<compile_context>
chip_gen: v5e
topology: v5e:2x2
jax: 0.10.0
libtpu: 0.0.40
codegen_flags: <defaults>
</compile_context>

<pallas_src>
import numpy as np
import jax
import jax.numpy as jnp
from jax.experimental import pallas as pl
from jax.experimental.pallas import tpu as pltpu


# ----------------------------------------------------------------------------
# Static configuration (toy-sized, consistent with the module)
# ----------------------------------------------------------------------------
GRID_SIZE = (16, 16, 1)          # (X, Y, Z)
SPARSE_SHAPE = (16, 16)          # grid_size[[1, 0]]  -> (Y, X)
INPUT_CHANNELS = 4
SST_D_MODELS = (8, 16)           # two SST blocks, each downsample x2
FUSE_UP_FILTER = 8               # NUM_UPSAMPLE_FILTER for both sources
FUSE_UP_STRIDES = (2, 4)         # UPSAMPLE_STRIDE for x_conv1 / x_conv2
MASK_RATIO = 0.5
NUM_PRD_POINTS = 4

LANE = 128                       # padded channel width (lane-dense everywhere)

# packed weight-tap layout:  conv1(9) conv2(9) deconv1(4) deconv2(16) conv_out(9) pred(1)
NTAP_C1, NTAP_C2, NTAP_D1, NTAP_D2, NTAP_CO = 9, 9, 4, 16, 9
OFF_C1 = 0
OFF_C2 = OFF_C1 + NTAP_C1      # 9
OFF_D1 = OFF_C2 + NTAP_C2      # 18
OFF_D2 = OFF_D1 + NTAP_D1      # 22
OFF_CO = OFF_D2 + NTAP_D2      # 38
OFF_PR = OFF_CO + NTAP_CO      # 47
N_TAPS = OFF_PR + 1            # 48


# ----------------------------------------------------------------------------
# The fused Pallas kernel (one grid step = one batch element)
# ----------------------------------------------------------------------------
def _spt_fused_kernel(x0_ref, s1_ref, s2_ref, u1_ref, u2_ref, so_ref,
                      w_ref, sc_ref, bi_ref,
                      xc1_ref, xc2_ref, sf_ref, pr_ref,
                      stk_ref):
    f32, bf16 = jnp.float32, jnp.bfloat16

    def affine(acc, row, relu=True):
        # folded BN (or linear bias): per-output-channel scale/bias, then ReLU
        out = acc * sc_ref[row:row + 1, :] + bi_ref[row:row + 1, :]
        return jnp.maximum(out, 0.0) if relu else out

    def conv(x_bf16, s_ref, w_off, n_tap, rows_out):
        # out = sum_t (S_t @ X) @ W_t ; S_t is a 0/1 spatial gather (exact in bf16)
        acc = jnp.zeros((rows_out, LANE), f32)
        for t in range(n_tap):                                   # static unroll
            sh = jnp.dot(s_ref[t], x_bf16, preferred_element_type=f32)
            acc = acc + jnp.dot(sh.astype(bf16), w_ref[w_off + t],
                                preferred_element_type=f32)
        return acc

    def deconv(x_bf16, u_ref, w_off, n_tap, rows_in):
        # stack per-tap channel matmuls into VMEM scratch, then one spatial
        # placement matmul with a 0/1 permutation operator (avoids tiny-K dots)
        for t in range(n_tap):                                   # static unroll
            stk_ref[t * rows_in:(t + 1) * rows_in, :] = jnp.dot(
                x_bf16, w_ref[w_off + t], preferred_element_type=f32)
        return jnp.dot(u_ref[...], stk_ref[...].astype(bf16),
                       preferred_element_type=f32)

    x0 = x0_ref[0].astype(bf16)                                  # (256, 128)

    # SST block stand-ins: 3x3 stride-2 conv + BN + ReLU
    h1 = affine(conv(x0, s1_ref, OFF_C1, NTAP_C1, 64), 0)        # (64, 128)
    xc1_ref[0] = h1
    h1b = h1.astype(bf16)

    h2 = affine(conv(h1b, s2_ref, OFF_C2, NTAP_C2, 16), 1)       # (16, 128)
    xc2_ref[0] = h2
    h2b = h2.astype(bf16)

    # decoder_deblocks: ConvTranspose(k=stride) + BN + ReLU
    up1 = affine(deconv(h1b, u1_ref, OFF_D1, NTAP_D1, 64), 2)    # lanes 0..7
    up2 = affine(deconv(h2b, u2_ref, OFF_D2, NTAP_D2, 16), 3)    # lanes 8..15
    cat = (up1 + up2).astype(bf16)                               # free concat

    # decoder_conv_out: 3x3 stride-1 conv + BN + ReLU
    h_out = affine(conv(cat, so_ref, OFF_CO, NTAP_CO, 256), 4)   # (256, 128)
    sf_ref[0] = h_out

    # decoder_pred: Linear (bias only) evaluated on every BEV cell; the
    # per-voxel gather happens outside (linear commutes with row gather).
    pr_ref[0] = affine(jnp.dot(h_out.astype(bf16), w_ref[OFF_PR],
                               preferred_element_type=f32), 5, relu=False)


def _spt_fused_call(dense, packed):
    """dense: (B, Y*X, 128) f32 BEV grid; packed: padded constant params."""
    B, P, _ = dense.shape

    def cspec(shape):
        return pl.BlockSpec(shape, lambda *_: (0,) * len(shape))

    return pl.pallas_call(
        _spt_fused_kernel,
        grid=(B,),
        in_specs=[
            pl.BlockSpec((1, P, LANE), lambda b: (b, 0, 0)),   # dense BEV input
            cspec(packed['S1'].shape),                         # conv1 taps
            cspec(packed['S2'].shape),                         # conv2 taps
            cspec(packed['U1'].shape),                         # deconv1 placement
            cspec(packed['U2'].shape),                         # deconv2 placement
            cspec(packed['SO'].shape),                         # conv_out taps
            cspec(packed['W'].shape),                          # all weights
            cspec(packed['scales'].shape),                     # folded BN scales
            cspec(packed['biases'].shape),                     # folded BN biases
        ],
        out_specs=(
            pl.BlockSpec((1, 64, LANE), lambda b: (b, 0, 0)),  # x_conv1 (padded)
            pl.BlockSpec((1, 16, LANE), lambda b: (b, 0, 0)),  # x_conv2 (padded)
            pl.BlockSpec((1, P, LANE), lambda b: (b, 0, 0)),   # spatial_features
            pl.BlockSpec((1, P, LANE), lambda b: (b, 0, 0)),   # pred (all cells)
        ),
        out_shape=(
            jax.ShapeDtypeStruct((B, 64, LANE), jnp.float32),
            jax.ShapeDtypeStruct((B, 16, LANE), jnp.float32),
            jax.ShapeDtypeStruct((B, P, LANE), jnp.float32),
            jax.ShapeDtypeStruct((B, P, LANE), jnp.float32),
        ),
        scratch_shapes=[pltpu.VMEM((P, LANE), jnp.float32)],
        compiler_params=pltpu.CompilerParams(
            dimension_semantics=("parallel",)),
    )(dense, packed['S1'], packed['S2'], packed['U1'], packed['U2'],
      packed['SO'], packed['W'], packed['scales'], packed['biases'])


# ----------------------------------------------------------------------------
# One-time (init) construction of spatial operators + padded/folded parameters
# ----------------------------------------------------------------------------
def _conv_tap_matrices(H, W, k, stride, pad):
    """0/1 gather matrices S_t: (k*k, Ho*Wo, H*W) for a kxk conv."""
    Ho = (H + 2 * pad - k) // stride + 1
    Wo = (W + 2 * pad - k) // stride + 1
    mats = np.zeros((k * k, Ho * Wo, H * W), np.float32)
    for ky in range(k):
        for kx in range(k):
            t = ky * k + kx
            for oy in range(Ho):
                for ox in range(Wo):
                    iy = oy * stride + ky - pad
                    ix = ox * stride + kx - pad
                    if 0 <= iy < H and 0 <= ix < W:
                        mats[t, oy * Wo + ox, iy * W + ix] = 1.0
    return mats


def _deconv_stacked_matrix(H, W, s):
    """Permutation placing stacked (tap-major) per-tap rows onto the upsampled grid."""
    Wo = W * s
    U = np.zeros((H * s * W * s, s * s * H * W), np.float32)
    for dy in range(s):
        for dx in range(s):
            t = dy * s + dx
            for y in range(H):
                for x in range(W):
                    U[(y * s + dy) * Wo + (x * s + dx), t * H * W + y * W + x] = 1.0
    return U


def bn_fold(gamma, beta, mean, var, eps=1e-3):
    # eps = 1e-3 matches nn.BatchNorm2d(..., eps=0.001) in the module
    scale = gamma / jnp.sqrt(var + eps)
    bias = beta - mean * scale
    return scale, bias


def init_params(key):
    ks = iter(jax.random.split(key, 32))
    p = {}

    def bn_params(k, c):
        k1, k2, k3 = jax.random.split(k, 3)
        gamma = 1.0 + 0.1 * jax.random.normal(k1, (c,))
        beta = 0.05 * jax.random.normal(k2, (c,))
        mean = 0.02 * jax.random.normal(k3, (c,))
        var = jnp.ones((c,))
        return bn_fold(gamma, beta, mean, var, eps=1e-3)

    # SST block stand-ins (dense stride-2 3x3 conv + BN + ReLU)
    p['sst_blocks'] = []
    cin = INPUT_CHANNELS
    for dm in SST_D_MODELS:
        w = 0.1 * jax.random.normal(next(ks), (dm, cin, 3, 3))
        s, b = bn_params(next(ks), dm)
        p['sst_blocks'].append({'w': w, 'bn_scale': s, 'bn_bias': b})
        cin = dm

    # decoder_deblocks: ConvTranspose2d + BN + ReLU per feature source
    p['deblocks'] = []
    for nf, stride in zip(SST_D_MODELS, FUSE_UP_STRIDES):
        w = 0.1 * jax.random.normal(next(ks), (nf, FUSE_UP_FILTER, stride, stride))
        s, b = bn_params(next(ks), FUSE_UP_FILTER)
        p['deblocks'].append({'w': w, 'bn_scale': s, 'bn_bias': b,
                              'stride': stride})

    # decoder_conv_out: Conv2d(cat_ch -> cat_ch // n_src, 3, pad 1) + BN + ReLU
    cat_ch = FUSE_UP_FILTER * len(SST_D_MODELS)           # 16
    out_ch = cat_ch // len(SST_D_MODELS)                  # 8
    w = 0.1 * jax.random.normal(next(ks), (out_ch, cat_ch, 3, 3))
    s, b = bn_params(next(ks), out_ch)
    p['conv_out'] = {'w': w, 'bn_scale': s, 'bn_bias': b}

    # decoder_pred: Linear(out_ch, NUM_PRD_POINTS * 3)
    p['pred_w'] = 0.1 * jax.random.normal(next(ks), (NUM_PRD_POINTS * 3, out_ch))
    p['pred_b'] = 0.05 * jax.random.normal(next(ks), (NUM_PRD_POINTS * 3,))
    return p


def pack_params(p):
    """Pad / fold everything ONCE (outside jit).  All padded lanes are exactly 0."""
    W = np.zeros((N_TAPS, LANE, LANE), np.float32)
    scales = np.zeros((8, LANE), np.float32)
    biases = np.zeros((8, LANE), np.float32)

    def put_conv(off, w, col_off=0):
        co, ci, k, _ = w.shape
        wn = np.asarray(w)
        for ky in range(k):
            for kx in range(k):
                W[off + ky * k + kx, :ci, col_off:col_off + co] = wn[:, :, ky, kx].T

    def put_deconv(off, w, col_off=0):
        ci, co, s, _ = w.shape
        wn = np.asarray(w)
        for dy in range(s):
            for dx in range(s):
                W[off + dy * s + dx, :ci, col_off:col_off + co] = wn[:, :, dy, dx]

    def put_affine(row, scale, bias, col_off=0):
        n = scale.shape[0]
        scales[row, col_off:col_off + n] = np.asarray(scale)
        biases[row, col_off:col_off + n] = np.asarray(bias)

    put_conv(OFF_C1, p['sst_blocks'][0]['w'])
    put_conv(OFF_C2, p['sst_blocks'][1]['w'])
    put_deconv(OFF_D1, p['deblocks'][0]['w'], col_off=0)
    # deconv2 output channels land on lanes 8..15 -> the channel concat before
    # conv_out becomes a plain add of disjoint lanes inside the kernel.
    put_deconv(OFF_D2, p['deblocks'][1]['w'], col_off=FUSE_UP_FILTER)
    put_conv(OFF_CO, p['conv_out']['w'])
    W[OFF_PR, :p['pred_w'].shape[1], :NUM_PRD_POINTS * 3] = np.asarray(p['pred_w']).T

    put_affine(0, p['sst_blocks'][0]['bn_scale'], p['sst_blocks'][0]['bn_bias'])
    put_affine(1, p['sst_blocks'][1]['bn_scale'], p['sst_blocks'][1]['bn_bias'])
    put_affine(2, p['deblocks'][0]['bn_scale'], p['deblocks'][0]['bn_bias'])
    put_affine(3, p['deblocks'][1]['bn_scale'], p['deblocks'][1]['bn_bias'],
               col_off=FUSE_UP_FILTER)
    put_affine(4, p['conv_out']['bn_scale'], p['conv_out']['bn_bias'])
    put_affine(5, np.ones((NUM_PRD_POINTS * 3,), np.float32), p['pred_b'])

    Y, X = SPARSE_SHAPE
    S1 = _conv_tap_matrices(Y, X, 3, 2, 1)                 # (9, 64, 256)
    S2 = _conv_tap_matrices(Y // 2, X // 2, 3, 2, 1)       # (9, 16, 64)
    SO = _conv_tap_matrices(Y, X, 3, 1, 1)                 # (9, 256, 256)
    U1 = _deconv_stacked_matrix(Y // 2, X // 2, FUSE_UP_STRIDES[0])   # (256, 256)
    U2 = _deconv_stacked_matrix(Y // 4, X // 4, FUSE_UP_STRIDES[1])   # (256, 256)

    return {
        'W': jnp.asarray(W, jnp.bfloat16),          # weights are bf16 (f32 accum)
        'scales': jnp.asarray(scales, jnp.float32),
        'biases': jnp.asarray(biases, jnp.float32),
        'S1': jnp.asarray(S1, jnp.bfloat16),        # 0/1 operators exact in bf16
        'S2': jnp.asarray(S2, jnp.bfloat16),
        'SO': jnp.asarray(SO, jnp.bfloat16),
        'U1': jnp.asarray(U1, jnp.bfloat16),
        'U2': jnp.asarray(U2, jnp.bfloat16),
    }


# ----------------------------------------------------------------------------
# Forward pass (mirrors SPTBackboneMAE.forward + target_assigner pred path)
# Fully jittable: no host syncs, vectorized per-batch masking.
# ----------------------------------------------------------------------------
def forward(packed, voxel_features, voxel_coords, mask_key, *, batch_size):
    Y, X = SPARSE_SHAPE
    P = Y * X
    n_vox = voxel_features.shape[0]
    b_idx = voxel_coords[:, 0]
    y_idx = voxel_coords[:, 2]
    x_idx = voxel_coords[:, 3]

    # common_utils.random_masking stand-in: per-batch random mask (1 = masked),
    # vectorized (no data-dependent host syncs, no contiguity assumption).
    scores = jax.random.uniform(mask_key, (n_vox,), jnp.float32)
    arange = jnp.arange(n_vox, dtype=jnp.int32)
    voxel_mae_mask = jnp.zeros((n_vox,), jnp.float32)
    for b in range(batch_size):                       # static Python loop
        sel = b_idx == b
        n_b = jnp.sum(sel)
        n_mask = jnp.floor(MASK_RATIO * n_b.astype(jnp.float32)).astype(jnp.int32)
        s_b = jnp.where(sel, scores, jnp.inf)
        order = jnp.argsort(s_b)
        ranks = jnp.zeros((n_vox,), jnp.int32).at[order].set(arange)
        voxel_mae_mask = jnp.where(sel & (ranks < n_mask), 1.0, voxel_mae_mask)

    # Densify visible (mask == 0) voxels onto a lane-padded (B, Y*X, 128) grid.
    vis = voxel_features * (1.0 - voxel_mae_mask)[:, None]
    vis_pad = jnp.zeros((n_vox, LANE), jnp.float32).at[:, :INPUT_CHANNELS].set(vis)
    flat = y_idx * X + x_idx
    dense = jnp.zeros((batch_size, P, LANE), jnp.float32).at[b_idx, flat].add(vis_pad)

    # One fused Pallas kernel for the full dense pipeline.
    xc1_p, xc2_p, sf_p, pred_p = _spt_fused_call(dense, packed)

    # Boundary relayout to the NCHW dict contract.
    c1, c2 = SST_D_MODELS
    out_ch = FUSE_UP_FILTER * len(SST_D_MODELS) // len(SST_D_MODELS)   # 8
    x_conv1 = xc1_p[:, :, :c1].reshape(batch_size, Y // 2, X // 2, c1).transpose(0, 3, 1, 2)
    x_conv2 = xc2_p[:, :, :c2].reshape(batch_size, Y // 4, X // 4, c2).transpose(0, 3, 1, 2)
    spatial_features = sf_p[:, :, :out_ch].reshape(batch_size, Y, X, out_ch).transpose(0, 3, 1, 2)

    multi_scale_3d_features = {'x_conv1': x_conv1, 'x_conv2': x_conv2}
    multi_scale_3d_strides = {'x_conv1': Y // (Y // 2), 'x_conv2': Y // (Y // 4)}
    spatial_features_stride = multi_scale_3d_strides['x_conv1'] // FUSE_UP_STRIDES[0]

    # Per-voxel gather: spatial_features.permute(0,2,3,1)[b, y, x]; decoder_pred
    # was applied to every BEV cell in-kernel (linear commutes with row gather).
    all_voxel_shuffle_inds = jnp.arange(n_vox, dtype=jnp.int32)
    all_pyramid_voxel_features = sf_p[b_idx, flat, :out_ch]
    pred_points = pred_p[b_idx, flat, :NUM_PRD_POINTS * 3].reshape(
        n_vox, NUM_PRD_POINTS, 3)

    forward_ret_dict = {'pred_points': pred_points,
                        'mask': voxel_mae_mask[all_voxel_shuffle_inds]}

    return {
        'spatial_features': spatial_features,
        'spatial_features_stride': spatial_features_stride,
        'multi_scale_3d_features': multi_scale_3d_features,
        'multi_scale_3d_strides': multi_scale_3d_strides,
        'voxel_features': all_pyramid_voxel_features,
        'voxel_coords': voxel_coords,
        'voxel_shuffle_inds': all_voxel_shuffle_inds,
        'voxel_mae_mask': voxel_mae_mask,
        'forward_ret_dict': forward_ret_dict,
    }


# ----------------------------------------------------------------------------
if __name__ == "__main__":
    key = jax.random.PRNGKey(0)
    k_param, k_feat, k_coord, k_mask = jax.random.split(key, 4)

    batch_size = 2
    n_per_batch = 40
    Y, X = SPARSE_SHAPE

    # Unique voxel coords per batch: (batch_idx, z=0, y, x)
    coords = []
    for b in range(batch_size):
        cells = jax.random.choice(jax.random.fold_in(k_coord, b), Y * X,
                                  (n_per_batch,), replace=False)
        coords.append(jnp.stack([
            jnp.full((n_per_batch,), b, jnp.int32),
            jnp.zeros((n_per_batch,), jnp.int32),
            (cells // X).astype(jnp.int32),
            (cells % X).astype(jnp.int32)], axis=1))
    voxel_coords = jnp.concatenate(coords, axis=0)                 # (80, 4)
    voxel_features = jax.random.normal(
        k_feat, (voxel_coords.shape[0], INPUT_CHANNELS), jnp.float32)

    # module assertion (host-side, outside the jitted forward)
    assert bool(jnp.all(voxel_coords[:, 1] == 0))

    params = init_params(k_param)
    packed = pack_params(params)                 # one-time pad/fold/operator build

    fwd = jax.jit(forward, static_argnames=('batch_size',))
    out = fwd(packed, voxel_features, voxel_coords, k_mask, batch_size=batch_size)

    jax.block_until_ready(out['spatial_features'])
    jax.block_until_ready(out['forward_ret_dict']['pred_points'])

    assert out['spatial_features'].shape == (batch_size, 8, GRID_SIZE[1], GRID_SIZE[0])
    assert out['voxel_features'].shape == (voxel_coords.shape[0], 8)
    assert out['forward_ret_dict']['pred_points'].shape == (
        voxel_coords.shape[0], NUM_PRD_POINTS, 3)
    assert out['multi_scale_3d_features']['x_conv1'].shape == (batch_size, 8, 8, 8)
    assert out['multi_scale_3d_features']['x_conv2'].shape == (batch_size, 16, 4, 4)
    print("KERNEL_OK")
</pallas_src>

<mosaic_0001>
module attributes {stable_mosaic.version = 11 : i64} {
  func.func @_spt_fused_kernel(%arg0: i32, %arg1: memref<1x256x128xf32, #tpu.memory_space<vmem>>, %arg2: memref<9x64x256xbf16, #tpu.memory_space<vmem>>, %arg3: memref<9x16x64xbf16, #tpu.memory_space<vmem>>, %arg4: memref<256x256xbf16, #tpu.memory_space<vmem>>, %arg5: memref<256x256xbf16, #tpu.memory_space<vmem>>, %arg6: memref<9x256x256xbf16, #tpu.memory_space<vmem>>, %arg7: memref<48x128x128xbf16, #tpu.memory_space<vmem>>, %arg8: memref<8x128xf32, #tpu.memory_space<vmem>>, %arg9: memref<8x128xf32, #tpu.memory_space<vmem>>, %arg10: memref<1x64x128xf32, #tpu.memory_space<vmem>>, %arg11: memref<1x16x128xf32, #tpu.memory_space<vmem>>, %arg12: memref<1x256x128xf32, #tpu.memory_space<vmem>>, %arg13: memref<1x256x128xf32, #tpu.memory_space<vmem>>, %arg14: memref<256x128xf32, #tpu.memory_space<vmem>>) attributes {dimension_semantics = [#tpu.dimension_semantics<parallel>], iteration_bounds = array<i64: 2>, scalar_prefetch = 0 : i64, scratch_operands = 1 : i64, tpu.core_type = #tpu.core_type<tc>, window_params = [{transform_indices = @transform_0, window_bounds = array<i64: 1, 256, 128>}, {pipeline_mode = #tpu.pipeline_mode<synchronous>, transform_indices = @transform_1, window_bounds = array<i64: 9, 64, 256>}, {pipeline_mode = #tpu.pipeline_mode<synchronous>, transform_indices = @transform_2, window_bounds = array<i64: 9, 16, 64>}, {pipeline_mode = #tpu.pipeline_mode<synchronous>, transform_indices = @transform_3, window_bounds = array<i64: 256, 256>}, {pipeline_mode = #tpu.pipeline_mode<synchronous>, transform_indices = @transform_4, window_bounds = array<i64: 256, 256>}, {pipeline_mode = #tpu.pipeline_mode<synchronous>, transform_indices = @transform_5, window_bounds = array<i64: 9, 256, 256>}, {pipeline_mode = #tpu.pipeline_mode<synchronous>, transform_indices = @transform_6, window_bounds = array<i64: 48, 128, 128>}, {pipeline_mode = #tpu.pipeline_mode<synchronous>, transform_indices = @transform_7, window_bounds = array<i64: 8, 128>}, {pipeline_mode = #tpu.pipeline_mode<synchronous>, transform_indices = @transform_8, window_bounds = array<i64: 8, 128>}, {transform_indices = @transform_9, window_bounds = array<i64: 1, 64, 128>}, {transform_indices = @transform_10, window_bounds = array<i64: 1, 16, 128>}, {transform_indices = @transform_11, window_bounds = array<i64: 1, 256, 128>}, {transform_indices = @transform_12, window_bounds = array<i64: 1, 256, 128>}]} {
    %c0 = arith.constant 0 : index
    %c0_0 = arith.constant 0 : index
    %c0_1 = arith.constant 0 : index
    %0 = vector.load %arg1[%c0, %c0_0, %c0_1] : memref<1x256x128xf32, #tpu.memory_space<vmem>>, vector<1x256x128xf32>
    %1 = vector.shape_cast %0 : vector<1x256x128xf32> to vector<256x128xf32>
    %2 = arith.truncf %1 : vector<256x128xf32> to vector<256x128xbf16>
    %cst = arith.constant 0.000000e+00 : f32
    %3 = vector.broadcast %cst : f32 to vector<64x128xf32>
    %c0_2 = arith.constant 0 : index
    %c0_3 = arith.constant 0 : index
    %c0_4 = arith.constant 0 : index
    %4 = vector.load %arg2[%c0_2, %c0_3, %c0_4] : memref<9x64x256xbf16, #tpu.memory_space<vmem>>, vector<1x64x256xbf16>
    %5 = vector.shape_cast %4 : vector<1x64x256xbf16> to vector<64x256xbf16>
    %cst_5 = arith.constant dense<0.000000e+00> : vector<64x128xf32>
    %6 = tpu.matmul %5, %2, %cst_5 {dimension_numbers = #tpu.dot_dimension_numbers<[1], [0], [0], [1], [0, 0, 1, 1], [], []>} : vector<64x256xbf16>, vector<256x128xbf16>, vector<64x128xf32> -> vector<64x128xf32>
    %7 = arith.truncf %6 : vector<64x128xf32> to vector<64x128xbf16>
    %c0_6 = arith.constant 0 : index
    %c0_7 = arith.constant 0 : index
    %c0_8 = arith.constant 0 : index
    %8 = vector.load %arg7[%c0_6, %c0_7, %c0_8] : memref<48x128x128xbf16, #tpu.memory_space<vmem>>, vector<1x128x128xbf16>
    %9 = vector.shape_cast %8 : vector<1x128x128xbf16> to vector<128x128xbf16>
    %cst_9 = arith.constant dense<0.000000e+00> : vector<64x128xf32>
    %10 = tpu.matmul %7, %9, %cst_9 {dimension_numbers = #tpu.dot_dimension_numbers<[1], [0], [0], [1], [0, 0, 1, 1], [], []>} : vector<64x128xbf16>, vector<128x128xbf16>, vector<64x128xf32> -> vector<64x128xf32>
    %11 = arith.addf %3, %10 : vector<64x128xf32>
    %c1 = arith.constant 1 : index
    %c0_10 = arith.constant 0 : index
    %c0_11 = arith.constant 0 : index
    %12 = vector.load %arg2[%c1, %c0_10, %c0_11] : memref<9x64x256xbf16, #tpu.memory_space<vmem>>, vector<1x64x256xbf16>
    %13 = vector.shape_cast %12 : vector<1x64x256xbf16> to vector<64x256xbf16>
    %cst_12 = arith.constant dense<0.000000e+00> : vector<64x128xf32>
    %14 = tpu.matmul %13, %2, %cst_12 {dimension_numbers = #tpu.dot_dimension_numbers<[1], [0], [0], [1], [0, 0, 1, 1], [], []>} : vector<64x256xbf16>, vector<256x128xbf16>, vector<64x128xf32> -> vector<64x128xf32>
    %15 = arith.truncf %14 : vector<64x128xf32> to vector<64x128xbf16>
    %c1_13 = arith.constant 1 : index
    %c0_14 = arith.constant 0 : index
    %c0_15 = arith.constant 0 : index
    %16 = vector.load %arg7[%c1_13, %c0_14, %c0_15] : memref<48x128x128xbf16, #tpu.memory_space<vmem>>, vector<1x128x128xbf16>
    %17 = vector.shape_cast %16 : vector<1x128x128xbf16> to vector<128x128xbf16>
    %cst_16 = arith.constant dense<0.000000e+00> : vector<64x128xf32>
    %18 = tpu.matmul %15, %17, %cst_16 {dimension_numbers = #tpu.dot_dimension_numbers<[1], [0], [0], [1], [0, 0, 1, 1], [], []>} : vector<64x128xbf16>, vector<128x128xbf16>, vector<64x128xf32> -> vector<64x128xf32>
    %19 = arith.addf %11, %18 : vector<64x128xf32>
    %c2 = arith.constant 2 : index
    %c0_17 = arith.constant 0 : index
    %c0_18 = arith.constant 0 : index
    %20 = vector.load %arg2[%c2, %c0_17, %c0_18] : memref<9x64x256xbf16, #tpu.memory_space<vmem>>, vector<1x64x256xbf16>
    %21 = vector.shape_cast %20 : vector<1x64x256xbf16> to vector<64x256xbf16>
    %cst_19 = arith.constant dense<0.000000e+00> : vector<64x128xf32>
    %22 = tpu.matmul %21, %2, %cst_19 {dimension_numbers = #tpu.dot_dimension_numbers<[1], [0], [0], [1], [0, 0, 1, 1], [], []>} : vector<64x256xbf16>, vector<256x128xbf16>, vector<64x128xf32> -> vector<64x128xf32>
    %23 = arith.truncf %22 : vector<64x128xf32> to vector<64x128xbf16>
    %c2_20 = arith.constant 2 : index
    %c0_21 = arith.constant 0 : index
    %c0_22 = arith.constant 0 : index
    %24 = vector.load %arg7[%c2_20, %c0_21, %c0_22] : memref<48x128x128xbf16, #tpu.memory_space<vmem>>, vector<1x128x128xbf16>
    %25 = vector.shape_cast %24 : vector<1x128x128xbf16> to vector<128x128xbf16>
    %cst_23 = arith.constant dense<0.000000e+00> : vector<64x128xf32>
    %26 = tpu.matmul %23, %25, %cst_23 {dimension_numbers = #tpu.dot_dimension_numbers<[1], [0], [0], [1], [0, 0, 1, 1], [], []>} : vector<64x128xbf16>, vector<128x128xbf16>, vector<64x128xf32> -> vector<64x128xf32>
    %27 = arith.addf %19, %26 : vector<64x128xf32>
    %c3 = arith.constant 3 : index
    %c0_24 = arith.constant 0 : index
    %c0_25 = arith.constant 0 : index
    %28 = vector.load %arg2[%c3, %c0_24, %c0_25] : memref<9x64x256xbf16, #tpu.memory_space<vmem>>, vector<1x64x256xbf16>
    %29 = vector.shape_cast %28 : vector<1x64x256xbf16> to vector<64x256xbf16>
    %cst_26 = arith.constant dense<0.000000e+00> : vector<64x128xf32>
    %30 = tpu.matmul %29, %2, %cst_26 {dimension_numbers = #tpu.dot_dimension_numbers<[1], [0], [0], [1], [0, 0, 1, 1], [], []>} : vector<64x256xbf16>, vector<256x128xbf16>, vector<64x128xf32> -> vector<64x128xf32>
    %31 = arith.truncf %30 : vector<64x128xf32> to vector<64x128xbf16>
    %c3_27 = arith.constant 3 : index
    %c0_28 = arith.constant 0 : index
    %c0_29 = arith.constant 0 : index
    %32 = vector.load %arg7[%c3_27, %c0_28, %c0_29] : memref<48x128x128xbf16, #tpu.memory_space<vmem>>, vector<1x128x128xbf16>
    %33 = vector.shape_cast %32 : vector<1x128x128xbf16> to vector<128x128xbf16>
    %cst_30 = arith.constant dense<0.000000e+00> : vector<64x128xf32>
    %34 = tpu.matmul %31, %33, %cst_30 {dimension_numbers = #tpu.dot_dimension_numbers<[1], [0], [0], [1], [0, 0, 1, 1], [], []>} : vector<64x128xbf16>, vector<128x128xbf16>, vector<64x128xf32> -> vector<64x128xf32>
    %35 = arith.addf %27, %34 : vector<64x128xf32>
    %c4 = arith.constant 4 : index
    %c0_31 = arith.constant 0 : index
    %c0_32 = arith.constant 0 : index
    %36 = vector.load %arg2[%c4, %c0_31, %c0_32] : memref<9x64x256xbf16, #tpu.memory_space<vmem>>, vector<1x64x256xbf16>
    %37 = vector.shape_cast %36 : vector<1x64x256xbf16> to vector<64x256xbf16>
    %cst_33 = arith.constant dense<0.000000e+00> : vector<64x128xf32>
    %38 = tpu.matmul %37, %2, %cst_33 {dimension_numbers = #tpu.dot_dimension_numbers<[1], [0], [0], [1], [0, 0, 1, 1], [], []>} : vector<64x256xbf16>, vector<256x128xbf16>, vector<64x128xf32> -> vector<64x128xf32>
    %39 = arith.truncf %38 : vector<64x128xf32> to vector<64x128xbf16>
    %c4_34 = arith.constant 4 : index
    %c0_35 = arith.constant 0 : index
    %c0_36 = arith.constant 0 : index
    %40 = vector.load %arg7[%c4_34, %c0_35, %c0_36] : memref<48x128x128xbf16, #tpu.memory_space<vmem>>, vector<1x128x128xbf16>
    %41 = vector.shape_cast %40 : vector<1x128x128xbf16> to vector<128x128xbf16>
    %cst_37 = arith.constant dense<0.000000e+00> : vector<64x128xf32>
    %42 = tpu.matmul %39, %41, %cst_37 {dimension_numbers = #tpu.dot_dimension_numbers<[1], [0], [0], [1], [0, 0, 1, 1], [], []>} : vector<64x128xbf16>, vector<128x128xbf16>, vector<64x128xf32> -> vector<64x128xf32>
    %43 = arith.addf %35, %42 : vector<64x128xf32>
    %c5 = arith.constant 5 : index
    %c0_38 = arith.constant 0 : index
    %c0_39 = arith.constant 0 : index
    %44 = vector.load %arg2[%c5, %c0_38, %c0_39] : memref<9x64x256xbf16, #tpu.memory_space<vmem>>, vector<1x64x256xbf16>
    %45 = vector.shape_cast %44 : vector<1x64x256xbf16> to vector<64x256xbf16>
    %cst_40 = arith.constant dense<0.000000e+00> : vector<64x128xf32>
    %46 = tpu.matmul %45, %2, %cst_40 {dimension_numbers = #tpu.dot_dimension_numbers<[1], [0], [0], [1], [0, 0, 1, 1], [], []>} : vector<64x256xbf16>, vector<256x128xbf16>, vector<64x128xf32> -> vector<64x128xf32>
    %47 = arith.truncf %46 : vector<64x128xf32> to vector<64x128xbf16>
    %c5_41 = arith.constant 5 : index
    %c0_42 = arith.constant 0 : index
    %c0_43 = arith.constant 0 : index
    %48 = vector.load %arg7[%c5_41, %c0_42, %c0_43] : memref<48x128x128xbf16, #tpu.memory_space<vmem>>, vector<1x128x128xbf16>
    %49 = vector.shape_cast %48 : vector<1x128x128xbf16> to vector<128x128xbf16>
    %cst_44 = arith.constant dense<0.000000e+00> : vector<64x128xf32>
    %50 = tpu.matmul %47, %49, %cst_44 {dimension_numbers = #tpu.dot_dimension_numbers<[1], [0], [0], [1], [0, 0, 1, 1], [], []>} : vector<64x128xbf16>, vector<128x128xbf16>, vector<64x128xf32> -> vector<64x128xf32>
    %51 = arith.addf %43, %50 : vector<64x128xf32>
    %c6 = arith.constant 6 : index
    %c0_45 = arith.constant 0 : index
    %c0_46 = arith.constant 0 : index
    %52 = vector.load %arg2[%c6, %c0_45, %c0_46] : memref<9x64x256xbf16, #tpu.memory_space<vmem>>, vector<1x64x256xbf16>
    %53 = vector.shape_cast %52 : vector<1x64x256xbf16> to vector<64x256xbf16>
    %cst_47 = arith.constant dense<0.000000e+00> : vector<64x128xf32>
    %54 = tpu.matmul %53, %2, %cst_47 {dimension_numbers = #tpu.dot_dimension_numbers<[1], [0], [0], [1], [0, 0, 1, 1], [], []>} : vector<64x256xbf16>, vector<256x128xbf16>, vector<64x128xf32> -> vector<64x128xf32>
    %55 = arith.truncf %54 : vector<64x128xf32> to vector<64x128xbf16>
    %c6_48 = arith.constant 6 : index
    %c0_49 = arith.constant 0 : index
    %c0_50 = arith.constant 0 : index
    %56 = vector.load %arg7[%c6_48, %c0_49, %c0_50] : memref<48x128x128xbf16, #tpu.memory_space<vmem>>, vector<1x128x128xbf16>
    %57 = vector.shape_cast %56 : vector<1x128x128xbf16> to vector<128x128xbf16>
    %cst_51 = arith.constant dense<0.000000e+00> : vector<64x128xf32>
    %58 = tpu.matmul %55, %57, %cst_51 {dimension_numbers = #tpu.dot_dimension_numbers<[1], [0], [0], [1], [0, 0, 1, 1], [], []>} : vector<64x128xbf16>, vector<128x128xbf16>, vector<64x128xf32> -> vector<64x128xf32>
    %59 = arith.addf %51, %58 : vector<64x128xf32>
    %c7 = arith.constant 7 : index
    %c0_52 = arith.constant 0 : index
    %c0_53 = arith.constant 0 : index
    %60 = vector.load %arg2[%c7, %c0_52, %c0_53] : memref<9x64x256xbf16, #tpu.memory_space<vmem>>, vector<1x64x256xbf16>
    %61 = vector.shape_cast %60 : vector<1x64x256xbf16> to vector<64x256xbf16>
    %cst_54 = arith.constant dense<0.000000e+00> : vector<64x128xf32>
    %62 = tpu.matmul %61, %2, %cst_54 {dimension_numbers = #tpu.dot_dimension_numbers<[1], [0], [0], [1], [0, 0, 1, 1], [], []>} : vector<64x256xbf16>, vector<256x128xbf16>, vector<64x128xf32> -> vector<64x128xf32>
    %63 = arith.truncf %62 : vector<64x128xf32> to vector<64x128xbf16>
    %c7_55 = arith.constant 7 : index
    %c0_56 = arith.constant 0 : index
    %c0_57 = arith.constant 0 : index
    %64 = vector.load %arg7[%c7_55, %c0_56, %c0_57] : memref<48x128x128xbf16, #tpu.memory_space<vmem>>, vector<1x128x128xbf16>
    %65 = vector.shape_cast %64 : vector<1x128x128xbf16> to vector<128x128xbf16>
    %cst_58 = arith.constant dense<0.000000e+00> : vector<64x128xf32>
    %66 = tpu.matmul %63, %65, %cst_58 {dimension_numbers = #tpu.dot_dimension_numbers<[1], [0], [0], [1], [0, 0, 1, 1], [], []>} : vector<64x128xbf16>, vector<128x128xbf16>, vector<64x128xf32> -> vector<64x128xf32>
    %67 = arith.addf %59, %66 : vector<64x128xf32>
    %c8 = arith.constant 8 : index
    %c0_59 = arith.constant 0 : index
    %c0_60 = arith.constant 0 : index
    %68 = vector.load %arg2[%c8, %c0_59, %c0_60] : memref<9x64x256xbf16, #tpu.memory_space<vmem>>, vector<1x64x256xbf16>
    %69 = vector.shape_cast %68 : vector<1x64x256xbf16> to vector<64x256xbf16>
    %cst_61 = arith.constant dense<0.000000e+00> : vector<64x128xf32>
    %70 = tpu.matmul %69, %2, %cst_61 {dimension_numbers = #tpu.dot_dimension_numbers<[1], [0], [0], [1], [0, 0, 1, 1], [], []>} : vector<64x256xbf16>, vector<256x128xbf16>, vector<64x128xf32> -> vector<64x128xf32>
    %71 = arith.truncf %70 : vector<64x128xf32> to vector<64x128xbf16>
    %c8_62 = arith.constant 8 : index
    %c0_63 = arith.constant 0 : index
    %c0_64 = arith.constant 0 : index
    %72 = vector.load %arg7[%c8_62, %c0_63, %c0_64] : memref<48x128x128xbf16, #tpu.memory_space<vmem>>, vector<1x128x128xbf16>
    %73 = vector.shape_cast %72 : vector<1x128x128xbf16> to vector<128x128xbf16>
    %cst_65 = arith.constant dense<0.000000e+00> : vector<64x128xf32>
    %74 = tpu.matmul %71, %73, %cst_65 {dimension_numbers = #tpu.dot_dimension_numbers<[1], [0], [0], [1], [0, 0, 1, 1], [], []>} : vector<64x128xbf16>, vector<128x128xbf16>, vector<64x128xf32> -> vector<64x128xf32>
    %75 = arith.addf %67, %74 : vector<64x128xf32>
    %c0_66 = arith.constant 0 : index
    %c0_67 = arith.constant 0 : index
    %76 = vector.load %arg8[%c0_66, %c0_67] : memref<8x128xf32, #tpu.memory_space<vmem>>, vector<1x128xf32>
    %77 = vector.broadcast %76 : vector<1x128xf32> to vector<64x128xf32>
    %78 = arith.mulf %75, %77 : vector<64x128xf32>
    %c0_68 = arith.constant 0 : index
    %c0_69 = arith.constant 0 : index
    %79 = vector.load %arg9[%c0_68, %c0_69] : memref<8x128xf32, #tpu.memory_space<vmem>>, vector<1x128xf32>
    %80 = vector.broadcast %79 : vector<1x128xf32> to vector<64x128xf32>
    %81 = arith.addf %78, %80 : vector<64x128xf32>
    %cst_70 = arith.constant 0.000000e+00 : f32
    %82 = vector.broadcast %cst_70 : f32 to vector<64x128xf32>
    %83 = arith.maximumf %81, %82 : vector<64x128xf32>
    %c0_71 = arith.constant 0 : index
    %c0_72 = arith.constant 0 : index
    %c0_73 = arith.constant 0 : index
    %84 = vector.load %arg10[%c0_71, %c0_72, %c0_73] : memref<1x64x128xf32, #tpu.memory_space<vmem>>, vector<1x64x128xf32>
    %85 = vector.shape_cast %84 : vector<1x64x128xf32> to vector<64x128xf32>
    %86 = vector.shape_cast %83 : vector<64x128xf32> to vector<1x64x128xf32>
    tpu.vector_store %arg10[%c0_71, %c0_72, %c0_73], %86 {strides = array<i32>} : memref<1x64x128xf32, #tpu.memory_space<vmem>>, vector<1x64x128xf32>,
    %87 = arith.truncf %83 : vector<64x128xf32> to vector<64x128xbf16>
    %cst_74 = arith.constant 0.000000e+00 : f32
    %88 = vector.broadcast %cst_74 : f32 to vector<16x128xf32>
    %c0_75 = arith.constant 0 : index
    %c0_76 = arith.constant 0 : index
    %c0_77 = arith.constant 0 : index
    %89 = vector.load %arg3[%c0_75, %c0_76, %c0_77] : memref<9x16x64xbf16, #tpu.memory_space<vmem>>, vector<1x16x64xbf16>
    %90 = vector.shape_cast %89 : vector<1x16x64xbf16> to vector<16x64xbf16>
    %cst_78 = arith.constant dense<0.000000e+00> : vector<16x128xf32>
    %91 = tpu.matmul %90, %87, %cst_78 {dimension_numbers = #tpu.dot_dimension_numbers<[1], [0], [0], [1], [0, 0, 1, 1], [], []>} : vector<16x64xbf16>, vector<64x128xbf16>, vector<16x128xf32> -> vector<16x128xf32>
    %92 = arith.truncf %91 : vector<16x128xf32> to vector<16x128xbf16>
    %c9 = arith.constant 9 : index
    %c0_79 = arith.constant 0 : index
    %c0_80 = arith.constant 0 : index
    %93 = vector.load %arg7[%c9, %c0_79, %c0_80] : memref<48x128x128xbf16, #tpu.memory_space<vmem>>, vector<1x128x128xbf16>
    %94 = vector.shape_cast %93 : vector<1x128x128xbf16> to vector<128x128xbf16>
    %cst_81 = arith.constant dense<0.000000e+00> : vector<16x128xf32>
    %95 = tpu.matmul %92, %94, %cst_81 {dimension_numbers = #tpu.dot_dimension_numbers<[1], [0], [0], [1], [0, 0, 1, 1], [], []>} : vector<16x128xbf16>, vector<128x128xbf16>, vector<16x128xf32> -> vector<16x128xf32>
    %96 = arith.addf %88, %95 : vector<16x128xf32>
    %c1_82 = arith.constant 1 : index
    %c0_83 = arith.constant 0 : index
    %c0_84 = arith.constant 0 : index
    %97 = vector.load %arg3[%c1_82, %c0_83, %c0_84] : memref<9x16x64xbf16, #tpu.memory_space<vmem>>, vector<1x16x64xbf16>
    %98 = vector.shape_cast %97 : vector<1x16x64xbf16> to vector<16x64xbf16>
    %cst_85 = arith.constant dense<0.000000e+00> : vector<16x128xf32>
    %99 = tpu.matmul %98, %87, %cst_85 {dimension_numbers = #tpu.dot_dimension_numbers<[1], [0], [0], [1], [0, 0, 1, 1], [], []>} : vector<16x64xbf16>, vector<64x128xbf16>, vector<16x128xf32> -> vector<16x128xf32>
    %100 = arith.truncf %99 : vector<16x128xf32> to vector<16x128xbf16>
    %c10 = arith.constant 10 : index
    %c0_86 = arith.constant 0 : index
    %c0_87 = arith.constant 0 : index
    %101 = vector.load %arg7[%c10, %c0_86, %c0_87] : memref<48x128x128xbf16, #tpu.memory_space<vmem>>, vector<1x128x128xbf16>
    %102 = vector.shape_cast %101 : vector<1x128x128xbf16> to vector<128x128xbf16>
    %cst_88 = arith.constant dense<0.000000e+00> : vector<16x128xf32>
    %103 = tpu.matmul %100, %102, %cst_88 {dimension_numbers = #tpu.dot_dimension_numbers<[1], [0], [0], [1], [0, 0, 1, 1], [], []>} : vector<16x128xbf16>, vector<128x128xbf16>, vector<16x128xf32> -> vector<16x128xf32>
    %104 = arith.addf %96, %103 : vector<16x128xf32>
    %c2_89 = arith.constant 2 : index
    %c0_90 = arith.constant 0 : index
    %c0_91 = arith.constant 0 : index
    %105 = vector.load %arg3[%c2_89, %c0_90, %c0_91] : memref<9x16x64xbf16, #tpu.memory_space<vmem>>, vector<1x16x64xbf16>
    %106 = vector.shape_cast %105 : vector<1x16x64xbf16> to vector<16x64xbf16>
    %cst_92 = arith.constant dense<0.000000e+00> : vector<16x128xf32>
    %107 = tpu.matmul %106, %87, %cst_92 {dimension_numbers = #tpu.dot_dimension_numbers<[1], [0], [0], [1], [0, 0, 1, 1], [], []>} : vector<16x64xbf16>, vector<64x128xbf16>, vector<16x128xf32> -> vector<16x128xf32>
    %108 = arith.truncf %107 : vector<16x128xf32> to vector<16x128xbf16>
    %c11 = arith.constant 11 : index
    %c0_93 = arith.constant 0 : index
    %c0_94 = arith.constant 0 : index
    %109 = vector.load %arg7[%c11, %c0_93, %c0_94] : memref<48x128x128xbf16, #tpu.memory_space<vmem>>, vector<1x128x128xbf16>
    %110 = vector.shape_cast %109 : vector<1x128x128xbf16> to vector<128x128xbf16>
    %cst_95 = arith.constant dense<0.000000e+00> : vector<16x128xf32>
    %111 = tpu.matmul %108, %110, %cst_95 {dimension_numbers = #tpu.dot_dimension_numbers<[1], [0], [0], [1], [0, 0, 1, 1], [], []>} : vector<16x128xbf16>, vector<128x128xbf16>, vector<16x128xf32> -> vector<16x128xf32>
    %112 = arith.addf %104, %111 : vector<16x128xf32>
    %c3_96 = arith.constant 3 : index
    %c0_97 = arith.constant 0 : index
    %c0_98 = arith.constant 0 : index
    %113 = vector.load %arg3[%c3_96, %c0_97, %c0_98] : memref<9x16x64xbf16, #tpu.memory_space<vmem>>, vector<1x16x64xbf16>
    %114 = vector.shape_cast %113 : vector<1x16x64xbf16> to vector<16x64xbf16>
    %cst_99 = arith.constant dense<0.000000e+00> : vector<16x128xf32>
    %115 = tpu.matmul %114, %87, %cst_99 {dimension_numbers = #tpu.dot_dimension_numbers<[1], [0], [0], [1], [0, 0, 1, 1], [], []>} : vector<16x64xbf16>, vector<64x128xbf16>, vector<16x128xf32> -> vector<16x128xf32>
    %116 = arith.truncf %115 : vector<16x128xf32> to vector<16x128xbf16>
    %c12 = arith.constant 12 : index
    %c0_100 = arith.constant 0 : index
    %c0_101 = arith.constant 0 : index
    %117 = vector.load %arg7[%c12, %c0_100, %c0_101] : memref<48x128x128xbf16, #tpu.memory_space<vmem>>, vector<1x128x128xbf16>
    %118 = vector.shape_cast %117 : vector<1x128x128xbf16> to vector<128x128xbf16>
    %cst_102 = arith.constant dense<0.000000e+00> : vector<16x128xf32>
    %119 = tpu.matmul %116, %118, %cst_102 {dimension_numbers = #tpu.dot_dimension_numbers<[1], [0], [0], [1], [0, 0, 1, 1], [], []>} : vector<16x128xbf16>, vector<128x128xbf16>, vector<16x128xf32> -> vector<16x128xf32>
    %120 = arith.addf %112, %119 : vector<16x128xf32>
    %c4_103 = arith.constant 4 : index
    %c0_104 = arith.constant 0 : index
    %c0_105 = arith.constant 0 : index
    %121 = vector.load %arg3[%c4_103, %c0_104, %c0_105] : memref<9x16x64xbf16, #tpu.memory_space<vmem>>, vector<1x16x64xbf16>
    %122 = vector.shape_cast %121 : vector<1x16x64xbf16> to vector<16x64xbf16>
    %cst_106 = arith.constant dense<0.000000e+00> : vector<16x128xf32>
    %123 = tpu.matmul %122, %87, %cst_106 {dimension_numbers = #tpu.dot_dimension_numbers<[1], [0], [0], [1], [0, 0, 1, 1], [], []>} : vector<16x64xbf16>, vector<64x128xbf16>, vector<16x128xf32> -> vector<16x128xf32>
    %124 = arith.truncf %123 : vector<16x128xf32> to vector<16x128xbf16>
    %c13 = arith.constant 13 : index
    %c0_107 = arith.constant 0 : index
    %c0_108 = arith.constant 0 : index
    %125 = vector.load %arg7[%c13, %c0_107, %c0_108] : memref<48x128x128xbf16, #tpu.memory_space<vmem>>, vector<1x128x128xbf16>
    %126 = vector.shape_cast %125 : vector<1x128x128xbf16> to vector<128x128xbf16>
    %cst_109 = arith.constant dense<0.000000e+00> : vector<16x128xf32>
    %127 = tpu.matmul %124, %126, %cst_109 {dimension_numbers = #tpu.dot_dimension_numbers<[1], [0], [0], [1], [0, 0, 1, 1], [], []>} : vector<16x128xbf16>, vector<128x128xbf16>, vector<16x128xf32> -> vector<16x128xf32>
    %128 = arith.addf %120, %127 : vector<16x128xf32>
    %c5_110 = arith.constant 5 : index
    %c0_111 = arith.constant 0 : index
    %c0_112 = arith.constant 0 : index
    %129 = vector.load %arg3[%c5_110, %c0_111, %c0_112] : memref<9x16x64xbf16, #tpu.memory_space<vmem>>, vector<1x16x64xbf16>
    %130 = vector.shape_cast %129 : vector<1x16x64xbf16> to vector<16x64xbf16>
    %cst_113 = arith.constant dense<0.000000e+00> : vector<16x128xf32>
    %131 = tpu.matmul %130, %87, %cst_113 {dimension_numbers = #tpu.dot_dimension_numbers<[1], [0], [0], [1], [0, 0, 1, 1], [], []>} : vector<16x64xbf16>, vector<64x128xbf16>, vector<16x128xf32> -> vector<16x128xf32>
    %132 = arith.truncf %131 : vector<16x128xf32> to vector<16x128xbf16>
    %c14 = arith.constant 14 : index
    %c0_114 = arith.constant 0 : index
    %c0_115 = arith.constant 0 : index
    %133 = vector.load %arg7[%c14, %c0_114, %c0_115] : memref<48x128x128xbf16, #tpu.memory_space<vmem>>, vector<1x128x128xbf16>
    %134 = vector.shape_cast %133 : vector<1x128x128xbf16> to vector<128x128xbf16>
    %cst_116 = arith.constant dense<0.000000e+00> : vector<16x128xf32>
    %135 = tpu.matmul %132, %134, %cst_116 {dimension_numbers = #tpu.dot_dimension_numbers<[1], [0], [0], [1], [0, 0, 1, 1], [], []>} : vector<16x128xbf16>, vector<128x128xbf16>, vector<16x128xf32> -> vector<16x128xf32>
    %136 = arith.addf %128, %135 : vector<16x128xf32>
    %c6_117 = arith.constant 6 : index
    %c0_118 = arith.constant 0 : index
    %c0_119 = arith.constant 0 : index
    %137 = vector.load %arg3[%c6_117, %c0_118, %c0_119] : memref<9x16x64xbf16, #tpu.memory_space<vmem>>, vector<1x16x64xbf16>
    %138 = vector.shape_cast %137 : vector<1x16x64xbf16> to vector<16x64xbf16>
    %cst_120 = arith.constant dense<0.000000e+00> : vector<16x128xf32>
    %139 = tpu.matmul %138, %87, %cst_120 {dimension_numbers = #tpu.dot_dimension_numbers<[1], [0], [0], [1], [0, 0, 1, 1], [], []>} : vector<16x64xbf16>, vector<64x128xbf16>, vector<16x128xf32> -> vector<16x128xf32>
    %140 = arith.truncf %139 : vector<16x128xf32> to vector<16x128xbf16>
    %c15 = arith.constant 15 : index
    %c0_121 = arith.constant 0 : index
    %c0_122 = arith.constant 0 : index
    %141 = vector.load %arg7[%c15, %c0_121, %c0_122] : memref<48x128x128xbf16, #tpu.memory_space<vmem>>, vector<1x128x128xbf16>
    %142 = vector.shape_cast %141 : vector<1x128x128xbf16> to vector<128x128xbf16>
    %cst_123 = arith.constant dense<0.000000e+00> : vector<16x128xf32>
    %143 = tpu.matmul %140, %142, %cst_123 {dimension_numbers = #tpu.dot_dimension_numbers<[1], [0], [0], [1], [0, 0, 1, 1], [], []>} : vector<16x128xbf16>, vector<128x128xbf16>, vector<16x128xf32> -> vector<16x128xf32>
    %144 = arith.addf %136, %143 : vector<16x128xf32>
    %c7_124 = arith.constant 7 : index
    %c0_125 = arith.constant 0 : index
    %c0_126 = arith.constant 0 : index
    %145 = vector.load %arg3[%c7_124, %c0_125, %c0_126] : memref<9x16x64xbf16, #tpu.memory_space<vmem>>, vector<1x16x64xbf16>
    %146 = vector.shape_cast %145 : vector<1x16x64xbf16> to vector<16x64xbf16>
    %cst_127 = arith.constant dense<0.000000e+00> : vector<16x128xf32>
    %147 = tpu.matmul %146, %87, %cst_127 {dimension_numbers = #tpu.dot_dimension_numbers<[1], [0], [0], [1], [0, 0, 1, 1], [], []>} : vector<16x64xbf16>, vector<64x128xbf16>, vector<16x128xf32> -> vector<16x128xf32>
    %148 = arith.truncf %147 : vector<16x128xf32> to vector<16x128xbf16>
    %c16 = arith.constant 16 : index
    %c0_128 = arith.constant 0 : index
    %c0_129 = arith.constant 0 : index
    %149 = vector.load %arg7[%c16, %c0_128, %c0_129] : memref<48x128x128xbf16, #tpu.memory_space<vmem>>, vector<1x128x128xbf16>
    %150 = vector.shape_cast %149 : vector<1x128x128xbf16> to vector<128x128xbf16>
    %cst_130 = arith.constant dense<0.000000e+00> : vector<16x128xf32>
    %151 = tpu.matmul %148, %150, %cst_130 {dimension_numbers = #tpu.dot_dimension_numbers<[1], [0], [0], [1], [0, 0, 1, 1], [], []>} : vector<16x128xbf16>, vector<128x128xbf16>, vector<16x128xf32> -> vector<16x128xf32>
    %152 = arith.addf %144, %151 : vector<16x128xf32>
    %c8_131 = arith.constant 8 : index
    %c0_132 = arith.constant 0 : index
    %c0_133 = arith.constant 0 : index
    %153 = vector.load %arg3[%c8_131, %c0_132, %c0_133] : memref<9x16x64xbf16, #tpu.memory_space<vmem>>, vector<1x16x64xbf16>
    %154 = vector.shape_cast %153 : vector<1x16x64xbf16> to vector<16x64xbf16>
    %cst_134 = arith.constant dense<0.000000e+00> : vector<16x128xf32>
    %155 = tpu.matmul %154, %87, %cst_134 {dimension_numbers = #tpu.dot_dimension_numbers<[1], [0], [0], [1], [0, 0, 1, 1], [], []>} : vector<16x64xbf16>, vector<64x128xbf16>, vector<16x128xf32> -> vector<16x128xf32>
    %156 = arith.truncf %155 : vector<16x128xf32> to vector<16x128xbf16>
    %c17 = arith.constant 17 : index
    %c0_135 = arith.constant 0 : index
    %c0_136 = arith.constant 0 : index
    %157 = vector.load %arg7[%c17, %c0_135, %c0_136] : memref<48x128x128xbf16, #tpu.memory_space<vmem>>, vector<1x128x128xbf16>
    %158 = vector.shape_cast %157 : vector<1x128x128xbf16> to vector<128x128xbf16>
    %cst_137 = arith.constant dense<0.000000e+00> : vector<16x128xf32>
    %159 = tpu.matmul %156, %158, %cst_137 {dimension_numbers = #tpu.dot_dimension_numbers<[1], [0], [0], [1], [0, 0, 1, 1], [], []>} : vector<16x128xbf16>, vector<128x128xbf16>, vector<16x128xf32> -> vector<16x128xf32>
    %160 = arith.addf %152, %159 : vector<16x128xf32>
    %c1_138 = arith.constant 1 : index
    %c0_139 = arith.constant 0 : index
    %161 = vector.load %arg8[%c1_138, %c0_139] : memref<8x128xf32, #tpu.memory_space<vmem>>, vector<1x128xf32>
    %162 = vector.broadcast %161 : vector<1x128xf32> to vector<16x128xf32>
    %163 = arith.mulf %160, %162 : vector<16x128xf32>
    %c1_140 = arith.constant 1 : index
    %c0_141 = arith.constant 0 : index
    %164 = vector.load %arg9[%c1_140, %c0_141] : memref<8x128xf32, #tpu.memory_space<vmem>>, vector<1x128xf32>
    %165 = vector.broadcast %164 : vector<1x128xf32> to vector<16x128xf32>
    %166 = arith.addf %163, %165 : vector<16x128xf32>
    %cst_142 = arith.constant 0.000000e+00 : f32
    %167 = vector.broadcast %cst_142 : f32 to vector<16x128xf32>
    %168 = arith.maximumf %166, %167 : vector<16x128xf32>
    %c0_143 = arith.constant 0 : index
    %c0_144 = arith.constant 0 : index
    %c0_145 = arith.constant 0 : index
    %169 = vector.load %arg11[%c0_143, %c0_144, %c0_145] : memref<1x16x128xf32, #tpu.memory_space<vmem>>, vector<1x16x128xf32>
    %170 = vector.shape_cast %169 : vector<1x16x128xf32> to vector<16x128xf32>
    %171 = vector.shape_cast %168 : vector<16x128xf32> to vector<1x16x128xf32>
    tpu.vector_store %arg11[%c0_143, %c0_144, %c0_145], %171 {strides = array<i32>} : memref<1x16x128xf32, #tpu.memory_space<vmem>>, vector<1x16x128xf32>,
    %172 = arith.truncf %168 : vector<16x128xf32> to vector<16x128xbf16>
    %c18 = arith.constant 18 : index
    %c0_146 = arith.constant 0 : index
    %c0_147 = arith.constant 0 : index
    %173 = vector.load %arg7[%c18, %c0_146, %c0_147] : memref<48x128x128xbf16, #tpu.memory_space<vmem>>, vector<1x128x128xbf16>
    %174 = vector.shape_cast %173 : vector<1x128x128xbf16> to vector<128x128xbf16>
    %cst_148 = arith.constant dense<0.000000e+00> : vector<64x128xf32>
    %175 = tpu.matmul %87, %174, %cst_148 {dimension_numbers = #tpu.dot_dimension_numbers<[1], [0], [0], [1], [0, 0, 1, 1], [], []>} : vector<64x128xbf16>, vector<128x128xbf16>, vector<64x128xf32> -> vector<64x128xf32>
    %c0_149 = arith.constant 0 : index
    %c0_150 = arith.constant 0 : index
    %176 = vector.load %arg14[%c0_149, %c0_150] : memref<256x128xf32, #tpu.memory_space<vmem>>, vector<64x128xf32>
    tpu.vector_store %arg14[%c0_149, %c0_150], %175 {strides = array<i32>} : memref<256x128xf32, #tpu.memory_space<vmem>>, vector<64x128xf32>,
    %c19 = arith.constant 19 : index
    %c0_151 = arith.constant 0 : index
    %c0_152 = arith.constant 0 : index
    %177 = vector.load %arg7[%c19, %c0_151, %c0_152] : memref<48x128x128xbf16, #tpu.memory_space<vmem>>, vector<1x128x128xbf16>
    %178 = vector.shape_cast %177 : vector<1x128x128xbf16> to vector<128x128xbf16>
    %cst_153 = arith.constant dense<0.000000e+00> : vector<64x128xf32>
    %179 = tpu.matmul %87, %178, %cst_153 {dimension_numbers = #tpu.dot_dimension_numbers<[1], [0], [0], [1], [0, 0, 1, 1], [], []>} : vector<64x128xbf16>, vector<128x128xbf16>, vector<64x128xf32> -> vector<64x128xf32>
    %c64 = arith.constant 64 : index
    %c0_154 = arith.constant 0 : index
    %180 = vector.load %arg14[%c64, %c0_154] : memref<256x128xf32, #tpu.memory_space<vmem>>, vector<64x128xf32>
    tpu.vector_store %arg14[%c64, %c0_154], %179 {strides = array<i32>} : memref<256x128xf32, #tpu.memory_space<vmem>>, vector<64x128xf32>,
    %c20 = arith.constant 20 : index
    %c0_155 = arith.constant 0 : index
    %c0_156 = arith.constant 0 : index
    %181 = vector.load %arg7[%c20, %c0_155, %c0_156] : memref<48x128x128xbf16, #tpu.memory_space<vmem>>, vector<1x128x128xbf16>
    %182 = vector.shape_cast %181 : vector<1x128x128xbf16> to vector<128x128xbf16>
    %cst_157 = arith.constant dense<0.000000e+00> : vector<64x128xf32>
    %183 = tpu.matmul %87, %182, %cst_157 {dimension_numbers = #tpu.dot_dimension_numbers<[1], [0], [0], [1], [0, 0, 1, 1], [], []>} : vector<64x128xbf16>, vector<128x128xbf16>, vector<64x128xf32> -> vector<64x128xf32>
    %c128 = arith.constant 128 : index
    %c0_158 = arith.constant 0 : index
    %184 = vector.load %arg14[%c128, %c0_158] : memref<256x128xf32, #tpu.memory_space<vmem>>, vector<64x128xf32>
    tpu.vector_store %arg14[%c128, %c0_158], %183 {strides = array<i32>} : memref<256x128xf32, #tpu.memory_space<vmem>>, vector<64x128xf32>,
    %c21 = arith.constant 21 : index
    %c0_159 = arith.constant 0 : index
    %c0_160 = arith.constant 0 : index
    %185 = vector.load %arg7[%c21, %c0_159, %c0_160] : memref<48x128x128xbf16, #tpu.memory_space<vmem>>, vector<1x128x128xbf16>
    %186 = vector.shape_cast %185 : vector<1x128x128xbf16> to vector<128x128xbf16>
    %cst_161 = arith.constant dense<0.000000e+00> : vector<64x128xf32>
    %187 = tpu.matmul %87, %186, %cst_161 {dimension_numbers = #tpu.dot_dimension_numbers<[1], [0], [0], [1], [0, 0, 1, 1], [], []>} : vector<64x128xbf16>, vector<128x128xbf16>, vector<64x128xf32> -> vector<64x128xf32>
    %c192 = arith.constant 192 : index
    %c0_162 = arith.constant 0 : index
    %188 = vector.load %arg14[%c192, %c0_162] : memref<256x128xf32, #tpu.memory_space<vmem>>, vector<64x128xf32>
    tpu.vector_store %arg14[%c192, %c0_162], %187 {strides = array<i32>} : memref<256x128xf32, #tpu.memory_space<vmem>>, vector<64x128xf32>,
    %c0_163 = arith.constant 0 : index
    %c0_164 = arith.constant 0 : index
    %189 = vector.load %arg4[%c0_163, %c0_164] : memref<256x256xbf16, #tpu.memory_space<vmem>>, vector<256x256xbf16>
    %c0_165 = arith.constant 0 : index
    %c0_166 = arith.constant 0 : index
    %190 = vector.load %arg14[%c0_165, %c0_166] : memref<256x128xf32, #tpu.memory_space<vmem>>, vector<256x128xf32>
    %191 = arith.truncf %190 : vector<256x128xf32> to vector<256x128xbf16>
    %cst_167 = arith.constant dense<0.000000e+00> : vector<256x128xf32>
    %192 = tpu.matmul %189, %191, %cst_167 {dimension_numbers = #tpu.dot_dimension_numbers<[1], [0], [0], [1], [0, 0, 1, 1], [], []>} : vector<256x256xbf16>, vector<256x128xbf16>, vector<256x128xf32> -> vector<256x128xf32>
    %c2_168 = arith.constant 2 : index
    %c0_169 = arith.constant 0 : index
    %193 = vector.load %arg8[%c2_168, %c0_169] : memref<8x128xf32, #tpu.memory_space<vmem>>, vector<1x128xf32>
    %194 = vector.broadcast %193 : vector<1x128xf32> to vector<256x128xf32>
    %195 = arith.mulf %192, %194 : vector<256x128xf32>
    %c2_170 = arith.constant 2 : index
    %c0_171 = arith.constant 0 : index
    %196 = vector.load %arg9[%c2_170, %c0_171] : memref<8x128xf32, #tpu.memory_space<vmem>>, vector<1x128xf32>
    %197 = vector.broadcast %196 : vector<1x128xf32> to vector<256x128xf32>
    %198 = arith.addf %195, %197 : vector<256x128xf32>
    %cst_172 = arith.constant 0.000000e+00 : f32
    %199 = vector.broadcast %cst_172 : f32 to vector<256x128xf32>
    %200 = arith.maximumf %198, %199 : vector<256x128xf32>
    %c22 = arith.constant 22 : index
    %c0_173 = arith.constant 0 : index
    %c0_174 = arith.constant 0 : index
    %201 = vector.load %arg7[%c22, %c0_173, %c0_174] : memref<48x128x128xbf16, #tpu.memory_space<vmem>>, vector<1x128x128xbf16>
    %202 = vector.shape_cast %201 : vector<1x128x128xbf16> to vector<128x128xbf16>
    %cst_175 = arith.constant dense<0.000000e+00> : vector<16x128xf32>
    %203 = tpu.matmul %172, %202, %cst_175 {dimension_numbers = #tpu.dot_dimension_numbers<[1], [0], [0], [1], [0, 0, 1, 1], [], []>} : vector<16x128xbf16>, vector<128x128xbf16>, vector<16x128xf32> -> vector<16x128xf32>
    %c0_176 = arith.constant 0 : index
    %c0_177 = arith.constant 0 : index
    %204 = vector.load %arg14[%c0_176, %c0_177] : memref<256x128xf32, #tpu.memory_space<vmem>>, vector<16x128xf32>
    tpu.vector_store %arg14[%c0_176, %c0_177], %203 {strides = array<i32>} : memref<256x128xf32, #tpu.memory_space<vmem>>, vector<16x128xf32>,
    %c23 = arith.constant 23 : index
    %c0_178 = arith.constant 0 : index
    %c0_179 = arith.constant 0 : index
    %205 = vector.load %arg7[%c23, %c0_178, %c0_179] : memref<48x128x128xbf16, #tpu.memory_space<vmem>>, vector<1x128x128xbf16>
    %206 = vector.shape_cast %205 : vector<1x128x128xbf16> to vector<128x128xbf16>
    %cst_180 = arith.constant dense<0.000000e+00> : vector<16x128xf32>
    %207 = tpu.matmul %172, %206, %cst_180 {dimension_numbers = #tpu.dot_dimension_numbers<[1], [0], [0], [1], [0, 0, 1, 1], [], []>} : vector<16x128xbf16>, vector<128x128xbf16>, vector<16x128xf32> -> vector<16x128xf32>
    %c16_181 = arith.constant 16 : index
    %c0_182 = arith.constant 0 : index
    %208 = vector.load %arg14[%c16_181, %c0_182] : memref<256x128xf32, #tpu.memory_space<vmem>>, vector<16x128xf32>
    tpu.vector_store %arg14[%c16_181, %c0_182], %207 {strides = array<i32>} : memref<256x128xf32, #tpu.memory_space<vmem>>, vector<16x128xf32>,
    %c24 = arith.constant 24 : index
    %c0_183 = arith.constant 0 : index
    %c0_184 = arith.constant 0 : index
    %209 = vector.load %arg7[%c24, %c0_183, %c0_184] : memref<48x128x128xbf16, #tpu.memory_space<vmem>>, vector<1x128x128xbf16>
    %210 = vector.shape_cast %209 : vector<1x128x128xbf16> to vector<128x128xbf16>
    %cst_185 = arith.constant dense<0.000000e+00> : vector<16x128xf32>
    %211 = tpu.matmul %172, %210, %cst_185 {dimension_numbers = #tpu.dot_dimension_numbers<[1], [0], [0], [1], [0, 0, 1, 1], [], []>} : vector<16x128xbf16>, vector<128x128xbf16>, vector<16x128xf32> -> vector<16x128xf32>
    %c32 = arith.constant 32 : index
    %c0_186 = arith.constant 0 : index
    %212 = vector.load %arg14[%c32, %c0_186] : memref<256x128xf32, #tpu.memory_space<vmem>>, vector<16x128xf32>
    tpu.vector_store %arg14[%c32, %c0_186], %211 {strides = array<i32>} : memref<256x128xf32, #tpu.memory_space<vmem>>, vector<16x128xf32>,
    %c25 = arith.constant 25 : index
    %c0_187 = arith.constant 0 : index
    %c0_188 = arith.constant 0 : index
    %213 = vector.load %arg7[%c25, %c0_187, %c0_188] : memref<48x128x128xbf16, #tpu.memory_space<vmem>>, vector<1x128x128xbf16>
    %214 = vector.shape_cast %213 : vector<1x128x128xbf16> to vector<128x128xbf16>
    %cst_189 = arith.constant dense<0.000000e+00> : vector<16x128xf32>
    %215 = tpu.matmul %172, %214, %cst_189 {dimension_numbers = #tpu.dot_dimension_numbers<[1], [0], [0], [1], [0, 0, 1, 1], [], []>} : vector<16x128xbf16>, vector<128x128xbf16>, vector<16x128xf32> -> vector<16x128xf32>
    %c48 = arith.constant 48 : index
    %c0_190 = arith.constant 0 : index
    %216 = vector.load %arg14[%c48, %c0_190] : memref<256x128xf32, #tpu.memory_space<vmem>>, vector<16x128xf32>
    tpu.vector_store %arg14[%c48, %c0_190], %215 {strides = array<i32>} : memref<256x128xf32, #tpu.memory_space<vmem>>, vector<16x128xf32>,
    %c26 = arith.constant 26 : index
    %c0_191 = arith.constant 0 : index
    %c0_192 = arith.constant 0 : index
    %217 = vector.load %arg7[%c26, %c0_191, %c0_192] : memref<48x128x128xbf16, #tpu.memory_space<vmem>>, vector<1x128x128xbf16>
    %218 = vector.shape_cast %217 : vector<1x128x128xbf16> to vector<128x128xbf16>
    %cst_193 = arith.constant dense<0.000000e+00> : vector<16x128xf32>
    %219 = tpu.matmul %172, %218, %cst_193 {dimension_numbers = #tpu.dot_dimension_numbers<[1], [0], [0], [1], [0, 0, 1, 1], [], []>} : vector<16x128xbf16>, vector<128x128xbf16>, vector<16x128xf32> -> vector<16x128xf32>
    %c64_194 = arith.constant 64 : index
    %c0_195 = arith.constant 0 : index
    %220 = vector.load %arg14[%c64_194, %c0_195] : memref<256x128xf32, #tpu.memory_space<vmem>>, vector<16x128xf32>
    tpu.vector_store %arg14[%c64_194, %c0_195], %219 {strides = array<i32>} : memref<256x128xf32, #tpu.memory_space<vmem>>, vector<16x128xf32>,
    %c27 = arith.constant 27 : index
    %c0_196 = arith.constant 0 : index
    %c0_197 = arith.constant 0 : index
    %221 = vector.load %arg7[%c27, %c0_196, %c0_197] : memref<48x128x128xbf16, #tpu.memory_space<vmem>>, vector<1x128x128xbf16>
    %222 = vector.shape_cast %221 : vector<1x128x128xbf16> to vector<128x128xbf16>
    %cst_198 = arith.constant dense<0.000000e+00> : vector<16x128xf32>
    %223 = tpu.matmul %172, %222, %cst_198 {dimension_numbers = #tpu.dot_dimension_numbers<[1], [0], [0], [1], [0, 0, 1, 1], [], []>} : vector<16x128xbf16>, vector<128x128xbf16>, vector<16x128xf32> -> vector<16x128xf32>
    %c80 = arith.constant 80 : index
    %c0_199 = arith.constant 0 : index
    %224 = vector.load %arg14[%c80, %c0_199] : memref<256x128xf32, #tpu.memory_space<vmem>>, vector<16x128xf32>
    tpu.vector_store %arg14[%c80, %c0_199], %223 {strides = array<i32>} : memref<256x128xf32, #tpu.memory_space<vmem>>, vector<16x128xf32>,
    %c28 = arith.constant 28 : index
    %c0_200 = arith.constant 0 : index
    %c0_201 = arith.constant 0 : index
    %225 = vector.load %arg7[%c28, %c0_200, %c0_201] : memref<48x128x128xbf16, #tpu.memory_space<vmem>>, vector<1x128x128xbf16>
    %226 = vector.shape_cast %225 : vector<1x128x128xbf16> to vector<128x128xbf16>
    %cst_202 = arith.constant dense<0.000000e+00> : vector<16x128xf32>
    %227 = tpu.matmul %172, %226, %cst_202 {dimension_numbers = #tpu.dot_dimension_numbers<[1], [0], [0], [1], [0, 0, 1, 1], [], []>} : vector<16x128xbf16>, vector<128x128xbf16>, vector<16x128xf32> -> vector<16x128xf32>
    %c96 = arith.constant 96 : index
    %c0_203 = arith.constant 0 : index
    %228 = vector.load %arg14[%c96, %c0_203] : memref<256x128xf32, #tpu.memory_space<vmem>>, vector<16x128xf32>
    tpu.vector_store %arg14[%c96, %c0_203], %227 {strides = array<i32>} : memref<256x128xf32, #tpu.memory_space<vmem>>, vector<16x128xf32>,
    %c29 = arith.constant 29 : index
    %c0_204 = arith.constant 0 : index
    %c0_205 = arith.constant 0 : index
    %229 = vector.load %arg7[%c29, %c0_204, %c0_205] : memref<48x128x128xbf16, #tpu.memory_space<vmem>>, vector<1x128x128xbf16>
    %230 = vector.shape_cast %229 : vector<1x128x128xbf16> to vector<128x128xbf16>
    %cst_206 = arith.constant dense<0.000000e+00> : vector<16x128xf32>
    %231 = tpu.matmul %172, %230, %cst_206 {dimension_numbers = #tpu.dot_dimension_numbers<[1], [0], [0], [1], [0, 0, 1, 1], [], []>} : vector<16x128xbf16>, vector<128x128xbf16>, vector<16x128xf32> -> vector<16x128xf32>
    %c112 = arith.constant 112 : index
    %c0_207 = arith.constant 0 : index
    %232 = vector.load %arg14[%c112, %c0_207] : memref<256x128xf32, #tpu.memory_space<vmem>>, vector<16x128xf32>
    tpu.vector_store %arg14[%c112, %c0_207], %231 {strides = array<i32>} : memref<256x128xf32, #tpu.memory_space<vmem>>, vector<16x128xf32>,
    %c30 = arith.constant 30 : index
    %c0_208 = arith.constant 0 : index
    %c0_209 = arith.constant 0 : index
    %233 = vector.load %arg7[%c30, %c0_208, %c0_209] : memref<48x128x128xbf16, #tpu.memory_space<vmem>>, vector<1x128x128xbf16>
    %234 = vector.shape_cast %233 : vector<1x128x128xbf16> to vector<128x128xbf16>
    %cst_210 = arith.constant dense<0.000000e+00> : vector<16x128xf32>
    %235 = tpu.matmul %172, %234, %cst_210 {dimension_numbers = #tpu.dot_dimension_numbers<[1], [0], [0], [1], [0, 0, 1, 1], [], []>} : vector<16x128xbf16>, vector<128x128xbf16>, vector<16x128xf32> -> vector<16x128xf32>
    %c128_211 = arith.constant 128 : index
    %c0_212 = arith.constant 0 : index
    %236 = vector.load %arg14[%c128_211, %c0_212] : memref<256x128xf32, #tpu.memory_space<vmem>>, vector<16x128xf32>
    tpu.vector_store %arg14[%c128_211, %c0_212], %235 {strides = array<i32>} : memref<256x128xf32, #tpu.memory_space<vmem>>, vector<16x128xf32>,
    %c31 = arith.constant 31 : index
    %c0_213 = arith.constant 0 : index
    %c0_214 = arith.constant 0 : index
    %237 = vector.load %arg7[%c31, %c0_213, %c0_214] : memref<48x128x128xbf16, #tpu.memory_space<vmem>>, vector<1x128x128xbf16>
    %238 = vector.shape_cast %237 : vector<1x128x128xbf16> to vector<128x128xbf16>
    %cst_215 = arith.constant dense<0.000000e+00> : vector<16x128xf32>
    %239 = tpu.matmul %172, %238, %cst_215 {dimension_numbers = #tpu.dot_dimension_numbers<[1], [0], [0], [1], [0, 0, 1, 1], [], []>} : vector<16x128xbf16>, vector<128x128xbf16>, vector<16x128xf32> -> vector<16x128xf32>
    %c144 = arith.constant 144 : index
    %c0_216 = arith.constant 0 : index
    %240 = vector.load %arg14[%c144, %c0_216] : memref<256x128xf32, #tpu.memory_space<vmem>>, vector<16x128xf32>
    tpu.vector_store %arg14[%c144, %c0_216], %239 {strides = array<i32>} : memref<256x128xf32, #tpu.memory_space<vmem>>, vector<16x128xf32>,
    %c32_217 = arith.constant 32 : index
    %c0_218 = arith.constant 0 : index
    %c0_219 = arith.constant 0 : index
    %241 = vector.load %arg7[%c32_217, %c0_218, %c0_219] : memref<48x128x128xbf16, #tpu.memory_space<vmem>>, vector<1x128x128xbf16>
    %242 = vector.shape_cast %241 : vector<1x128x128xbf16> to vector<128x128xbf16>
    %cst_220 = arith.constant dense<0.000000e+00> : vector<16x128xf32>
    %243 = tpu.matmul %172, %242, %cst_220 {dimension_numbers = #tpu.dot_dimension_numbers<[1], [0], [0], [1], [0, 0, 1, 1], [], []>} : vector<16x128xbf16>, vector<128x128xbf16>, vector<16x128xf32> -> vector<16x128xf32>
    %c160 = arith.constant 160 : index
    %c0_221 = arith.constant 0 : index
    %244 = vector.load %arg14[%c160, %c0_221] : memref<256x128xf32, #tpu.memory_space<vmem>>, vector<16x128xf32>
    tpu.vector_store %arg14[%c160, %c0_221], %243 {strides = array<i32>} : memref<256x128xf32, #tpu.memory_space<vmem>>, vector<16x128xf32>,
    %c33 = arith.constant 33 : index
    %c0_222 = arith.constant 0 : index
    %c0_223 = arith.constant 0 : index
    %245 = vector.load %arg7[%c33, %c0_222, %c0_223] : memref<48x128x128xbf16, #tpu.memory_space<vmem>>, vector<1x128x128xbf16>
    %246 = vector.shape_cast %245 : vector<1x128x128xbf16> to vector<128x128xbf16>
    %cst_224 = arith.constant dense<0.000000e+00> : vector<16x128xf32>
    %247 = tpu.matmul %172, %246, %cst_224 {dimension_numbers = #tpu.dot_dimension_numbers<[1], [0], [0], [1], [0, 0, 1, 1], [], []>} : vector<16x128xbf16>, vector<128x128xbf16>, vector<16x128xf32> -> vector<16x128xf32>
    %c176 = arith.constant 176 : index
    %c0_225 = arith.constant 0 : index
    %248 = vector.load %arg14[%c176, %c0_225] : memref<256x128xf32, #tpu.memory_space<vmem>>, vector<16x128xf32>
    tpu.vector_store %arg14[%c176, %c0_225], %247 {strides = array<i32>} : memref<256x128xf32, #tpu.memory_space<vmem>>, vector<16x128xf32>,
    %c34 = arith.constant 34 : index
    %c0_226 = arith.constant 0 : index
    %c0_227 = arith.constant 0 : index
    %249 = vector.load %arg7[%c34, %c0_226, %c0_227] : memref<48x128x128xbf16, #tpu.memory_space<vmem>>, vector<1x128x128xbf16>
    %250 = vector.shape_cast %249 : vector<1x128x128xbf16> to vector<128x128xbf16>
    %cst_228 = arith.constant dense<0.000000e+00> : vector<16x128xf32>
    %251 = tpu.matmul %172, %250, %cst_228 {dimension_numbers = #tpu.dot_dimension_numbers<[1], [0], [0], [1], [0, 0, 1, 1], [], []>} : vector<16x128xbf16>, vector<128x128xbf16>, vector<16x128xf32> -> vector<16x128xf32>
    %c192_229 = arith.constant 192 : index
    %c0_230 = arith.constant 0 : index
    %252 = vector.load %arg14[%c192_229, %c0_230] : memref<256x128xf32, #tpu.memory_space<vmem>>, vector<16x128xf32>
    tpu.vector_store %arg14[%c192_229, %c0_230], %251 {strides = array<i32>} : memref<256x128xf32, #tpu.memory_space<vmem>>, vector<16x128xf32>,
    %c35 = arith.constant 35 : index
    %c0_231 = arith.constant 0 : index
    %c0_232 = arith.constant 0 : index
    %253 = vector.load %arg7[%c35, %c0_231, %c0_232] : memref<48x128x128xbf16, #tpu.memory_space<vmem>>, vector<1x128x128xbf16>
    %254 = vector.shape_cast %253 : vector<1x128x128xbf16> to vector<128x128xbf16>
    %cst_233 = arith.constant dense<0.000000e+00> : vector<16x128xf32>
    %255 = tpu.matmul %172, %254, %cst_233 {dimension_numbers = #tpu.dot_dimension_numbers<[1], [0], [0], [1], [0, 0, 1, 1], [], []>} : vector<16x128xbf16>, vector<128x128xbf16>, vector<16x128xf32> -> vector<16x128xf32>
    %c208 = arith.constant 208 : index
    %c0_234 = arith.constant 0 : index
    %256 = vector.load %arg14[%c208, %c0_234] : memref<256x128xf32, #tpu.memory_space<vmem>>, vector<16x128xf32>
    tpu.vector_store %arg14[%c208, %c0_234], %255 {strides = array<i32>} : memref<256x128xf32, #tpu.memory_space<vmem>>, vector<16x128xf32>,
    %c36 = arith.constant 36 : index
    %c0_235 = arith.constant 0 : index
    %c0_236 = arith.constant 0 : index
    %257 = vector.load %arg7[%c36, %c0_235, %c0_236] : memref<48x128x128xbf16, #tpu.memory_space<vmem>>, vector<1x128x128xbf16>
    %258 = vector.shape_cast %257 : vector<1x128x128xbf16> to vector<128x128xbf16>
    %cst_237 = arith.constant dense<0.000000e+00> : vector<16x128xf32>
    %259 = tpu.matmul %172, %258, %cst_237 {dimension_numbers = #tpu.dot_dimension_numbers<[1], [0], [0], [1], [0, 0, 1, 1], [], []>} : vector<16x128xbf16>, vector<128x128xbf16>, vector<16x128xf32> -> vector<16x128xf32>
    %c224 = arith.constant 224 : index
    %c0_238 = arith.constant 0 : index
    %260 = vector.load %arg14[%c224, %c0_238] : memref<256x128xf32, #tpu.memory_space<vmem>>, vector<16x128xf32>
    tpu.vector_store %arg14[%c224, %c0_238], %259 {strides = array<i32>} : memref<256x128xf32, #tpu.memory_space<vmem>>, vector<16x128xf32>,
    %c37 = arith.constant 37 : index
    %c0_239 = arith.constant 0 : index
    %c0_240 = arith.constant 0 : index
    %261 = vector.load %arg7[%c37, %c0_239, %c0_240] : memref<48x128x128xbf16, #tpu.memory_space<vmem>>, vector<1x128x128xbf16>
    %262 = vector.shape_cast %261 : vector<1x128x128xbf16> to vector<128x128xbf16>
    %cst_241 = arith.constant dense<0.000000e+00> : vector<16x128xf32>
    %263 = tpu.matmul %172, %262, %cst_241 {dimension_numbers = #tpu.dot_dimension_numbers<[1], [0], [0], [1], [0, 0, 1, 1], [], []>} : vector<16x128xbf16>, vector<128x128xbf16>, vector<16x128xf32> -> vector<16x128xf32>
    %c240 = arith.constant 240 : index
    %c0_242 = arith.constant 0 : index
    %264 = vector.load %arg14[%c240, %c0_242] : memref<256x128xf32, #tpu.memory_space<vmem>>, vector<16x128xf32>
    tpu.vector_store %arg14[%c240, %c0_242], %263 {strides = array<i32>} : memref<256x128xf32, #tpu.memory_space<vmem>>, vector<16x128xf32>,
    %c0_243 = arith.constant 0 : index
    %c0_244 = arith.constant 0 : index
    %265 = vector.load %arg5[%c0_243, %c0_244] : memref<256x256xbf16, #tpu.memory_space<vmem>>, vector<256x256xbf16>
    %c0_245 = arith.constant 0 : index
    %c0_246 = arith.constant 0 : index
    %266 = vector.load %arg14[%c0_245, %c0_246] : memref<256x128xf32, #tpu.memory_space<vmem>>, vector<256x128xf32>
    %267 = arith.truncf %266 : vector<256x128xf32> to vector<256x128xbf16>
    %cst_247 = arith.constant dense<0.000000e+00> : vector<256x128xf32>
    %268 = tpu.matmul %265, %267, %cst_247 {dimension_numbers = #tpu.dot_dimension_numbers<[1], [0], [0], [1], [0, 0, 1, 1], [], []>} : vector<256x256xbf16>, vector<256x128xbf16>, vector<256x128xf32> -> vector<256x128xf32>
    %c3_248 = arith.constant 3 : index
    %c0_249 = arith.constant 0 : index
    %269 = vector.load %arg8[%c3_248, %c0_249] : memref<8x128xf32, #tpu.memory_space<vmem>>, vector<1x128xf32>
    %270 = vector.broadcast %269 : vector<1x128xf32> to vector<256x128xf32>
    %271 = arith.mulf %268, %270 : vector<256x128xf32>
    %c3_250 = arith.constant 3 : index
    %c0_251 = arith.constant 0 : index
    %272 = vector.load %arg9[%c3_250, %c0_251] : memref<8x128xf32, #tpu.memory_space<vmem>>, vector<1x128xf32>
    %273 = vector.broadcast %272 : vector<1x128xf32> to vector<256x128xf32>
    %274 = arith.addf %271, %273 : vector<256x128xf32>
    %cst_252 = arith.constant 0.000000e+00 : f32
    %275 = vector.broadcast %cst_252 : f32 to vector<256x128xf32>
    %276 = arith.maximumf %274, %275 : vector<256x128xf32>
    %277 = arith.addf %200, %276 : vector<256x128xf32>
    %278 = arith.truncf %277 : vector<256x128xf32> to vector<256x128xbf16>
    %cst_253 = arith.constant 0.000000e+00 : f32
    %279 = vector.broadcast %cst_253 : f32 to vector<256x128xf32>
    %c0_254 = arith.constant 0 : index
    %c0_255 = arith.constant 0 : index
    %c0_256 = arith.constant 0 : index
    %280 = vector.load %arg6[%c0_254, %c0_255, %c0_256] : memref<9x256x256xbf16, #tpu.memory_space<vmem>>, vector<1x256x256xbf16>
    %281 = vector.shape_cast %280 : vector<1x256x256xbf16> to vector<256x256xbf16>
    %cst_257 = arith.constant dense<0.000000e+00> : vector<256x128xf32>
    %282 = tpu.matmul %281, %278, %cst_257 {dimension_numbers = #tpu.dot_dimension_numbers<[1], [0], [0], [1], [0, 0, 1, 1], [], []>} : vector<256x256xbf16>, vector<256x128xbf16>, vector<256x128xf32> -> vector<256x128xf32>
    %283 = arith.truncf %282 : vector<256x128xf32> to vector<256x128xbf16>
    %c38 = arith.constant 38 : index
    %c0_258 = arith.constant 0 : index
    %c0_259 = arith.constant 0 : index
    %284 = vector.load %arg7[%c38, %c0_258, %c0_259] : memref<48x128x128xbf16, #tpu.memory_space<vmem>>, vector<1x128x128xbf16>
    %285 = vector.shape_cast %284 : vector<1x128x128xbf16> to vector<128x128xbf16>
    %cst_260 = arith.constant dense<0.000000e+00> : vector<256x128xf32>
    %286 = tpu.matmul %283, %285, %cst_260 {dimension_numbers = #tpu.dot_dimension_numbers<[1], [0], [0], [1], [0, 0, 1, 1], [], []>} : vector<256x128xbf16>, vector<128x128xbf16>, vector<256x128xf32> -> vector<256x128xf32>
    %287 = arith.addf %279, %286 : vector<256x128xf32>
    %c1_261 = arith.constant 1 : index
    %c0_262 = arith.constant 0 : index
    %c0_263 = arith.constant 0 : index
    %288 = vector.load %arg6[%c1_261, %c0_262, %c0_263] : memref<9x256x256xbf16, #tpu.memory_space<vmem>>, vector<1x256x256xbf16>
    %289 = vector.shape_cast %288 : vector<1x256x256xbf16> to vector<256x256xbf16>
    %cst_264 = arith.constant dense<0.000000e+00> : vector<256x128xf32>
    %290 = tpu.matmul %289, %278, %cst_264 {dimension_numbers = #tpu.dot_dimension_numbers<[1], [0], [0], [1], [0, 0, 1, 1], [], []>} : vector<256x256xbf16>, vector<256x128xbf16>, vector<256x128xf32> -> vector<256x128xf32>
    %291 = arith.truncf %290 : vector<256x128xf32> to vector<256x128xbf16>
    %c39 = arith.constant 39 : index
    %c0_265 = arith.constant 0 : index
    %c0_266 = arith.constant 0 : index
    %292 = vector.load %arg7[%c39, %c0_265, %c0_266] : memref<48x128x128xbf16, #tpu.memory_space<vmem>>, vector<1x128x128xbf16>
    %293 = vector.shape_cast %292 : vector<1x128x128xbf16> to vector<128x128xbf16>
    %cst_267 = arith.constant dense<0.000000e+00> : vector<256x128xf32>
    %294 = tpu.matmul %291, %293, %cst_267 {dimension_numbers = #tpu.dot_dimension_numbers<[1], [0], [0], [1], [0, 0, 1, 1], [], []>} : vector<256x128xbf16>, vector<128x128xbf16>, vector<256x128xf32> -> vector<256x128xf32>
    %295 = arith.addf %287, %294 : vector<256x128xf32>
    %c2_268 = arith.constant 2 : index
    %c0_269 = arith.constant 0 : index
    %c0_270 = arith.constant 0 : index
    %296 = vector.load %arg6[%c2_268, %c0_269, %c0_270] : memref<9x256x256xbf16, #tpu.memory_space<vmem>>, vector<1x256x256xbf16>
    %297 = vector.shape_cast %296 : vector<1x256x256xbf16> to vector<256x256xbf16>
    %cst_271 = arith.constant dense<0.000000e+00> : vector<256x128xf32>
    %298 = tpu.matmul %297, %278, %cst_271 {dimension_numbers = #tpu.dot_dimension_numbers<[1], [0], [0], [1], [0, 0, 1, 1], [], []>} : vector<256x256xbf16>, vector<256x128xbf16>, vector<256x128xf32> -> vector<256x128xf32>
    %299 = arith.truncf %298 : vector<256x128xf32> to vector<256x128xbf16>
    %c40 = arith.constant 40 : index
    %c0_272 = arith.constant 0 : index
    %c0_273 = arith.constant 0 : index
    %300 = vector.load %arg7[%c40, %c0_272, %c0_273] : memref<48x128x128xbf16, #tpu.memory_space<vmem>>, vector<1x128x128xbf16>
    %301 = vector.shape_cast %300 : vector<1x128x128xbf16> to vector<128x128xbf16>
    %cst_274 = arith.constant dense<0.000000e+00> : vector<256x128xf32>
    %302 = tpu.matmul %299, %301, %cst_274 {dimension_numbers = #tpu.dot_dimension_numbers<[1], [0], [0], [1], [0, 0, 1, 1], [], []>} : vector<256x128xbf16>, vector<128x128xbf16>, vector<256x128xf32> -> vector<256x128xf32>
    %303 = arith.addf %295, %302 : vector<256x128xf32>
    %c3_275 = arith.constant 3 : index
    %c0_276 = arith.constant 0 : index
    %c0_277 = arith.constant 0 : index
    %304 = vector.load %arg6[%c3_275, %c0_276, %c0_277] : memref<9x256x256xbf16, #tpu.memory_space<vmem>>, vector<1x256x256xbf16>
    %305 = vector.shape_cast %304 : vector<1x256x256xbf16> to vector<256x256xbf16>
    %cst_278 = arith.constant dense<0.000000e+00> : vector<256x128xf32>
    %306 = tpu.matmul %305, %278, %cst_278 {dimension_numbers = #tpu.dot_dimension_numbers<[1], [0], [0], [1], [0, 0, 1, 1], [], []>} : vector<256x256xbf16>, vector<256x128xbf16>, vector<256x128xf32> -> vector<256x128xf32>
    %307 = arith.truncf %306 : vector<256x128xf32> to vector<256x128xbf16>
    %c41 = arith.constant 41 : index
    %c0_279 = arith.constant 0 : index
    %c0_280 = arith.constant 0 : index
    %308 = vector.load %arg7[%c41, %c0_279, %c0_280] : memref<48x128x128xbf16, #tpu.memory_space<vmem>>, vector<1x128x128xbf16>
    %309 = vector.shape_cast %308 : vector<1x128x128xbf16> to vector<128x128xbf16>
    %cst_281 = arith.constant dense<0.000000e+00> : vector<256x128xf32>
    %310 = tpu.matmul %307, %309, %cst_281 {dimension_numbers = #tpu.dot_dimension_numbers<[1], [0], [0], [1], [0, 0, 1, 1], [], []>} : vector<256x128xbf16>, vector<128x128xbf16>, vector<256x128xf32> -> vector<256x128xf32>
    %311 = arith.addf %303, %310 : vector<256x128xf32>
    %c4_282 = arith.constant 4 : index
    %c0_283 = arith.constant 0 : index
    %c0_284 = arith.constant 0 : index
    %312 = vector.load %arg6[%c4_282, %c0_283, %c0_284] : memref<9x256x256xbf16, #tpu.memory_space<vmem>>, vector<1x256x256xbf16>
    %313 = vector.shape_cast %312 : vector<1x256x256xbf16> to vector<256x256xbf16>
    %cst_285 = arith.constant dense<0.000000e+00> : vector<256x128xf32>
    %314 = tpu.matmul %313, %278, %cst_285 {dimension_numbers = #tpu.dot_dimension_numbers<[1], [0], [0], [1], [0, 0, 1, 1], [], []>} : vector<256x256xbf16>, vector<256x128xbf16>, vector<256x128xf32> -> vector<256x128xf32>
    %315 = arith.truncf %314 : vector<256x128xf32> to vector<256x128xbf16>
    %c42 = arith.constant 42 : index
    %c0_286 = arith.constant 0 : index
    %c0_287 = arith.constant 0 : index
    %316 = vector.load %arg7[%c42, %c0_286, %c0_287] : memref<48x128x128xbf16, #tpu.memory_space<vmem>>, vector<1x128x128xbf16>
    %317 = vector.shape_cast %316 : vector<1x128x128xbf16> to vector<128x128xbf16>
    %cst_288 = arith.constant dense<0.000000e+00> : vector<256x128xf32>
    %318 = tpu.matmul %315, %317, %cst_288 {dimension_numbers = #tpu.dot_dimension_numbers<[1], [0], [0], [1], [0, 0, 1, 1], [], []>} : vector<256x128xbf16>, vector<128x128xbf16>, vector<256x128xf32> -> vector<256x128xf32>
    %319 = arith.addf %311, %318 : vector<256x128xf32>
    %c5_289 = arith.constant 5 : index
    %c0_290 = arith.constant 0 : index
    %c0_291 = arith.constant 0 : index
    %320 = vector.load %arg6[%c5_289, %c0_290, %c0_291] : memref<9x256x256xbf16, #tpu.memory_space<vmem>>, vector<1x256x256xbf16>
    %321 = vector.shape_cast %320 : vector<1x256x256xbf16> to vector<256x256xbf16>
    %cst_292 = arith.constant dense<0.000000e+00> : vector<256x128xf32>
    %322 = tpu.matmul %321, %278, %cst_292 {dimension_numbers = #tpu.dot_dimension_numbers<[1], [0], [0], [1], [0, 0, 1, 1], [], []>} : vector<256x256xbf16>, vector<256x128xbf16>, vector<256x128xf32> -> vector<256x128xf32>
    %323 = arith.truncf %322 : vector<256x128xf32> to vector<256x128xbf16>
    %c43 = arith.constant 43 : index
    %c0_293 = arith.constant 0 : index
    %c0_294 = arith.constant 0 : index
    %324 = vector.load %arg7[%c43, %c0_293, %c0_294] : memref<48x128x128xbf16, #tpu.memory_space<vmem>>, vector<1x128x128xbf16>
    %325 = vector.shape_cast %324 : vector<1x128x128xbf16> to vector<128x128xbf16>
    %cst_295 = arith.constant dense<0.000000e+00> : vector<256x128xf32>
    %326 = tpu.matmul %323, %325, %cst_295 {dimension_numbers = #tpu.dot_dimension_numbers<[1], [0], [0], [1], [0, 0, 1, 1], [], []>} : vector<256x128xbf16>, vector<128x128xbf16>, vector<256x128xf32> -> vector<256x128xf32>
    %327 = arith.addf %319, %326 : vector<256x128xf32>
    %c6_296 = arith.constant 6 : index
    %c0_297 = arith.constant 0 : index
    %c0_298 = arith.constant 0 : index
    %328 = vector.load %arg6[%c6_296, %c0_297, %c0_298] : memref<9x256x256xbf16, #tpu.memory_space<vmem>>, vector<1x256x256xbf16>
    %329 = vector.shape_cast %328 : vector<1x256x256xbf16> to vector<256x256xbf16>
    %cst_299 = arith.constant dense<0.000000e+00> : vector<256x128xf32>
    %330 = tpu.matmul %329, %278, %cst_299 {dimension_numbers = #tpu.dot_dimension_numbers<[1], [0], [0], [1], [0, 0, 1, 1], [], []>} : vector<256x256xbf16>, vector<256x128xbf16>, vector<256x128xf32> -> vector<256x128xf32>
    %331 = arith.truncf %330 : vector<256x128xf32> to vector<256x128xbf16>
    %c44 = arith.constant 44 : index
    %c0_300 = arith.constant 0 : index
    %c0_301 = arith.constant 0 : index
    %332 = vector.load %arg7[%c44, %c0_300, %c0_301] : memref<48x128x128xbf16, #tpu.memory_space<vmem>>, vector<1x128x128xbf16>
    %333 = vector.shape_cast %332 : vector<1x128x128xbf16> to vector<128x128xbf16>
    %cst_302 = arith.constant dense<0.000000e+00> : vector<256x128xf32>
    %334 = tpu.matmul %331, %333, %cst_302 {dimension_numbers = #tpu.dot_dimension_numbers<[1], [0], [0], [1], [0, 0, 1, 1], [], []>} : vector<256x128xbf16>, vector<128x128xbf16>, vector<256x128xf32> -> vector<256x128xf32>
    %335 = arith.addf %327, %334 : vector<256x128xf32>
    %c7_303 = arith.constant 7 : index
    %c0_304 = arith.constant 0 : index
    %c0_305 = arith.constant 0 : index
    %336 = vector.load %arg6[%c7_303, %c0_304, %c0_305] : memref<9x256x256xbf16, #tpu.memory_space<vmem>>, vector<1x256x256xbf16>
    %337 = vector.shape_cast %336 : vector<1x256x256xbf16> to vector<256x256xbf16>
    %cst_306 = arith.constant dense<0.000000e+00> : vector<256x128xf32>
    %338 = tpu.matmul %337, %278, %cst_306 {dimension_numbers = #tpu.dot_dimension_numbers<[1], [0], [0], [1], [0, 0, 1, 1], [], []>} : vector<256x256xbf16>, vector<256x128xbf16>, vector<256x128xf32> -> vector<256x128xf32>
    %339 = arith.truncf %338 : vector<256x128xf32> to vector<256x128xbf16>
    %c45 = arith.constant 45 : index
    %c0_307 = arith.constant 0 : index
    %c0_308 = arith.constant 0 : index
    %340 = vector.load %arg7[%c45, %c0_307, %c0_308] : memref<48x128x128xbf16, #tpu.memory_space<vmem>>, vector<1x128x128xbf16>
    %341 = vector.shape_cast %340 : vector<1x128x128xbf16> to vector<128x128xbf16>
    %cst_309 = arith.constant dense<0.000000e+00> : vector<256x128xf32>
    %342 = tpu.matmul %339, %341, %cst_309 {dimension_numbers = #tpu.dot_dimension_numbers<[1], [0], [0], [1], [0, 0, 1, 1], [], []>} : vector<256x128xbf16>, vector<128x128xbf16>, vector<256x128xf32> -> vector<256x128xf32>
    %343 = arith.addf %335, %342 : vector<256x128xf32>
    %c8_310 = arith.constant 8 : index
    %c0_311 = arith.constant 0 : index
    %c0_312 = arith.constant 0 : index
    %344 = vector.load %arg6[%c8_310, %c0_311, %c0_312] : memref<9x256x256xbf16, #tpu.memory_space<vmem>>, vector<1x256x256xbf16>
    %345 = vector.shape_cast %344 : vector<1x256x256xbf16> to vector<256x256xbf16>
    %cst_313 = arith.constant dense<0.000000e+00> : vector<256x128xf32>
    %346 = tpu.matmul %345, %278, %cst_313 {dimension_numbers = #tpu.dot_dimension_numbers<[1], [0], [0], [1], [0, 0, 1, 1], [], []>} : vector<256x256xbf16>, vector<256x128xbf16>, vector<256x128xf32> -> vector<256x128xf32>
    %347 = arith.truncf %346 : vector<256x128xf32> to vector<256x128xbf16>
    %c46 = arith.constant 46 : index
    %c0_314 = arith.constant 0 : index
    %c0_315 = arith.constant 0 : index
    %348 = vector.load %arg7[%c46, %c0_314, %c0_315] : memref<48x128x128xbf16, #tpu.memory_space<vmem>>, vector<1x128x128xbf16>
    %349 = vector.shape_cast %348 : vector<1x128x128xbf16> to vector<128x128xbf16>
    %cst_316 = arith.constant dense<0.000000e+00> : vector<256x128xf32>
    %350 = tpu.matmul %347, %349, %cst_316 {dimension_numbers = #tpu.dot_dimension_numbers<[1], [0], [0], [1], [0, 0, 1, 1], [], []>} : vector<256x128xbf16>, vector<128x128xbf16>, vector<256x128xf32> -> vector<256x128xf32>
    %351 = arith.addf %343, %350 : vector<256x128xf32>
    %c4_317 = arith.constant 4 : index
    %c0_318 = arith.constant 0 : index
    %352 = vector.load %arg8[%c4_317, %c0_318] : memref<8x128xf32, #tpu.memory_space<vmem>>, vector<1x128xf32>
    %353 = vector.broadcast %352 : vector<1x128xf32> to vector<256x128xf32>
    %354 = arith.mulf %351, %353 : vector<256x128xf32>
    %c4_319 = arith.constant 4 : index
    %c0_320 = arith.constant 0 : index
    %355 = vector.load %arg9[%c4_319, %c0_320] : memref<8x128xf32, #tpu.memory_space<vmem>>, vector<1x128xf32>
    %356 = vector.broadcast %355 : vector<1x128xf32> to vector<256x128xf32>
    %357 = arith.addf %354, %356 : vector<256x128xf32>
    %cst_321 = arith.constant 0.000000e+00 : f32
    %358 = vector.broadcast %cst_321 : f32 to vector<256x128xf32>
    %359 = arith.maximumf %357, %358 : vector<256x128xf32>
    %c0_322 = arith.constant 0 : index
    %c0_323 = arith.constant 0 : index
    %c0_324 = arith.constant 0 : index
    %360 = vector.load %arg12[%c0_322, %c0_323, %c0_324] : memref<1x256x128xf32, #tpu.memory_space<vmem>>, vector<1x256x128xf32>
    %361 = vector.shape_cast %360 : vector<1x256x128xf32> to vector<256x128xf32>
    %362 = vector.shape_cast %359 : vector<256x128xf32> to vector<1x256x128xf32>
    tpu.vector_store %arg12[%c0_322, %c0_323, %c0_324], %362 {strides = array<i32>} : memref<1x256x128xf32, #tpu.memory_space<vmem>>, vector<1x256x128xf32>,
    %363 = arith.truncf %359 : vector<256x128xf32> to vector<256x128xbf16>
    %c47 = arith.constant 47 : index
    %c0_325 = arith.constant 0 : index
    %c0_326 = arith.constant 0 : index
    %364 = vector.load %arg7[%c47, %c0_325, %c0_326] : memref<48x128x128xbf16, #tpu.memory_space<vmem>>, vector<1x128x128xbf16>
    %365 = vector.shape_cast %364 : vector<1x128x128xbf16> to vector<128x128xbf16>
    %cst_327 = arith.constant dense<0.000000e+00> : vector<256x128xf32>
    %366 = tpu.matmul %363, %365, %cst_327 {dimension_numbers = #tpu.dot_dimension_numbers<[1], [0], [0], [1], [0, 0, 1, 1], [], []>} : vector<256x128xbf16>, vector<128x128xbf16>, vector<256x128xf32> -> vector<256x128xf32>
    %c5_328 = arith.constant 5 : index
    %c0_329 = arith.constant 0 : index
    %367 = vector.load %arg8[%c5_328, %c0_329] : memref<8x128xf32, #tpu.memory_space<vmem>>, vector<1x128xf32>
    %368 = vector.broadcast %367 : vector<1x128xf32> to vector<256x128xf32>
    %369 = arith.mulf %366, %368 : vector<256x128xf32>
    %c5_330 = arith.constant 5 : index
    %c0_331 = arith.constant 0 : index
    %370 = vector.load %arg9[%c5_330, %c0_331] : memref<8x128xf32, #tpu.memory_space<vmem>>, vector<1x128xf32>
    %371 = vector.broadcast %370 : vector<1x128xf32> to vector<256x128xf32>
    %372 = arith.addf %369, %371 : vector<256x128xf32>
    %c0_332 = arith.constant 0 : index
    %c0_333 = arith.constant 0 : index
    %c0_334 = arith.constant 0 : index
    %373 = vector.load %arg13[%c0_332, %c0_333, %c0_334] : memref<1x256x128xf32, #tpu.memory_space<vmem>>, vector<1x256x128xf32>
    %374 = vector.shape_cast %373 : vector<1x256x128xf32> to vector<256x128xf32>
    %375 = vector.shape_cast %372 : vector<256x128xf32> to vector<1x256x128xf32>
    tpu.vector_store %arg13[%c0_332, %c0_333, %c0_334], %375 {strides = array<i32>} : memref<1x256x128xf32, #tpu.memory_space<vmem>>, vector<1x256x128xf32>,
    return
  }
  func.func @transform_0(%arg0: i32) -> (i32, i32, i32) {
    %c0_i32 = arith.constant 0 : i32
    %c0_i32_0 = arith.constant 0 : i32
    %c0_i32_1 = arith.constant 0 : i32
    return %arg0, %c0_i32, %c0_i32_0 : i32, i32, i32
  }
  func.func @transform_1(%arg0: i32) -> (i32, i32, i32) {
    %c0_i32 = arith.constant 0 : i32
    %c0_i32_0 = arith.constant 0 : i32
    %c0_i32_1 = arith.constant 0 : i32
    %c0_i32_2 = arith.constant 0 : i32
    return %c0_i32, %c0_i32_0, %c0_i32_1 : i32, i32, i32
  }
  func.func @transform_2(%arg0: i32) -> (i32, i32, i32) {
    %c0_i32 = arith.constant 0 : i32
    %c0_i32_0 = arith.constant 0 : i32
    %c0_i32_1 = arith.constant 0 : i32
    %c0_i32_2 = arith.constant 0 : i32
    return %c0_i32, %c0_i32_0, %c0_i32_1 : i32, i32, i32
  }
  func.func @transform_3(%arg0: i32) -> (i32, i32) {
    %c0_i32 = arith.constant 0 : i32
    %c0_i32_0 = arith.constant 0 : i32
    %c0_i32_1 = arith.constant 0 : i32
    return %c0_i32, %c0_i32_0 : i32, i32
  }
  func.func @transform_4(%arg0: i32) -> (i32, i32) {
    %c0_i32 = arith.constant 0 : i32
    %c0_i32_0 = arith.constant 0 : i32
    %c0_i32_1 = arith.constant 0 : i32
    return %c0_i32, %c0_i32_0 : i32, i32
  }
  func.func @transform_5(%arg0: i32) -> (i32, i32, i32) {
    %c0_i32 = arith.constant 0 : i32
    %c0_i32_0 = arith.constant 0 : i32
    %c0_i32_1 = arith.constant 0 : i32
    %c0_i32_2 = arith.constant 0 : i32
    return %c0_i32, %c0_i32_0, %c0_i32_1 : i32, i32, i32
  }
  func.func @transform_6(%arg0: i32) -> (i32, i32, i32) {
    %c0_i32 = arith.constant 0 : i32
    %c0_i32_0 = arith.constant 0 : i32
    %c0_i32_1 = arith.constant 0 : i32
    %c0_i32_2 = arith.constant 0 : i32
    return %c0_i32, %c0_i32_0, %c0_i32_1 : i32, i32, i32
  }
  func.func @transform_7(%arg0: i32) -> (i32, i32) {
    %c0_i32 = arith.constant 0 : i32
    %c0_i32_0 = arith.constant 0 : i32
    %c0_i32_1 = arith.constant 0 : i32
    return %c0_i32, %c0_i32_0 : i32, i32
  }
  func.func @transform_8(%arg0: i32) -> (i32, i32) {
    %c0_i32 = arith.constant 0 : i32
    %c0_i32_0 = arith.constant 0 : i32
    %c0_i32_1 = arith.constant 0 : i32
    return %c0_i32, %c0_i32_0 : i32, i32
  }
  func.func @transform_9(%arg0: i32) -> (i32, i32, i32) {
    %c0_i32 = arith.constant 0 : i32
    %c0_i32_0 = arith.constant 0 : i32
    %c0_i32_1 = arith.constant 0 : i32
    return %arg0, %c0_i32, %c0_i32_0 : i32, i32, i32
  }
  func.func @transform_10(%arg0: i32) -> (i32, i32, i32) {
    %c0_i32 = arith.constant 0 : i32
    %c0_i32_0 = arith.constant 0 : i32
    %c0_i32_1 = arith.constant 0 : i32
    return %arg0, %c0_i32, %c0_i32_0 : i32, i32, i32
  }
  func.func @transform_11(%arg0: i32) -> (i32, i32, i32) {
    %c0_i32 = arith.constant 0 : i32
    %c0_i32_0 = arith.constant 0 : i32
    %c0_i32_1 = arith.constant 0 : i32
    return %arg0, %c0_i32, %c0_i32_0 : i32, i32, i32
  }
  func.func @transform_12(%arg0: i32) -> (i32, i32, i32) {
    %c0_i32 = arith.constant 0 : i32
    %c0_i32_0 = arith.constant 0 : i32
    %c0_i32_1 = arith.constant 0 : i32
    return %arg0, %c0_i32, %c0_i32_0 : i32, i32, i32
  }
}

</mosaic_0001>

<bundles_post_ra>
// kernel: custom-call.5
= control target key start
LH: loop header
LB: loop body
LE: loop exit
PB: predicated region body
PF: predicated region fallthrough
CT: control target
= control target key end

     0   :  { %s6_s0 = inlined_call_operand.vmem [shape: f32[80,8], index: 0, kind: output, shape index: {}]  }

// kernel: custom-call.4
= control target key start
LH: loop header
LB: loop body
LE: loop exit
PB: predicated region body
PF: predicated region fallthrough
CT: control target
= control target key end

     0   :  { %s6_s0 = inlined_call_operand.vmem [shape: f32[80,12], index: 0, kind: output, shape index: {}]  }

// kernel: forward.1
= control target key start
LH: loop header
LB: loop body
LE: loop exit
PB: predicated region body
PF: predicated region fallthrough
CT: control target
= control target key end

     0   :  { %s19637_s0 = inlined_call_operand.vmem [shape: f32[2,256,128], index: 0, kind: input, shape index: {}]   ;;  %s19638_s1 = inlined_call_operand.hbm [shape: bf16[9,64,256], index: 1, kind: input, shape index: {}]   ;;  %s19639_s2 = inlined_call_operand.hbm [shape: bf16[9,16,64], index: 2, kind: input, shape index: {}]   ;;  %s19640_s3 = inlined_call_operand.hbm [shape: bf16[256,256], index: 3, kind: input, shape index: {}]   ;;  %s19641_s4 = inlined_call_operand.hbm [shape: bf16[256,256], index: 4, kind: input, shape index: {}]   ;;  %s19642_s5 = inlined_call_operand.hbm [shape: bf16[9,256,256], index: 5, kind: input, shape index: {}]   ;;  %s19643_s6 = inlined_call_operand.hbm [shape: bf16[48,128,128], index: 6, kind: input, shape index: {}]   ;;  %s19644_s7 = inlined_call_operand.hbm [shape: f32[8,128], index: 7, kind: input, shape index: {}]   ;;  %s19645_s8 = inlined_call_operand.hbm [shape: f32[8,128], index: 8, kind: input, shape index: {}]   ;;  %s19646_s9 = inlined_call_operand.vmem [shape: f32[2,64,128], index: 9, kind: output, shape index: {0}]   ;;  %s19647_s10 = inlined_call_operand.hbm [shape: f32[2,16,128], index: 10, kind: output, shape index: {1}]   ;;  %s19648_s11 = inlined_call_operand.vmem [shape: f32[2,256,128], index: 11, kind: output, shape index: {2}]   ;;  %s19649_s12 = inlined_call_operand.vmem [shape: f32[2,256,128], index: 12, kind: output, shape index: {3}]  }
   0x1   :  { %19676 = sst [smem:[#allocation56_spill]] %s19639_s2 }
   0x2   :  { %19677 = sst [smem:[#allocation57_spill]] %s19641_s4 }
   0x3   :  { %19678 = sst [smem:[#allocation58_spill]] %s19643_s6 }
   0x4   :  { %19679 = sst [smem:[#allocation59_spill]] %s19647_s10 }
   0x5   :  { %18 = vsyncpa [#allocation4], 0 }
   0x6   :  { %19 = vsyncpa [#allocation7], 0 }
   0x7   :  { %20 = vsyncpa [#allocation10], 0 }
   0x8   :  { %21 = vsyncpa [#allocation13], 0 }
   0x9   :  { %22 = vsyncpa [#allocation16], 0 }
   0xa   :  { %23 = vsyncpa [#allocation5], 0 }
   0xb   :  { %25 = vsyncpa [#allocation5 + $0x1], 0  ;;  %s16766_s21 = smov 0   ;;  %s16768_s22 = smov 0  }
   0xc   :  { %s16770_s23 = smov 0   ;;  %s16772_s24 = smov 0  }
   0xd LB: > { %19680 = sst [smem:[#allocation24_spill]] %s16673_s21  ;;  %s16787_s25 = sadd.s32 4294967295, %s16685_s24   ;;  %s16685_s24 = sphi %s16772_s24, %s19876_s24   ;;  %s16681_s23 = sphi %s16770_s23, %s19878_s23   ;;  %s16677_s22 = sphi %s16768_s22, %s19880_s22   ;;  %s16673_s21 = sphi %s16766_s21, %s19879_s21  }
   0xe   : > { %19681 = sst [smem:[#allocation25_spill]] %s16681_s23  ;;  %s12076_s26 = sadd.s32 4294967294, %s16685_s24  }
   0xf   : > { %19682 = sst [smem:[#allocation26_spill]] %s16685_s24  ;;  %s16791_s27 = sadd.s32 1, %s16685_s24  }
  0x10   : > { %19683 = sst [smem:[#allocation27_spill]] %s16791_s27  ;;  %s258_s28 = sadd.s32 1, %s16681_s23 }
  0x11   : > { %s255_s29 = ssub.s32 %s16685_s24, %s16791_s27  ;;  %p268_p0 = scmp.ne.s32.totalorder %s16681_s23, %s16677_s22 }
  0x12   : > { %p256_p1 = scmp.eq.s32.totalorder %s255_s29, 0  ;;  %p269_p2 = scmp.eq.s32.totalorder %s16787_s25, 1 }
  0x13   : > { %p274_p3 = scmp.ne.s32.totalorder %s16677_s22, %s16673_s21  ;;  %p275_p4 = scmp.eq.s32.totalorder %s12076_s26, 1 }
  0x14   : > { %s16802_s30 = scalar_select %p256_p1, %s16681_s23, %s258_s28  }
  0x15   : > { %p16804_p5 = por %p269_p2, %p268_p0  ;;  %p16808_p6 = por %p275_p4, %p274_p3 }
  0x16   : > { %19684 = sst [smem:[#allocation28_spill]] %s16802_s30  ;;  %p12077_p7 = scmp.ge.s32.totalorder %s16685_s24, 1 }
  0x17   : > { %s19686_s14 = scalar_select %p16808_p6, 1, 0 }
  0x18   : > { %p334_p8 = scmp.lt.s32.totalorder %s16685_s24, 3  ;;  %p16288_p9 = scmp.eq.s32.totalorder %s16787_s25, 0 }
  0x19   : > { %19687 = sst [smem:[#allocation29_spill]] %s19686_s14  ;;  %s16687_s19 = smov [#allocation6]  }
  0x1a   : > { %p16815_p10 = pnand %p12077_p7, %p334_p8  ;;  %s19689_s2 = sld [smem:[#allocation56_spill]] }
  0x1b   : > { %s361_s20 = sshll.u32 %s16687_s19, 4  ;;  %s19691_s4 = sld [smem:[#allocation57_spill]]  ;;  %s362_s20 = int_to_ptr.vmem [resolvable:$true] %s361_s20 }
  0x1c   : > { %p16259_p11 = pneg %p16815_p10  ;;  %s16688_s16 = smov 64  }
  0x1d   : > { %s16689_s17 = smov 4   ;;  %s19692_s6 = sld [smem:[#allocation58_spill]] }
  0x1e   : > { %p16826_p12 = pnand %p16288_p9, %p16259_p11  ;;  %s16691_s21 = smov 128  }
  0x1f   : > { %s16692_s28 = smov 8   ;;  %s345_s24 = sshll.u32 %s19638_s1, 4  ;;  %s346_s24 = int_to_ptr.hbm [resolvable:$true] %s345_s24 }
  0x20   : > { %s359_s18 = sshll.u32 %s19689_s2, 4  ;;  %s16690_s2 = smov [#allocation9]   ;;  %s360_s18 = int_to_ptr.hbm [resolvable:$true] %s359_s18 }
  0x21   : > { %s387_s30 = sshll.u32 %s19691_s4, 4  ;;  %s389_s19 = sshll.u32 %s16690_s2, 4  ;;  %s388_s30 = int_to_ptr.hbm [resolvable:$true] %s387_s30  ;;  %s390_s19 = int_to_ptr.vmem [resolvable:$true] %s389_s19 }
  0x22   : > { %16265 = dma.hbm_to_vmem [thread:$0]  (!%p16826_p12), %s360_s18, 1152, %s362_s20, [#allocation7], %s16688_s16, %s16688_s16, %s16689_s17  }
  0x23   : > { %s415_s14 = sshll.u32 %s19692_s6, 4  ;;  %s16693_s10 = smov [#allocation12]   ;;  %s416_s14 = int_to_ptr.hbm [resolvable:$true] %s415_s14 }
  0x24   : > { %16271 = dma.hbm_to_vmem [thread:$0]  (!%p16826_p12), %s388_s30, 4096, %s390_s19, [#allocation10], %s16691_s21, %s16691_s21, %s16692_s28  }
  0x25   : > { %s417_s18 = sshll.u32 %s16693_s10, 4  ;;  %s16694_s2 = smov [#allocation3]   ;;  %s418_s18 = int_to_ptr.vmem [resolvable:$true] %s417_s18 }
  0x26   : > { %16277 = dma.hbm_to_vmem [thread:$0]  (!%p16826_p12), %s416_s14, 49152, %s418_s18, [#allocation13], %s16688_s16, %s16688_s16, %s16689_s17  }
  0x27   : > { %s347_s23 = sshll.u32 %s16694_s2, 4  ;;  %s373_s6 = sshll.u32 %s19640_s3, 4  ;;  %s348_s23 = int_to_ptr.vmem [resolvable:$true] %s347_s23  ;;  %s374_s6 = int_to_ptr.hbm [resolvable:$true] %s373_s6 }
  0x28   : > { %16262 = dma.hbm_to_vmem [thread:$0]  (!%p16826_p12), %s346_s24, 9216, %s348_s23, [#allocation4], %s16691_s21, %s16691_s21, %s16692_s28  }
  0x29   : > { %s401_s19 = sshll.u32 %s19642_s5, 4  ;;  %s16695_s10 = smov [#allocation8]   ;;  %s402_s19 = int_to_ptr.hbm [resolvable:$true] %s401_s19 }
  0x2a   : > { %s375_s29 = sshll.u32 %s16695_s10, 4  ;;  %s16696_s14 = smov [#allocation11]   ;;  %s376_s29 = int_to_ptr.vmem [resolvable:$true] %s375_s29 }
  0x2b   : > { %16268 = dma.hbm_to_vmem [thread:$0]  (!%p16826_p12), %s374_s6, 4096, %s376_s29, [#allocation7], %s16691_s21, %s16691_s21, %s16692_s28  }
  0x2c   : > { %s403_s16 = sshll.u32 %s16696_s14, 4  ;;  %s430_s2 = sshll.u32 %s19644_s7, 4  ;;  %s404_s16 = int_to_ptr.vmem [resolvable:$true] %s403_s16  ;;  %s431_s2 = int_to_ptr.hbm [resolvable:$true] %s430_s2 }
  0x2d   : > { %16274 = dma.hbm_to_vmem [thread:$0]  (!%p16826_p12), %s402_s19, 36864, %s404_s16, [#allocation10], %s16691_s21, %s16691_s21, %s16692_s28  }
  0x2e   : > { %s442_s27 = sshll.u32 %s19645_s8, 4  ;;  %s16697_s20 = smov [#allocation14]   ;;  %s443_s27 = int_to_ptr.hbm [resolvable:$true] %s442_s27 }
  0x2f   : > { %s432_s4 = sshll.u32 %s16697_s20, 4  ;;  %s16698_s6 = smov [#allocation15]   ;;  %s433_s4 = int_to_ptr.vmem [resolvable:$true] %s432_s4 }
  0x30   : > { %16280 = dma.hbm_to_vmem [thread:$0]  (!%p16826_p12), %s431_s2, 128, %s433_s4, [#allocation13]  }
  0x31   : > { %s444_s30 = sshll.u32 %s16698_s6, 4  ;;  %465 = sbr.rel (%p16815_p10) target bundleno = 4985 (0x1379), region = 56  ;;  %s445_s30 = int_to_ptr.vmem [resolvable:$true] %s444_s30 }
  0x32   : > { %16283 = dma.hbm_to_vmem [thread:$0]  (!%p16826_p12), %s443_s27, 128, %s445_s30, [#allocation16]  }
  0x36   : > { %16648 = dma.done.wait (%p16288_p9), [#allocation4], 9216  }
  0x37   : > { %16650 = vsyncadd (%p16288_p9), [#allocation4], 4294958080 }
  0x38   : > { %16652 = dma.done.wait (%p16288_p9), [#allocation7], 5248  }
  0x39   : > { %16654 = vsyncadd (%p16288_p9), [#allocation7], 4294962048 }
  0x3a   : > { %16656 = dma.done.wait (%p16288_p9), [#allocation10], 40960  }
  0x3b   : > { %16658 = vsyncadd (%p16288_p9), [#allocation10], 4294926336 }
  0x3c   : > { %16660 = dma.done.wait (%p16288_p9), [#allocation13], 49280  }
  0x3d   : > { %16662 = vsyncadd (%p16288_p9), [#allocation13], 4294918016 }
  0x3e   : > { %16664 = dma.done.wait (%p16288_p9), [#allocation16], 128  }
  0x3f   : > { %16666 = vsyncadd (%p16288_p9), [#allocation16], 4294967168  ;;  %p558_p13 = scmp.lt.s32.totalorder %s16787_s25, 1  ;;  %v12107_v46 = vld [vmem:[#allocation3] sm:$0xf]  ;;  %vm2573_vm0 = vcmask 523264  }
  0x40   : > { %v15392_v47 = vld [vmem:[#allocation3 + $0x4] sm:$0xf0]  ;;  %v15391_v49 = vld [vmem:[#allocation3 + $0x4] sm:$0xf]  ;;  %v12139_v50 = vld [vmem:[#allocation3 + $0x40] sm:$0xf] }
  0x41   : > { %s16891_s21 = scalar_select %p558_p13, %s16787_s25, 1  ;;  %v15408_v51 = vld [vmem:[#allocation3 + $0x44] sm:$0xf0]  ;;  %v12109_v53 = vld [vmem:[#allocation3 + $0x8] sm:$0xf0]  ;;  %v12108_v56 = vor.u32 %v15392_v47, %v12107_v46 }
  0x42   : > { %v15407_v54 = vld [vmem:[#allocation3 + $0x44] sm:$0xf]  ;;  %v12141_v55 = vld [vmem:[#allocation3 + $0x48] sm:$0xf0]  ;;  %v12140_v57 = vor.u32 %v15408_v51, %v12139_v50  ;;  %v12112_v58 = vor.u32 %v15391_v49, %v12109_v53  ;;  %v12115_v60 = vld [vmem:[#allocation3 + $0x10] sm:$0xf] }
  0x43   : > { %s16894_s15 = sshll.u32 %s16891_s21, 8  ;;  %v12144_v59 = vor.u32 %v15407_v54, %v12141_v55  ;;  %v15394_v61 = vld [vmem:[#allocation3 + $0x14] sm:$0xf0]  ;;  %v15393_v62 = vld [vmem:[#allocation3 + $0x14] sm:$0xf]  ;;  %v15406_v54 = vld [vmem:[#allocation12 + $0x38] sm:$0xff] }
  0x44   : > { %s16900_s19 = scalar_lea.vmem %s19637_s0, %s16894_s15  ;;  %v12147_v63 = vld [vmem:[#allocation3 + $0x50] sm:$0xf]  ;;  %v12235_v46 = vld [vmem:[#allocation3 + $0x80] sm:$0xf]  ;;  %v15424_v47 = vld [vmem:[#allocation3 + $0x84] sm:$0xf0]  ;;  %s19326_s27 = scalar_lea.vmem %s19648_s11, %s16894_s15 }
  0x45   : > { %v593_v0 = vld [vmem:[%s16900_s19 + $0x70] sm:$0xff]  ;;  %v594_v1 = vld [vmem:[%s16900_s19 + $0x78] sm:$0xff]  ;;  %v591_v5 = vld [vmem:[%s16900_s19 + $0x60] sm:$0xff]  ;;  %v12236_v51 = vor.u32 %v15424_v47, %v12235_v46  ;;  %s15388_s10 = sshll.u32 %s16891_s21, 6  ;;  %s541_s17 = sand.u32 1, %s16677_s22  }
  0x46   : > { %v609_v2 = vld [vmem:[%s16900_s19 + $0xf0] sm:$0xff]  ;;  %v16905_v3 = vpack.c.bf16 %v594_v1, %v593_v0  ;;  %v610_v4 = vld [vmem:[%s16900_s19 + $0xf8] sm:$0xff]  ;;  %v592_v6 = vld [vmem:[%s16900_s19 + $0x68] sm:$0xff]  ;;  %s17242_s16 = scalar_lea.vmem %s19646_s9, %s15388_s10  ;;  %s12096_s18 = sshll.u32 %s541_s17, 4 }
  0x47   : > { %v16910_v7 = vpack.c.bf16 %v610_v4, %v609_v2  ;;  %v607_v8 = vld [vmem:[%s16900_s19 + $0xe0] sm:$0xff]  ;;  %v608_v9 = vld [vmem:[%s16900_s19 + $0xe8] sm:$0xff]  ;;  %v16916_v10 = vpack.c.bf16 %v592_v6, %v591_v5  ;;  %v589_v12 = vld [vmem:[%s16900_s19 + $0x50] sm:$0xff]  ;;  %v12116_v5 = vor.u32 %v15394_v61, %v12115_v60  ;;  %s17407_s2 = scalar_lea.vmem [#allocation17], %s12096_s18  ;;  %s19444_s6 = scalar_lea.vmem %s19649_s12, %s16894_s15 }
  0x48   : > { %675 = vmatpush.bf16.msra.mxu0 %v16905_v3  ;;  %802 = vmatpush.bf16.msra.mxu2 %v16905_v3  ;;  %v16920_v11 = vpack.c.bf16 %v608_v9, %v607_v8  ;;  %v590_v13 = vld [vmem:[%s16900_s19 + $0x58] sm:$0xff]  ;;  %v605_v14 = vld [vmem:[%s16900_s19 + $0xd0] sm:$0xff]  ;;  %v587_v18 = vld [vmem:[%s16900_s19 + $0x40] sm:$0xff]  ;;  %s11851_s30 = sshll.u32 %s17407_s2, 4  ;;  %s16208_s21 = sshll.u32 %s16787_s25, 4  ;;  %s11852_s30 = int_to_ptr.vmem [resolvable:$true] %s11851_s30 }
  0x49   : > { %704 = vmatpush.bf16.msra.mxu1 %v16910_v7  ;;  %831 = vmatpush.bf16.msra.mxu3 %v16910_v7  ;;  %v606_v15 = vld [vmem:[%s16900_s19 + $0xd8] sm:$0xff]  ;;  %v16928_v16 = vpack.c.bf16 %v590_v13, %v589_v12  ;;  %v588_v19 = vld [vmem:[%s16900_s19 + $0x48] sm:$0xff]  ;;  %v603_v20 = vld [vmem:[%s16900_s19 + $0xc0] sm:$0xff]  ;;  %s19872_s28 = sld [smem:[#allocation59_spill]]  ;;  %s11826_s29 = scalar_lea.sflag [#allocation5], %s541_s17 }
  0x4a   : > { %v16932_v17 = vpack.c.bf16 %v606_v15, %v605_v14  ;;  %v604_v21 = vld [vmem:[%s16900_s19 + $0xc8] sm:$0xff]  ;;  %v16940_v22 = vpack.c.bf16 %v588_v19, %v587_v18  ;;  %v585_v24 = vld [vmem:[%s16900_s19 + $0x30] sm:$0xff]  ;;  %v586_v25 = vld [vmem:[%s16900_s19 + $0x38] sm:$0xff] }
  0x4b   : > { %v16944_v23 = vpack.c.bf16 %v604_v21, %v603_v20  ;;  %v601_v26 = vld [vmem:[%s16900_s19 + $0xb0] sm:$0xff]  ;;  %v602_v27 = vld [vmem:[%s16900_s19 + $0xb8] sm:$0xff]  ;;  %v16952_v28 = vpack.c.bf16 %v586_v25, %v585_v24  ;;  %v583_v30 = vld [vmem:[%s16900_s19 + $0x20] sm:$0xff] }
  0x4c   : > { %676 = vmatpush.bf16.msra.mxu0 %v16916_v10  ;;  %803 = vmatpush.bf16.msra.mxu2 %v16916_v10  ;;  %v16956_v29 = vpack.c.bf16 %v602_v27, %v601_v26  ;;  %v584_v31 = vld [vmem:[%s16900_s19 + $0x28] sm:$0xff]  ;;  %v599_v32 = vld [vmem:[%s16900_s19 + $0xa0] sm:$0xff]  ;;  %v581_v35 = vld [vmem:[%s16900_s19 + $0x10] sm:$0xff] }
  0x4d   : > { %705 = vmatpush.bf16.msra.mxu1 %v16920_v11  ;;  %832 = vmatpush.bf16.msra.mxu3 %v16920_v11  ;;  %v600_v33 = vld [vmem:[%s16900_s19 + $0xa8] sm:$0xff]  ;;  %v16964_v34 = vpack.c.bf16 %v584_v31, %v583_v30  ;;  %v582_v37 = vld [vmem:[%s16900_s19 + $0x18] sm:$0xff]  ;;  %v597_v38 = vld [vmem:[%s16900_s19 + $0x90] sm:$0xff] }
  0x4e   : > { %v16969_v36 = vpack.c.bf16 %v600_v33, %v599_v32  ;;  %v598_v39 = vld [vmem:[%s16900_s19 + $0x98] sm:$0xff]  ;;  %v16976_v40 = vpack.c.bf16 %v582_v37, %v581_v35  ;;  %v579_v42 = vld [vmem:[%s16900_s19] sm:$0xff]  ;;  %v580_v43 = vld [vmem:[%s16900_s19 + $0x8] sm:$0xff] }
  0x4f   : > { %v16980_v41 = vpack.c.bf16 %v598_v39, %v597_v38  ;;  %v595_v44 = vld [vmem:[%s16900_s19 + $0x80] sm:$0xff]  ;;  %v596_v45 = vld [vmem:[%s16900_s19 + $0x88] sm:$0xff]  ;;  %v16988_v48 = vpack.c.bf16 %v580_v43, %v579_v42  ;;  %v15410_v0 = vld [vmem:[#allocation3 + $0x54] sm:$0xf0]  ;;  %s11850_s19 = scalar_lea.hbm %s19872_s28, %s16208_s21 }
  0x50   : > { %677 = vmatpush.bf16.msra.mxu0 %v16928_v16  ;;  %804 = vmatpush.bf16.msra.mxu2 %v16928_v16  ;;  %v16992_v52 = vpack.c.bf16 %v596_v45, %v595_v44  ;;  %v12117_v1 = vld [vmem:[#allocation3 + $0x18] sm:$0xf0]  ;;  %v15409_v2 = vld [vmem:[#allocation3 + $0x54] sm:$0xf]  ;;  %v12148_v6 = vor.u32 %v15410_v0, %v12147_v63  ;;  %v12123_v12 = vld [vmem:[#allocation3 + $0x20] sm:$0xf] }
  0x51   : > { %706 = vmatpush.bf16.msra.mxu1 %v16932_v17  ;;  %833 = vmatpush.bf16.msra.mxu3 %v16932_v17  ;;  %v12149_v4 = vld [vmem:[#allocation3 + $0x58] sm:$0xf0]  ;;  %v12120_v8 = vor.u32 %v15393_v62, %v12117_v1  ;;  %v15396_v13 = vld [vmem:[#allocation3 + $0x24] sm:$0xf0]  ;;  %v15395_v14 = vld [vmem:[#allocation3 + $0x24] sm:$0xf] }
  0x52   : > { %v12152_v9 = vor.u32 %v15409_v2, %v12149_v4  ;;  %v12155_v15 = vld [vmem:[#allocation3 + $0x60] sm:$0xf]  ;;  %v15412_v18 = vld [vmem:[#allocation3 + $0x64] sm:$0xf0]  ;;  %v12125_v19 = vld [vmem:[#allocation3 + $0x28] sm:$0xf0]  ;;  %v12124_v24 = vor.u32 %v15396_v13, %v12123_v12 }
  0x53   : > { %v15411_v20 = vld [vmem:[#allocation3 + $0x64] sm:$0xf]  ;;  %v12157_v21 = vld [vmem:[#allocation3 + $0x68] sm:$0xf0]  ;;  %v12156_v25 = vor.u32 %v15412_v18, %v12155_v15  ;;  %v12128_v26 = vor.u32 %v15395_v14, %v12125_v19  ;;  %v12131_v30 = vld [vmem:[#allocation3 + $0x30] sm:$0xf] }
  0x54   : > { %678 = vmatpush.bf16.msra.mxu0 %v16940_v22  ;;  %805 = vmatpush.bf16.msra.mxu2 %v16940_v22  ;;  %v12160_v27 = vor.u32 %v15411_v20, %v12157_v21  ;;  %v15398_v31 = vld [vmem:[#allocation3 + $0x34] sm:$0xf0]  ;;  %v15397_v32 = vld [vmem:[#allocation3 + $0x34] sm:$0xf]  ;;  %v12163_v33 = vld [vmem:[#allocation3 + $0x70] sm:$0xf] }
  0x55   : > { %707 = vmatpush.bf16.msra.mxu1 %v16944_v23  ;;  %834 = vmatpush.bf16.msra.mxu3 %v16944_v23  ;;  %v15414_v35 = vld [vmem:[#allocation3 + $0x74] sm:$0xf0]  ;;  %v12133_v37 = vld [vmem:[#allocation3 + $0x38] sm:$0xf0]  ;;  %v15413_v38 = vld [vmem:[#allocation3 + $0x74] sm:$0xf]  ;;  %v12132_v42 = vor.u32 %v15398_v31, %v12131_v30 }
  0x56   : > { %v12165_v39 = vld [vmem:[#allocation3 + $0x78] sm:$0xf0]  ;;  %v12164_v43 = vor.u32 %v15414_v35, %v12163_v33  ;;  %v12136_v44 = vor.u32 %v15397_v32, %v12133_v37  ;;  %v15423_v49 = vld [vmem:[#allocation3 + $0x84] sm:$0xf]  ;;  %v12237_v50 = vld [vmem:[#allocation3 + $0x88] sm:$0xf0] }
  0x57   : > { %v12168_v45 = vor.u32 %v15413_v38, %v12165_v39  ;;  %v12240_v53 = vor.u32 %v15423_v49, %v12237_v50  ;;  %v15405_v55 = vld [vmem:[#allocation12 + $0x30] sm:$0xff]  ;;  %v15422_v62 = vld [vmem:[#allocation12 + $0x78] sm:$0xff]  ;;  %v15404_v63 = vld [vmem:[#allocation12 + $0x28] sm:$0xff]  ;;  %s11853_s10 = sshll.u32 %s11850_s19, 4  ;;  %s11854_s10 = int_to_ptr.hbm [resolvable:$true] %s11853_s10 }
  0x58   : > { %679 = vmatpush.bf16.msra.mxu0 %v16952_v28  ;;  %806 = vmatpush.bf16.msra.mxu2 %v16952_v28  ;;  %v15421_v0 = vld [vmem:[#allocation12 + $0x70] sm:$0xff]  ;;  %v15403_v1 = vld [vmem:[#allocation12 + $0x20] sm:$0xff]  ;;  %v15420_v2 = vld [vmem:[#allocation12 + $0x68] sm:$0xff]  ;;  %s16617_s14 = sshra.s32 %s11854_s10, 4  ;;  %s16618_s14 = int_to_ptr.hbm [resolvable:$true] %s16617_s14 }
  0x59   : > { %708 = vmatpush.bf16.msra.mxu1 %v16956_v29  ;;  %835 = vmatpush.bf16.msra.mxu3 %v16956_v29  ;;  %v15402_v4 = vld [vmem:[#allocation12 + $0x18] sm:$0xff]  ;;  %v15419_v13 = vld [vmem:[#allocation12 + $0x60] sm:$0xff]  ;;  %v15401_v15 = vld [vmem:[#allocation12 + $0x10] sm:$0xff]  ;;  %p16624_p3 = scmp.lt.s32.totalorder %s16618_s14, %s19872_s28 }
  0x5a   : > { %v15418_v18 = vld [vmem:[#allocation12 + $0x58] sm:$0xff]  ;;  %v15400_v19 = vld [vmem:[#allocation12 + $0x8] sm:$0xff]  ;;  %v15417_v20 = vld [vmem:[#allocation12 + $0x50] sm:$0xff] }
  0x5b   : > { %v15399_v21 = vld [vmem:[#allocation12] sm:$0xff]  ;;  %v12261_v30 = vld [vmem:[#allocation3 + $0xb8] sm:$0xf0] }
  0x5c   : > { %680 = vmatpush.bf16.msra.mxu0 %v16964_v34  ;;  %807 = vmatpush.bf16.msra.mxu2 %v16964_v34  ;;  %v15415_v32 = vld [vmem:[#allocation12 + $0x40] sm:$0xff] }
  0x5d   : > { %709 = vmatpush.bf16.msra.mxu1 %v16969_v36  ;;  %836 = vmatpush.bf16.msra.mxu3 %v16969_v36 }
  0x60   : > { %681 = vmatpush.bf16.msra.mxu0 %v16976_v40  ;;  %808 = vmatpush.bf16.msra.mxu2 %v16976_v40 }
  0x61   : > { %710 = vmatpush.bf16.msra.mxu1 %v16980_v41  ;;  %837 = vmatpush.bf16.msra.mxu3 %v16980_v41 }
  0x64   : > { %682 = vmatpush.bf16.msra.mxu0 %v16988_v48  ;;  %809 = vmatpush.bf16.msra.mxu2 %v16988_v48 }
  0x65   : > { %711 = vmatpush.bf16.msra.mxu1 %v16992_v52  ;;  %838 = vmatpush.bf16.msra.mxu3 %v16992_v52 }
  0x67   : > { %683 = vmatmul.bf16.vlgmr.msra.gmra.mxu0 %v12108_v56  ;;  %810 = vmatmul.bf16.vlgmr.msra.gmra.mxu2 %v12140_v57  ;;  %v12243_v56 = vld [vmem:[#allocation3 + $0x90] sm:$0xf]  ;;  %v15426_v57 = vld [vmem:[#allocation3 + $0x94] sm:$0xf0] }
  0x68   : > { %1084 = vmatpush.bf16.msrb.mxu2 %v16905_v3  ;;  %712 = vmatmul.bf16.vlgmr.msra.gmra.mxu1 %v12112_v58  ;;  %v15425_v58 = vld [vmem:[#allocation3 + $0x94] sm:$0xf]  ;;  %v12244_v60 = vor.u32 %v15426_v57, %v12243_v56  ;;  %v15438_v56 = vld [vmem:[#allocation12 + $0xb8] sm:$0xff] }
  0x69   : > { %1113 = vmatpush.bf16.msrb.mxu3 %v16910_v7  ;;  %1006 = vmatpush.bf16.msrb.mxu1 %v15406_v54 }
  0x6a   : > { %839 = vmatmul.bf16.vlgmr.msra.gmra.mxu3 %v12144_v59  ;;  %v12245_v59 = vld [vmem:[#allocation3 + $0x98] sm:$0xf0]  ;;  %929 = vmatpush.bf16.msrb.mxu0 %v15422_v62 }
  0x6b   : > { %v12248_v61 = vor.u32 %v15425_v58, %v12245_v59  ;;  %v15437_v59 = vld [vmem:[#allocation12 + $0xb0] sm:$0xff] }
  0x6c   : > { %1085 = vmatpush.bf16.msrb.mxu2 %v16916_v10 }
  0x6d   : > { %1114 = vmatpush.bf16.msrb.mxu3 %v16920_v11  ;;  %1007 = vmatpush.bf16.msrb.mxu1 %v15405_v55 }
  0x6e   : > { %930 = vmatpush.bf16.msrb.mxu0 %v15421_v0  ;;  %v15436_v0 = vld [vmem:[#allocation12 + $0xa8] sm:$0xff] }
  0x70   : > { %1086 = vmatpush.bf16.msrb.mxu2 %v16928_v16 }
  0x71   : > { %1115 = vmatpush.bf16.msrb.mxu3 %v16932_v17  ;;  %1008 = vmatpush.bf16.msrb.mxu1 %v15404_v63 }
  0x72   : > { %931 = vmatpush.bf16.msrb.mxu0 %v15420_v2 }
  0x74   : > { %1087 = vmatpush.bf16.msrb.mxu2 %v16940_v22 }
  0x75   : > { %1116 = vmatpush.bf16.msrb.mxu3 %v16944_v23  ;;  %1009 = vmatpush.bf16.msrb.mxu1 %v15403_v1 }
  0x76   : > { %932 = vmatpush.bf16.msrb.mxu0 %v15419_v13 }
  0x77   : > { %688 = vmatmul.bf16.gmra.mxu0 %v12116_v5  ;;  %815 = vmatmul.bf16.gmra.mxu2 %v12148_v6  ;;  %v12251_v5 = vld [vmem:[#allocation3 + $0xa0] sm:$0xf]  ;;  %v15428_v6 = vld [vmem:[#allocation3 + $0xa4] sm:$0xf0] }
  0x78   : > { %1088 = vmatpush.bf16.msrb.mxu2 %v16952_v28  ;;  %717 = vmatmul.bf16.gmra.mxu1 %v12120_v8  ;;  %v15427_v8 = vld [vmem:[#allocation3 + $0xa4] sm:$0xf]  ;;  %v12252_v12 = vor.u32 %v15428_v6, %v12251_v5  ;;  %v15435_v5 = vld [vmem:[#allocation12 + $0xa0] sm:$0xff] }
  0x79   : > { %1117 = vmatpush.bf16.msrb.mxu3 %v16956_v29  ;;  %1010 = vmatpush.bf16.msrb.mxu1 %v15402_v4 }
  0x7a   : > { %844 = vmatmul.bf16.gmra.mxu3 %v12152_v9  ;;  %v12253_v9 = vld [vmem:[#allocation3 + $0xa8] sm:$0xf0]  ;;  %933 = vmatpush.bf16.msrb.mxu0 %v15418_v18 }
  0x7b   : > { %v12256_v14 = vor.u32 %v15427_v8, %v12253_v9  ;;  %v12301_v18 = vld [vmem:[#allocation3 + $0xc8] sm:$0xf0] }
  0x7c   : > { %1089 = vmatpush.bf16.msrb.mxu2 %v16964_v34 }
  0x7d   : > { %1118 = vmatpush.bf16.msrb.mxu3 %v16969_v36  ;;  %1011 = vmatpush.bf16.msrb.mxu1 %v15401_v15  ;;  %v15439_v15 = vld [vmem:[#allocation3 + $0xc4] sm:$0xf] }
  0x7e   : > { %934 = vmatpush.bf16.msrb.mxu0 %v15417_v20 }
  0x80   : > { %1090 = vmatpush.bf16.msrb.mxu2 %v16976_v40 }
  0x81   : > { %1119 = vmatpush.bf16.msrb.mxu3 %v16980_v41  ;;  %1012 = vmatpush.bf16.msrb.mxu1 %v15400_v19  ;;  %v12304_v19 = vor.u32 %v15439_v15, %v12301_v18  ;;  %v15445_v15 = vld [vmem:[#allocation3 + $0xf4] sm:$0xf]  ;;  %v12325_v18 = vld [vmem:[#allocation3 + $0xf8] sm:$0xf0] }
  0x84   : > { %1091 = vmatpush.bf16.msrb.mxu2 %v16988_v48 }
  0x85   : > { %1120 = vmatpush.bf16.msrb.mxu3 %v16992_v52  ;;  %1013 = vmatpush.bf16.msrb.mxu1 %v15399_v21 }
  0x87   : > { %693 = vmatmul.bf16.gmra.mxu0 %v12124_v24  ;;  %820 = vmatmul.bf16.gmra.mxu2 %v12156_v25  ;;  %v15416_v24 = vld [vmem:[#allocation12 + $0x48] sm:$0xff] }
  0x88   : > { %1326 = vmatpush.bf16.msra.mxu2 %v16910_v7  ;;  %722 = vmatmul.bf16.gmra.mxu1 %v12128_v26  ;;  %v12259_v25 = vld [vmem:[#allocation3 + $0xb0] sm:$0xf]  ;;  %v15430_v26 = vld [vmem:[#allocation3 + $0xb4] sm:$0xf0] }
  0x89   : > { %1297 = vmatpush.bf16.msra.mxu1 %v16905_v3  ;;  %935 = vmatpush.bf16.msrb.mxu0 %v15416_v24  ;;  %v12260_v31 = vor.u32 %v15430_v26, %v12259_v25  ;;  %v15433_v24 = vld [vmem:[#allocation12 + $0x90] sm:$0xff] }
  0x8a   : > { %849 = vmatmul.bf16.gmra.mxu3 %v12160_v27  ;;  %v15429_v27 = vld [vmem:[#allocation3 + $0xb4] sm:$0xf] }
  0x8b   : > { %v12264_v33 = vor.u32 %v15429_v27, %v12261_v30  ;;  %v15432_v27 = vld [vmem:[#allocation12 + $0x88] sm:$0xff] }
  0x8c   : > { %1327 = vmatpush.bf16.msra.mxu2 %v16920_v11 }
  0x8d   : > { %1298 = vmatpush.bf16.msra.mxu1 %v16916_v10  ;;  %936 = vmatpush.bf16.msrb.mxu0 %v15415_v32 }
  0x90   : > { %1328 = vmatpush.bf16.msra.mxu2 %v16932_v17 }
  0x91   : > { %1299 = vmatpush.bf16.msra.mxu1 %v16928_v16  ;;  %1211 = vmatpush.bf16.msra.mxu0 %v15438_v56 }
  0x94   : > { %1329 = vmatpush.bf16.msra.mxu2 %v16944_v23 }
  0x95   : > { %1300 = vmatpush.bf16.msra.mxu1 %v16940_v22  ;;  %1212 = vmatpush.bf16.msra.mxu0 %v15437_v59 }
  0x97   : > { %698 = vmatmul.bf16.gmra.mxu0 %v12132_v42  ;;  %825 = vmatmul.bf16.gmra.mxu2 %v12164_v43 }
  0x98   : > { %1330 = vmatpush.bf16.msra.mxu2 %v16956_v29  ;;  %727 = vmatmul.bf16.gmra.mxu1 %v12136_v44 }
  0x99   : > { %1301 = vmatpush.bf16.msra.mxu1 %v16952_v28  ;;  %1213 = vmatpush.bf16.msra.mxu0 %v15436_v0 }
  0x9a   : > { %854 = vmatmul.bf16.gmra.mxu3 %v12168_v45 }
  0x9c   : > { %1331 = vmatpush.bf16.msra.mxu2 %v16969_v36 }
  0x9d   : > { %1302 = vmatpush.bf16.msra.mxu1 %v16964_v34  ;;  %1214 = vmatpush.bf16.msra.mxu0 %v15435_v5  ;;  %v15440_v5 = vld [vmem:[#allocation3 + $0xc4] sm:$0xf0] }
  0xa0   : > { %1332 = vmatpush.bf16.msra.mxu2 %v16980_v41 }
  0xa1   : > { %1303 = vmatpush.bf16.msra.mxu1 %v16976_v40 }
  0xa4   : > { %1333 = vmatpush.bf16.msra.mxu2 %v16992_v52 }
  0xa5   : > { %1304 = vmatpush.bf16.msra.mxu1 %v16988_v48 }
  0xa7   : > { %1092 = vmatmul.bf16.vlgmr.msrb.gmra.mxu2 %v12236_v51 }
  0xaa   : > { %1121 = vmatmul.bf16.vlgmr.msrb.gmra.mxu3 %v12240_v53 }
  0xb7   : > { %1097 = vmatmul.bf16.gmra.mxu2 %v12244_v60 }
  0xba   : > { %1126 = vmatmul.bf16.gmra.mxu3 %v12248_v61 }
  0xc7   : > { %1102 = vmatmul.bf16.gmra.mxu2 %v12252_v12 }
  0xca   : > { %1131 = vmatmul.bf16.gmra.mxu3 %v12256_v14  ;;  %v15434_v14 = vld [vmem:[#allocation12 + $0x98] sm:$0xff] }
  0xcb   : > { %1215 = vmatpush.bf16.msra.mxu0 %v15434_v14 }
  0xcf   : > { %1216 = vmatpush.bf16.msra.mxu0 %v15433_v24  ;;  %v12307_v24 = vld [vmem:[#allocation3 + $0xd0] sm:$0xf] }
  0xd3   : > { %1217 = vmatpush.bf16.msra.mxu0 %v15432_v27 }
  0xd7   : > { %1107 = vmatmul.bf16.gmra.mxu2 %v12260_v31 }
  0xda   : > { %1136 = vmatmul.bf16.gmra.mxu3 %v12264_v33 }
  0xe4   : > { %v684_v35 = vpop.f32.mrf.mxu0 }
  0xe5   : > { %v713_v37 = vpop.f32.mrf.mxu1 }
  0xe6   : > { %v714_v44 = vadd.f32 %v713_v37, %v684_v35  ;;  %v15431_v37 = vld [vmem:[#allocation12 + $0x80] sm:$0xff] }
  0xe7   : > { %1334 = vmatmul.bf16.vlgmr.msra.gmra.mxu2 %v12304_v19  ;;  %1218 = vmatpush.bf16.msra.mxu0 %v15431_v37  ;;  %v12328_v19 = vor.u32 %v15445_v15, %v12325_v18  ;;  %v15453_v18 = vld [vmem:[#allocation12 + $0xf0] sm:$0xff] }
  0xea   : > { %v811_v38 = vpop.f32.mrf.mxu2 }
  0xec   : > { %v686_v42 = vpop.f32.mrf.mxu0 }
  0xed   : > { %v840_v39 = vpop.f32.mrf.mxu3  ;;  %v715_v43 = vpop.f32.mrf.mxu1 }
  0xee   : > { %v716_v45 = vadd.f32 %v715_v43, %v686_v42  ;;  %v841_v50 = vadd.f32 %v840_v39, %v811_v38 }
  0xf0   : > { %v733_v46 = vpack.c.bf16 %v716_v45, %v714_v44  ;;  %v15441_v45 = vld [vmem:[#allocation3 + $0xd4] sm:$0xf] }
  0xf2   : > { %1014 = vmatmul.bf16.vlgmr.msrb.gmra.mxu1 %v733_v46  ;;  %v813_v47 = vpop.f32.mrf.mxu2  ;;  %v12309_v46 = vld [vmem:[#allocation3 + $0xd8] sm:$0xf0] }
  0xf3   : > { %1539 = vmatpush.bf16.msrb.mxu1 %v16910_v7 }
  0xf4   : > { %v689_v53 = vpop.f32.mrf.mxu0 }
  0xf5   : > { %v842_v49 = vpop.f32.mrf.mxu3  ;;  %v718_v54 = vpop.f32.mrf.mxu1 }
  0xf6   : > { %v843_v51 = vadd.f32 %v842_v49, %v813_v47  ;;  %v719_v62 = vadd.f32 %v718_v54, %v689_v53  ;;  %v12312_v47 = vor.u32 %v15441_v45, %v12309_v46 }
  0xf7   : > { %1540 = vmatpush.bf16.msrb.mxu1 %v16920_v11 }
  0xf8   : > { %v860_v55 = vpack.c.bf16 %v843_v51, %v841_v50  ;;  %1339 = vmatmul.bf16.gmra.mxu2 %v12312_v47 }
  0xfa   : > { %937 = vmatmul.bf16.vlgmr.msrb.gmra.mxu0 %v860_v55  ;;  %v816_v57 = vpop.f32.mrf.mxu2 }
  0xfb   : > { %1541 = vmatpush.bf16.msrb.mxu1 %v16932_v17  ;;  %1510 = vmatpush.bf16.msrb.mxu0 %v16905_v3 }
  0xfc   : > { %v691_v60 = vpop.f32.mrf.mxu0 }
  0xfd   : > { %v845_v58 = vpop.f32.mrf.mxu3  ;;  %v720_v61 = vpop.f32.mrf.mxu1 }
  0xfe   : > { %v721_v63 = vadd.f32 %v720_v61, %v691_v60  ;;  %v846_v6 = vadd.f32 %v845_v58, %v816_v57 }
  0xff   : > { %1542 = vmatpush.bf16.msrb.mxu1 %v16944_v23  ;;  %1511 = vmatpush.bf16.msrb.mxu0 %v16916_v10 }
 0x100   : > { %v734_v1 = vpack.c.bf16 %v721_v63, %v719_v62  ;;  %v15443_v62 = vld [vmem:[#allocation3 + $0xe4] sm:$0xf]  ;;  %v12317_v63 = vld [vmem:[#allocation3 + $0xe8] sm:$0xf0] }
 0x101   : > { %v12320_v0 = vor.u32 %v15443_v62, %v12317_v63 }
 0x102   : > { %1019 = vmatmul.bf16.gmra.mxu1 %v734_v1  ;;  %v818_v2 = vpop.f32.mrf.mxu2 }
 0x103   : > { %1543 = vmatpush.bf16.msrb.mxu1 %v16956_v29  ;;  %1512 = vmatpush.bf16.msrb.mxu0 %v16928_v16 }
 0x104   : > { %v694_v9 = vpop.f32.mrf.mxu0 }
 0x105   : > { %v847_v4 = vpop.f32.mrf.mxu3  ;;  %v723_v12 = vpop.f32.mrf.mxu1 }
 0x106   : > { %v848_v8 = vadd.f32 %v847_v4, %v818_v2  ;;  %v724_v30 = vadd.f32 %v723_v12, %v694_v9  ;;  %v12299_v4 = vld [vmem:[#allocation3 + $0xc0] sm:$0xf] }
 0x107   : > { %1544 = vmatpush.bf16.msrb.mxu1 %v16969_v36  ;;  %1513 = vmatpush.bf16.msrb.mxu0 %v16940_v22 }
 0x108   : > { %v861_v13 = vpack.c.bf16 %v848_v8, %v846_v6  ;;  %1344 = vmatmul.bf16.gmra.mxu2 %v12320_v0  ;;  %v12300_v6 = vor.u32 %v15440_v5, %v12299_v4  ;;  %v12363_v0 = vld [vmem:[#allocation3 + $0x100] sm:$0xf] }
 0x10a   : > { %942 = vmatmul.bf16.gmra.mxu0 %v861_v13  ;;  %v821_v20 = vpop.f32.mrf.mxu2 }
 0x10b   : > { %1545 = vmatpush.bf16.msrb.mxu1 %v16980_v41  ;;  %1514 = vmatpush.bf16.msrb.mxu0 %v16952_v28 }
 0x10c   : > { %v696_v25 = vpop.f32.mrf.mxu0 }
 0x10d   : > { %v850_v21 = vpop.f32.mrf.mxu3  ;;  %v725_v26 = vpop.f32.mrf.mxu1 }
 0x10e   : > { %v726_v31 = vadd.f32 %v725_v26, %v696_v25  ;;  %v851_v38 = vadd.f32 %v850_v21, %v821_v20  ;;  %v15442_v25 = vld [vmem:[#allocation3 + $0xd4] sm:$0xf0] }
 0x10f   : > { %1546 = vmatpush.bf16.msrb.mxu1 %v16992_v52  ;;  %1515 = vmatpush.bf16.msrb.mxu0 %v16964_v34  ;;  %v12308_v26 = vor.u32 %v15442_v25, %v12307_v24 }
 0x110   : > { %v735_v32 = vpack.c.bf16 %v726_v31, %v724_v30 }
 0x112   : > { %1024 = vmatmul.bf16.gmra.mxu1 %v735_v32  ;;  %v823_v33 = vpop.f32.mrf.mxu2 }
 0x113   : > { %1516 = vmatpush.bf16.msrb.mxu0 %v16976_v40 }
 0x114   : > { %v699_v42 = vpop.f32.mrf.mxu0 }
 0x115   : > { %v852_v35 = vpop.f32.mrf.mxu3  ;;  %v728_v43 = vpop.f32.mrf.mxu1 }
 0x116   : > { %v853_v39 = vadd.f32 %v852_v35, %v823_v33  ;;  %v729_v54 = vadd.f32 %v728_v43, %v699_v42 }
 0x117   : > { %1517 = vmatpush.bf16.msrb.mxu0 %v16988_v48 }
 0x118   : > { %v862_v44 = vpack.c.bf16 %v853_v39, %v851_v38  ;;  %1349 = vmatmul.bf16.gmra.mxu2 %v12328_v19  ;;  %v12315_v38 = vld [vmem:[#allocation3 + $0xe0] sm:$0xf]  ;;  %v15444_v39 = vld [vmem:[#allocation3 + $0xe4] sm:$0xf0]  ;;  %v12371_v19 = vld [vmem:[#allocation3 + $0x110] sm:$0xf] }
 0x119   : > { %v12316_v42 = vor.u32 %v15444_v39, %v12315_v38  ;;  %v15449_v39 = vld [vmem:[#allocation12 + $0xd0] sm:$0xff] }
 0x11a   : > { %947 = vmatmul.bf16.gmra.mxu0 %v862_v44  ;;  %v826_v49 = vpop.f32.mrf.mxu2 }
 0x11c   : > { %v701_v51 = vpop.f32.mrf.mxu0 }
 0x11d   : > { %v855_v50 = vpop.f32.mrf.mxu3  ;;  %v730_v53 = vpop.f32.mrf.mxu1 }
 0x11e   : > { %v731_v55 = vadd.f32 %v730_v53, %v701_v51  ;;  %v856_v59 = vadd.f32 %v855_v50, %v826_v49  ;;  %v12323_v51 = vld [vmem:[#allocation3 + $0xf0] sm:$0xf]  ;;  %v15446_v53 = vld [vmem:[#allocation3 + $0xf4] sm:$0xf0] }
 0x120   : > { %v736_v56 = vpack.c.bf16 %v731_v55, %v729_v54  ;;  %v12324_v54 = vor.u32 %v15446_v53, %v12323_v51  ;;  %v15461_v51 = vld [vmem:[#allocation3 + $0x134] sm:$0xf]  ;;  %v12389_v53 = vld [vmem:[#allocation3 + $0x138] sm:$0xf0] }
 0x122   : > { %1029 = vmatmul.bf16.gmra.mxu1 %v736_v56  ;;  %v828_v57 = vpop.f32.mrf.mxu2 }
 0x125   : > { %v857_v58 = vpop.f32.mrf.mxu3 }
 0x126   : > { %v858_v60 = vadd.f32 %v857_v58, %v828_v57 }
 0x128   : > { %v863_v61 = vpack.c.bf16 %v858_v60, %v856_v59  ;;  %v15455_v60 = vld [vmem:[#allocation3 + $0x104] sm:$0xf] }
 0x12a   : > { %952 = vmatmul.bf16.gmra.mxu0 %v863_v61  ;;  %v1093_v1 = vpop.f32.mrf.mxu2  ;;  %v12365_v61 = vld [vmem:[#allocation3 + $0x108] sm:$0xf0] }
 0x12b   : > { %v12368_v62 = vor.u32 %v15455_v60, %v12365_v61 }
 0x12d   : > { %v1122_v2 = vpop.f32.mrf.mxu3 }
 0x12e   : > { %v1123_v12 = vadd.f32 %v1122_v2, %v1093_v1  ;;  %v15456_v1 = vld [vmem:[#allocation3 + $0x104] sm:$0xf0] }
 0x12f   : > { %v12364_v2 = vor.u32 %v15456_v1, %v12363_v0 }
 0x132   : > { %1305 = vmatmul.bf16.vlgmr.msra.gmra.mxu1 %v12300_v6  ;;  %v1095_v8 = vpop.f32.mrf.mxu2 }
 0x135   : > { %v1124_v9 = vpop.f32.mrf.mxu3 }
 0x136   : > { %v1125_v13 = vadd.f32 %v1124_v9, %v1095_v8  ;;  %v15457_v8 = vld [vmem:[#allocation3 + $0x114] sm:$0xf]  ;;  %v12373_v9 = vld [vmem:[#allocation3 + $0x118] sm:$0xf0] }
 0x138   : > { %v1142_v14 = vpack.c.bf16 %v1125_v13, %v1123_v12  ;;  %v15454_v12 = vld [vmem:[#allocation12 + $0xf8] sm:$0xff] }
 0x139   : > { %1424 = vmatpush.bf16.msra.mxu3 %v15454_v12 }
 0x13a   : > { %1219 = vmatmul.bf16.vlgmr.msra.gmra.mxu0 %v1142_v14  ;;  %v1098_v20 = vpop.f32.mrf.mxu2  ;;  %v12376_v14 = vor.u32 %v15457_v8, %v12373_v9 }
 0x13b   : > { %1752 = vmatpush.bf16.msra.mxu0 %v16910_v7 }
 0x13d   : > { %v1127_v21 = vpop.f32.mrf.mxu3  ;;  %1425 = vmatpush.bf16.msra.mxu3 %v15453_v18 }
 0x13e   : > { %v1128_v31 = vadd.f32 %v1127_v21, %v1098_v20  ;;  %v15458_v20 = vld [vmem:[#allocation3 + $0x114] sm:$0xf0]  ;;  %v15452_v21 = vld [vmem:[#allocation12 + $0xe8] sm:$0xff] }
 0x13f   : > { %1753 = vmatpush.bf16.msra.mxu0 %v16920_v11  ;;  %v12372_v24 = vor.u32 %v15458_v20, %v12371_v19 }
 0x141   : > { %1426 = vmatpush.bf16.msra.mxu3 %v15452_v21 }
 0x142   : > { %1310 = vmatmul.bf16.gmra.mxu1 %v12308_v26  ;;  %v1100_v27 = vpop.f32.mrf.mxu2 }
 0x143   : > { %1754 = vmatpush.bf16.msra.mxu0 %v16932_v17 }
 0x145   : > { %v1129_v30 = vpop.f32.mrf.mxu3 }
 0x146   : > { %v1130_v32 = vadd.f32 %v1129_v30, %v1100_v27  ;;  %v15451_v30 = vld [vmem:[#allocation12 + $0xe0] sm:$0xff] }
 0x147   : > { %1755 = vmatpush.bf16.msra.mxu0 %v16944_v23  ;;  %1427 = vmatpush.bf16.msra.mxu3 %v15451_v30 }
 0x148   : > { %v1143_v33 = vpack.c.bf16 %v1130_v32, %v1128_v31  ;;  %v15459_v31 = vld [vmem:[#allocation3 + $0x124] sm:$0xf]  ;;  %v12381_v32 = vld [vmem:[#allocation3 + $0x128] sm:$0xf0] }
 0x14a   : > { %1224 = vmatmul.bf16.gmra.mxu0 %v1143_v33  ;;  %v1103_v35 = vpop.f32.mrf.mxu2  ;;  %v15450_v33 = vld [vmem:[#allocation12 + $0xd8] sm:$0xff] }
 0x14b   : > { %1756 = vmatpush.bf16.msra.mxu0 %v16956_v29  ;;  %1428 = vmatpush.bf16.msra.mxu3 %v15450_v33 }
 0x14d   : > { %v1132_v37 = vpop.f32.mrf.mxu3 }
 0x14e   : > { %v1133_v45 = vadd.f32 %v1132_v37, %v1103_v35  ;;  %v12384_v37 = vor.u32 %v15459_v31, %v12381_v32 }
 0x14f   : > { %1757 = vmatpush.bf16.msra.mxu0 %v16969_v36  ;;  %1429 = vmatpush.bf16.msra.mxu3 %v15449_v39 }
 0x152   : > { %1315 = vmatmul.bf16.gmra.mxu1 %v12316_v42  ;;  %v1105_v43 = vpop.f32.mrf.mxu2  ;;  %v12379_v42 = vld [vmem:[#allocation3 + $0x120] sm:$0xf] }
 0x153   : > { %1758 = vmatpush.bf16.msra.mxu0 %v16980_v41 }
 0x155   : > { %v1134_v44 = vpop.f32.mrf.mxu3 }
 0x156   : > { %v1135_v46 = vadd.f32 %v1134_v44, %v1105_v43  ;;  %v15460_v43 = vld [vmem:[#allocation3 + $0x124] sm:$0xf0]  ;;  %v15448_v44 = vld [vmem:[#allocation12 + $0xc8] sm:$0xff] }
 0x157   : > { %1759 = vmatpush.bf16.msra.mxu0 %v16992_v52  ;;  %1430 = vmatpush.bf16.msra.mxu3 %v15448_v44 }
 0x158   : > { %v1144_v47 = vpack.c.bf16 %v1135_v46, %v1133_v45  ;;  %v12380_v45 = vor.u32 %v15460_v43, %v12379_v42  ;;  %v15467_v43 = vld [vmem:[#allocation12 + $0x120] sm:$0xff] }
 0x15a   : > { %1229 = vmatmul.bf16.gmra.mxu0 %v1144_v47  ;;  %v1108_v49 = vpop.f32.mrf.mxu2 }
 0x15d   : > { %v1137_v50 = vpop.f32.mrf.mxu3 }
 0x15e   : > { %v1138_v57 = vadd.f32 %v1137_v50, %v1108_v49  ;;  %v15447_v50 = vld [vmem:[#allocation12 + $0xc0] sm:$0xff] }
 0x15f   : > { %1431 = vmatpush.bf16.msra.mxu3 %v15447_v50  ;;  %v15465_v50 = vld [vmem:[#allocation12 + $0x110] sm:$0xff] }
 0x162   : > { %1320 = vmatmul.bf16.gmra.mxu1 %v12324_v54  ;;  %v1110_v55 = vpop.f32.mrf.mxu2 }
 0x163   : > { %1723 = vmatpush.bf16.msrb.mxu3 %v16905_v3 }
 0x165   : > { %v1139_v56 = vpop.f32.mrf.mxu3 }
 0x166   : > { %v1140_v58 = vadd.f32 %v1139_v56, %v1110_v55  ;;  %v12392_v55 = vor.u32 %v15461_v51, %v12389_v53 }
 0x167   : > { %1724 = vmatpush.bf16.msrb.mxu3 %v16916_v10 }
 0x168   : > { %v1145_v59 = vpack.c.bf16 %v1140_v58, %v1138_v57  ;;  %v12387_v57 = vld [vmem:[#allocation3 + $0x130] sm:$0xf]  ;;  %v15462_v58 = vld [vmem:[#allocation3 + $0x134] sm:$0xf0] }
 0x169   : > { %v12388_v60 = vor.u32 %v15462_v58, %v12387_v57 }
 0x16a   : > { %1234 = vmatmul.bf16.gmra.mxu0 %v1145_v59  ;;  %v1335_v59 = vpop.f32.mrf.mxu2 }
 0x16b   : > { %1725 = vmatpush.bf16.msrb.mxu3 %v16928_v16 }
 0x16f   : > { %v1015_v63 = vpop.f32.mrf.mxu1  ;;  %1726 = vmatpush.bf16.msrb.mxu3 %v16940_v22 }
 0x172   : > { %1547 = vmatmul.bf16.vlgmr.msrb.gmra.mxu1 %v12368_v62  ;;  %v1337_v0 = vpop.f32.mrf.mxu2 }
 0x173   : > { %1727 = vmatpush.bf16.msrb.mxu3 %v16952_v28 }
 0x177   : > { %v938_v4 = vpop.f32.mrf.mxu0  ;;  %v17056_v6 = vpop.f32.mrf.mxu1  ;;  %1728 = vmatpush.bf16.msrb.mxu3 %v16964_v34 }
 0x178   : > { %v17054_v5 = vadd.f32 %v1015_v63, %v938_v4 }
 0x17a   : > { %1518 = vmatmul.bf16.vlgmr.msrb.gmra.mxu0 %v12364_v2 }
 0x17b   : > { %1729 = vmatpush.bf16.msrb.mxu3 %v16976_v40  ;;  %v1340_v8 = vpop.f32.mrf.mxu2 }
 0x17f   : > { %v17058_v13 = vpop.f32.mrf.mxu0  ;;  %v1020_v15 = vpop.f32.mrf.mxu1  ;;  %1730 = vmatpush.bf16.msrb.mxu3 %v16988_v48 }
 0x182   : > { %1552 = vmatmul.bf16.gmra.mxu1 %v12376_v14 }
 0x183   : > { %v1342_v21 = vpop.f32.mrf.mxu2 }
 0x187   : > { %v943_v25 = vpop.f32.mrf.mxu0  ;;  %v17062_v27 = vpop.f32.mrf.mxu1 }
 0x188   : > { %v17060_v26 = vadd.f32 %v1020_v15, %v943_v25 }
 0x18a   : > { %1523 = vmatmul.bf16.gmra.mxu0 %v12372_v24  ;;  %v15470_v24 = vld [vmem:[#allocation12 + $0x138] sm:$0xff] }
 0x18b   : > { %1637 = vmatpush.bf16.msrb.mxu2 %v15470_v24 }
 0x18f   : > { %v17064_v35 = vpop.f32.mrf.mxu0  ;;  %v1025_v38 = vpop.f32.mrf.mxu1 }
 0x192   : > { %1557 = vmatmul.bf16.gmra.mxu1 %v12384_v37  ;;  %v15468_v37 = vld [vmem:[#allocation12 + $0x128] sm:$0xff] }
 0x197   : > { %v948_v46 = vpop.f32.mrf.mxu0  ;;  %v17068_v49 = vpop.f32.mrf.mxu1 }
 0x198   : > { %v17066_v47 = vadd.f32 %v1025_v38, %v948_v46  ;;  %v1345_v38 = vpop.f32.mrf.mxu2 }
 0x19a   : > { %1528 = vmatmul.bf16.gmra.mxu0 %v12380_v45 }
 0x19f   : > { %v17071_v54 = vpop.f32.mrf.mxu0  ;;  %v1030_v56 = vpop.f32.mrf.mxu1 }
 0x1a0   : > { %v1347_v45 = vpop.f32.mrf.mxu2 }
 0x1a2   : > { %1562 = vmatmul.bf16.gmra.mxu1 %v12392_v55  ;;  %v15464_v55 = vld [vmem:[#allocation12 + $0x108] sm:$0xff] }
 0x1a7   : > { %v953_v61 = vpop.f32.mrf.mxu0  ;;  %v17078_v63 = vpop.f32.mrf.mxu1 }
 0x1a8   : > { %v17075_v62 = vadd.f32 %v1030_v56, %v953_v61  ;;  %v15463_v61 = vld [vmem:[#allocation12 + $0x100] sm:$0xff] }
 0x1aa   : > { %1533 = vmatmul.bf16.gmra.mxu0 %v12388_v60  ;;  %v1350_v60 = vpop.f32.mrf.mxu2 }
 0x1af   : > { %v17081_v1 = vpop.f32.mrf.mxu0  ;;  %v1306_v2 = vpop.f32.mrf.mxu1 }
 0x1b0   : > { %v1336_v14 = vadd.f32 %v1335_v59, %v1306_v2  ;;  %v12429_v2 = vld [vmem:[#allocation3 + $0x148] sm:$0xf0] }
 0x1b7   : > { %v1220_v4 = vpop.f32.mrf.mxu0  ;;  %v1308_v12 = vpop.f32.mrf.mxu1 }
 0x1b8   : > { %v17086_v9 = vadd.f32 %v1220_v4, %v17054_v5  ;;  %v1338_v15 = vadd.f32 %v1337_v0, %v1308_v12  ;;  %v15469_v5 = vld [vmem:[#allocation12 + $0x130] sm:$0xff]  ;;  %v15471_v0 = vld [vmem:[#allocation3 + $0x144] sm:$0xf] }
 0x1b9   : > { %1638 = vmatpush.bf16.msrb.mxu2 %v15469_v5  ;;  %v12432_v4 = vor.u32 %v15471_v0, %v12429_v2  ;;  %v12437_v5 = vld [vmem:[#allocation3 + $0x158] sm:$0xf0]  ;;  %v15477_v2 = vld [vmem:[#allocation3 + $0x174] sm:$0xf] }
 0x1ba   : > { %v1355_v18 = vpack.c.bf16 %v1338_v15, %v1336_v14  ;;  %v1352_v14 = vpop.f32.mrf.mxu2 }
 0x1bb   : > { %1760 = vmatmul.bf16.vlgmr.msra.gmra.mxu0 %v12432_v4  ;;  %v12453_v4 = vld [vmem:[#allocation3 + $0x178] sm:$0xf0] }
 0x1bc   : > { %1432 = vmatmul.bf16.vlgmr.msra.gmra.mxu3 %v1355_v18 }
 0x1bd   : > { %1965 = vmatpush.bf16.msra.mxu3 %v16910_v7  ;;  %1639 = vmatpush.bf16.msrb.mxu2 %v15468_v37  ;;  %v15472_v37 = vld [vmem:[#allocation3 + $0x144] sm:$0xf0] }
 0x1bf   : > { %v17089_v19 = vpop.f32.mrf.mxu0  ;;  %v1311_v20 = vpop.f32.mrf.mxu1 }
 0x1c0   : > { %v1341_v32 = vadd.f32 %v1340_v8, %v1311_v20 }
 0x1c1   : > { %1966 = vmatpush.bf16.msra.mxu3 %v16920_v11  ;;  %1640 = vmatpush.bf16.msrb.mxu2 %v15467_v43 }
 0x1c5   : > { %1967 = vmatpush.bf16.msra.mxu3 %v16932_v17 }
 0x1c7   : > { %v1225_v25 = vpop.f32.mrf.mxu0  ;;  %v1313_v31 = vpop.f32.mrf.mxu1 }
 0x1c8   : > { %v17095_v30 = vadd.f32 %v1225_v25, %v17060_v26  ;;  %v1343_v33 = vadd.f32 %v1342_v21, %v1313_v31  ;;  %v15466_v26 = vld [vmem:[#allocation12 + $0x118] sm:$0xff]  ;;  %v15473_v25 = vld [vmem:[#allocation3 + $0x154] sm:$0xf] }
 0x1c9   : > { %1968 = vmatpush.bf16.msra.mxu3 %v16944_v23  ;;  %1641 = vmatpush.bf16.msrb.mxu2 %v15466_v26  ;;  %v12440_v31 = vor.u32 %v15473_v25, %v12437_v5  ;;  %v12445_v26 = vld [vmem:[#allocation3 + $0x168] sm:$0xf0]  ;;  %v15476_v25 = vld [vmem:[#allocation3 + $0x164] sm:$0xf0] }
 0x1ca   : > { %v1356_v39 = vpack.c.bf16 %v1343_v33, %v1341_v32  ;;  %v12427_v33 = vld [vmem:[#allocation3 + $0x140] sm:$0xf] }
 0x1cb   : > { %1765 = vmatmul.bf16.gmra.mxu0 %v12440_v31 }
 0x1cc   : > { %1437 = vmatmul.bf16.gmra.mxu3 %v1356_v39  ;;  %v12428_v39 = vor.u32 %v15472_v37, %v12427_v33 }
 0x1cd   : > { %1969 = vmatpush.bf16.msra.mxu3 %v16956_v29  ;;  %1642 = vmatpush.bf16.msrb.mxu2 %v15465_v50 }
 0x1cf   : > { %v17098_v42 = vpop.f32.mrf.mxu0  ;;  %v1316_v44 = vpop.f32.mrf.mxu1 }
 0x1d0   : > { %v1346_v56 = vadd.f32 %v1345_v38, %v1316_v44  ;;  %v15475_v44 = vld [vmem:[#allocation3 + $0x164] sm:$0xf] }
 0x1d1   : > { %1970 = vmatpush.bf16.msra.mxu3 %v16969_v36  ;;  %1643 = vmatpush.bf16.msrb.mxu2 %v15464_v55  ;;  %v12448_v50 = vor.u32 %v15475_v44, %v12445_v26  ;;  %v15478_v44 = vld [vmem:[#allocation3 + $0x174] sm:$0xf0] }
 0x1d5   : > { %1971 = vmatpush.bf16.msra.mxu3 %v16980_v41  ;;  %1644 = vmatpush.bf16.msrb.mxu2 %v15463_v61 }
 0x1d7   : > { %v1230_v46 = vpop.f32.mrf.mxu0  ;;  %v1318_v53 = vpop.f32.mrf.mxu1 }
 0x1d8   : > { %v17104_v51 = vadd.f32 %v1230_v46, %v17066_v47  ;;  %v1348_v57 = vadd.f32 %v1347_v45, %v1318_v53 }
 0x1d9   : > { %1972 = vmatpush.bf16.msra.mxu3 %v16992_v52  ;;  %1936 = vmatpush.bf16.msra.mxu2 %v16905_v3 }
 0x1da   : > { %v1357_v58 = vpack.c.bf16 %v1348_v57, %v1346_v56  ;;  %v12435_v57 = vld [vmem:[#allocation3 + $0x150] sm:$0xf] }
 0x1db   : > { %1770 = vmatmul.bf16.gmra.mxu0 %v12448_v50 }
 0x1dc   : > { %1442 = vmatmul.bf16.gmra.mxu3 %v1357_v58  ;;  %v15474_v58 = vld [vmem:[#allocation3 + $0x154] sm:$0xf0] }
 0x1dd   : > { %1937 = vmatpush.bf16.msra.mxu2 %v16916_v10  ;;  %v12436_v61 = vor.u32 %v15474_v58, %v12435_v57  ;;  %v12493_v57 = vld [vmem:[#allocation3 + $0x188] sm:$0xf0] }
 0x1df   : > { %v17107_v59 = vpop.f32.mrf.mxu0  ;;  %v1321_v8 = vpop.f32.mrf.mxu1 }
 0x1e0   : > { %v1351_v18 = vadd.f32 %v1350_v60, %v1321_v8 }
 0x1e1   : > { %1938 = vmatpush.bf16.msra.mxu2 %v16928_v16 }
 0x1e5   : > { %1939 = vmatpush.bf16.msra.mxu2 %v16940_v22 }
 0x1e7   : > { %v1235_v47 = vpop.f32.mrf.mxu0  ;;  %v1323_v15 = vpop.f32.mrf.mxu1 }
 0x1e8   : > { %v17112_v12 = vadd.f32 %v1235_v47, %v17075_v62  ;;  %v1353_v20 = vadd.f32 %v1352_v14, %v1323_v15  ;;  %v12456_v14 = vor.u32 %v15477_v2, %v12453_v4 }
 0x1e9   : > { %1940 = vmatpush.bf16.msra.mxu2 %v16952_v28 }
 0x1ea   : > { %v1358_v21 = vpack.c.bf16 %v1353_v20, %v1351_v18 }
 0x1eb   : > { %1775 = vmatmul.bf16.gmra.mxu0 %v12456_v14 }
 0x1ec   : > { %1447 = vmatmul.bf16.gmra.mxu3 %v1358_v21  ;;  %v12443_v21 = vld [vmem:[#allocation3 + $0x160] sm:$0xf] }
 0x1ed   : > { %1941 = vmatpush.bf16.msra.mxu2 %v16964_v34  ;;  %v12444_v5 = vor.u32 %v15476_v25, %v12443_v21  ;;  %v15486_v21 = vld [vmem:[#allocation12 + $0x178] sm:$0xff] }
 0x1ee   : > { %1850 = vmatpush.bf16.msra.mxu1 %v15486_v21 }
 0x1ef   : > { %v17116_v24 = vpop.f32.mrf.mxu0  ;;  %v1548_v32 = vpop.f32.mrf.mxu1 }
 0x1f1   : > { %1942 = vmatpush.bf16.msra.mxu2 %v16976_v40 }
 0x1f5   : > { %1943 = vmatpush.bf16.msra.mxu2 %v16988_v48 }
 0x1f7   : > { %v1519_v62 = vpop.f32.mrf.mxu0  ;;  %v1550_v38 = vpop.f32.mrf.mxu1 }
 0x1f8   : > { %v1549_v45 = vadd.f32 %v1548_v32, %v1519_v62 }
 0x1fc   : > { %1731 = vmatmul.bf16.vlgmr.msrb.gmra.mxu3 %v12428_v39 }
 0x1ff   : > { %v1521_v43 = vpop.f32.mrf.mxu0  ;;  %v1553_v53 = vpop.f32.mrf.mxu1 }
 0x200   : > { %v1551_v46 = vadd.f32 %v1550_v38, %v1521_v43  ;;  %v12451_v43 = vld [vmem:[#allocation3 + $0x170] sm:$0xf] }
 0x201   : > { %v12452_v26 = vor.u32 %v15478_v44, %v12451_v43  ;;  %v15482_v43 = vld [vmem:[#allocation12 + $0x158] sm:$0xff] }
 0x202   : > { %v1568_v55 = vpack.c.bf16 %v1551_v46, %v1549_v45  ;;  %v12507_v44 = vld [vmem:[#allocation3 + $0x1a0] sm:$0xf] }
 0x204   : > { %1645 = vmatmul.bf16.vlgmr.msrb.gmra.mxu2 %v1568_v55 }
 0x205   : > { %2178 = vmatpush.bf16.msrb.mxu2 %v16910_v7 }
 0x207   : > { %v1524_v56 = vpop.f32.mrf.mxu0  ;;  %v1555_v60 = vpop.f32.mrf.mxu1 }
 0x208   : > { %v1554_v8 = vadd.f32 %v1553_v53, %v1524_v56  ;;  %v15487_v56 = vld [vmem:[#allocation3 + $0x184] sm:$0xf] }
 0x209   : > { %2179 = vmatpush.bf16.msrb.mxu2 %v16920_v11  ;;  %v12496_v58 = vor.u32 %v15487_v56, %v12493_v57  ;;  %v12517_v56 = vld [vmem:[#allocation3 + $0x1b8] sm:$0xf0] }
 0x20c   : > { %1736 = vmatmul.bf16.gmra.mxu3 %v12436_v61  ;;  %v15488_v61 = vld [vmem:[#allocation3 + $0x184] sm:$0xf0] }
 0x20d   : > { %2180 = vmatpush.bf16.msrb.mxu2 %v16932_v17 }
 0x20f   : > { %v1526_v0 = vpop.f32.mrf.mxu0  ;;  %v1558_v15 = vpop.f32.mrf.mxu1 }
 0x210   : > { %v1556_v47 = vadd.f32 %v1555_v60, %v1526_v0  ;;  %v12491_v60 = vld [vmem:[#allocation3 + $0x180] sm:$0xf] }
 0x211   : > { %2181 = vmatpush.bf16.msrb.mxu2 %v16944_v23  ;;  %v12492_v0 = vor.u32 %v15488_v61, %v12491_v60  ;;  %v12515_v61 = vld [vmem:[#allocation3 + $0x1b0] sm:$0xf] }
 0x212   : > { %v1569_v18 = vpack.c.bf16 %v1556_v47, %v1554_v8  ;;  %v15489_v8 = vld [vmem:[#allocation3 + $0x194] sm:$0xf]  ;;  %v12501_v47 = vld [vmem:[#allocation3 + $0x198] sm:$0xf0] }
 0x214   : > { %1650 = vmatmul.bf16.gmra.mxu2 %v1569_v18  ;;  %v12499_v18 = vld [vmem:[#allocation3 + $0x190] sm:$0xf] }
 0x215   : > { %2182 = vmatpush.bf16.msrb.mxu2 %v16956_v29 }
 0x217   : > { %v1529_v20 = vpop.f32.mrf.mxu0  ;;  %v1560_v31 = vpop.f32.mrf.mxu1 }
 0x218   : > { %v1559_v62 = vadd.f32 %v1558_v15, %v1529_v20  ;;  %v12504_v15 = vor.u32 %v15489_v8, %v12501_v47  ;;  %v15490_v20 = vld [vmem:[#allocation3 + $0x194] sm:$0xf0] }
 0x219   : > { %2183 = vmatpush.bf16.msrb.mxu2 %v16969_v36  ;;  %v12500_v25 = vor.u32 %v15490_v20, %v12499_v18 }
 0x21c   : > { %1741 = vmatmul.bf16.gmra.mxu3 %v12444_v5 }
 0x21d   : > { %2184 = vmatpush.bf16.msrb.mxu2 %v16980_v41 }
 0x21f   : > { %v1531_v32 = vpop.f32.mrf.mxu0  ;;  %v1563_v38 = vpop.f32.mrf.mxu1 }
 0x220   : > { %v1561_v33 = vadd.f32 %v1560_v31, %v1531_v32  ;;  %v15485_v31 = vld [vmem:[#allocation12 + $0x170] sm:$0xff] }
 0x221   : > { %2185 = vmatpush.bf16.msrb.mxu2 %v16992_v52  ;;  %1851 = vmatpush.bf16.msra.mxu1 %v15485_v31 }
 0x222   : > { %v1570_v37 = vpack.c.bf16 %v1561_v33, %v1559_v62  ;;  %v15491_v62 = vld [vmem:[#allocation3 + $0x1a4] sm:$0xf]  ;;  %v12509_v33 = vld [vmem:[#allocation3 + $0x1a8] sm:$0xf0] }
 0x224   : > { %1655 = vmatmul.bf16.gmra.mxu2 %v1570_v37 }
 0x227   : > { %v1534_v39 = vpop.f32.mrf.mxu0  ;;  %v1565_v45 = vpop.f32.mrf.mxu1 }
 0x228   : > { %v1564_v50 = vadd.f32 %v1563_v38, %v1534_v39  ;;  %v15483_v38 = vld [vmem:[#allocation12 + $0x160] sm:$0xff]  ;;  %v12512_v39 = vor.u32 %v15491_v62, %v12509_v33 }
 0x22c   : > { %1746 = vmatmul.bf16.gmra.mxu3 %v12452_v26  ;;  %v15492_v26 = vld [vmem:[#allocation3 + $0x1a4] sm:$0xf0] }
 0x22f   : > { %v1536_v46 = vpop.f32.mrf.mxu0 }
 0x230   : > { %v1566_v53 = vadd.f32 %v1565_v45, %v1536_v46  ;;  %v12508_v45 = vor.u32 %v15492_v26, %v12507_v44 }
 0x232   : > { %v1571_v55 = vpack.c.bf16 %v1566_v53, %v1564_v50  ;;  %v15480_v53 = vld [vmem:[#allocation12 + $0x148] sm:$0xff] }
 0x234   : > { %1660 = vmatmul.bf16.gmra.mxu2 %v1571_v55  ;;  %v15493_v55 = vld [vmem:[#allocation3 + $0x1b4] sm:$0xf] }
 0x235   : > { %v12520_v60 = vor.u32 %v15493_v55, %v12517_v56  ;;  %v15500_v55 = vld [vmem:[#allocation12 + $0x1a8] sm:$0xff]  ;;  %v15499_v56 = vld [vmem:[#allocation12 + $0x1a0] sm:$0xff] }
 0x238   : > { %v1761_v47 = vpop.f32.mrf.mxu0 }
 0x23c   : > { %1973 = vmatmul.bf16.vlgmr.msra.gmra.mxu3 %v12496_v58  ;;  %v15479_v58 = vld [vmem:[#allocation12 + $0x140] sm:$0xff] }
 0x23f   : > { %v1433_v2 = vpop.f32.mrf.mxu3 }
 0x240   : > { %v17131_v4 = vadd.f32 %v1433_v2, %v17086_v9  ;;  %v15484_v9 = vld [vmem:[#allocation12 + $0x168] sm:$0xff]  ;;  %v1763_v18 = vpop.f32.mrf.mxu0 }
 0x241   : > { %1852 = vmatpush.bf16.msra.mxu1 %v15484_v9 }
 0x244   : > { %1944 = vmatmul.bf16.vlgmr.msra.gmra.mxu2 %v12492_v0  ;;  %v15494_v0 = vld [vmem:[#allocation3 + $0x1b4] sm:$0xf0] }
 0x245   : > { %1853 = vmatpush.bf16.msra.mxu1 %v15483_v38  ;;  %v12516_v2 = vor.u32 %v15494_v0, %v12515_v61  ;;  %v12557_v61 = vld [vmem:[#allocation3 + $0x1c8] sm:$0xf0] }
 0x247   : > { %v17133_v14 = vpop.f32.mrf.mxu3 }
 0x249   : > { %1854 = vmatpush.bf16.msra.mxu1 %v15482_v43  ;;  %v15502_v43 = vld [vmem:[#allocation12 + $0x1b8] sm:$0xff] }
 0x24a   : > { %2063 = vmatpush.bf16.msrb.mxu0 %v15502_v43 }
 0x24c   : > { %1978 = vmatmul.bf16.gmra.mxu3 %v12504_v15 }
 0x24f   : > { %v1438_v5 = vpop.f32.mrf.mxu3 }
 0x250   : > { %v17136_v32 = vadd.f32 %v1438_v5, %v17095_v30  ;;  %v15481_v30 = vld [vmem:[#allocation12 + $0x150] sm:$0xff] }
 0x251   : > { %1855 = vmatpush.bf16.msra.mxu1 %v15481_v30 }
 0x254   : > { %1949 = vmatmul.bf16.gmra.mxu2 %v12500_v25  ;;  %v1766_v25 = vpop.f32.mrf.mxu0 }
 0x255   : > { %1856 = vmatpush.bf16.msra.mxu1 %v15480_v53 }
 0x257   : > { %v17138_v37 = vpop.f32.mrf.mxu3 }
 0x259   : > { %1857 = vmatpush.bf16.msra.mxu1 %v15479_v58 }
 0x25c   : > { %1983 = vmatmul.bf16.gmra.mxu3 %v12512_v39  ;;  %v1768_v39 = vpop.f32.mrf.mxu0 }
 0x25d   : > { %2149 = vmatpush.bf16.msrb.mxu1 %v16905_v3 }
 0x25f   : > { %v1443_v46 = vpop.f32.mrf.mxu3 }
 0x260   : > { %v17141_v50 = vadd.f32 %v1443_v46, %v17104_v51 }
 0x261   : > { %2150 = vmatpush.bf16.msrb.mxu1 %v16916_v10 }
 0x264   : > { %1954 = vmatmul.bf16.gmra.mxu2 %v12508_v45  ;;  %v1771_v53 = vpop.f32.mrf.mxu0 }
 0x265   : > { %2151 = vmatpush.bf16.msrb.mxu1 %v16928_v16 }
 0x267   : > { %v17143_v57 = vpop.f32.mrf.mxu3 }
 0x269   : > { %2152 = vmatpush.bf16.msrb.mxu1 %v16940_v22 }
 0x26c   : > { %1988 = vmatmul.bf16.gmra.mxu3 %v12520_v60  ;;  %v1773_v58 = vpop.f32.mrf.mxu0  ;;  %v15503_v60 = vld [vmem:[#allocation3 + $0x1c4] sm:$0xf] }
 0x26d   : > { %2153 = vmatpush.bf16.msrb.mxu1 %v16952_v28  ;;  %v12560_v0 = vor.u32 %v15503_v60, %v12557_v61  ;;  %v12581_v60 = vld [vmem:[#allocation3 + $0x1f8] sm:$0xf0] }
 0x26f   : > { %v1448_v51 = vpop.f32.mrf.mxu3 }
 0x270   : > { %v17148_v8 = vadd.f32 %v1448_v51, %v17112_v12 }
 0x271   : > { %2154 = vmatpush.bf16.msrb.mxu1 %v16964_v34 }
 0x274   : > { %1959 = vmatmul.bf16.gmra.mxu2 %v12516_v2 }
 0x275   : > { %2155 = vmatpush.bf16.msrb.mxu1 %v16976_v40 }
 0x277   : > { %v17152_v15 = vpop.f32.mrf.mxu3 }
 0x279   : > { %2156 = vmatpush.bf16.msrb.mxu1 %v16988_v48 }
 0x27f   : > { %v1732_v20 = vpop.f32.mrf.mxu3 }
 0x280   : > { %v1762_v31 = vadd.f32 %v1761_v47, %v1732_v20 }
 0x284   : > { %2186 = vmatmul.bf16.vlgmr.msrb.gmra.mxu2 %v12560_v0  ;;  %v12563_v0 = vld [vmem:[#allocation3 + $0x1d0] sm:$0xf] }
 0x287   : > { %v1646_v21 = vpop.f32.mrf.mxu2  ;;  %v1734_v5 = vpop.f32.mrf.mxu3 }
 0x288   : > { %v17158_v12 = vadd.f32 %v1646_v21, %v17131_v4  ;;  %v1764_v9 = vadd.f32 %v1763_v18, %v1734_v5  ;;  %v15501_v4 = vld [vmem:[#allocation12 + $0x1b0] sm:$0xff]  ;;  %v15495_v5 = vld [vmem:[#allocation12 + $0x180] sm:$0xff] }
 0x289   : > { %2064 = vmatpush.bf16.msrb.mxu0 %v15501_v4 }
 0x28a   : > { %v1781_v62 = vpack.c.bf16 %v1764_v9, %v1762_v31 }
 0x28c   : > { %1858 = vmatmul.bf16.vlgmr.msra.gmra.mxu1 %v1781_v62 }
 0x28d   : > { %2391 = vmatpush.bf16.msra.mxu1 %v16910_v7  ;;  %2065 = vmatpush.bf16.msrb.mxu0 %v15500_v55  ;;  %v15504_v55 = vld [vmem:[#allocation3 + $0x1c4] sm:$0xf0] }
 0x28f   : > { %v17161_v33 = vpop.f32.mrf.mxu2  ;;  %v1737_v38 = vpop.f32.mrf.mxu3 }
 0x290   : > { %v1767_v46 = vadd.f32 %v1766_v25, %v1737_v38  ;;  %v1776_v25 = vpop.f32.mrf.mxu0 }
 0x291   : > { %2392 = vmatpush.bf16.msra.mxu1 %v16920_v11  ;;  %2066 = vmatpush.bf16.msrb.mxu0 %v15499_v56 }
 0x295   : > { %2393 = vmatpush.bf16.msra.mxu1 %v16932_v17 }
 0x297   : > { %v1651_v44 = vpop.f32.mrf.mxu2  ;;  %v1739_v45 = vpop.f32.mrf.mxu3 }
 0x298   : > { %v17167_v26 = vadd.f32 %v1651_v44, %v17136_v32  ;;  %v1769_v30 = vadd.f32 %v1768_v39, %v1739_v45  ;;  %v15498_v32 = vld [vmem:[#allocation12 + $0x198] sm:$0xff] }
 0x299   : > { %2394 = vmatpush.bf16.msra.mxu1 %v16944_v23  ;;  %2067 = vmatpush.bf16.msrb.mxu0 %v15498_v32  ;;  %v15497_v23 = vld [vmem:[#allocation12 + $0x190] sm:$0xff] }
 0x29a   : > { %v1782_v7 = vpack.c.bf16 %v1769_v30, %v1767_v46  ;;  %v12573_v46 = vld [vmem:[#allocation3 + $0x1e8] sm:$0xf0] }
 0x29c   : > { %1863 = vmatmul.bf16.gmra.mxu1 %v1782_v7 }
 0x29d   : > { %2395 = vmatpush.bf16.msra.mxu1 %v16956_v29  ;;  %2068 = vmatpush.bf16.msrb.mxu0 %v15497_v23  ;;  %v15496_v29 = vld [vmem:[#allocation12 + $0x188] sm:$0xff] }
 0x29f   : > { %v17170_v11 = vpop.f32.mrf.mxu2  ;;  %v1742_v17 = vpop.f32.mrf.mxu3 }
 0x2a0   : > { %v1772_v18 = vadd.f32 %v1771_v53, %v1742_v17  ;;  %v12555_v53 = vld [vmem:[#allocation3 + $0x1c0] sm:$0xf] }
 0x2a1   : > { %2396 = vmatpush.bf16.msra.mxu1 %v16969_v36  ;;  %2069 = vmatpush.bf16.msrb.mxu0 %v15496_v29 }
 0x2a5   : > { %2397 = vmatpush.bf16.msra.mxu1 %v16980_v41  ;;  %2070 = vmatpush.bf16.msrb.mxu0 %v15495_v5  ;;  %v15505_v41 = vld [vmem:[#allocation3 + $0x1d4] sm:$0xf]  ;;  %v15508_v5 = vld [vmem:[#allocation3 + $0x1e4] sm:$0xf0] }
 0x2a7   : > { %v1656_v2 = vpop.f32.mrf.mxu2  ;;  %v1744_v47 = vpop.f32.mrf.mxu3 }
 0x2a8   : > { %v17176_v51 = vadd.f32 %v1656_v2, %v17141_v50  ;;  %v1774_v20 = vadd.f32 %v1773_v58, %v1744_v47  ;;  %v12565_v50 = vld [vmem:[#allocation3 + $0x1d8] sm:$0xf0]  ;;  %v15509_v58 = vld [vmem:[#allocation3 + $0x1f4] sm:$0xf]  ;;  %v15506_v2 = vld [vmem:[#allocation3 + $0x1d4] sm:$0xf0] }
 0x2a9   : > { %2398 = vmatpush.bf16.msra.mxu1 %v16992_v52  ;;  %2362 = vmatpush.bf16.msra.mxu0 %v16905_v3  ;;  %v12568_v9 = vor.u32 %v15505_v41, %v12565_v50  ;;  %v1778_v52 = vpop.f32.mrf.mxu0  ;;  %v12564_v47 = vor.u32 %v15506_v2, %v12563_v0 }
 0x2aa   : > { %v1783_v36 = vpack.c.bf16 %v1774_v20, %v1772_v18 }
 0x2ab   : > { %2191 = vmatmul.bf16.gmra.mxu2 %v12568_v9 }
 0x2ac   : > { %1868 = vmatmul.bf16.gmra.mxu1 %v1783_v36 }
 0x2ad   : > { %2363 = vmatpush.bf16.msra.mxu0 %v16916_v10  ;;  %v15507_v10 = vld [vmem:[#allocation3 + $0x1e4] sm:$0xf] }
 0x2af   : > { %v17179_v21 = vpop.f32.mrf.mxu2  ;;  %v1747_v31 = vpop.f32.mrf.mxu3 }
 0x2b0   : > { %v1777_v43 = vadd.f32 %v1776_v25, %v1747_v31  ;;  %v12571_v25 = vld [vmem:[#allocation3 + $0x1e0] sm:$0xf] }
 0x2b1   : > { %2364 = vmatpush.bf16.msra.mxu0 %v16928_v16  ;;  %v12556_v16 = vor.u32 %v15504_v55, %v12555_v53  ;;  %v12572_v31 = vor.u32 %v15508_v5, %v12571_v25  ;;  %v15519_v55 = vld [vmem:[#allocation3 + $0x204] sm:$0xf]  ;;  %v12637_v5 = vld [vmem:[#allocation3 + $0x228] sm:$0xf0] }
 0x2b2   : > { %v15523_v25 = vld [vmem:[#allocation3 + $0x224] sm:$0xf] }
 0x2b5   : > { %2365 = vmatpush.bf16.msra.mxu0 %v16940_v22 }
 0x2b7   : > { %v1661_v62 = vpop.f32.mrf.mxu2  ;;  %v1749_v39 = vpop.f32.mrf.mxu3 }
 0x2b8   : > { %v17184_v38 = vadd.f32 %v1661_v62, %v17148_v8  ;;  %v1779_v44 = vadd.f32 %v1778_v52, %v1749_v39  ;;  %v12576_v8 = vor.u32 %v15507_v10, %v12573_v46 }
 0x2b9   : > { %2366 = vmatpush.bf16.msra.mxu0 %v16952_v28 }
 0x2ba   : > { %v1784_v4 = vpack.c.bf16 %v1779_v44, %v1777_v43  ;;  %v12579_v44 = vld [vmem:[#allocation3 + $0x1f0] sm:$0xf] }
 0x2bb   : > { %2196 = vmatmul.bf16.gmra.mxu2 %v12576_v8 }
 0x2bc   : > { %1873 = vmatmul.bf16.gmra.mxu1 %v1784_v4  ;;  %v15510_v4 = vld [vmem:[#allocation3 + $0x1f4] sm:$0xf0] }
 0x2bd   : > { %2367 = vmatpush.bf16.msra.mxu0 %v16964_v34  ;;  %v12584_v34 = vor.u32 %v15509_v58, %v12581_v60  ;;  %v15518_v60 = vld [vmem:[#allocation12 + $0x1f8] sm:$0xff] }
 0x2be   : > { %2276 = vmatpush.bf16.msrb.mxu3 %v15518_v60 }
 0x2bf   : > { %v17188_v3 = vpop.f32.mrf.mxu2  ;;  %v1974_v45 = vpop.f32.mrf.mxu3 }
 0x2c1   : > { %2368 = vmatpush.bf16.msra.mxu0 %v16976_v40 }
 0x2c5   : > { %2369 = vmatpush.bf16.msra.mxu0 %v16988_v48 }
 0x2c7   : > { %v1945_v30 = vpop.f32.mrf.mxu2  ;;  %v1976_v7 = vpop.f32.mrf.mxu3 }
 0x2c8   : > { %v1975_v56 = vadd.f32 %v1974_v45, %v1945_v30  ;;  %v12580_v45 = vor.u32 %v15510_v4, %v12579_v44  ;;  %v15511_v44 = vld [vmem:[#allocation12 + $0x1c0] sm:$0xff]  ;;  %v15525_v4 = vld [vmem:[#allocation3 + $0x234] sm:$0xf] }
 0x2cb   : > { %2201 = vmatmul.bf16.gmra.mxu2 %v12584_v34  ;;  %v15521_v34 = vld [vmem:[#allocation3 + $0x214] sm:$0xf] }
 0x2cc   : > { %2157 = vmatmul.bf16.vlgmr.msrb.gmra.mxu1 %v12556_v16 }
 0x2cf   : > { %v1947_v22 = vpop.f32.mrf.mxu2  ;;  %v1979_v28 = vpop.f32.mrf.mxu3 }
 0x2d0   : > { %v1977_v17 = vadd.f32 %v1976_v7, %v1947_v22  ;;  %v12621_v7 = vld [vmem:[#allocation3 + $0x208] sm:$0xf0] }
 0x2d1   : > { %v12624_v16 = vor.u32 %v15519_v55, %v12621_v7 }
 0x2d2   : > { %v1994_v32 = vpack.c.bf16 %v1977_v17, %v1975_v56  ;;  %v12619_v17 = vld [vmem:[#allocation3 + $0x200] sm:$0xf] }
 0x2d4   : > { %2071 = vmatmul.bf16.vlgmr.msrb.gmra.mxu0 %v1994_v32 }
 0x2d7   : > { %v1950_v61 = vpop.f32.mrf.mxu2  ;;  %v1981_v23 = vpop.f32.mrf.mxu3 }
 0x2d8   : > { %v1980_v29 = vadd.f32 %v1979_v28, %v1950_v61  ;;  %v15520_v28 = vld [vmem:[#allocation3 + $0x204] sm:$0xf0]  ;;  %v12629_v61 = vld [vmem:[#allocation3 + $0x218] sm:$0xf0] }
 0x2d9   : > { %v12620_v32 = vor.u32 %v15520_v28, %v12619_v17  ;;  %v12632_v0 = vor.u32 %v15521_v34, %v12629_v61 }
 0x2dc   : > { %2162 = vmatmul.bf16.gmra.mxu1 %v12564_v47 }
 0x2df   : > { %v1952_v40 = vpop.f32.mrf.mxu2  ;;  %v1984_v48 = vpop.f32.mrf.mxu3 }
 0x2e0   : > { %v1982_v18 = vadd.f32 %v1981_v23, %v1952_v40  ;;  %v15517_v23 = vld [vmem:[#allocation12 + $0x1f0] sm:$0xff]  ;;  %v12627_v40 = vld [vmem:[#allocation3 + $0x210] sm:$0xf] }
 0x2e1   : > { %2277 = vmatpush.bf16.msrb.mxu3 %v15517_v23 }
 0x2e2   : > { %v1995_v20 = vpack.c.bf16 %v1982_v18, %v1980_v29  ;;  %v15522_v29 = vld [vmem:[#allocation3 + $0x214] sm:$0xf0] }
 0x2e3   : > { %v12628_v18 = vor.u32 %v15522_v29, %v12627_v40  ;;  %v15534_v40 = vld [vmem:[#allocation12 + $0x238] sm:$0xff] }
 0x2e4   : > { %2076 = vmatmul.bf16.gmra.mxu0 %v1995_v20  ;;  %v15515_v20 = vld [vmem:[#allocation12 + $0x1e0] sm:$0xff]  ;;  %2489 = vmatpush.bf16.msra.mxu2 %v15534_v40 }
 0x2e7   : > { %v1955_v36 = vpop.f32.mrf.mxu2  ;;  %v1986_v41 = vpop.f32.mrf.mxu3 }
 0x2e8   : > { %v1985_v9 = vadd.f32 %v1984_v48, %v1955_v36  ;;  %v15514_v36 = vld [vmem:[#allocation12 + $0x1d8] sm:$0xff] }
 0x2ec   : > { %2167 = vmatmul.bf16.gmra.mxu1 %v12572_v31  ;;  %v12640_v31 = vor.u32 %v15523_v25, %v12637_v5  ;;  %v15532_v5 = vld [vmem:[#allocation12 + $0x228] sm:$0xff] }
 0x2ef   : > { %v1957_v50 = vpop.f32.mrf.mxu2  ;;  %v1989_v39 = vpop.f32.mrf.mxu3 }
 0x2f0   : > { %v1987_v62 = vadd.f32 %v1986_v41, %v1957_v50  ;;  %v15513_v50 = vld [vmem:[#allocation12 + $0x1d0] sm:$0xff] }
 0x2f2   : > { %v1996_v52 = vpack.c.bf16 %v1987_v62, %v1985_v9  ;;  %v12635_v9 = vld [vmem:[#allocation3 + $0x220] sm:$0xf]  ;;  %v15524_v62 = vld [vmem:[#allocation3 + $0x224] sm:$0xf0] }
 0x2f4   : > { %2081 = vmatmul.bf16.gmra.mxu0 %v1996_v52  ;;  %v15512_v52 = vld [vmem:[#allocation12 + $0x1c8] sm:$0xff] }
 0x2f7   : > { %v1960_v43 = vpop.f32.mrf.mxu2  ;;  %v1991_v10 = vpop.f32.mrf.mxu3 }
 0x2f8   : > { %v1990_v8 = vadd.f32 %v1989_v39, %v1960_v43  ;;  %v12636_v39 = vor.u32 %v15524_v62, %v12635_v9  ;;  %v15530_v62 = vld [vmem:[#allocation12 + $0x218] sm:$0xff] }
 0x2fc   : > { %2172 = vmatmul.bf16.gmra.mxu1 %v12580_v45  ;;  %v12645_v45 = vld [vmem:[#allocation3 + $0x238] sm:$0xf0] }
 0x2ff   : > { %v1962_v46 = vpop.f32.mrf.mxu2 }
 0x300   : > { %v1992_v30 = vadd.f32 %v1991_v10, %v1962_v46  ;;  %v12648_v10 = vor.u32 %v15525_v4, %v12645_v45  ;;  %v15528_v45 = vld [vmem:[#allocation12 + $0x208] sm:$0xff] }
 0x302   : > { %v1997_v53 = vpack.c.bf16 %v1992_v30, %v1990_v8 }
 0x304   : > { %2086 = vmatmul.bf16.gmra.mxu0 %v1997_v53  ;;  %v15526_v53 = vld [vmem:[#allocation3 + $0x234] sm:$0xf0] }
 0x307   : > { %v2187_v8 = vpop.f32.mrf.mxu2 }
 0x309   : > { %v1859_v22 = vpop.f32.mrf.mxu1 }
 0x30a   : > { %v1879_v56 = vadd.f32 %v1859_v22, %v17158_v12  ;;  %v15516_v12 = vld [vmem:[#allocation12 + $0x1e8] sm:$0xff] }
 0x30b   : > { %2278 = vmatpush.bf16.msrb.mxu3 %v15516_v12  ;;  %v15533_v12 = vld [vmem:[#allocation12 + $0x230] sm:$0xff] }
 0x30c   : > { %2399 = vmatmul.bf16.vlgmr.msra.gmra.mxu1 %v12624_v16  ;;  %2490 = vmatpush.bf16.msra.mxu2 %v15533_v12 }
 0x30f   : > { %2279 = vmatpush.bf16.msrb.mxu3 %v15515_v20  ;;  %v2189_v16 = vpop.f32.mrf.mxu2 }
 0x310   : > { %2491 = vmatpush.bf16.msra.mxu2 %v15532_v5 }
 0x311   : > { %v17195_v58 = vpop.f32.mrf.mxu1 }
 0x313   : > { %2280 = vmatpush.bf16.msrb.mxu3 %v15514_v36 }
 0x314   : > { %2370 = vmatmul.bf16.vlgmr.msra.gmra.mxu0 %v12620_v32 }
 0x317   : > { %2281 = vmatpush.bf16.msrb.mxu3 %v15513_v50  ;;  %v15531_v50 = vld [vmem:[#allocation12 + $0x220] sm:$0xff] }
 0x318   : > { %2492 = vmatpush.bf16.msra.mxu2 %v15531_v50 }
 0x319   : > { %v1864_v2 = vpop.f32.mrf.mxu1 }
 0x31a   : > { %v1881_v47 = vadd.f32 %v1864_v2, %v17167_v26 }
 0x31b   : > { %2282 = vmatpush.bf16.msrb.mxu3 %v15512_v52 }
 0x31c   : > { %2404 = vmatmul.bf16.gmra.mxu1 %v12632_v0  ;;  %2493 = vmatpush.bf16.msra.mxu2 %v15530_v62 }
 0x31f   : > { %2283 = vmatpush.bf16.msrb.mxu3 %v15511_v44 }
 0x321   : > { %v17198_v48 = vpop.f32.mrf.mxu1 }
 0x324   : > { %2375 = vmatmul.bf16.gmra.mxu0 %v12628_v18 }
 0x329   : > { %v1869_v41 = vpop.f32.mrf.mxu1 }
 0x32a   : > { %v1883_v26 = vadd.f32 %v1869_v41, %v17176_v51  ;;  %v12643_v51 = vld [vmem:[#allocation3 + $0x230] sm:$0xf] }
 0x32b   : > { %v12644_v55 = vor.u32 %v15526_v53, %v12643_v51 }
 0x32c   : > { %2409 = vmatmul.bf16.gmra.mxu1 %v12640_v31 }
 0x32e   : > { %v2192_v17 = vpop.f32.mrf.mxu2 }
 0x331   : > { %v17201_v43 = vpop.f32.mrf.mxu1 }
 0x334   : > { %2380 = vmatmul.bf16.gmra.mxu0 %v12636_v39 }
 0x339   : > { %v1874_v46 = vpop.f32.mrf.mxu1 }
 0x33a   : > { %v1885_v30 = vadd.f32 %v1874_v46, %v17184_v38  ;;  %v2194_v38 = vpop.f32.mrf.mxu2 }
 0x33c   : > { %2414 = vmatmul.bf16.gmra.mxu1 %v12648_v10 }
 0x341   : > { %v17204_v7 = vpop.f32.mrf.mxu1 }
 0x342   : > { %v2197_v36 = vpop.f32.mrf.mxu2 }
 0x344   : > { %2385 = vmatmul.bf16.gmra.mxu0 %v12644_v55  ;;  %v15527_v55 = vld [vmem:[#allocation12 + $0x200] sm:$0xff] }
 0x349   : > { %v2158_v22 = vpop.f32.mrf.mxu1 }
 0x34a   : > { %v2188_v34 = vadd.f32 %v2187_v8, %v2158_v22  ;;  %v2199_v52 = vpop.f32.mrf.mxu2 }
 0x351   : > { %v2072_v28 = vpop.f32.mrf.mxu0  ;;  %v2160_v60 = vpop.f32.mrf.mxu1 }
 0x352   : > { %v17206_v32 = vadd.f32 %v2072_v28, %v1879_v56  ;;  %v2190_v61 = vadd.f32 %v2189_v16, %v2160_v60  ;;  %v2202_v51 = vpop.f32.mrf.mxu2 }
 0x354   : > { %v2207_v0 = vpack.c.bf16 %v2190_v61, %v2188_v34 }
 0x356   : > { %2284 = vmatmul.bf16.vlgmr.msrb.gmra.mxu3 %v2207_v0 }
 0x359   : > { %v17208_v2 = vpop.f32.mrf.mxu0  ;;  %v2163_v23 = vpop.f32.mrf.mxu1 }
 0x35a   : > { %v2193_v56 = vadd.f32 %v2192_v17, %v2163_v23  ;;  %v2204_v17 = vpop.f32.mrf.mxu2 }
 0x361   : > { %v2077_v29 = vpop.f32.mrf.mxu0  ;;  %v2165_v20 = vpop.f32.mrf.mxu1 }
 0x362   : > { %v17210_v18 = vadd.f32 %v2077_v29, %v1881_v47  ;;  %v2195_v25 = vadd.f32 %v2194_v38, %v2165_v20  ;;  %v15529_v47 = vld [vmem:[#allocation12 + $0x210] sm:$0xff] }
 0x363   : > { %2494 = vmatpush.bf16.msra.mxu2 %v15529_v47 }
 0x364   : > { %v2208_v31 = vpack.c.bf16 %v2195_v25, %v2193_v56 }
 0x366   : > { %2289 = vmatmul.bf16.gmra.mxu3 %v2208_v31 }
 0x367   : > { %2495 = vmatpush.bf16.msra.mxu2 %v15528_v45 }
 0x369   : > { %v17212_v41 = vpop.f32.mrf.mxu0  ;;  %v2168_v9 = vpop.f32.mrf.mxu1 }
 0x36a   : > { %v2198_v10 = vadd.f32 %v2197_v36, %v2168_v9 }
 0x36b   : > { %2496 = vmatpush.bf16.msra.mxu2 %v15527_v55 }
 0x371   : > { %v2082_v39 = vpop.f32.mrf.mxu0  ;;  %v2170_v4 = vpop.f32.mrf.mxu1 }
 0x372   : > { %v17214_v44 = vadd.f32 %v2082_v39, %v1883_v26  ;;  %v2200_v46 = vadd.f32 %v2199_v52, %v2170_v4 }
 0x374   : > { %v2209_v8 = vpack.c.bf16 %v2200_v46, %v2198_v10 }
 0x376   : > { %2294 = vmatmul.bf16.gmra.mxu3 %v2209_v8 }
 0x379   : > { %v17216_v53 = vpop.f32.mrf.mxu0  ;;  %v2173_v16 = vpop.f32.mrf.mxu1 }
 0x37a   : > { %v2203_v60 = vadd.f32 %v2202_v51, %v2173_v16 }
 0x381   : > { %v2087_v22 = vpop.f32.mrf.mxu0  ;;  %v2175_v26 = vpop.f32.mrf.mxu1 }
 0x382   : > { %v17218_v28 = vadd.f32 %v2087_v22, %v1885_v30  ;;  %v2205_v34 = vadd.f32 %v2204_v17, %v2175_v26 }
 0x384   : > { %v2210_v61 = vpack.c.bf16 %v2205_v34, %v2203_v60  ;;  %v1018_v34 = vadd.f32 %v17056_v6, %v17058_v13 }
 0x386   : > { %2299 = vmatmul.bf16.gmra.mxu3 %v2210_v61  ;;  %v1241_v61 = vadd.f32 %v17089_v19, %v1018_v34 }
 0x389   : > { %v17220_v0 = vpop.f32.mrf.mxu0  ;;  %v2400_v38 = vpop.f32.mrf.mxu1 }
 0x391   : > { %v2371_v23 = vpop.f32.mrf.mxu0  ;;  %v2402_v40 = vpop.f32.mrf.mxu1 }
 0x392   : > { %v2401_v12 = vadd.f32 %v2400_v38, %v2371_v23  ;;  %v1454_v38 = vadd.f32 %v17133_v14, %v1241_v61 }
 0x399   : > { %v2373_v29 = vpop.f32.mrf.mxu0  ;;  %v2405_v36 = vpop.f32.mrf.mxu1 }
 0x39a   : > { %v2403_v20 = vadd.f32 %v2402_v40, %v2373_v29  ;;  %v17227_v40 = vld [vmem:[#allocation14] ss:$0 sm:$0xff] }
 0x39c   : > { %v2420_v56 = vpack.c.bf16 %v2403_v20, %v2401_v12  ;;  %v1667_v12 = vadd.f32 %v17161_v33, %v1454_v38 }
 0x39e   : > { %2497 = vmatmul.bf16.vlgmr.msra.gmra.mxu2 %v2420_v56 }
 0x3a1   : > { %v2376_v25 = vpop.f32.mrf.mxu0  ;;  %v2407_v5 = vpop.f32.mrf.mxu1 }
 0x3a2   : > { %v2406_v31 = vadd.f32 %v2405_v36, %v2376_v25  ;;  %v17230_v36 = vld [vmem:[#allocation15] ss:$0 sm:$0xff]  ;;  %v1880_v25 = vadd.f32 %v17195_v58, %v1667_v12 }
 0x3a4   : > { %v2093_v13 = vadd.f32 %v17208_v2, %v1880_v25  ;;  %v1023_v2 = vadd.f32 %v17062_v27, %v17064_v35 }
 0x3a9   : > { %v2378_v30 = vpop.f32.mrf.mxu0  ;;  %v2410_v9 = vpop.f32.mrf.mxu1 }
 0x3aa   : > { %v2408_v50 = vadd.f32 %v2407_v5, %v2378_v30 }
 0x3ac   : > { %v2421_v62 = vpack.c.bf16 %v2408_v50, %v2406_v31  ;;  %v1243_v31 = vadd.f32 %v17098_v42, %v1023_v2 }
 0x3ae   : > { %2502 = vmatmul.bf16.gmra.mxu2 %v2421_v62 }
 0x3b1   : > { %v2381_v52 = vpop.f32.mrf.mxu0  ;;  %v2412_v39 = vpop.f32.mrf.mxu1 }
 0x3b2   : > { %v2411_v4 = vadd.f32 %v2410_v9, %v2381_v52  ;;  %v1456_v9 = vadd.f32 %v17138_v37, %v1243_v31 }
 0x3b9   : > { %v2383_v47 = vpop.f32.mrf.mxu0  ;;  %v2415_v46 = vpop.f32.mrf.mxu1 }
 0x3ba   : > { %v2413_v45 = vadd.f32 %v2412_v39, %v2383_v47  ;;  %v1669_v47 = vadd.f32 %v17170_v11, %v1456_v9  ;;  %v1028_v11 = vadd.f32 %v17068_v49, %v17071_v54 }
 0x3bc   : > { %v2422_v10 = vpack.c.bf16 %v2413_v45, %v2411_v4  ;;  %v1882_v35 = vadd.f32 %v17198_v48, %v1669_v47  ;;  %v1245_v48 = vadd.f32 %v17107_v59, %v1028_v11  ;;  %v15571_v47 = vld [vmem:[#allocation6 + $0x20] sm:$0xff]  ;;  %v15559_v11 = vld [vmem:[#allocation12 + $0x2e8] sm:$0xff] }
 0x3be   : > { %2507 = vmatmul.bf16.gmra.mxu2 %v2422_v10  ;;  %v2095_v4 = vadd.f32 %v17212_v41, %v1882_v35  ;;  %v1458_v41 = vadd.f32 %v17143_v57, %v1245_v48  ;;  %v15586_v35 = vld [vmem:[#allocation12 + $0x3a8] sm:$0xff]  ;;  %v15583_v48 = vld [vmem:[#allocation12 + $0x390] sm:$0xff] }
 0x3c1   : > { %v2386_v8 = vpop.f32.mrf.mxu0  ;;  %v2417_v51 = vpop.f32.mrf.mxu1 }
 0x3c2   : > { %v2416_v16 = vadd.f32 %v2415_v46, %v2386_v8 }
 0x3c9   : > { %v2388_v55 = vpop.f32.mrf.mxu0 }
 0x3ca   : > { %v2418_v22 = vadd.f32 %v2417_v51, %v2388_v55 }
 0x3cc   : > { %v2423_v17 = vpack.c.bf16 %v2418_v22, %v2416_v16 }
 0x3ce   : > { %2512 = vmatmul.bf16.gmra.mxu2 %v2423_v17 }
 0x3d9   : > { %v2285_v26 = vpop.f32.mrf.mxu3 }
 0x3da   : > { %v2305_v23 = vadd.f32 %v2285_v26, %v17206_v32 }
 0x3e1   : > { %v2287_v60 = vpop.f32.mrf.mxu3 }
 0x3e2   : > { %v2306_v14 = vadd.f32 %v2287_v60, %v2093_v13  ;;  %v1671_v60 = vadd.f32 %v17179_v21, %v1458_v41  ;;  %v1033_v21 = vadd.f32 %v17078_v63, %v17081_v1  ;;  %v15558_v41 = vld [vmem:[#allocation12 + $0x2e0] sm:$0xff] }
 0x3e4   : > { %v1884_v49 = vadd.f32 %v17201_v43, %v1671_v60  ;;  %v1247_v43 = vadd.f32 %v17116_v24, %v1033_v21  ;;  %v15545_v60 = vld [vmem:[#allocation12 + $0x280] sm:$0xff]  ;;  %v15574_v21 = vld [vmem:[#allocation12 + $0x350] sm:$0xff] }
 0x3e6   : > { %v2097_v59 = vadd.f32 %v17216_v53, %v1884_v49  ;;  %v1460_v53 = vadd.f32 %v17152_v15, %v1247_v43  ;;  %v15556_v49 = vld [vmem:[#allocation12 + $0x2d0] sm:$0xff]  ;;  %v15573_v43 = vld [vmem:[#allocation12 + $0x348] sm:$0xff] }
 0x3e8   : > { %v1673_v13 = vadd.f32 %v17188_v3, %v1460_v53  ;;  %v15572_v53 = vld [vmem:[#allocation12 + $0x340] sm:$0xff] }
 0x3e9   : > { %v2290_v56 = vpop.f32.mrf.mxu3 }
 0x3ea   : > { %v2307_v62 = vadd.f32 %v2290_v56, %v17210_v18  ;;  %v1886_v63 = vadd.f32 %v17204_v7, %v1673_v13 }
 0x3ec   : > { %v2099_v24 = vadd.f32 %v17220_v0, %v1886_v63 }
 0x3f1   : > { %v2292_v30 = vpop.f32.mrf.mxu3 }
 0x3f2   : > { %v2308_v18 = vadd.f32 %v2292_v30, %v2095_v4  ;;  %v15585_v4 = vld [vmem:[#allocation12 + $0x3a0] sm:$0xff] }
 0x3f9   : > { %v2295_v37 = vpop.f32.mrf.mxu3 }
 0x3fa   : > { %v2309_v16 = vadd.f32 %v2295_v37, %v17214_v44  ;;  %v15560_v37 = vld [vmem:[#allocation12 + $0x2f0] sm:$0xff] }
 0x401   : > { %v2297_v17 = vpop.f32.mrf.mxu3 }
 0x402   : > { %v2310_v38 = vadd.f32 %v2297_v17, %v2097_v59  ;;  %v15540_v17 = vld [vmem:[#allocation12 + $0x260] sm:$0xff] }
 0x403   : > { %v15554_v59 = vld [vmem:[#allocation12 + $0x2c0] sm:$0xff] }
 0x421   : > { %v2498_v29 = vpop.f32.mrf.mxu2 }
 0x422   : > { %v2518_v20 = vadd.f32 %v2498_v29, %v2305_v23  ;;  %v2300_v29 = vpop.f32.mrf.mxu3 }
 0x423   : > { %v2311_v56 = vadd.f32 %v2300_v29, %v17218_v28  ;;  %v15539_v29 = vld [vmem:[#allocation12 + $0x258] sm:$0xff] }
 0x424   : > { %v2528_v6 = vmul.f32 %v17227_v40, %v2518_v20 }
 0x426   : > { %v17237_v19 = vadd.f32 %v17230_v36, %v2528_v6 }
 0x428   : > { %v2546_v33 = vmax.f32 %v17237_v19, 0.0  ;;  %v15552_v19 = vld [vmem:[#allocation12 + $0x2b8] sm:$0xff] }
 0x429   : > { %v2500_v32 = vpop.f32.mrf.mxu2 }
 0x42a   : > { %2554 = vst [vmem:[%s17242_s16] sm:$0xff] %v2546_v33  ;;  %v2519_v58 = vadd.f32 %v2500_v32, %v2306_v14  ;;  %v2302_v32 = vpop.f32.mrf.mxu3 }
 0x42b   : > { %v2312_v2 = vadd.f32 %v2302_v32, %v2099_v24 }
 0x42c   : > { %v2529_v5 = vmul.f32 %v17227_v40, %v2519_v58 }
 0x42e   : > { %v17253_v50 = vadd.f32 %v17230_v36, %v2529_v5 }
 0x430   : > { %v2547_v52 = vmax.f32 %v17253_v50, 0.0  ;;  %v15551_v50 = vld [vmem:[#allocation12 + $0x2b0] sm:$0xff] }
 0x431   : > { %v2503_v39 = vpop.f32.mrf.mxu2 }
 0x432   : > { %2555 = vst [vmem:[%s17242_s16 + $0x8] sm:$0xff] %v2547_v52  ;;  %v2520_v27 = vadd.f32 %v2503_v39, %v2307_v62  ;;  %v15553_v62 = vld [vmem:[#allocation6 + $0x10] sm:$0xff]  ;;  %v15544_v39 = vld [vmem:[#allocation6 + $0x8] sm:$0xff] }
 0x434   : > { %v2530_v42 = vmul.f32 %v17227_v40, %v2520_v27  ;;  %v15550_v27 = vld [vmem:[#allocation12 + $0x2a8] sm:$0xff] }
 0x436   : > { %v2540_v45 = vadd.f32 %v17230_v36, %v2530_v42  ;;  %v15549_v42 = vld [vmem:[#allocation12 + $0x2a0] sm:$0xff] }
 0x438   : > { %v2548_v10 = vmax.f32 %v2540_v45, 0.0  ;;  %v15561_v45 = vld [vmem:[#allocation12 + $0x2f8] sm:$0xff] }
 0x439   : > { %v2505_v46 = vpop.f32.mrf.mxu2  ;;  %2867 = vmatpush.bf16.msrb.mxu2 %v15561_v45  ;;  %v15599_v45 = vld [vmem:[#allocation12 + $0x400] sm:$0xff] }
 0x43a   : > { %2556 = vst [vmem:[%s17242_s16 + $0x10] sm:$0xff] %v2548_v10  ;;  %v2521_v8 = vadd.f32 %v2505_v46, %v2308_v18  ;;  %v15548_v18 = vld [vmem:[#allocation12 + $0x298] sm:$0xff] }
 0x43b   : > { %v15543_v46 = vld [vmem:[#allocation12 + $0x278] sm:$0xff] }
 0x43c   : > { %v2531_v51 = vmul.f32 %v17227_v40, %v2521_v8  ;;  %2762 = vmatpush.bf16.msrb.mxu0 %v15543_v46  ;;  %v15542_v8 = vld [vmem:[#allocation12 + $0x270] sm:$0xff] }
 0x43d   : > { %2868 = vmatpush.bf16.msrb.mxu2 %v15560_v37  ;;  %v15565_v37 = vld [vmem:[#allocation12 + $0x310] sm:$0xff] }
 0x43e   : > { %v2541_v55 = vadd.f32 %v17230_v36, %v2531_v51  ;;  %v15547_v51 = vld [vmem:[#allocation12 + $0x290] sm:$0xff] }
 0x43f   : > { %v15638_v46 = vld [vmem:[#allocation12 + $0x530] sm:$0xff] }
 0x440   : > { %v2549_v22 = vmax.f32 %v2541_v55, 0.0  ;;  %2763 = vmatpush.bf16.msrb.mxu0 %v15542_v8  ;;  %v15541_v55 = vld [vmem:[#allocation12 + $0x268] sm:$0xff] }
 0x441   : > { %v2508_v26 = vpop.f32.mrf.mxu2  ;;  %2869 = vmatpush.bf16.msrb.mxu2 %v15559_v11  ;;  %v15563_v11 = vld [vmem:[#allocation12 + $0x300] sm:$0xff] }
 0x442   : > { %2557 = vst [vmem:[%s17242_s16 + $0x18] sm:$0xff] %v2549_v22  ;;  %v2522_v34 = vadd.f32 %v2508_v26, %v2309_v16  ;;  %v17306_v0 = vpack.c.bf16 %v2549_v22, %v2548_v10  ;;  %v15584_v10 = vld [vmem:[#allocation12 + $0x398] sm:$0xff]  ;;  %v15546_v16 = vld [vmem:[#allocation12 + $0x288] sm:$0xff] }
 0x443   : > { %v15582_v22 = vld [vmem:[#allocation12 + $0x388] sm:$0xff]  ;;  %v15557_v26 = vld [vmem:[#allocation12 + $0x2d8] sm:$0xff] }
 0x444   : > { %v2532_v54 = vmul.f32 %v17227_v40, %v2522_v34  ;;  %2764 = vmatpush.bf16.msrb.mxu0 %v15541_v55  ;;  %v15581_v34 = vld [vmem:[#allocation12 + $0x380] sm:$0xff] }
 0x445   : > { %2870 = vmatpush.bf16.msrb.mxu2 %v15558_v41  ;;  %v15636_v55 = vld [vmem:[#allocation12 + $0x520] sm:$0xff] }
 0x446   : > { %v2542_v61 = vadd.f32 %v17230_v36, %v2532_v54  ;;  %v15555_v54 = vld [vmem:[#allocation12 + $0x2c8] sm:$0xff] }
 0x448   : > { %v2550_v57 = vmax.f32 %v2542_v61, 0.0  ;;  %2765 = vmatpush.bf16.msrb.mxu0 %v15540_v17  ;;  %v15579_v61 = vld [vmem:[#allocation12 + $0x378] sm:$0xff]  ;;  %v15595_v17 = vld [vmem:[#allocation12 + $0x3e8] sm:$0xff] }
 0x449   : > { %v2510_v23 = vpop.f32.mrf.mxu2  ;;  %2871 = vmatpush.bf16.msrb.mxu2 %v15557_v26  ;;  %v15634_v26 = vld [vmem:[#allocation12 + $0x510] sm:$0xff] }
 0x44a   : > { %2558 = vst [vmem:[%s17242_s16 + $0x20] sm:$0xff] %v2550_v57  ;;  %v2523_v44 = vadd.f32 %v2510_v23, %v2310_v38  ;;  %v15578_v38 = vld [vmem:[#allocation12 + $0x370] sm:$0xff]  ;;  %v15576_v23 = vld [vmem:[#allocation12 + $0x360] sm:$0xff] }
 0x44c   : > { %v2533_v12 = vmul.f32 %v17227_v40, %v2523_v44  ;;  %v15575_v44 = vld [vmem:[#allocation12 + $0x358] sm:$0xff]  ;;  %2766 = vmatpush.bf16.msrb.mxu0 %v15539_v29 }
 0x44d   : > { %2872 = vmatpush.bf16.msrb.mxu2 %v15556_v49  ;;  %v15633_v49 = vld [vmem:[#allocation12 + $0x508] sm:$0xff] }
 0x44e   : > { %v2543_v20 = vadd.f32 %v17230_v36, %v2533_v12  ;;  %v15538_v12 = vld [vmem:[#allocation12 + $0x250] sm:$0xff] }
 0x450   : > { %v2551_v25 = vmax.f32 %v2543_v20, 0.0  ;;  %2767 = vmatpush.bf16.msrb.mxu0 %v15538_v12  ;;  %v15537_v20 = vld [vmem:[#allocation12 + $0x248] sm:$0xff] }
 0x451   : > { %v2513_v6 = vpop.f32.mrf.mxu2  ;;  %2873 = vmatpush.bf16.msrb.mxu2 %v15555_v54  ;;  %v15593_v54 = vld [vmem:[#allocation12 + $0x3d8] sm:$0xff] }
 0x452   : > { %2559 = vst [vmem:[%s17242_s16 + $0x28] sm:$0xff] %v2551_v25  ;;  %v2524_v14 = vadd.f32 %v2513_v6, %v2311_v56  ;;  %v17302_v7 = vpack.c.bf16 %v2551_v25, %v2550_v57  ;;  %v15577_v57 = vld [vmem:[#allocation12 + $0x368] sm:$0xff]  ;;  %v15536_v56 = vld [vmem:[#allocation12 + $0x240] sm:$0xff] }
 0x454   : > { %v2534_v1 = vmul.f32 %v17227_v40, %v2524_v14  ;;  %2768 = vmatpush.bf16.msrb.mxu0 %v15537_v20  ;;  %v15590_v20 = vld [vmem:[#allocation12 + $0x3c0] sm:$0xff] }
 0x455   : > { %2874 = vmatpush.bf16.msrb.mxu2 %v15554_v59 }
 0x456   : > { %v2544_v58 = vadd.f32 %v17230_v36, %v2534_v1 }
 0x458   : > { %v2552_v15 = vmax.f32 %v2544_v58, 0.0  ;;  %2769 = vmatpush.bf16.msrb.mxu0 %v15536_v56 }
 0x459   : > { %v2515_v5 = vpop.f32.mrf.mxu2  ;;  %3081 = vmatpush.bf16.msra.mxu2 %v15579_v61 }
 0x45a   : > { %2560 = vst [vmem:[%s17242_s16 + $0x30] sm:$0xff] %v2552_v15  ;;  %v2525_v28 = vadd.f32 %v2515_v5, %v2312_v2 }
 0x45c   : > { %v2535_v30 = vmul.f32 %v17227_v40, %v2525_v28  ;;  %v17314_v40 = vpack.c.bf16 %v2547_v52, %v2546_v33  ;;  %v15588_v33 = vld [vmem:[#allocation12 + $0x3b8] sm:$0xff]  ;;  %v15587_v52 = vld [vmem:[#allocation12 + $0x3b0] sm:$0xff] }
 0x45d   : > { %3082 = vmatpush.bf16.msra.mxu2 %v15578_v38  ;;  %v15598_v28 = vld [vmem:[#allocation6 + $0x38] sm:$0xff]  ;;  %v15632_v38 = vld [vmem:[#allocation12 + $0x500] sm:$0xff] }
 0x45e   : > { %v2545_v3 = vadd.f32 %v17230_v36, %v2535_v30  ;;  %v15535_v36 = vld [vmem:[#allocation6] sm:$0xff]  ;;  %v15562_v30 = vld [vmem:[#allocation6 + $0x18] sm:$0xff] }
 0x460   : > { %v2553_v31 = vmax.f32 %v2545_v3, 0.0  ;;  %v15580_v3 = vld [vmem:[#allocation6 + $0x28] sm:$0xff] }
 0x461   : > { %3083 = vmatpush.bf16.msra.mxu2 %v15577_v57  ;;  %v15592_v57 = vld [vmem:[#allocation12 + $0x3d0] sm:$0xff] }
 0x462   : > { %2561 = vst [vmem:[%s17242_s16 + $0x38] sm:$0xff] %v2553_v31  ;;  %v17298_v9 = vpack.c.bf16 %v2553_v31, %v2552_v15  ;;  %v15606_v31 = vld [vmem:[#allocation12 + $0x438] sm:$0xff]  ;;  %s16619_s16 = scalar_lea.hbm %s16618_s14, 16 }
 0x463   : > { %p16620_p0 = scmp.ne.s32.totalorder %s16618_s14, %s16619_s16 }
 0x464   : > { %2581 = vmatpush.bf16.msra.mxu3 %v17298_v9  ;;  %2791 = vmatpush.bf16.msrb.mxu1 %v17298_v9 }
 0x465   : > { %3084 = vmatpush.bf16.msra.mxu2 %v15576_v23  ;;  %p16621_p1 = pnand %p16620_p0, %p16804_p5 }
 0x467   : > { %p16622_p2 = pneg %p16621_p1 }
 0x468   : > { %2582 = vmatpush.bf16.msra.mxu3 %v17302_v7  ;;  %2792 = vmatpush.bf16.msrb.mxu1 %v17302_v7 }
 0x469   : > { %3085 = vmatpush.bf16.msra.mxu2 %v15575_v44 }
 0x46c   : > { %2583 = vmatpush.bf16.msra.mxu3 %v17306_v0  ;;  %2793 = vmatpush.bf16.msrb.mxu1 %v17306_v0 }
 0x46d   : > { %3086 = vmatpush.bf16.msra.mxu2 %v15574_v21  ;;  %v15591_v21 = vld [vmem:[#allocation12 + $0x3c8] sm:$0xff] }
 0x470   : > { %2584 = vmatpush.bf16.msra.mxu3 %v17314_v40  ;;  %2794 = vmatpush.bf16.msrb.mxu1 %v17314_v40 }
 0x471   : > { %3087 = vmatpush.bf16.msra.mxu2 %v15573_v43 }
 0x473   : > { %12685 = vmatmul.msk.bf16.vlgmr.msra.gmra.mxu3 %vm2573_vm0, %v15535_v36  ;;  %12759 = vmatmul.msk.bf16.vlgmr.msrb.gmra.mxu1 %vm2573_vm0, %v15553_v62  ;;  %v15589_v36 = vld [vmem:[#allocation6 + $0x30] sm:$0xff]  ;;  %v15605_v62 = vld [vmem:[#allocation12 + $0x430] sm:$0xff] }
 0x474   : > { %2624 = vmatpush.bf16.msrb.mxu3 %v17298_v9  ;;  %3005 = vmatpush.bf16.msra.mxu1 %v17298_v9 }
 0x475   : > { %3088 = vmatpush.bf16.msra.mxu2 %v15572_v53 }
 0x478   : > { %2625 = vmatpush.bf16.msrb.mxu3 %v17302_v7  ;;  %3006 = vmatpush.bf16.msra.mxu1 %v17302_v7 }
 0x47c   : > { %2626 = vmatpush.bf16.msrb.mxu3 %v17306_v0  ;;  %3007 = vmatpush.bf16.msra.mxu1 %v17306_v0 }
 0x480   : > { %2627 = vmatpush.bf16.msrb.mxu3 %v17314_v40  ;;  %3008 = vmatpush.bf16.msra.mxu1 %v17314_v40 }
 0x483   : > { %12690 = vmatmul.msk.bf16.vlgmr.msrb.gmra.mxu3 %vm2573_vm0, %v15544_v39  ;;  %12833 = vmatmul.msk.bf16.vlgmr.msra.gmra.mxu1 %vm2573_vm0, %v15571_v47  ;;  %v15602_v39 = vld [vmem:[#allocation12 + $0x418] sm:$0xff]  ;;  %v15568_v47 = vld [vmem:[#allocation12 + $0x328] sm:$0xff] }
 0x484   : > { %2700 = vmatpush.bf16.msra.mxu3 %v15552_v19  ;;  %3188 = vmatpush.bf16.msrb.mxu1 %v15588_v33  ;;  %v15604_v19 = vld [vmem:[#allocation12 + $0x428] sm:$0xff]  ;;  %v15570_v33 = vld [vmem:[#allocation12 + $0x338] sm:$0xff] }
 0x485   : > { %2974 = vmatpush.bf16.msra.mxu0 %v15570_v33  ;;  %v15607_v33 = vld [vmem:[#allocation6 + $0x40] sm:$0xff] }
 0x488   : > { %2701 = vmatpush.bf16.msra.mxu3 %v15551_v50  ;;  %3189 = vmatpush.bf16.msrb.mxu1 %v15587_v52  ;;  %v15603_v50 = vld [vmem:[#allocation12 + $0x420] sm:$0xff]  ;;  %v15569_v52 = vld [vmem:[#allocation12 + $0x330] sm:$0xff] }
 0x489   : > { %2975 = vmatpush.bf16.msra.mxu0 %v15569_v52  ;;  %v15627_v52 = vld [vmem:[#allocation12 + $0x4d8] sm:$0xff] }
 0x48c   : > { %2702 = vmatpush.bf16.msra.mxu3 %v15550_v27  ;;  %3190 = vmatpush.bf16.msrb.mxu1 %v15586_v35  ;;  %v15601_v27 = vld [vmem:[#allocation12 + $0x410] sm:$0xff]  ;;  %v15567_v35 = vld [vmem:[#allocation12 + $0x320] sm:$0xff] }
 0x48d   : > { %2976 = vmatpush.bf16.msra.mxu0 %v15568_v47  ;;  %v15626_v47 = vld [vmem:[#allocation12 + $0x4d0] sm:$0xff] }
 0x490   : > { %2703 = vmatpush.bf16.msra.mxu3 %v15549_v42  ;;  %3191 = vmatpush.bf16.msrb.mxu1 %v15585_v4  ;;  %v15600_v42 = vld [vmem:[#allocation12 + $0x408] sm:$0xff]  ;;  %v15566_v4 = vld [vmem:[#allocation12 + $0x318] sm:$0xff] }
 0x491   : > { %2977 = vmatpush.bf16.msra.mxu0 %v15567_v35  ;;  %v15624_v35 = vld [vmem:[#allocation12 + $0x4c0] sm:$0xff] }
 0x494   : > { %2704 = vmatpush.bf16.msra.mxu3 %v15548_v18  ;;  %3192 = vmatpush.bf16.msrb.mxu1 %v15584_v10  ;;  %v15639_v18 = vld [vmem:[#allocation12 + $0x538] sm:$0xff]  ;;  %v15564_v10 = vld [vmem:[#allocation12 + $0x308] sm:$0xff] }
 0x495   : > { %2978 = vmatpush.bf16.msra.mxu0 %v15566_v4  ;;  %v15614_v4 = vld [vmem:[#allocation12 + $0x470] sm:$0xff] }
 0x498   : > { %2705 = vmatpush.bf16.msra.mxu3 %v15547_v51  ;;  %3193 = vmatpush.bf16.msrb.mxu1 %v15583_v48  ;;  %v15637_v51 = vld [vmem:[#allocation12 + $0x528] sm:$0xff]  ;;  %v15597_v48 = vld [vmem:[#allocation12 + $0x3f8] sm:$0xff] }
 0x499   : > { %2979 = vmatpush.bf16.msra.mxu0 %v15565_v37  ;;  %v15612_v37 = vld [vmem:[#allocation12 + $0x460] sm:$0xff] }
 0x49c   : > { %2706 = vmatpush.bf16.msra.mxu3 %v15546_v16  ;;  %3194 = vmatpush.bf16.msrb.mxu1 %v15582_v22  ;;  %v15596_v16 = vld [vmem:[#allocation12 + $0x3f0] sm:$0xff]  ;;  %v15635_v22 = vld [vmem:[#allocation12 + $0x518] sm:$0xff] }
 0x49d   : > { %2980 = vmatpush.bf16.msra.mxu0 %v15564_v10  ;;  %v15610_v10 = vld [vmem:[#allocation12 + $0x450] sm:$0xff] }
 0x4a0   : > { %2707 = vmatpush.bf16.msra.mxu3 %v15545_v60  ;;  %3195 = vmatpush.bf16.msrb.mxu1 %v15581_v34  ;;  %v15594_v34 = vld [vmem:[#allocation12 + $0x3e0] sm:$0xff] }
 0x4a1   : > { %2981 = vmatpush.bf16.msra.mxu0 %v15563_v11  ;;  %v15608_v11 = vld [vmem:[#allocation12 + $0x440] sm:$0xff] }
 0x4a4   : > { %2898 = vmatpush.bf16.msrb.mxu3 %v17298_v9  ;;  %3433 = vmatpush.bf16.msra.mxu1 %v17298_v9 }
 0x4a8   : > { %2899 = vmatpush.bf16.msrb.mxu3 %v17302_v7  ;;  %3434 = vmatpush.bf16.msra.mxu1 %v17302_v7 }
 0x4ac   : > { %2900 = vmatpush.bf16.msrb.mxu3 %v17306_v0  ;;  %3435 = vmatpush.bf16.msra.mxu1 %v17306_v0 }
 0x4b0   : > { %2901 = vmatpush.bf16.msrb.mxu3 %v17314_v40  ;;  %3436 = vmatpush.bf16.msra.mxu1 %v17314_v40 }
 0x4f0   : > { %v2796_v25 = vpop.f32.mrf.mxu1 }
 0x4f6   : > { %v2586_v6 = vpop.f32.mrf.mxu3 }
 0x4f8   : > { %v2798_v13 = vpop.f32.mrf.mxu1 }
 0x4f9   : > { %v2801_v14 = vpack.c.bf16 %v2798_v13, %v2796_v25  ;;  %v15623_v13 = vld [vmem:[#allocation12 + $0x4b8] sm:$0xff] }
 0x4fb   : > { %2875 = vmatmul.bf16.vlgmr.msrb.gmra.mxu2 %v2801_v14 }
 0x4fc   : > { %3326 = vmatpush.bf16.msrb.mxu2 %v17298_v9 }
 0x4fe   : > { %v2588_v63 = vpop.f32.mrf.mxu3 }
 0x4ff   : > { %v2591_v1 = vpack.c.bf16 %v2588_v63, %v2586_v6  ;;  %v15622_v63 = vld [vmem:[#allocation12 + $0x4b0] sm:$0xff] }
 0x500   : > { %3327 = vmatpush.bf16.msrb.mxu2 %v17302_v7  ;;  %v3010_v32 = vpop.f32.mrf.mxu1 }
 0x501   : > { %2770 = vmatmul.bf16.vlgmr.msrb.gmra.mxu0 %v2591_v1 }
 0x502   : > { %3295 = vmatpush.bf16.msrb.mxu0 %v15597_v48  ;;  %v15646_v48 = vld [vmem:[#allocation12 + $0x570] sm:$0xff] }
 0x504   : > { %3328 = vmatpush.bf16.msrb.mxu2 %v17306_v0 }
 0x506   : > { %v2629_v24 = vpop.f32.mrf.mxu3  ;;  %3296 = vmatpush.bf16.msrb.mxu0 %v15596_v16 }
 0x508   : > { %3329 = vmatpush.bf16.msrb.mxu2 %v17314_v40  ;;  %v3012_v58 = vpop.f32.mrf.mxu1 }
 0x509   : > { %v3015_v2 = vpack.c.bf16 %v3012_v58, %v3010_v32  ;;  %v15621_v32 = vld [vmem:[#allocation12 + $0x4a8] sm:$0xff] }
 0x50a   : > { %3297 = vmatpush.bf16.msrb.mxu0 %v15595_v17  ;;  %v15644_v17 = vld [vmem:[#allocation12 + $0x560] sm:$0xff] }
 0x50b   : > { %3089 = vmatmul.bf16.vlgmr.msra.gmra.mxu2 %v3015_v2  ;;  %v15631_v2 = vld [vmem:[#allocation12 + $0x4f8] sm:$0xff] }
 0x50e   : > { %v2631_v15 = vpop.f32.mrf.mxu3  ;;  %3298 = vmatpush.bf16.msrb.mxu0 %v15594_v34 }
 0x50f   : > { %v2634_v5 = vpack.c.bf16 %v2631_v15, %v2629_v24  ;;  %v15620_v24 = vld [vmem:[#allocation12 + $0x4a0] sm:$0xff]  ;;  %v15619_v15 = vld [vmem:[#allocation12 + $0x498] sm:$0xff] }
 0x511   : > { %2708 = vmatmul.bf16.vlgmr.msra.gmra.mxu3 %v2634_v5 }
 0x512   : > { %3112 = vmatpush.bf16.msra.mxu3 %v17298_v9  ;;  %3299 = vmatpush.bf16.msrb.mxu0 %v15593_v54 }
 0x516   : > { %3113 = vmatpush.bf16.msra.mxu3 %v17302_v7  ;;  %3300 = vmatpush.bf16.msrb.mxu0 %v15592_v57 }
 0x51a   : > { %3114 = vmatpush.bf16.msra.mxu3 %v17306_v0  ;;  %3301 = vmatpush.bf16.msrb.mxu0 %v15591_v21 }
 0x51b   : > { %12944 = vmatmul.msk.bf16.vlgmr.msrb.gmra.mxu2 %vm2573_vm0, %v15598_v28  ;;  %v15630_v28 = vld [vmem:[#allocation12 + $0x4f0] sm:$0xff] }
 0x51e   : > { %3115 = vmatpush.bf16.msra.mxu3 %v17314_v40  ;;  %3302 = vmatpush.bf16.msrb.mxu0 %v15590_v20 }
 0x521   : > { %12796 = vmatmul.msk.bf16.vlgmr.msrb.gmra.mxu3 %vm2573_vm0, %v15562_v30  ;;  %v15618_v30 = vld [vmem:[#allocation12 + $0x490] sm:$0xff] }
 0x522   : > { %3219 = vmatpush.bf16.msrb.mxu3 %v17298_v9 }
 0x526   : > { %3220 = vmatpush.bf16.msrb.mxu3 %v17302_v7 }
 0x52a   : > { %3221 = vmatpush.bf16.msrb.mxu3 %v17306_v0 }
 0x52e   : > { %3222 = vmatpush.bf16.msrb.mxu3 %v17314_v40 }
 0x531   : > { %12870 = vmatmul.msk.bf16.vlgmr.msra.gmra.mxu3 %vm2573_vm0, %v15580_v3 }
 0x532   : > { %3402 = vmatpush.bf16.msra.mxu3 %v15606_v31  ;;  %v15629_v31 = vld [vmem:[#allocation12 + $0x4e8] sm:$0xff] }
 0x536   : > { %3403 = vmatpush.bf16.msra.mxu3 %v15605_v62  ;;  %v15628_v62 = vld [vmem:[#allocation12 + $0x4e0] sm:$0xff] }
 0x53a   : > { %3404 = vmatpush.bf16.msra.mxu3 %v15604_v19  ;;  %v15616_v19 = vld [vmem:[#allocation12 + $0x480] sm:$0xff] }
 0x53e   : > { %3405 = vmatpush.bf16.msra.mxu3 %v15603_v50 }
 0x541   : > { %12907 = vmatmul.msk.bf16.vlgmr.msrb.gmra.mxu3 %vm2573_vm0, %v15589_v36  ;;  %v15617_v36 = vld [vmem:[#allocation12 + $0x488] sm:$0xff] }
 0x542   : > { %3406 = vmatpush.bf16.msra.mxu3 %v15602_v39 }
 0x546   : > { %3407 = vmatpush.bf16.msra.mxu3 %v15601_v27  ;;  %v15625_v27 = vld [vmem:[#allocation12 + $0x4c8] sm:$0xff] }
 0x54a   : > { %3408 = vmatpush.bf16.msra.mxu3 %v15600_v42  ;;  %v15615_v42 = vld [vmem:[#allocation12 + $0x478] sm:$0xff] }
 0x54b   : > { %3509 = vmatpush.bf16.msra.mxu2 %v15615_v42  ;;  %v15686_v42 = vld [vmem:[#allocation12 + $0x5b0] sm:$0xff] }
 0x54e   : > { %3409 = vmatpush.bf16.msra.mxu3 %v15599_v45  ;;  %v15613_v45 = vld [vmem:[#allocation12 + $0x468] sm:$0xff] }
 0x54f   : > { %3510 = vmatpush.bf16.msra.mxu2 %v15614_v4 }
 0x552   : > { %3807 = vmatpush.bf16.msrb.mxu3 %v15639_v18  ;;  %v15611_v18 = vld [vmem:[#allocation12 + $0x458] sm:$0xff] }
 0x553   : > { %3511 = vmatpush.bf16.msra.mxu2 %v15613_v45  ;;  %v13232_v45 = vld [vmem:[#allocation8 + $0xb0] sm:$0xf] }
 0x556   : > { %3808 = vmatpush.bf16.msrb.mxu3 %v15638_v46  ;;  %v15609_v46 = vld [vmem:[#allocation12 + $0x448] sm:$0xff] }
 0x557   : > { %3512 = vmatpush.bf16.msra.mxu2 %v15612_v37  ;;  %v15671_v37 = vld [vmem:[#allocation8 + $0xb4] sm:$0xf0] }
 0x55a   : > { %3809 = vmatpush.bf16.msrb.mxu3 %v15637_v51  ;;  %v15647_v51 = vld [vmem:[#allocation12 + $0x578] sm:$0xff] }
 0x55b   : > { %3513 = vmatpush.bf16.msra.mxu2 %v15611_v18 }
 0x55e   : > { %3810 = vmatpush.bf16.msrb.mxu3 %v15636_v55 }
 0x55f   : > { %3514 = vmatpush.bf16.msra.mxu2 %v15610_v10  ;;  %v13233_v10 = vor.u32 %v15671_v37, %v13232_v45  ;;  %v15719_v37 = vld [vmem:[#allocation12 + $0x6b8] sm:$0xff] }
 0x562   : > { %3811 = vmatpush.bf16.msrb.mxu3 %v15635_v22  ;;  %v15645_v22 = vld [vmem:[#allocation12 + $0x568] sm:$0xff] }
 0x563   : > { %3515 = vmatpush.bf16.msra.mxu2 %v15609_v46  ;;  %v15685_v46 = vld [vmem:[#allocation12 + $0x5a8] sm:$0xff] }
 0x566   : > { %3812 = vmatpush.bf16.msrb.mxu3 %v15634_v26  ;;  %v15643_v26 = vld [vmem:[#allocation12 + $0x558] sm:$0xff] }
 0x567   : > { %3516 = vmatpush.bf16.msra.mxu2 %v15608_v11 }
 0x56a   : > { %3813 = vmatpush.bf16.msrb.mxu3 %v15633_v49  ;;  %v15642_v49 = vld [vmem:[#allocation12 + $0x550] sm:$0xff] }
 0x56b   : > { %3909 = vmatpush.bf16.msrb.mxu2 %v15647_v51 }
 0x56e   : > { %3814 = vmatpush.bf16.msrb.mxu3 %v15632_v38  ;;  %v15640_v38 = vld [vmem:[#allocation12 + $0x540] sm:$0xff] }
 0x56f   : > { %3910 = vmatpush.bf16.msrb.mxu2 %v15646_v48  ;;  %v15684_v48 = vld [vmem:[#allocation12 + $0x5a0] sm:$0xff] }
 0x573   : > { %3911 = vmatpush.bf16.msrb.mxu2 %v15645_v22  ;;  %v15683_v22 = vld [vmem:[#allocation12 + $0x598] sm:$0xff] }
 0x577   : > { %3912 = vmatpush.bf16.msrb.mxu2 %v15644_v17 }
 0x57b   : > { %3913 = vmatpush.bf16.msrb.mxu2 %v15643_v26  ;;  %v16354_v26 = vld [vmem:[#allocation15 + $0x1] ss:$0 sm:$0xff] }
 0x57e   : > { %v2876_v8 = vpop.f32.mrf.mxu2  ;;  %v2771_v59 = vpop.f32.mrf.mxu0 }
 0x57f   : > { %3914 = vmatpush.bf16.msrb.mxu2 %v15642_v49 }
 0x586   : > { %v17354_v41 = vpop.f32.mrf.mxu2 }
 0x58e   : > { %v17356_v60 = vpop.f32.mrf.mxu2 }
 0x594   : > { %v2709_v61 = vpop.f32.mrf.mxu3 }
 0x595   : > { %v2772_v23 = vadd.f32 %v2771_v59, %v2709_v61  ;;  %v15641_v61 = vld [vmem:[#allocation12 + $0x548] sm:$0xff] }
 0x596   : > { %v17358_v44 = vpop.f32.mrf.mxu2  ;;  %3915 = vmatpush.bf16.msrb.mxu2 %v15641_v61  ;;  %v13240_v61 = vld [vmem:[#allocation8 + $0xc0] sm:$0xf] }
 0x597   : > { %v17360_v29 = vadd.f32 %v2876_v8, %v2772_v23  ;;  %v17377_v8 = vpop.f32.mrf.mxu0 }
 0x59a   : > { %3916 = vmatpush.bf16.msrb.mxu2 %v15640_v38  ;;  %v15673_v38 = vld [vmem:[#allocation8 + $0xc4] sm:$0xf0] }
 0x59c   : > { %v17362_v12 = vpop.f32.mrf.mxu3 }
 0x59d   : > { %v2774_v4 = vadd.f32 %v17377_v8, %v17362_v12  ;;  %v16353_v12 = vld [vmem:[#allocation14 + $0x1] ss:$0 sm:$0xff] }
 0x59e   : > { %v3331_v43 = vpop.f32.mrf.mxu2 }
 0x59f   : > { %v2882_v18 = vadd.f32 %v17354_v41, %v2774_v4 }
 0x5a4   : > { %v2903_v53 = vpop.f32.mrf.mxu3 }
 0x5a6   : > { %v3333_v56 = vpop.f32.mrf.mxu2 }
 0x5a7   : > { %v3336_v25 = vpack.c.bf16 %v3333_v56, %v3331_v43 }
 0x5a9   : > { %3410 = vmatmul.bf16.vlgmr.msra.gmra.mxu3 %v3336_v25 }
 0x5ac   : > { %v2905_v6 = vpop.f32.mrf.mxu3 }
 0x5ad   : > { %v2908_v14 = vpack.c.bf16 %v2905_v6, %v2903_v53 }
 0x5af   : > { %2982 = vmatmul.bf16.vlgmr.msra.gmra.mxu0 %v2908_v14 }
 0x5b0   : > { %3603 = vmatpush.bf16.msra.mxu0 %v15623_v13 }
 0x5b4   : > { %v3117_v1 = vpop.f32.mrf.mxu3  ;;  %3604 = vmatpush.bf16.msra.mxu0 %v15622_v63 }
 0x5b8   : > { %3605 = vmatpush.bf16.msra.mxu0 %v15621_v32 }
 0x5b9   : > { %3815 = vmatmul.bf16.vlgmr.msrb.gmra.mxu3 %v17314_v40 }
 0x5bc   : > { %v3119_v58 = vpop.f32.mrf.mxu3  ;;  %3606 = vmatpush.bf16.msra.mxu0 %v15620_v24 }
 0x5bd   : > { %v3122_v5 = vpack.c.bf16 %v3119_v58, %v3117_v1 }
 0x5bf   : > { %3196 = vmatmul.bf16.vlgmr.msrb.gmra.mxu1 %v3122_v5 }
 0x5c0   : > { %3705 = vmatpush.bf16.msrb.mxu1 %v15631_v2  ;;  %3607 = vmatpush.bf16.msra.mxu0 %v15619_v15 }
 0x5c4   : > { %v3224_v3 = vpop.f32.mrf.mxu3  ;;  %3706 = vmatpush.bf16.msrb.mxu1 %v15630_v28  ;;  %3608 = vmatpush.bf16.msra.mxu0 %v15618_v30 }
 0x5c8   : > { %3707 = vmatpush.bf16.msrb.mxu1 %v15629_v31  ;;  %3609 = vmatpush.bf16.msra.mxu0 %v15617_v36 }
 0x5c9   : > { %3820 = vmatmul.bf16.gmra.mxu3 %v17306_v0 }
 0x5cc   : > { %v3226_v50 = vpop.f32.mrf.mxu3  ;;  %3708 = vmatpush.bf16.msrb.mxu1 %v15628_v62  ;;  %3610 = vmatpush.bf16.msra.mxu0 %v15616_v19  ;;  %v13216_v19 = vld [vmem:[#allocation8 + $0x90] sm:$0xf] }
 0x5cd   : > { %v3229_v39 = vpack.c.bf16 %v3226_v50, %v3224_v3 }
 0x5cf   : > { %3303 = vmatmul.bf16.vlgmr.msrb.gmra.mxu0 %v3229_v39  ;;  %12981 = vmatmul.msk.bf16.vlgmr.msra.gmra.mxu1 %vm2573_vm0, %v15607_v33  ;;  %v15667_v33 = vld [vmem:[#allocation8 + $0x94] sm:$0xf0]  ;;  %v13224_v39 = vld [vmem:[#allocation8 + $0xa0] sm:$0xf] }
 0x5d0   : > { %3709 = vmatpush.bf16.msrb.mxu1 %v15627_v52  ;;  %v13217_v52 = vor.u32 %v15667_v33, %v13216_v19 }
 0x5d4   : > { %3710 = vmatpush.bf16.msrb.mxu1 %v15626_v47  ;;  %v15669_v47 = vld [vmem:[#allocation8 + $0xa4] sm:$0xf0] }
 0x5d8   : > { %3711 = vmatpush.bf16.msrb.mxu1 %v15625_v27  ;;  %v13225_v27 = vor.u32 %v15669_v47, %v13224_v39 }
 0x5d9   : > { %3825 = vmatmul.bf16.gmra.mxu3 %v17302_v7 }
 0x5dc   : > { %3712 = vmatpush.bf16.msrb.mxu1 %v15624_v35  ;;  %v15687_v35 = vld [vmem:[#allocation12 + $0x5b8] sm:$0xff] }
 0x5df   : > { %3611 = vmatmul.bf16.vlgmr.msra.gmra.mxu0 %v17314_v40  ;;  %3713 = vmatmul.bf16.vlgmr.msrb.gmra.mxu1 %v17314_v40 }
 0x5e9   : > { %3830 = vmatmul.bf16.gmra.mxu3 %v17298_v9 }
 0x5ef   : > { %3616 = vmatmul.bf16.gmra.mxu0 %v17306_v0  ;;  %3718 = vmatmul.bf16.gmra.mxu1 %v17306_v0 }
 0x5ff   : > { %3621 = vmatmul.bf16.gmra.mxu0 %v17302_v7  ;;  %3723 = vmatmul.bf16.gmra.mxu1 %v17302_v7 }
 0x60f   : > { %3626 = vmatmul.bf16.gmra.mxu0 %v17298_v9  ;;  %3728 = vmatmul.bf16.gmra.mxu1 %v17298_v9 }
 0x62c   : > { %v2983_v55 = vpop.f32.mrf.mxu0  ;;  %v3411_v51 = vpop.f32.mrf.mxu3 }
 0x62d   : > { %v2988_v16 = vadd.f32 %v2983_v55, %v17360_v29 }
 0x62f   : > { %v3095_v34 = vadd.f32 %v17356_v60, %v2988_v16 }
 0x634   : > { %v17381_v57 = vpop.f32.mrf.mxu0 }
 0x635   : > { %v2989_v11 = vadd.f32 %v17381_v57, %v2882_v18 }
 0x637   : > { %v3096_v55 = vadd.f32 %v17358_v44, %v2989_v11  ;;  %v3413_v44 = vpop.f32.mrf.mxu3  ;;  %v15718_v11 = vld [vmem:[#allocation12 + $0x6b0] sm:$0xff] }
 0x63c   : > { %v3197_v54 = vpop.f32.mrf.mxu1 }
 0x63d   : > { %v3202_v59 = vadd.f32 %v3197_v54, %v3095_v34  ;;  %v15682_v54 = vld [vmem:[#allocation12 + $0x590] sm:$0xff] }
 0x644   : > { %v17383_v23 = vpop.f32.mrf.mxu1 }
 0x645   : > { %v3203_v41 = vadd.f32 %v17383_v23, %v3096_v55 }
 0x64c   : > { %v3304_v29 = vpop.f32.mrf.mxu0  ;;  %v3438_v21 = vpop.f32.mrf.mxu1 }
 0x64d   : > { %v17385_v43 = vadd.f32 %v3304_v29, %v3202_v59 }
 0x64f   : > { %v3416_v16 = vadd.f32 %v3411_v51, %v17385_v43  ;;  %v13241_v43 = vor.u32 %v15673_v38, %v13240_v61  ;;  %v15735_v38 = vld [vmem:[#allocation12 + $0x738] sm:$0xff] }
 0x654   : > { %v17387_v20 = vpop.f32.mrf.mxu0  ;;  %v3440_v53 = vpop.f32.mrf.mxu1 }
 0x655   : > { %v3443_v60 = vpack.c.bf16 %v3440_v53, %v3438_v21  ;;  %v3310_v34 = vadd.f32 %v17387_v20, %v3203_v41  ;;  %v15681_v20 = vld [vmem:[#allocation12 + $0x588] sm:$0xff] }
 0x657   : > { %3517 = vmatmul.bf16.vlgmr.msra.gmra.mxu2 %v3443_v60  ;;  %v3417_v29 = vadd.f32 %v3413_v44, %v3310_v34  ;;  %v15713_v34 = vld [vmem:[#allocation12 + $0x688] sm:$0xff]  ;;  %v15712_v44 = vld [vmem:[#allocation12 + $0x680] sm:$0xff] }
 0x65c   : > { %v3612_v56 = vpop.f32.mrf.mxu0  ;;  %v3714_v25 = vpop.f32.mrf.mxu1 }
 0x664   : > { %v3716_v6 = vpop.f32.mrf.mxu1  ;;  %v3614_v13 = vpop.f32.mrf.mxu0 }
 0x665   : > { %v4010_v50 = vpack.c.bf16 %v3614_v13, %v3612_v56  ;;  %v15680_v56 = vld [vmem:[#allocation12 + $0x580] sm:$0xff]  ;;  %v17410_v13 = vpop.f32.mrf.mxu3 }
 0x667   : > { %3917 = vmatmul.bf16.vlgmr.msrb.gmra.mxu2 %v17314_v40 }
 0x66c   : > { %v3719_v14 = vpop.f32.mrf.mxu1  ;;  %v3617_v63 = vpop.f32.mrf.mxu0 }
 0x674   : > { %v3721_v1 = vpop.f32.mrf.mxu1  ;;  %v3619_v32 = vpop.f32.mrf.mxu0 }
 0x675   : > { %v4015_v31 = vpack.c.bf16 %v3721_v1, %v3719_v14  ;;  %v15701_v1 = vld [vmem:[#allocation12 + $0x628] sm:$0xff] }
 0x677   : > { %3922 = vmatmul.bf16.gmra.mxu2 %v17306_v0  ;;  %v4014_v0 = vpack.c.bf16 %v3716_v6, %v3714_v25  ;;  %v15703_v25 = vld [vmem:[#allocation12 + $0x638] sm:$0xff] }
 0x67c   : > { %v3724_v24 = vpop.f32.mrf.mxu1  ;;  %v3622_v58 = vpop.f32.mrf.mxu0 }
 0x684   : > { %v3726_v2 = vpop.f32.mrf.mxu1  ;;  %v3624_v5 = vpop.f32.mrf.mxu0 }
 0x685   : > { %v4016_v40 = vpack.c.bf16 %v3726_v2, %v3724_v24  ;;  %v4012_v62 = vpack.c.bf16 %v3624_v5, %v3622_v58  ;;  %v15675_v24 = vld [vmem:[#allocation8 + $0xd4] sm:$0xf0]  ;;  %v17413_v5 = vpop.f32.mrf.mxu3 }
 0x687   : > { %3927 = vmatmul.bf16.gmra.mxu2 %v17302_v7 }
 0x68c   : > { %v3729_v15 = vpop.f32.mrf.mxu1  ;;  %v3627_v3 = vpop.f32.mrf.mxu0 }
 0x694   : > { %v3731_v28 = vpop.f32.mrf.mxu1  ;;  %v3629_v36 = vpop.f32.mrf.mxu0 }
 0x695   : > { %v4017_v30 = vpack.c.bf16 %v3731_v28, %v3729_v15  ;;  %v4013_v7 = vpack.c.bf16 %v3629_v36, %v3627_v3  ;;  %v15700_v15 = vld [vmem:[#allocation12 + $0x620] sm:$0xff]  ;;  %v15699_v28 = vld [vmem:[#allocation12 + $0x618] sm:$0xff]  ;;  %v15698_v3 = vld [vmem:[#allocation12 + $0x610] sm:$0xff] }
 0x696   : > { %v15677_v36 = vld [vmem:[#allocation8 + $0xe4] sm:$0xf0] }
 0x697   : > { %3932 = vmatmul.bf16.gmra.mxu2 %v17298_v9  ;;  %4186 = vmatpush.bf16.msrb.mxu0 %v4017_v30  ;;  %v4011_v9 = vpack.c.bf16 %v3619_v32, %v3617_v63  ;;  %v15702_v63 = vld [vmem:[#allocation12 + $0x630] sm:$0xff] }
 0x698   : > { %16209 = vmatpush.bf16.msra.mxu3 %v4017_v30  ;;  %v13248_v32 = vld [vmem:[#allocation8 + $0xd0] sm:$0xf] }
 0x699   : > { %v13249_v2 = vor.u32 %v15675_v24, %v13248_v32  ;;  %v15750_v24 = vld [vmem:[#allocation12 + $0x7b0] sm:$0xff] }
 0x69b   : > { %4187 = vmatpush.bf16.msrb.mxu0 %v4016_v40 }
 0x69c   : > { %16210 = vmatpush.bf16.msra.mxu3 %v4016_v40  ;;  %v3821_v40 = vpop.f32.mrf.mxu3 }
 0x69f   : > { %4188 = vmatpush.bf16.msrb.mxu0 %v4015_v31 }
 0x6a0   : > { %16211 = vmatpush.bf16.msra.mxu3 %v4015_v31  ;;  %v15697_v31 = vld [vmem:[#allocation12 + $0x608] sm:$0xff] }
 0x6a3   : > { %4189 = vmatpush.bf16.msrb.mxu0 %v4014_v0 }
 0x6a4   : > { %16212 = vmatpush.bf16.msra.mxu3 %v4014_v0  ;;  %v13256_v0 = vld [vmem:[#allocation8 + $0xe0] sm:$0xf]  ;;  %v3823_v19 = vpop.f32.mrf.mxu3 }
 0x6a7   : > { %4190 = vmatpush.bf16.msrb.mxu0 %v4013_v7 }
 0x6a8   : > { %16213 = vmatpush.bf16.msra.mxu3 %v4013_v7 }
 0x6ab   : > { %4191 = vmatpush.bf16.msrb.mxu0 %v4012_v62 }
 0x6ac   : > { %16214 = vmatpush.bf16.msra.mxu3 %v4012_v62  ;;  %v13257_v62 = vor.u32 %v15677_v36, %v13256_v0  ;;  %v3826_v39 = vpop.f32.mrf.mxu3  ;;  %v15746_v36 = vld [vmem:[#allocation12 + $0x790] sm:$0xff] }
 0x6af   : > { %4192 = vmatpush.bf16.msrb.mxu0 %v4011_v9 }
 0x6b0   : > { %16215 = vmatpush.bf16.msra.mxu3 %v4011_v9  ;;  %v15696_v9 = vld [vmem:[#allocation12 + $0x600] sm:$0xff] }
 0x6b3   : > { %4193 = vmatpush.bf16.msrb.mxu0 %v4010_v50 }
 0x6b4   : > { %16216 = vmatpush.bf16.msra.mxu3 %v4010_v50  ;;  %v13264_v50 = vld [vmem:[#allocation8 + $0xf0] sm:$0xf] }
 0x6b7   : > { %4239 = vmatmul.bf16.vlgmr.msra.gmra.mxu3 %v13217_v52  ;;  %v15679_v52 = vld [vmem:[#allocation8 + $0xf4] sm:$0xf0] }
 0x6b8   : > { %4529 = vmatpush.bf16.msrb.mxu3 %v15687_v35 }
 0x6bc   : > { %4530 = vmatpush.bf16.msrb.mxu3 %v15686_v42  ;;  %v3828_v42 = vpop.f32.mrf.mxu3 }
 0x6bd   : > { %v4020_v41 = vpack.c.bf16 %v3828_v42, %v3826_v39  ;;  %v15674_v39 = vld [vmem:[#allocation8 + $0xd4] sm:$0xf] }
 0x6c0   : > { %4531 = vmatpush.bf16.msrb.mxu3 %v15685_v46 }
 0x6c4   : > { %4532 = vmatpush.bf16.msrb.mxu3 %v15684_v48  ;;  %v15717_v48 = vld [vmem:[#allocation12 + $0x6a8] sm:$0xff] }
 0x6c7   : > { %4244 = vmatmul.bf16.gmra.mxu3 %v13225_v27  ;;  %v13265_v27 = vor.u32 %v15679_v52, %v13264_v50  ;;  %v15767_v50 = vld [vmem:[#allocation12 + $0x838] sm:$0xff]  ;;  %v15710_v52 = vld [vmem:[#allocation12 + $0x670] sm:$0xff] }
 0x6c8   : > { %4533 = vmatpush.bf16.msrb.mxu3 %v15683_v22  ;;  %v15715_v22 = vld [vmem:[#allocation12 + $0x698] sm:$0xff] }
 0x6cc   : > { %4534 = vmatpush.bf16.msrb.mxu3 %v15682_v54  ;;  %v13218_v54 = vld [vmem:[#allocation8 + $0x98] sm:$0xf0] }
 0x6d0   : > { %4535 = vmatpush.bf16.msrb.mxu3 %v15681_v20 }
 0x6d4   : > { %4536 = vmatpush.bf16.msrb.mxu3 %v15680_v56  ;;  %v15729_v56 = vld [vmem:[#allocation12 + $0x708] sm:$0xff] }
 0x6d7   : > { %4249 = vmatmul.bf16.gmra.mxu3 %v13233_v10  ;;  %v3831_v10 = vpop.f32.mrf.mxu3 }
 0x6d8   : > { %4691 = vmatpush.bf16.msra.mxu3 %v15703_v25  ;;  %v15695_v25 = vld [vmem:[#allocation12 + $0x5f8] sm:$0xff] }
 0x6da   : > { %v3518_v8 = vpop.f32.mrf.mxu2 }
 0x6db   : > { %v3523_v17 = vadd.f32 %v3518_v8, %v3416_v16 }
 0x6dc   : > { %4692 = vmatpush.bf16.msra.mxu3 %v15702_v63  ;;  %v15751_v63 = vld [vmem:[#allocation12 + $0x7b8] sm:$0xff] }
 0x6dd   : > { %v3527_v49 = vmul.f32 %v16353_v12, %v3523_v17  ;;  %v15714_v17 = vld [vmem:[#allocation12 + $0x690] sm:$0xff] }
 0x6df   : > { %v17404_v59 = vadd.f32 %v16354_v26, %v3527_v49  ;;  %v3833_v16 = vpop.f32.mrf.mxu3  ;;  %v15666_v49 = vld [vmem:[#allocation8 + $0x94] sm:$0xf] }
 0x6e0   : > { %4693 = vmatpush.bf16.msra.mxu3 %v15701_v1  ;;  %v4021_v8 = vpack.c.bf16 %v3833_v16, %v3831_v10  ;;  %v13221_v61 = vor.u32 %v15666_v49, %v13218_v54  ;;  %v15694_v1 = vld [vmem:[#allocation12 + $0x5f0] sm:$0xff]  ;;  %v15707_v10 = vld [vmem:[#allocation12 + $0x658] sm:$0xff]  ;;  %v15705_v16 = vld [vmem:[#allocation12 + $0x648] sm:$0xff] }
 0x6e1   : > { %v3533_v57 = vmax.f32 %v17404_v59, 0.0  ;;  %v4018_v59 = vpack.c.bf16 %v17413_v5, %v17410_v13  ;;  %v15670_v13 = vld [vmem:[#allocation8 + $0xb4] sm:$0xf]  ;;  %v15748_v5 = vld [vmem:[#allocation12 + $0x7a0] sm:$0xff]  ;;  %v13266_v54 = vld [vmem:[#allocation8 + $0xf8] sm:$0xf0] }
 0x6e2   : > { %v3520_v21 = vpop.f32.mrf.mxu2  ;;  %v15678_v49 = vld [vmem:[#allocation8 + $0xf4] sm:$0xf] }
 0x6e3   : > { %3535 = vst [vmem:[%s17407_s2] sm:$0xff] %v3533_v57  ;;  %v3524_v23 = vadd.f32 %v3520_v21, %v3417_v29  ;;  %v15733_v29 = vld [vmem:[#allocation12 + $0x728] sm:$0xff]  ;;  %v15732_v21 = vld [vmem:[#allocation12 + $0x720] sm:$0xff] }
 0x6e4   : > { %4694 = vmatpush.bf16.msra.mxu3 %v15700_v15  ;;  %v15692_v15 = vld [vmem:[#allocation12 + $0x5e0] sm:$0xff] }
 0x6e5   : > { %v3528_v53 = vmul.f32 %v16353_v12, %v3524_v23  ;;  %v15716_v12 = vld [vmem:[#allocation12 + $0x6a0] sm:$0xff] }
 0x6e6   : > { %v15668_v23 = vld [vmem:[#allocation8 + $0xa4] sm:$0xf] }
 0x6e7   : > { %v3532_v60 = vadd.f32 %v16354_v26, %v3528_v53  ;;  %4254 = vmatmul.bf16.gmra.mxu3 %v13241_v43  ;;  %v4019_v26 = vpack.c.bf16 %v3823_v19, %v3821_v40  ;;  %v13226_v43 = vld [vmem:[#allocation8 + $0xa8] sm:$0xf0]  ;;  %v15731_v53 = vld [vmem:[#allocation12 + $0x718] sm:$0xff] }
 0x6e8   : > { %4695 = vmatpush.bf16.msra.mxu3 %v15699_v28  ;;  %v13229_v20 = vor.u32 %v15668_v23, %v13226_v43  ;;  %v15691_v28 = vld [vmem:[#allocation12 + $0x5d8] sm:$0xff] }
 0x6e9   : > { %v3534_v6 = vmax.f32 %v3532_v60, 0.0  ;;  %v15730_v60 = vld [vmem:[#allocation12 + $0x710] sm:$0xff]  ;;  %v15747_v40 = vld [vmem:[#allocation12 + $0x798] sm:$0xff] }
 0x6ea   : > { %v3918_v14 = vpop.f32.mrf.mxu2  ;;  %v15711_v19 = vld [vmem:[#allocation12 + $0x678] sm:$0xff] }
 0x6eb   : > { %3536 = vst [vmem:[%s17407_s2 + $0x8] sm:$0xff] %v3534_v6  ;;  %v17415_v18 = vpack.c.bf16 %v3534_v6, %v3533_v57  ;;  %v15734_v57 = vld [vmem:[#allocation12 + $0x730] sm:$0xff]  ;;  %v15728_v6 = vld [vmem:[#allocation12 + $0x700] sm:$0xff]  ;;  %v15727_v43 = vld [vmem:[#allocation12 + $0x6f8] sm:$0xff]  ;;  %s16623_s2 = scalar_lea.hbm %s19872_s28, 32 }
 0x6ec   : > { %4696 = vmatpush.bf16.msra.mxu3 %v15698_v3  ;;  %v13242_v3 = vld [vmem:[#allocation8 + $0xc8] sm:$0xf0]  ;;  %p16625_p4 = scmp.lt.s32.totalorder %s16623_s2, %s16619_s16 }
 0x6ee   : > { %p16626_p7 = por %p16625_p4, %p16624_p3 }
 0x6f0   : > { %4697 = vmatpush.bf16.msra.mxu3 %v15697_v31  ;;  %v15690_v31 = vld [vmem:[#allocation12 + $0x5d0] sm:$0xff]  ;;  %p16627_p8 = pnand %p16626_p7, %p16622_p2 }
 0x6f2   : > { %v3920_v58 = vpop.f32.mrf.mxu2 }
 0x6f3   : > { %v4022_v55 = vpack.c.bf16 %v3920_v58, %v3918_v14  ;;  %v13234_v14 = vld [vmem:[#allocation8 + $0xb8] sm:$0xf0]  ;;  %v15693_v58 = vld [vmem:[#allocation12 + $0x5e8] sm:$0xff] }
 0x6f4   : > { %4698 = vmatpush.bf16.msra.mxu3 %v15696_v9  ;;  %v13237_v32 = vor.u32 %v15670_v13, %v13234_v14  ;;  %v15688_v9 = vld [vmem:[#allocation12 + $0x5c0] sm:$0xff]  ;;  %v15797_v13 = vld [vmem:[#allocation12 + $0x928] sm:$0xff] }
 0x6f5   : > { %v15724_v14 = vld [vmem:[#allocation12 + $0x6e0] sm:$0xff] }
 0x6f7   : > { %4259 = vmatmul.bf16.gmra.mxu3 %v13249_v2  ;;  %v15749_v2 = vld [vmem:[#allocation12 + $0x7a8] sm:$0xff] }
 0x6fa   : > { %v3923_v30 = vpop.f32.mrf.mxu2 }
 0x702   : > { %v3925_v7 = vpop.f32.mrf.mxu2 }
 0x703   : > { %v4023_v51 = vpack.c.bf16 %v3925_v7, %v3923_v30  ;;  %v15672_v30 = vld [vmem:[#allocation8 + $0xc4] sm:$0xf]  ;;  %v15689_v7 = vld [vmem:[#allocation12 + $0x5c8] sm:$0xff] }
 0x704   : > { %v13245_v0 = vor.u32 %v15672_v30, %v13242_v3  ;;  %v15743_v3 = vld [vmem:[#allocation12 + $0x778] sm:$0xff] }
 0x707   : > { %4264 = vmatmul.bf16.gmra.mxu3 %v13257_v62  ;;  %v15745_v62 = vld [vmem:[#allocation12 + $0x788] sm:$0xff] }
 0x70a   : > { %v3928_v33 = vpop.f32.mrf.mxu2 }
 0x712   : > { %v3930_v47 = vpop.f32.mrf.mxu2 }
 0x713   : > { %v4024_v46 = vpack.c.bf16 %v3930_v47, %v3928_v33  ;;  %v15744_v33 = vld [vmem:[#allocation12 + $0x780] sm:$0xff]  ;;  %v13250_v47 = vld [vmem:[#allocation8 + $0xd8] sm:$0xf0] }
 0x714   : > { %v13253_v42 = vor.u32 %v15674_v39, %v13250_v47 }
 0x717   : > { %4269 = vmatmul.bf16.gmra.mxu3 %v13265_v27  ;;  %v15766_v27 = vld [vmem:[#allocation12 + $0x830] sm:$0xff] }
 0x71a   : > { %v3933_v35 = vpop.f32.mrf.mxu2 }
 0x722   : > { %v3935_v4 = vpop.f32.mrf.mxu2 }
 0x723   : > { %v4025_v45 = vpack.c.bf16 %v3935_v4, %v3933_v35  ;;  %v15709_v35 = vld [vmem:[#allocation12 + $0x668] sm:$0xff] }
 0x724   : > { %v15765_v4 = vld [vmem:[#allocation12 + $0x828] sm:$0xff] }
 0x725   : > { %4275 = vmatpush.bf16.msra.mxu1 %v4025_v45  ;;  %16217 = vmatpush.bf16.msra.mxu2 %v4025_v45  ;;  %v15708_v45 = vld [vmem:[#allocation12 + $0x660] sm:$0xff] }
 0x727   : > { %4537 = vmatmul.bf16.vlgmr.msrb.gmra.mxu3 %v17415_v18 }
 0x728   : > { %4853 = vmatpush.bf16.msrb.mxu3 %v15719_v37  ;;  %v15764_v37 = vld [vmem:[#allocation12 + $0x820] sm:$0xff] }
 0x729   : > { %4276 = vmatpush.bf16.msra.mxu1 %v4024_v46  ;;  %16218 = vmatpush.bf16.msra.mxu2 %v4024_v46  ;;  %v15763_v46 = vld [vmem:[#allocation12 + $0x818] sm:$0xff] }
 0x72c   : > { %4854 = vmatpush.bf16.msrb.mxu3 %v15718_v11  ;;  %v15706_v11 = vld [vmem:[#allocation12 + $0x650] sm:$0xff] }
 0x72d   : > { %4277 = vmatpush.bf16.msra.mxu1 %v4023_v51  ;;  %16219 = vmatpush.bf16.msra.mxu2 %v4023_v51  ;;  %v15676_v51 = vld [vmem:[#allocation8 + $0xe4] sm:$0xf] }
 0x730   : > { %4855 = vmatpush.bf16.msrb.mxu3 %v15717_v48  ;;  %v13258_v48 = vld [vmem:[#allocation8 + $0xe8] sm:$0xf0] }
 0x731   : > { %4278 = vmatpush.bf16.msra.mxu1 %v4022_v55  ;;  %16220 = vmatpush.bf16.msra.mxu2 %v4022_v55  ;;  %v15762_v55 = vld [vmem:[#allocation12 + $0x810] sm:$0xff] }
 0x734   : > { %4856 = vmatpush.bf16.msrb.mxu3 %v15716_v12  ;;  %v13261_v12 = vor.u32 %v15676_v51, %v13258_v48 }
 0x735   : > { %4279 = vmatpush.bf16.msra.mxu1 %v4021_v8  ;;  %16221 = vmatpush.bf16.msra.mxu2 %v4021_v8  ;;  %v15761_v8 = vld [vmem:[#allocation12 + $0x808] sm:$0xff] }
 0x737   : > { %4699 = vmatmul.bf16.vlgmr.msra.gmra.mxu3 %v17415_v18 }
 0x738   : > { %4857 = vmatpush.bf16.msrb.mxu3 %v15715_v22  ;;  %v15704_v22 = vld [vmem:[#allocation12 + $0x640] sm:$0xff] }
 0x739   : > { %4280 = vmatpush.bf16.msra.mxu1 %v4020_v41  ;;  %16222 = vmatpush.bf16.msra.mxu2 %v4020_v41 }
 0x73a   : > { %v17424_v41 = vpop.f32.mrf.mxu3 }
 0x73c   : > { %4858 = vmatpush.bf16.msrb.mxu3 %v15714_v17  ;;  %v15760_v17 = vld [vmem:[#allocation12 + $0x800] sm:$0xff] }
 0x73d   : > { %4281 = vmatpush.bf16.msra.mxu1 %v4019_v26  ;;  %16223 = vmatpush.bf16.msra.mxu2 %v4019_v26  ;;  %v15783_v26 = vld [vmem:[#allocation12 + $0x8b8] sm:$0xff] }
 0x740   : > { %4859 = vmatpush.bf16.msrb.mxu3 %v15713_v34  ;;  %v15782_v34 = vld [vmem:[#allocation12 + $0x8b0] sm:$0xff] }
 0x741   : > { %4282 = vmatpush.bf16.msra.mxu1 %v4018_v59  ;;  %16224 = vmatpush.bf16.msra.mxu2 %v4018_v59 }
 0x742   : > { %v17426_v59 = vpop.f32.mrf.mxu3 }
 0x743   : > { %19693 = vst [vmem:[#allocation30_spill] sm:$0xff] %v17426_v59 }
 0x744   : > { %4860 = vmatpush.bf16.msrb.mxu3 %v15712_v44  ;;  %4328 = vmatmul.bf16.vlgmr.msra.gmra.mxu2 %v13221_v61  ;;  %v15781_v44 = vld [vmem:[#allocation12 + $0x8a8] sm:$0xff]  ;;  %v13269_v61 = vor.u32 %v15678_v49, %v13266_v54 }
 0x745   : > { %4610 = vmatpush.bf16.msrb.mxu2 %v15695_v25  ;;  %v15725_v25 = vld [vmem:[#allocation12 + $0x6e8] sm:$0xff] }
 0x746   : > { %v15773_v49 = vld [vmem:[#allocation12 + $0x868] sm:$0xff] }
 0x747   : > { %4861 = vmatmul.bf16.vlgmr.msrb.gmra.mxu3 %v17415_v18 }
 0x748   : > { %5015 = vmatpush.bf16.msra.mxu3 %v15735_v38  ;;  %v15780_v38 = vld [vmem:[#allocation12 + $0x8a0] sm:$0xff] }
 0x749   : > { %4611 = vmatpush.bf16.msrb.mxu2 %v15694_v1  ;;  %v15723_v1 = vld [vmem:[#allocation12 + $0x6d8] sm:$0xff] }
 0x74a   : > { %v17429_v23 = vpop.f32.mrf.mxu3 }
 0x74c   : > { %5016 = vmatpush.bf16.msra.mxu3 %v15734_v57  ;;  %v15779_v57 = vld [vmem:[#allocation12 + $0x898] sm:$0xff] }
 0x74d   : > { %4612 = vmatpush.bf16.msrb.mxu2 %v15693_v58 }
 0x750   : > { %5017 = vmatpush.bf16.msra.mxu3 %v15733_v29  ;;  %v15778_v29 = vld [vmem:[#allocation12 + $0x890] sm:$0xff] }
 0x751   : > { %4613 = vmatpush.bf16.msrb.mxu2 %v15692_v15  ;;  %v15721_v15 = vld [vmem:[#allocation12 + $0x6c8] sm:$0xff] }
 0x754   : > { %5018 = vmatpush.bf16.msra.mxu3 %v15732_v21  ;;  %4333 = vmatmul.bf16.gmra.mxu2 %v13229_v20  ;;  %v15777_v21 = vld [vmem:[#allocation12 + $0x888] sm:$0xff]  ;;  %v15776_v20 = vld [vmem:[#allocation12 + $0x880] sm:$0xff] }
 0x755   : > { %4614 = vmatpush.bf16.msrb.mxu2 %v15691_v28  ;;  %v15720_v28 = vld [vmem:[#allocation12 + $0x6c0] sm:$0xff] }
 0x758   : > { %5019 = vmatpush.bf16.msra.mxu3 %v15731_v53  ;;  %v15799_v53 = vld [vmem:[#allocation12 + $0x938] sm:$0xff] }
 0x759   : > { %4615 = vmatpush.bf16.msrb.mxu2 %v15690_v31  ;;  %v15792_v31 = vld [vmem:[#allocation12 + $0x900] sm:$0xff] }
 0x75c   : > { %5020 = vmatpush.bf16.msra.mxu3 %v15730_v60  ;;  %v15726_v60 = vld [vmem:[#allocation12 + $0x6f0] sm:$0xff] }
 0x75d   : > { %4616 = vmatpush.bf16.msrb.mxu2 %v15689_v7 }
 0x760   : > { %5021 = vmatpush.bf16.msra.mxu3 %v15729_v56  ;;  %v15798_v56 = vld [vmem:[#allocation12 + $0x930] sm:$0xff] }
 0x761   : > { %4617 = vmatpush.bf16.msrb.mxu2 %v15688_v9  ;;  %v15740_v9 = vld [vmem:[#allocation12 + $0x760] sm:$0xff] }
 0x764   : > { %5022 = vmatpush.bf16.msra.mxu3 %v15728_v6  ;;  %4338 = vmatmul.bf16.gmra.mxu2 %v13237_v32  ;;  %v17432_v6 = vpop.f32.mrf.mxu3  ;;  %v15795_v32 = vld [vmem:[#allocation12 + $0x918] sm:$0xff] }
 0x765   : > { %4772 = vmatpush.bf16.msra.mxu2 %v15711_v19  ;;  %19694 = vst [vmem:[#allocation31_spill] sm:$0xff] %v17432_v6  ;;  %v15739_v19 = vld [vmem:[#allocation12 + $0x758] sm:$0xff]  ;;  %v15820_v6 = vld [vmem:[#allocation9 + $0x64] sm:$0xf] }
 0x767   : > { %5023 = vmatmul.bf16.vlgmr.msra.gmra.mxu3 %v17415_v18 }
 0x768   : > { %5177 = vmatpush.bf16.msrb.mxu3 %v15751_v63  ;;  %v15796_v63 = vld [vmem:[#allocation12 + $0x920] sm:$0xff] }
 0x769   : > { %4773 = vmatpush.bf16.msra.mxu2 %v15710_v52  ;;  %v15737_v52 = vld [vmem:[#allocation12 + $0x748] sm:$0xff] }
 0x76c   : > { %5178 = vmatpush.bf16.msrb.mxu3 %v15750_v24  ;;  %v15722_v24 = vld [vmem:[#allocation12 + $0x6d0] sm:$0xff]  ;;  %v17438_v30 = vpop.f32.mrf.mxu3 }
 0x76d   : > { %4774 = vmatpush.bf16.msra.mxu2 %v15709_v35  ;;  %v15759_v35 = vld [vmem:[#allocation12 + $0x7f8] sm:$0xff] }
 0x770   : > { %5179 = vmatpush.bf16.msrb.mxu3 %v15749_v2  ;;  %v15794_v2 = vld [vmem:[#allocation12 + $0x910] sm:$0xff] }
 0x771   : > { %4775 = vmatpush.bf16.msra.mxu2 %v15708_v45  ;;  %v15757_v45 = vld [vmem:[#allocation12 + $0x7e8] sm:$0xff] }
 0x774   : > { %5180 = vmatpush.bf16.msrb.mxu3 %v15748_v5  ;;  %4343 = vmatmul.bf16.gmra.mxu2 %v13245_v0  ;;  %v15793_v5 = vld [vmem:[#allocation12 + $0x908] sm:$0xff]  ;;  %v15742_v0 = vld [vmem:[#allocation12 + $0x770] sm:$0xff] }
 0x775   : > { %4776 = vmatpush.bf16.msra.mxu2 %v15707_v10 }
 0x778   : > { %5181 = vmatpush.bf16.msrb.mxu3 %v15747_v40 }
 0x779   : > { %4777 = vmatpush.bf16.msra.mxu2 %v15706_v11  ;;  %v15755_v11 = vld [vmem:[#allocation12 + $0x7d8] sm:$0xff] }
 0x77c   : > { %5182 = vmatpush.bf16.msrb.mxu3 %v15746_v36  ;;  %v15741_v36 = vld [vmem:[#allocation12 + $0x768] sm:$0xff] }
 0x77d   : > { %4778 = vmatpush.bf16.msra.mxu2 %v15705_v16  ;;  %v15753_v16 = vld [vmem:[#allocation12 + $0x7c8] sm:$0xff] }
 0x780   : > { %5183 = vmatpush.bf16.msrb.mxu3 %v15745_v62  ;;  %v17445_v62 = vpop.f32.mrf.mxu3 }
 0x781   : > { %4779 = vmatpush.bf16.msra.mxu2 %v15704_v22  ;;  %19696 = vst [vmem:[#allocation33_spill] sm:$0xff] %v17445_v62 }
 0x784   : > { %5184 = vmatpush.bf16.msrb.mxu3 %v15744_v33  ;;  %4348 = vmatmul.bf16.gmra.mxu2 %v13253_v42 }
 0x787   : > { %5185 = vmatmul.bf16.vlgmr.msrb.gmra.mxu3 %v17415_v18 }
 0x788   : > { %5339 = vmatpush.bf16.msra.mxu3 %v15767_v50  ;;  %v15738_v50 = vld [vmem:[#allocation12 + $0x750] sm:$0xff]  ;;  %v17452_v47 = vpop.f32.mrf.mxu3 }
 0x78c   : > { %5340 = vmatpush.bf16.msra.mxu3 %v15766_v27  ;;  %v15736_v27 = vld [vmem:[#allocation12 + $0x740] sm:$0xff] }
 0x790   : > { %5341 = vmatpush.bf16.msra.mxu3 %v15765_v4  ;;  %v15758_v4 = vld [vmem:[#allocation12 + $0x7f0] sm:$0xff] }
 0x794   : > { %5342 = vmatpush.bf16.msra.mxu3 %v15764_v37  ;;  %4353 = vmatmul.bf16.gmra.mxu2 %v13261_v12  ;;  %v17457_v37 = vpop.f32.mrf.mxu3 }
 0x795   : > { %19699 = vst [vmem:[#allocation36_spill] sm:$0xff] %v17457_v37 }
 0x798   : > { %5343 = vmatpush.bf16.msra.mxu3 %v15763_v46  ;;  %v15756_v46 = vld [vmem:[#allocation12 + $0x7e0] sm:$0xff] }
 0x79c   : > { %5344 = vmatpush.bf16.msra.mxu3 %v15762_v55  ;;  %v17461_v51 = vpop.f32.mrf.mxu3  ;;  %v15754_v55 = vld [vmem:[#allocation12 + $0x7d0] sm:$0xff] }
 0x79d   : > { %19700 = vst [vmem:[#allocation37_spill] sm:$0xff] %v17461_v51 }
 0x7a0   : > { %5345 = vmatpush.bf16.msra.mxu3 %v15761_v8  ;;  %v15752_v8 = vld [vmem:[#allocation12 + $0x7c0] sm:$0xff] }
 0x7a4   : > { %5346 = vmatpush.bf16.msra.mxu3 %v15760_v17  ;;  %4358 = vmatmul.bf16.gmra.mxu2 %v13269_v61  ;;  %v17467_v22 = vpop.f32.mrf.mxu3  ;;  %v15775_v17 = vld [vmem:[#allocation12 + $0x878] sm:$0xff] }
 0x7a5   : > { %19703 = vst [vmem:[#allocation40_spill] sm:$0xff] %v17467_v22 }
 0x7a7   : > { %5347 = vmatmul.bf16.vlgmr.msra.gmra.mxu3 %v17415_v18 }
 0x7a8   : > { %5501 = vmatpush.bf16.msrb.mxu3 %v15783_v26  ;;  %v15774_v26 = vld [vmem:[#allocation12 + $0x870] sm:$0xff] }
 0x7ac   : > { %5502 = vmatpush.bf16.msrb.mxu3 %v15782_v34  ;;  %v17472_v54 = vpop.f32.mrf.mxu3 }
 0x7ad   : > { %19705 = vst [vmem:[#allocation42_spill] sm:$0xff] %v17472_v54  ;;  %v15831_v54 = vld [vmem:[#allocation9 + $0xb4] sm:$0xf0] }
 0x7b0   : > { %5503 = vmatpush.bf16.msrb.mxu3 %v15781_v44  ;;  %v15772_v44 = vld [vmem:[#allocation12 + $0x860] sm:$0xff] }
 0x7b4   : > { %5504 = vmatpush.bf16.msrb.mxu3 %v15780_v38  ;;  %4618 = vmatmul.bf16.vlgmr.msrb.gmra.mxu2 %v17415_v18  ;;  %v15771_v38 = vld [vmem:[#allocation12 + $0x858] sm:$0xff] }
 0x7b5   : > { %4934 = vmatpush.bf16.msrb.mxu2 %v15727_v43  ;;  %v15769_v43 = vld [vmem:[#allocation12 + $0x848] sm:$0xff] }
 0x7b8   : > { %5505 = vmatpush.bf16.msrb.mxu3 %v15779_v57  ;;  %v17476_v57 = vpop.f32.mrf.mxu3 }
 0x7b9   : > { %4935 = vmatpush.bf16.msrb.mxu2 %v15726_v60  ;;  %19707 = vst [vmem:[#allocation44_spill] sm:$0xff] %v17476_v57 }
 0x7bc   : > { %5506 = vmatpush.bf16.msrb.mxu3 %v15778_v29  ;;  %v15770_v29 = vld [vmem:[#allocation12 + $0x850] sm:$0xff] }
 0x7bd   : > { %4936 = vmatpush.bf16.msrb.mxu2 %v15725_v25  ;;  %v15790_v25 = vld [vmem:[#allocation12 + $0x8f0] sm:$0xff] }
 0x7c0   : > { %5507 = vmatpush.bf16.msrb.mxu3 %v15777_v21  ;;  %v17480_v60 = vpop.f32.mrf.mxu3 }
 0x7c1   : > { %4937 = vmatpush.bf16.msrb.mxu2 %v15724_v14 }
 0x7c4   : > { %5508 = vmatpush.bf16.msrb.mxu3 %v15776_v20  ;;  %4780 = vmatmul.bf16.vlgmr.msra.gmra.mxu2 %v17415_v18  ;;  %v15768_v20 = vld [vmem:[#allocation12 + $0x840] sm:$0xff] }
 0x7c5   : > { %4938 = vmatpush.bf16.msrb.mxu2 %v15723_v1  ;;  %v15788_v1 = vld [vmem:[#allocation12 + $0x8e0] sm:$0xff] }
 0x7c7   : > { %5509 = vmatmul.bf16.vlgmr.msrb.gmra.mxu3 %v17415_v18  ;;  %v17436_v58 = vpop.f32.mrf.mxu2 }
 0x7c8   : > { %5663 = vmatpush.bf16.msra.mxu3 %v15799_v53  ;;  %v15791_v53 = vld [vmem:[#allocation12 + $0x8f8] sm:$0xff]  ;;  %v17485_v14 = vpop.f32.mrf.mxu3 }
 0x7c9   : > { %4939 = vmatpush.bf16.msrb.mxu2 %v15722_v24  ;;  %v15786_v24 = vld [vmem:[#allocation12 + $0x8d0] sm:$0xff] }
 0x7cc   : > { %5664 = vmatpush.bf16.msra.mxu3 %v15798_v56 }
 0x7cd   : > { %4940 = vmatpush.bf16.msrb.mxu2 %v15721_v15 }
 0x7cf   : > { %v17440_v40 = vpop.f32.mrf.mxu2 }
 0x7d0   : > { %5665 = vmatpush.bf16.msra.mxu3 %v15797_v13  ;;  %19695 = vst [vmem:[#allocation32_spill] sm:$0xff] %v17440_v40  ;;  %v15789_v13 = vld [vmem:[#allocation12 + $0x8e8] sm:$0xff] }
 0x7d1   : > { %4941 = vmatpush.bf16.msrb.mxu2 %v15720_v28  ;;  %v15784_v28 = vld [vmem:[#allocation12 + $0x8c0] sm:$0xff] }
 0x7d4   : > { %5666 = vmatpush.bf16.msra.mxu3 %v15796_v63  ;;  %4942 = vmatmul.bf16.vlgmr.msrb.gmra.mxu2 %v17415_v18 }
 0x7d5   : > { %5096 = vmatpush.bf16.msra.mxu2 %v15743_v3  ;;  %v15807_v3 = vld [vmem:[#allocation12 + $0x978] sm:$0xff] }
 0x7d7   : > { %v17443_v7 = vpop.f32.mrf.mxu2 }
 0x7d8   : > { %5667 = vmatpush.bf16.msra.mxu3 %v15795_v32  ;;  %v15787_v32 = vld [vmem:[#allocation12 + $0x8d8] sm:$0xff] }
 0x7d9   : > { %5097 = vmatpush.bf16.msra.mxu2 %v15742_v0 }
 0x7dc   : > { %5668 = vmatpush.bf16.msra.mxu3 %v15794_v2  ;;  %v17489_v2 = vpop.f32.mrf.mxu3 }
 0x7dd   : > { %5098 = vmatpush.bf16.msra.mxu2 %v15741_v36  ;;  %v15806_v36 = vld [vmem:[#allocation12 + $0x970] sm:$0xff] }
 0x7df   : > { %v17448_v33 = vpop.f32.mrf.mxu2 }
 0x7e0   : > { %5669 = vmatpush.bf16.msra.mxu3 %v15793_v5  ;;  %19697 = vst [vmem:[#allocation34_spill] sm:$0xff] %v17448_v33  ;;  %v15785_v5 = vld [vmem:[#allocation12 + $0x8c8] sm:$0xff] }
 0x7e1   : > { %5099 = vmatpush.bf16.msra.mxu2 %v15740_v9  ;;  %v15805_v9 = vld [vmem:[#allocation12 + $0x968] sm:$0xff] }
 0x7e4   : > { %5670 = vmatpush.bf16.msra.mxu3 %v15792_v31  ;;  %v17493_v31 = vpop.f32.mrf.mxu3 }
 0x7e5   : > { %5100 = vmatpush.bf16.msra.mxu2 %v15739_v19 }
 0x7e7   : > { %5671 = vmatmul.bf16.vlgmr.msra.gmra.mxu3 %v17415_v18  ;;  %v17450_v39 = vpop.f32.mrf.mxu2 }
 0x7e9   : > { %5101 = vmatpush.bf16.msra.mxu2 %v15738_v50 }
 0x7ec   : > { %v17498_v19 = vpop.f32.mrf.mxu3 }
 0x7ed   : > { %5102 = vmatpush.bf16.msra.mxu2 %v15737_v52  ;;  %v15804_v52 = vld [vmem:[#allocation12 + $0x960] sm:$0xff] }
 0x7ef   : > { %v17454_v42 = vpop.f32.mrf.mxu2 }
 0x7f0   : > { %19698 = vst [vmem:[#allocation35_spill] sm:$0xff] %v17454_v42 }
 0x7f1   : > { %5103 = vmatpush.bf16.msra.mxu2 %v15736_v27  ;;  %v15803_v27 = vld [vmem:[#allocation12 + $0x958] sm:$0xff] }
 0x7f4   : > { %5104 = vmatmul.bf16.vlgmr.msra.gmra.mxu2 %v17415_v18 }
 0x7f5   : > { %5258 = vmatpush.bf16.msrb.mxu2 %v15759_v35  ;;  %v13144_v35 = vld [vmem:[#allocation8] sm:$0xf] }
 0x7f7   : > { %v17459_v10 = vpop.f32.mrf.mxu2 }
 0x7f9   : > { %5259 = vmatpush.bf16.msrb.mxu2 %v15758_v4  ;;  %v15649_v4 = vld [vmem:[#allocation8 + $0x4] sm:$0xf0] }
 0x7fd   : > { %5260 = vmatpush.bf16.msrb.mxu2 %v15757_v45  ;;  %v15648_v45 = vld [vmem:[#allocation8 + $0x4] sm:$0xf] }
 0x7ff   : > { %v17463_v48 = vpop.f32.mrf.mxu2 }
 0x800   : > { %19701 = vst [vmem:[#allocation38_spill] sm:$0xff] %v17463_v48 }
 0x801   : > { %5261 = vmatpush.bf16.msrb.mxu2 %v15756_v46  ;;  %v13145_v46 = vor.u32 %v15649_v4, %v13144_v35 }
 0x803   : > { %4194 = vmatmul.bf16.vlgmr.msrb.gmra.mxu0 %v13145_v46  ;;  %v13168_v46 = vld [vmem:[#allocation8 + $0x30] sm:$0xf] }
 0x805   : > { %5262 = vmatpush.bf16.msrb.mxu2 %v15755_v11  ;;  %v13146_v11 = vld [vmem:[#allocation8 + $0x8] sm:$0xf0] }
 0x807   : > { %v17465_v12 = vpop.f32.mrf.mxu2 }
 0x808   : > { %19702 = vst [vmem:[#allocation39_spill] sm:$0xff] %v17465_v12  ;;  %v17588_v12 = vld [vmem:[#allocation15 + $0x3] ss:$0 sm:$0xff] }
 0x809   : > { %5263 = vmatpush.bf16.msrb.mxu2 %v15754_v55  ;;  %v15802_v55 = vld [vmem:[#allocation12 + $0x950] sm:$0xff] }
 0x80d   : > { %5264 = vmatpush.bf16.msrb.mxu2 %v15753_v16  ;;  %v13149_v16 = vor.u32 %v15648_v45, %v13146_v11 }
 0x80f   : > { %v17470_v34 = vpop.f32.mrf.mxu2  ;;  %4283 = vmatmul.bf16.vlgmr.msra.gmra.mxu1 %v13149_v16  ;;  %v15654_v16 = vld [vmem:[#allocation8 + $0x34] sm:$0xf] }
 0x810   : > { %19704 = vst [vmem:[#allocation41_spill] sm:$0xff] %v17470_v34  ;;  %v15822_v34 = vld [vmem:[#allocation9 + $0x74] sm:$0xf] }
 0x811   : > { %5265 = vmatpush.bf16.msrb.mxu2 %v15752_v8  ;;  %v4702_v8 = vpop.f32.mrf.mxu3 }
 0x814   : > { %5266 = vmatmul.bf16.vlgmr.msrb.gmra.mxu2 %v17415_v18 }
 0x815   : > { %5420 = vmatpush.bf16.msra.mxu2 %v15775_v17 }
 0x817   : > { %v17474_v61 = vpop.f32.mrf.mxu2 }
 0x818   : > { %19706 = vst [vmem:[#allocation43_spill] sm:$0xff] %v17474_v61  ;;  %v13872_v61 = vld [vmem:[#allocation9 + $0xb0] sm:$0xf] }
 0x819   : > { %5421 = vmatpush.bf16.msra.mxu2 %v15774_v26  ;;  %v15801_v26 = vld [vmem:[#allocation12 + $0x948] sm:$0xff] }
 0x81d   : > { %5422 = vmatpush.bf16.msra.mxu2 %v15773_v49  ;;  %v15800_v49 = vld [vmem:[#allocation12 + $0x940] sm:$0xff] }
 0x81f   : > { %v17478_v21 = vpop.f32.mrf.mxu2 }
 0x820   : > { %19708 = vst [vmem:[#allocation45_spill] sm:$0xff] %v17478_v21 }
 0x821   : > { %5423 = vmatpush.bf16.msra.mxu2 %v15772_v44  ;;  %v4862_v44 = vpop.f32.mrf.mxu3 }
 0x825   : > { %5424 = vmatpush.bf16.msra.mxu2 %v15771_v38 }
 0x827   : > { %v17482_v56 = vpop.f32.mrf.mxu2 }
 0x829   : > { %5425 = vmatpush.bf16.msra.mxu2 %v15770_v29  ;;  %v13152_v29 = vld [vmem:[#allocation8 + $0x10] sm:$0xf] }
 0x82d   : > { %5426 = vmatpush.bf16.msra.mxu2 %v15769_v43  ;;  %v15651_v43 = vld [vmem:[#allocation8 + $0x14] sm:$0xf0] }
 0x82f   : > { %v17487_v63 = vpop.f32.mrf.mxu2 }
 0x831   : > { %5427 = vmatpush.bf16.msra.mxu2 %v15768_v20  ;;  %v15650_v20 = vld [vmem:[#allocation8 + $0x14] sm:$0xf] }
 0x834   : > { %5428 = vmatmul.bf16.vlgmr.msra.gmra.mxu2 %v17415_v18 }
 0x835   : > { %5582 = vmatpush.bf16.msrb.mxu2 %v15791_v53  ;;  %v13153_v53 = vor.u32 %v15651_v43, %v13152_v29 }
 0x837   : > { %v17491_v15 = vpop.f32.mrf.mxu2  ;;  %4199 = vmatmul.bf16.gmra.mxu0 %v13153_v53  ;;  %v5826_v53 = vpack.c.bf16 %v4702_v8, %v17498_v19  ;;  %v15658_v19 = vld [vmem:[#allocation8 + $0x54] sm:$0xf]  ;;  %v13186_v8 = vld [vmem:[#allocation8 + $0x58] sm:$0xf0] }
 0x839   : > { %5583 = vmatpush.bf16.msrb.mxu2 %v15790_v25  ;;  %v13154_v25 = vld [vmem:[#allocation8 + $0x18] sm:$0xf0] }
 0x83d   : > { %5584 = vmatpush.bf16.msrb.mxu2 %v15789_v13  ;;  %v13157_v13 = vor.u32 %v15650_v20, %v13154_v25 }
 0x83f   : > { %v17495_v0 = vpop.f32.mrf.mxu2  ;;  %4288 = vmatmul.bf16.gmra.mxu1 %v13157_v13  ;;  %v15657_v13 = vld [vmem:[#allocation8 + $0x44] sm:$0xf0] }
 0x840   : > { %v5825_v25 = vpack.c.bf16 %v17495_v0, %v17491_v15 }
 0x841   : > { %5585 = vmatpush.bf16.msrb.mxu2 %v15788_v1  ;;  %v4864_v1 = vpop.f32.mrf.mxu3 }
 0x842   : > { %v5828_v43 = vpack.c.bf16 %v4864_v1, %v4862_v44  ;;  %v5824_v44 = vpack.c.bf16 %v17493_v31, %v17489_v2  ;;  %v13194_v2 = vld [vmem:[#allocation8 + $0x68] sm:$0xf0] }
 0x845   : > { %5586 = vmatpush.bf16.msrb.mxu2 %v15787_v32 }
 0x847   : > { %v17500_v50 = vpop.f32.mrf.mxu2 }
 0x849   : > { %5587 = vmatpush.bf16.msrb.mxu2 %v15786_v24  ;;  %v5024_v24 = vpop.f32.mrf.mxu3 }
 0x84d   : > { %5588 = vmatpush.bf16.msrb.mxu2 %v15785_v5 }
 0x84f   : > { %v4783_v17 = vpop.f32.mrf.mxu2 }
 0x850   : > { %v5827_v20 = vpack.c.bf16 %v4783_v17, %v17500_v50  ;;  %v13184_v50 = vld [vmem:[#allocation8 + $0x50] sm:$0xf]  ;;  %v15659_v17 = vld [vmem:[#allocation8 + $0x54] sm:$0xf0] }
 0x851   : > { %5589 = vmatpush.bf16.msrb.mxu2 %v15784_v28  ;;  %v13160_v28 = vld [vmem:[#allocation8 + $0x20] sm:$0xf]  ;;  %v5026_v4 = vpop.f32.mrf.mxu3 }
 0x852   : > { %v5830_v45 = vpack.c.bf16 %v5026_v4, %v5024_v24 }
 0x854   : > { %5590 = vmatmul.bf16.vlgmr.msrb.gmra.mxu2 %v17415_v18 }
 0x855   : > { %5744 = vmatpush.bf16.msra.mxu2 %v15807_v3  ;;  %v15653_v3 = vld [vmem:[#allocation8 + $0x24] sm:$0xf0] }
 0x857   : > { %v4943_v38 = vpop.f32.mrf.mxu2 }
 0x859   : > { %5745 = vmatpush.bf16.msra.mxu2 %v15806_v36  ;;  %v15652_v36 = vld [vmem:[#allocation8 + $0x24] sm:$0xf]  ;;  %v17509_v15 = vpop.f32.mrf.mxu3 }
 0x85d   : > { %5746 = vmatpush.bf16.msra.mxu2 %v15805_v9  ;;  %v13161_v9 = vor.u32 %v15653_v3, %v13160_v28  ;;  %v13185_v28 = vor.u32 %v15659_v17, %v13184_v50  ;;  %v13189_v3 = vor.u32 %v15658_v19, %v13186_v8 }
 0x85f   : > { %v4945_v32 = vpop.f32.mrf.mxu2  ;;  %4204 = vmatmul.bf16.gmra.mxu0 %v13161_v9  ;;  %v15661_v9 = vld [vmem:[#allocation8 + $0x64] sm:$0xf0] }
 0x860   : > { %v5829_v11 = vpack.c.bf16 %v4945_v32, %v4943_v38  ;;  %v13176_v38 = vld [vmem:[#allocation8 + $0x40] sm:$0xf]  ;;  %v15656_v32 = vld [vmem:[#allocation8 + $0x44] sm:$0xf] }
 0x861   : > { %5747 = vmatpush.bf16.msra.mxu2 %v15804_v52  ;;  %v13162_v52 = vld [vmem:[#allocation8 + $0x28] sm:$0xf0]  ;;  %v13177_v24 = vor.u32 %v15657_v13, %v13176_v38 }
 0x865   : > { %5748 = vmatpush.bf16.msra.mxu2 %v15803_v27  ;;  %v13165_v27 = vor.u32 %v15652_v36, %v13162_v52  ;;  %v13192_v36 = vld [vmem:[#allocation8 + $0x60] sm:$0xf]  ;;  %v15660_v52 = vld [vmem:[#allocation8 + $0x64] sm:$0xf] }
 0x866   : > { %v13193_v31 = vor.u32 %v15661_v9, %v13192_v36  ;;  %v13784_v9 = vld [vmem:[#allocation9] sm:$0xf] }
 0x867   : > { %4293 = vmatmul.bf16.gmra.mxu1 %v13165_v27  ;;  %v13197_v27 = vor.u32 %v15660_v52, %v13194_v2  ;;  %v15809_v52 = vld [vmem:[#allocation9 + $0x4] sm:$0xf0] }
 0x869   : > { %5749 = vmatpush.bf16.msra.mxu2 %v15802_v55  ;;  %v15655_v55 = vld [vmem:[#allocation8 + $0x34] sm:$0xf0] }
 0x86d   : > { %5750 = vmatpush.bf16.msra.mxu2 %v15801_v26  ;;  %v13170_v26 = vld [vmem:[#allocation8 + $0x38] sm:$0xf0] }
 0x86e   : > { %v13173_v29 = vor.u32 %v15654_v16, %v13170_v26  ;;  %v13202_v26 = vld [vmem:[#allocation8 + $0x78] sm:$0xf0] }
 0x871   : > { %5751 = vmatpush.bf16.msra.mxu2 %v15800_v49  ;;  %v13169_v49 = vor.u32 %v15655_v55, %v13168_v46  ;;  %v13200_v46 = vld [vmem:[#allocation8 + $0x70] sm:$0xf]  ;;  %v15662_v55 = vld [vmem:[#allocation8 + $0x74] sm:$0xf] }
 0x873   : > { %4209 = vmatmul.bf16.gmra.mxu0 %v13169_v49  ;;  %v13205_v49 = vor.u32 %v15662_v55, %v13202_v26 }
 0x874   : > { %5752 = vmatmul.bf16.vlgmr.msra.gmra.mxu2 %v17415_v18 }
 0x877   : > { %v5105_v5 = vpop.f32.mrf.mxu2  ;;  %4298 = vmatmul.bf16.gmra.mxu1 %v13173_v29 }
 0x87f   : > { %v5107_v18 = vpop.f32.mrf.mxu2 }
 0x880   : > { %v5831_v35 = vpack.c.bf16 %v5107_v18, %v5105_v5  ;;  %v13178_v5 = vld [vmem:[#allocation8 + $0x48] sm:$0xf0]  ;;  %v17513_v18 = vpop.f32.mrf.mxu3 }
 0x881   : > { %v13181_v1 = vor.u32 %v15656_v32, %v13178_v5  ;;  %v13208_v32 = vld [vmem:[#allocation8 + $0x80] sm:$0xf]  ;;  %v15664_v5 = vld [vmem:[#allocation8 + $0x84] sm:$0xf] }
 0x882   : > { %6000 = vmatpush.bf16.msra.mxu0 %v5831_v35 }
 0x883   : > { %4214 = vmatmul.bf16.gmra.mxu0 %v13177_v24  ;;  %v15665_v24 = vld [vmem:[#allocation8 + $0x84] sm:$0xf0] }
 0x886   : > { %6001 = vmatpush.bf16.msra.mxu0 %v5830_v45 }
 0x887   : > { %4303 = vmatmul.bf16.gmra.mxu1 %v13181_v1  ;;  %v13210_v1 = vld [vmem:[#allocation8 + $0x88] sm:$0xf0] }
 0x888   : > { %v17517_v4 = vpop.f32.mrf.mxu3  ;;  %v13213_v50 = vor.u32 %v15664_v5, %v13210_v1 }
 0x88a   : > { %6002 = vmatpush.bf16.msra.mxu0 %v5829_v11  ;;  %v15663_v11 = vld [vmem:[#allocation8 + $0x74] sm:$0xf0] }
 0x88b   : > { %v13201_v16 = vor.u32 %v15663_v11, %v13200_v46 }
 0x88e   : > { %6003 = vmatpush.bf16.msra.mxu0 %v5828_v43 }
 0x890   : > { %v5350_v29 = vpop.f32.mrf.mxu3 }
 0x892   : > { %6004 = vmatpush.bf16.msra.mxu0 %v5827_v20  ;;  %v4195_v20 = vpop.f32.mrf.mxu0 }
 0x893   : > { %4219 = vmatmul.bf16.gmra.mxu0 %v13185_v28 }
 0x896   : > { %6005 = vmatpush.bf16.msra.mxu0 %v5826_v53 }
 0x897   : > { %4308 = vmatmul.bf16.gmra.mxu1 %v13189_v3  ;;  %v17511_v0 = vpop.f32.mrf.mxu2 }
 0x898   : > { %v5510_v53 = vpop.f32.mrf.mxu3 }
 0x89a   : > { %6006 = vmatpush.bf16.msra.mxu0 %v5825_v25  ;;  %v4284_v25 = vpop.f32.mrf.mxu1  ;;  %v17521_v17 = vpop.f32.mrf.mxu0 }
 0x89b   : > { %v17519_v13 = vadd.f32 %v4284_v25, %v4195_v20  ;;  %v13792_v25 = vld [vmem:[#allocation9 + $0x10] sm:$0xf] }
 0x89e   : > { %6007 = vmatpush.bf16.msra.mxu0 %v5824_v44  ;;  %v13209_v44 = vor.u32 %v15665_v24, %v13208_v32  ;;  %v15811_v32 = vld [vmem:[#allocation9 + $0x14] sm:$0xf0] }
 0x89f   : > { %v17515_v35 = vpop.f32.mrf.mxu2  ;;  %v13793_v5 = vor.u32 %v15811_v32, %v13792_v25 }
 0x8a0   : > { %v5512_v8 = vpop.f32.mrf.mxu3 }
 0x8a2   : > { %v17523_v19 = vpop.f32.mrf.mxu1 }
 0x8a3   : > { %4224 = vmatmul.bf16.gmra.mxu0 %v13193_v31 }
 0x8a7   : > { %4313 = vmatmul.bf16.gmra.mxu1 %v13197_v27  ;;  %v13785_v27 = vor.u32 %v15809_v52, %v13784_v9 }
 0x8a8   : > { %v5672_v3 = vpop.f32.mrf.mxu3 }
 0x8b3   : > { %4229 = vmatmul.bf16.gmra.mxu0 %v13201_v16 }
 0x8b4   : > { %v4200_v36 = vpop.f32.mrf.mxu0 }
 0x8b7   : > { %v5429_v45 = vpop.f32.mrf.mxu2  ;;  %4318 = vmatmul.bf16.gmra.mxu1 %v13205_v49  ;;  %v5674_v49 = vpop.f32.mrf.mxu3 }
 0x8b8   : > { %v5838_v20 = vpack.c.bf16 %v5674_v49, %v5672_v3  ;;  %v5834_v3 = vpack.c.bf16 %v5350_v29, %v17517_v4 }
 0x8bc   : > { %v4289_v31 = vpop.f32.mrf.mxu1  ;;  %v17527_v11 = vpop.f32.mrf.mxu0 }
 0x8bd   : > { %v17525_v46 = vadd.f32 %v4289_v31, %v4200_v36  ;;  %v5836_v36 = vpack.c.bf16 %v5512_v8, %v5510_v53  ;;  %v13800_v31 = vld [vmem:[#allocation9 + $0x20] sm:$0xf]  ;;  %v15808_v53 = vld [vmem:[#allocation9 + $0x4] sm:$0xf]  ;;  %v13786_v8 = vld [vmem:[#allocation9 + $0x8] sm:$0xf0] }
 0x8bf   : > { %v5431_v43 = vpop.f32.mrf.mxu2 }
 0x8c0   : > { %v5835_v52 = vpack.c.bf16 %v5431_v43, %v5429_v45  ;;  %v5832_v45 = vpack.c.bf16 %v17513_v18, %v17509_v15  ;;  %v13789_v43 = vor.u32 %v15808_v53, %v13786_v8  ;;  %v13816_v18 = vld [vmem:[#allocation9 + $0x40] sm:$0xf] }
 0x8c3   : > { %4234 = vmatmul.bf16.gmra.mxu0 %v13209_v44 }
 0x8c4   : > { %v17529_v16 = vpop.f32.mrf.mxu1 }
 0x8c7   : > { %4323 = vmatmul.bf16.gmra.mxu1 %v13213_v50 }
 0x8d3   : > { %6008 = vmatmul.bf16.vlgmr.msra.gmra.mxu0 %v13785_v27  ;;  %v15813_v27 = vld [vmem:[#allocation9 + $0x24] sm:$0xf0] }
 0x8d7   : > { %v5591_v38 = vpop.f32.mrf.mxu2 }
 0x8dc   : > { %v4205_v24 = vpop.f32.mrf.mxu0 }
 0x8df   : > { %v5593_v28 = vpop.f32.mrf.mxu2 }
 0x8e0   : > { %v5837_v44 = vpack.c.bf16 %v5593_v28, %v5591_v38  ;;  %v5833_v38 = vpack.c.bf16 %v17515_v35, %v17511_v0  ;;  %v15815_v0 = vld [vmem:[#allocation9 + $0x34] sm:$0xf0] }
 0x8e3   : > { %6013 = vmatmul.bf16.gmra.mxu0 %v13793_v5  ;;  %v15810_v5 = vld [vmem:[#allocation9 + $0x14] sm:$0xf] }
 0x8e4   : > { %v4294_v1 = vpop.f32.mrf.mxu1  ;;  %v17533_v9 = vpop.f32.mrf.mxu0 }
 0x8e5   : > { %v17531_v50 = vadd.f32 %v4294_v1, %v4205_v24 }
 0x8f0   : > { %v4210_v28 = vpop.f32.mrf.mxu0 }
 0x8f7   : > { %v5753_v2 = vpop.f32.mrf.mxu2 }
 0x8f8   : > { %v17544_v4 = vpop.f32.mrf.mxu0 }
 0x8ff   : > { %v5755_v55 = vpop.f32.mrf.mxu2 }
 0x900   : > { %v5839_v26 = vpack.c.bf16 %v5755_v55, %v5753_v2  ;;  %v17535_v2 = vpop.f32.mrf.mxu1  ;;  %v13801_v55 = vor.u32 %v15813_v27, %v13800_v31  ;;  %v4215_v25 = vpop.f32.mrf.mxu0 }
 0x902   : > { %6089 = vmatpush.bf16.msrb.mxu1 %v5839_v26  ;;  %6018 = vmatmul.bf16.gmra.mxu0 %v13801_v55 }
 0x906   : > { %6090 = vmatpush.bf16.msrb.mxu1 %v5838_v20  ;;  %v13808_v20 = vld [vmem:[#allocation9 + $0x30] sm:$0xf] }
 0x907   : > { %v13809_v35 = vor.u32 %v15815_v0, %v13808_v20 }
 0x908   : > { %v4299_v26 = vpop.f32.mrf.mxu1 }
 0x909   : > { %v17540_v49 = vadd.f32 %v4299_v26, %v4210_v28  ;;  %v13802_v28 = vld [vmem:[#allocation9 + $0x28] sm:$0xf0] }
 0x90a   : > { %6091 = vmatpush.bf16.msrb.mxu1 %v5837_v44  ;;  %v13794_v44 = vld [vmem:[#allocation9 + $0x18] sm:$0xf0] }
 0x90b   : > { %v13797_v1 = vor.u32 %v15810_v5, %v13794_v44  ;;  %v13810_v5 = vld [vmem:[#allocation9 + $0x38] sm:$0xf0] }
 0x90e   : > { %6092 = vmatpush.bf16.msrb.mxu1 %v5836_v36  ;;  %v17550_v36 = vpop.f32.mrf.mxu0 }
 0x910   : > { %v17546_v29 = vpop.f32.mrf.mxu1 }
 0x912   : > { %6093 = vmatpush.bf16.msrb.mxu1 %v5835_v52  ;;  %6023 = vmatmul.bf16.gmra.mxu0 %v13809_v35  ;;  %v15817_v52 = vld [vmem:[#allocation9 + $0x44] sm:$0xf0] }
 0x916   : > { %6094 = vmatpush.bf16.msrb.mxu1 %v5834_v3  ;;  %v13817_v3 = vor.u32 %v15817_v52, %v13816_v18  ;;  %v4220_v31 = vpop.f32.mrf.mxu0  ;;  %v13832_v52 = vld [vmem:[#allocation9 + $0x60] sm:$0xf] }
 0x918   : > { %v4304_v32 = vpop.f32.mrf.mxu1 }
 0x919   : > { %v17548_v24 = vadd.f32 %v4304_v32, %v4215_v25  ;;  %v15814_v32 = vld [vmem:[#allocation9 + $0x34] sm:$0xf] }
 0x91a   : > { %6095 = vmatpush.bf16.msrb.mxu1 %v5833_v38  ;;  %v15812_v38 = vld [vmem:[#allocation9 + $0x24] sm:$0xf]  ;;  %v13813_v44 = vor.u32 %v15814_v32, %v13810_v5  ;;  %v15823_v32 = vld [vmem:[#allocation9 + $0x74] sm:$0xf0] }
 0x91b   : > { %v13805_v26 = vor.u32 %v15812_v38, %v13802_v28 }
 0x91e   : > { %6096 = vmatpush.bf16.msrb.mxu1 %v5832_v45  ;;  %v17556_v53 = vpop.f32.mrf.mxu0  ;;  %v13824_v45 = vld [vmem:[#allocation9 + $0x50] sm:$0xf] }
 0x920   : > { %v17552_v15 = vpop.f32.mrf.mxu1 }
 0x921   : > { %6097 = vmatmul.bf16.vlgmr.msrb.gmra.mxu1 %v13789_v43  ;;  %v15819_v43 = vld [vmem:[#allocation9 + $0x54] sm:$0xf0] }
 0x922   : > { %6028 = vmatmul.bf16.gmra.mxu0 %v13817_v3  ;;  %v13825_v20 = vor.u32 %v15819_v43, %v13824_v45  ;;  %v15821_v3 = vld [vmem:[#allocation9 + $0x64] sm:$0xf0]  ;;  %v13818_v45 = vld [vmem:[#allocation9 + $0x48] sm:$0xf0] }
 0x926   : > { %v4225_v0 = vpop.f32.mrf.mxu0 }
 0x928   : > { %v4309_v27 = vpop.f32.mrf.mxu1 }
 0x929   : > { %v17554_v55 = vadd.f32 %v4309_v27, %v4220_v31  ;;  %v13833_v31 = vor.u32 %v15821_v3, %v13832_v52  ;;  %v15818_v52 = vld [vmem:[#allocation9 + $0x54] sm:$0xf]  ;;  %v13826_v3 = vld [vmem:[#allocation9 + $0x58] sm:$0xf0] }
 0x930   : > { %v17558_v8 = vpop.f32.mrf.mxu1 }
 0x931   : > { %6102 = vmatmul.bf16.gmra.mxu1 %v13797_v1  ;;  %v17562_v1 = vpop.f32.mrf.mxu0 }
 0x932   : > { %6033 = vmatmul.bf16.gmra.mxu0 %v13825_v20 }
 0x938   : > { %v4314_v35 = vpop.f32.mrf.mxu1 }
 0x939   : > { %v17560_v25 = vadd.f32 %v4314_v35, %v4225_v0  ;;  %v4230_v27 = vpop.f32.mrf.mxu0  ;;  %v13840_v35 = vld [vmem:[#allocation9 + $0x70] sm:$0xf] }
 0x93a   : > { %v13841_v5 = vor.u32 %v15823_v32, %v13840_v35  ;;  %v13856_v32 = vld [vmem:[#allocation9 + $0x90] sm:$0xf] }
 0x940   : > { %v17564_v18 = vpop.f32.mrf.mxu1 }
 0x941   : > { %6107 = vmatmul.bf16.gmra.mxu1 %v13805_v26  ;;  %v15816_v26 = vld [vmem:[#allocation9 + $0x44] sm:$0xf]  ;;  %v17568_v0 = vpop.f32.mrf.mxu0 }
 0x942   : > { %6038 = vmatmul.bf16.gmra.mxu0 %v13833_v31  ;;  %v13821_v43 = vor.u32 %v15816_v26, %v13818_v45  ;;  %v13848_v31 = vld [vmem:[#allocation9 + $0x80] sm:$0xf]  ;;  %v15825_v26 = vld [vmem:[#allocation9 + $0x84] sm:$0xf0] }
 0x943   : > { %v13849_v45 = vor.u32 %v15825_v26, %v13848_v31  ;;  %v13864_v31 = vld [vmem:[#allocation9 + $0xa0] sm:$0xf]  ;;  %v15829_v26 = vld [vmem:[#allocation9 + $0xa4] sm:$0xf0] }
 0x948   : > { %v4319_v38 = vpop.f32.mrf.mxu1 }
 0x949   : > { %v17566_v28 = vadd.f32 %v4319_v38, %v4230_v27  ;;  %v13829_v27 = vor.u32 %v15818_v52, %v13826_v3 }
 0x950   : > { %v17570_v20 = vpop.f32.mrf.mxu1 }
 0x951   : > { %6112 = vmatmul.bf16.gmra.mxu1 %v13813_v44  ;;  %v4235_v44 = vpop.f32.mrf.mxu0 }
 0x952   : > { %6043 = vmatmul.bf16.gmra.mxu0 %v13841_v5  ;;  %v13842_v5 = vld [vmem:[#allocation9 + $0x78] sm:$0xf0] }
 0x953   : > { %v13845_v52 = vor.u32 %v15822_v34, %v13842_v5  ;;  %v17586_v5 = vld [vmem:[#allocation15 + $0x2] ss:$0 sm:$0xff] }
 0x958   : > { %v4324_v40 = vpop.f32.mrf.mxu1 }
 0x959   : > { %v17572_v59 = vadd.f32 %v4324_v40, %v4235_v44  ;;  %v17574_v38 = vpop.f32.mrf.mxu0  ;;  %v15827_v40 = vld [vmem:[#allocation9 + $0x94] sm:$0xf0] }
 0x95a   : > { %v13857_v62 = vor.u32 %v15827_v40, %v13856_v32  ;;  %v17584_v40 = vld [vmem:[#allocation14 + $0x3] ss:$0 sm:$0xff] }
 0x961   : > { %6117 = vmatmul.bf16.gmra.mxu1 %v13821_v43  ;;  %v6009_v33 = vpop.f32.mrf.mxu0  ;;  %v13834_v43 = vld [vmem:[#allocation9 + $0x68] sm:$0xf0] }
 0x962   : > { %6048 = vmatmul.bf16.gmra.mxu0 %v13849_v45  ;;  %v13837_v42 = vor.u32 %v15820_v6, %v13834_v43  ;;  %v13865_v45 = vor.u32 %v15829_v26, %v13864_v31  ;;  %v15824_v6 = vld [vmem:[#allocation9 + $0x84] sm:$0xf]  ;;  %v13850_v43 = vld [vmem:[#allocation9 + $0x88] sm:$0xf0]  ;;  %v4287_v26 = vadd.f32 %v17523_v19, %v17521_v17  ;;  %v15826_v19 = vld [vmem:[#allocation9 + $0x94] sm:$0xf] }
 0x969   : > { %v6011_v35 = vpop.f32.mrf.mxu0 }
 0x971   : > { %6122 = vmatmul.bf16.gmra.mxu1 %v13829_v27  ;;  %v6014_v44 = vpop.f32.mrf.mxu0  ;;  %v17576_v27 = vpop.f32.mrf.mxu1 }
 0x972   : > { %6053 = vmatmul.bf16.gmra.mxu0 %v13857_v62  ;;  %v13853_v62 = vor.u32 %v15824_v6, %v13850_v43 }
 0x979   : > { %v6016_v3 = vpop.f32.mrf.mxu0 }
 0x981   : > { %6127 = vmatmul.bf16.gmra.mxu1 %v13837_v42  ;;  %v17578_v22 = vpop.f32.mrf.mxu0  ;;  %v17580_v42 = vld [vmem:[#allocation14 + $0x2] ss:$0 sm:$0xff] }
 0x982   : > { %6058 = vmatmul.bf16.gmra.mxu0 %v13865_v45  ;;  %v4366_v32 = vmul.f32 %v17580_v42, %v17519_v13  ;;  %v4367_v6 = vmul.f32 %v17580_v42, %v4287_v26  ;;  %v4368_v26 = vmul.f32 %v17580_v42, %v17525_v46 }
 0x984   : > { %v4400_v31 = vadd.f32 %v17586_v5, %v4366_v32  ;;  %v13873_v32 = vor.u32 %v15831_v54, %v13872_v61  ;;  %v4401_v57 = vadd.f32 %v17586_v5, %v4367_v6  ;;  %v4402_v54 = vadd.f32 %v17586_v5, %v4368_v26 }
 0x985   : > { %v4292_v61 = vadd.f32 %v17529_v16, %v17527_v11 }
 0x986   : > { %v4432_v48 = vmax.f32 %v4400_v31, 0.0  ;;  %v4433_v31 = vmax.f32 %v4401_v57, 0.0  ;;  %v4434_v46 = vmax.f32 %v4402_v54, 0.0 }
 0x989   : > { %v17590_v51 = vpop.f32.mrf.mxu0 }
 0x991   : > { %6132 = vmatmul.bf16.gmra.mxu1 %v13845_v52  ;;  %v17598_v21 = vpop.f32.mrf.mxu0 }
 0x992   : > { %6063 = vmatmul.bf16.gmra.mxu0 %v13873_v32  ;;  %v4369_v32 = vmul.f32 %v17580_v42, %v4292_v61 }
 0x994   : > { %v4403_v11 = vadd.f32 %v17586_v5, %v4369_v32 }
 0x99e   : > { %v6098_v34 = vpop.f32.mrf.mxu1 }
 0x99f   : > { %v6099_v52 = vadd.f32 %v6098_v34, %v6009_v33 }
 0x9a1   : > { %v6180_v45 = vmul.f32 %v17584_v40, %v6099_v52  ;;  %6137 = vmatmul.bf16.gmra.mxu1 %v13853_v62  ;;  %v13858_v62 = vld [vmem:[#allocation9 + $0x98] sm:$0xf0] }
 0x9a3   : > { %v6214_v13 = vadd.f32 %v17588_v12, %v6180_v45 }
 0x9a5   : > { %v6246_v43 = vmax.f32 %v6214_v13, 0.0 }
 0x9a6   : > { %v6100_v37 = vpop.f32.mrf.mxu1 }
 0x9a7   : > { %v6278_v33 = vadd.f32 %v6246_v43, %v4432_v48  ;;  %v6101_v34 = vadd.f32 %v6100_v37, %v6011_v35  ;;  %v13861_v37 = vor.u32 %v15826_v19, %v13858_v62  ;;  %v17605_v43 = vpop.f32.mrf.mxu0 }
 0x9a9   : > { %v6181_v17 = vmul.f32 %v17584_v40, %v6101_v34 }
 0x9ab   : > { %v6215_v52 = vadd.f32 %v17588_v12, %v6181_v17 }
 0x9ad   : > { %v6247_v48 = vmax.f32 %v6215_v52, 0.0  ;;  %v13880_v52 = vld [vmem:[#allocation9 + $0xc0] sm:$0xf] }
 0x9ae   : > { %v6103_v35 = vpop.f32.mrf.mxu1 }
 0x9af   : > { %v6279_v45 = vadd.f32 %v6247_v48, %v4433_v31  ;;  %v6104_v13 = vadd.f32 %v6103_v35, %v6014_v44  ;;  %v15833_v31 = vld [vmem:[#allocation9 + $0xc4] sm:$0xf0]  ;;  %v17615_v26 = vpop.f32.mrf.mxu0 }
 0x9b0   : > { %v13881_v48 = vor.u32 %v15833_v31, %v13880_v52 }
 0x9b1   : > { %v17610_v6 = vpack.c.bf16 %v6279_v45, %v6278_v33  ;;  %v6182_v34 = vmul.f32 %v17584_v40, %v6104_v13  ;;  %6142 = vmatmul.bf16.gmra.mxu1 %v13861_v37  ;;  %v15828_v33 = vld [vmem:[#allocation9 + $0xa4] sm:$0xf]  ;;  %v13866_v37 = vld [vmem:[#allocation9 + $0xa8] sm:$0xf0]  ;;  %v4435_v45 = vmax.f32 %v4403_v11, 0.0  ;;  %v4370_v13 = vmul.f32 %v17580_v42, %v17531_v50 }
 0x9b2   : > { %6068 = vmatmul.bf16.gmra.mxu0 %v13881_v48 }
 0x9b3   : > { %19709 = vst [vmem:[#allocation46_spill] sm:$0xff] %v17610_v6  ;;  %v6216_v57 = vadd.f32 %v17588_v12, %v6182_v34  ;;  %v4404_v32 = vadd.f32 %v17586_v5, %v4370_v13  ;;  %v13874_v13 = vld [vmem:[#allocation9 + $0xb8] sm:$0xf0] }
 0x9b5   : > { %v6248_v17 = vmax.f32 %v6216_v57, 0.0  ;;  %v4436_v52 = vmax.f32 %v4404_v32, 0.0 }
 0x9b6   : > { %v6105_v19 = vpop.f32.mrf.mxu1 }
 0x9b7   : > { %v6280_v44 = vadd.f32 %v6248_v17, %v4434_v46  ;;  %v6106_v62 = vadd.f32 %v6105_v19, %v6016_v3  ;;  %v13869_v3 = vor.u32 %v15828_v33, %v13866_v37  ;;  %v17623_v46 = vpop.f32.mrf.mxu0  ;;  %v4297_v17 = vadd.f32 %v17535_v2, %v17533_v9  ;;  %v13888_v33 = vld [vmem:[#allocation9 + $0xd0] sm:$0xf]  ;;  %v15835_v37 = vld [vmem:[#allocation9 + $0xd4] sm:$0xf0] }
 0x9b8   : > { %v13889_v9 = vor.u32 %v15835_v37, %v13888_v33 }
 0x9b9   : > { %v6183_v16 = vmul.f32 %v17584_v40, %v6106_v62  ;;  %v4371_v31 = vmul.f32 %v17580_v42, %v4297_v17 }
 0x9bb   : > { %v6217_v35 = vadd.f32 %v17588_v12, %v6183_v16  ;;  %v4405_v2 = vadd.f32 %v17586_v5, %v4371_v31 }
 0x9bd   : > { %v6249_v54 = vmax.f32 %v6217_v35, 0.0 }
 0x9be   : > { %v6108_v61 = vpop.f32.mrf.mxu1 }
 0x9bf   : > { %v6281_v34 = vadd.f32 %v6249_v54, %v4435_v45  ;;  %v6109_v57 = vadd.f32 %v6108_v61, %v17578_v22  ;;  %v17634_v35 = vpop.f32.mrf.mxu0  ;;  %v15830_v45 = vld [vmem:[#allocation9 + $0xb4] sm:$0xf]  ;;  %v4372_v61 = vmul.f32 %v17580_v42, %v17540_v49 }
 0x9c1   : > { %v17628_v19 = vpack.c.bf16 %v6281_v34, %v6280_v44  ;;  %v6184_v62 = vmul.f32 %v17584_v40, %v6109_v57  ;;  %6147 = vmatmul.bf16.gmra.mxu1 %v13869_v3  ;;  %v4437_v3 = vmax.f32 %v4405_v2, 0.0  ;;  %v13896_v2 = vld [vmem:[#allocation9 + $0xe0] sm:$0xf] }
 0x9c2   : > { %6073 = vmatmul.bf16.gmra.mxu0 %v13889_v9 }
 0x9c3   : > { %19710 = vst [vmem:[#allocation47_spill] sm:$0xff] %v17628_v19  ;;  %v6218_v50 = vadd.f32 %v17588_v12, %v6184_v62 }
 0x9c5   : > { %v6250_v48 = vmax.f32 %v6218_v50, 0.0  ;;  %v4406_v50 = vadd.f32 %v17586_v5, %v4372_v61 }
 0x9c6   : > { %v6110_v11 = vpop.f32.mrf.mxu1 }
 0x9c7   : > { %v6282_v22 = vadd.f32 %v6250_v48, %v4436_v52  ;;  %v6111_v16 = vadd.f32 %v6110_v11, %v17590_v51  ;;  %v13877_v51 = vor.u32 %v15830_v45, %v13874_v13  ;;  %v17642_v62 = vpop.f32.mrf.mxu0  ;;  %v4302_v52 = vadd.f32 %v17546_v29, %v17544_v4  ;;  %v15832_v13 = vld [vmem:[#allocation9 + $0xc4] sm:$0xf] }
 0x9c8   : > { %v4438_v11 = vmax.f32 %v4406_v50, 0.0 }
 0x9c9   : > { %v6185_v44 = vmul.f32 %v17584_v40, %v6111_v16  ;;  %v4373_v16 = vmul.f32 %v17580_v42, %v4302_v52  ;;  %v4307_v52 = vadd.f32 %v17552_v15, %v17550_v36 }
 0x9cb   : > { %v6219_v54 = vadd.f32 %v17588_v12, %v6185_v44  ;;  %v15837_v44 = vld [vmem:[#allocation9 + $0xe4] sm:$0xf0]  ;;  %v4407_v29 = vadd.f32 %v17586_v5, %v4373_v16 }
 0x9cc   : > { %v13897_v4 = vor.u32 %v15837_v44, %v13896_v2  ;;  %v13904_v44 = vld [vmem:[#allocation9 + $0xf0] sm:$0xf] }
 0x9cd   : > { %v6251_v34 = vmax.f32 %v6219_v54, 0.0  ;;  %v13882_v54 = vld [vmem:[#allocation9 + $0xc8] sm:$0xf0]  ;;  %v4439_v61 = vmax.f32 %v4407_v29, 0.0 }
 0x9ce   : > { %v6113_v57 = vpop.f32.mrf.mxu1 }
 0x9cf   : > { %v6283_v32 = vadd.f32 %v6251_v34, %v4437_v3  ;;  %v6114_v17 = vadd.f32 %v6113_v57, %v17598_v21  ;;  %v17653_v45 = vpop.f32.mrf.mxu0  ;;  %v4374_v34 = vmul.f32 %v17580_v42, %v17548_v24 }
 0x9d1   : > { %v17647_v31 = vpack.c.bf16 %v6283_v32, %v6282_v22  ;;  %v6186_v48 = vmul.f32 %v17584_v40, %v6114_v17  ;;  %6152 = vmatmul.bf16.gmra.mxu1 %v13877_v51  ;;  %v4408_v50 = vadd.f32 %v17586_v5, %v4374_v34 }
 0x9d2   : > { %6078 = vmatmul.bf16.gmra.mxu0 %v13897_v4  ;;  %v15839_v4 = vld [vmem:[#allocation9 + $0xf4] sm:$0xf0] }
 0x9d3   : > { %19711 = vst [vmem:[#allocation48_spill] sm:$0xff] %v17647_v31  ;;  %v6220_v49 = vadd.f32 %v17588_v12, %v6186_v48  ;;  %v4440_v24 = vmax.f32 %v4408_v50, 0.0  ;;  %v13905_v29 = vor.u32 %v15839_v4, %v13904_v44  ;;  %v4376_v50 = vmul.f32 %v17580_v42, %v17554_v55 }
 0x9d5   : > { %v6252_v33 = vmax.f32 %v6220_v49, 0.0 }
 0x9d6   : > { %v6115_v37 = vpop.f32.mrf.mxu1 }
 0x9d7   : > { %v6284_v21 = vadd.f32 %v6252_v33, %v4438_v11  ;;  %v6116_v9 = vadd.f32 %v6115_v37, %v17605_v43  ;;  %v13885_v43 = vor.u32 %v15832_v13, %v13882_v54  ;;  %v6041_v11 = vpop.f32.mrf.mxu0  ;;  %v4375_v33 = vmul.f32 %v17580_v42, %v4307_v52 }
 0x9d9   : > { %v6187_v22 = vmul.f32 %v17584_v40, %v6116_v9  ;;  %v4409_v36 = vadd.f32 %v17586_v5, %v4375_v33 }
 0x9db   : > { %v6221_v3 = vadd.f32 %v17588_v12, %v6187_v22  ;;  %v13890_v22 = vld [vmem:[#allocation9 + $0xd8] sm:$0xf0] }
 0x9dd   : > { %v6253_v51 = vmax.f32 %v6221_v3, 0.0  ;;  %v4441_v3 = vmax.f32 %v4409_v36, 0.0 }
 0x9de   : > { %v6118_v57 = vpop.f32.mrf.mxu1 }
 0x9df   : > { %v6285_v32 = vadd.f32 %v6253_v51, %v4439_v61  ;;  %v6119_v17 = vadd.f32 %v6118_v57, %v17615_v26  ;;  %v6044_v54 = vpop.f32.mrf.mxu0  ;;  %v4312_v57 = vadd.f32 %v17558_v8, %v17556_v53 }
 0x9e1   : > { %v17664_v48 = vpack.c.bf16 %v6285_v32, %v6284_v21  ;;  %v6188_v49 = vmul.f32 %v17584_v40, %v6119_v17  ;;  %6157 = vmatmul.bf16.gmra.mxu1 %v13885_v43  ;;  %v15834_v21 = vld [vmem:[#allocation9 + $0xd4] sm:$0xf]  ;;  %v4377_v52 = vmul.f32 %v17580_v42, %v4312_v57 }
 0x9e2   : > { %6083 = vmatmul.bf16.gmra.mxu0 %v13905_v29  ;;  %v13893_v34 = vor.u32 %v15834_v21, %v13890_v22 }
 0x9e3   : > { %19712 = vst [vmem:[#allocation49_spill] sm:$0xff] %v17664_v48  ;;  %v6222_v16 = vadd.f32 %v17588_v12, %v6188_v49  ;;  %v4411_v53 = vadd.f32 %v17586_v5, %v4377_v52 }
 0x9e5   : > { %v6254_v37 = vmax.f32 %v6222_v16, 0.0  ;;  %v4443_v44 = vmax.f32 %v4411_v53, 0.0 }
 0x9e6   : > { %v6120_v9 = vpop.f32.mrf.mxu1 }
 0x9e7   : > { %v6286_v2 = vadd.f32 %v6254_v37, %v4440_v24  ;;  %v6121_v26 = vadd.f32 %v6120_v9, %v17623_v46  ;;  %v6046_v16 = vpop.f32.mrf.mxu0  ;;  %v15836_v37 = vld [vmem:[#allocation9 + $0xe4] sm:$0xf]  ;;  %v13898_v9 = vld [vmem:[#allocation9 + $0xe8] sm:$0xf0] }
 0x9e8   : > { %v13901_v29 = vor.u32 %v15836_v37, %v13898_v9 }
 0x9e9   : > { %v6189_v15 = vmul.f32 %v17584_v40, %v6121_v26 }
 0x9eb   : > { %v6223_v13 = vadd.f32 %v17588_v12, %v6189_v15 }
 0x9ed   : > { %v6255_v61 = vmax.f32 %v6223_v13, 0.0  ;;  %v4317_v13 = vadd.f32 %v17564_v18, %v17562_v1  ;;  %v15838_v18 = vld [vmem:[#allocation9 + $0xf4] sm:$0xf] }
 0x9ee   : > { %v6123_v51 = vpop.f32.mrf.mxu1 }
 0x9ef   : > { %v6287_v43 = vadd.f32 %v6255_v61, %v4441_v3  ;;  %v6124_v46 = vadd.f32 %v6123_v51, %v17634_v35  ;;  %v4410_v35 = vadd.f32 %v17586_v5, %v4376_v50  ;;  %v6049_v22 = vpop.f32.mrf.mxu0  ;;  %v4379_v51 = vmul.f32 %v17580_v42, %v4317_v13  ;;  %v13906_v50 = vld [vmem:[#allocation9 + $0xf8] sm:$0xf0] }
 0x9f0   : > { %v13909_v53 = vor.u32 %v15838_v18, %v13906_v50 }
 0x9f1   : > { %v17676_v32 = vpack.c.bf16 %v6287_v43, %v6286_v2  ;;  %6162 = vmatmul.bf16.gmra.mxu1 %v13893_v34  ;;  %v6190_v17 = vmul.f32 %v17584_v40, %v6124_v46  ;;  %v4442_v55 = vmax.f32 %v4410_v35, 0.0  ;;  %v4378_v34 = vmul.f32 %v17580_v42, %v17560_v25 }
 0x9f3   : > { %19713 = vst [vmem:[#allocation50_spill] sm:$0xff] %v17676_v32  ;;  %v6224_v24 = vadd.f32 %v17588_v12, %v6190_v17  ;;  %v4413_v17 = vadd.f32 %v17586_v5, %v4379_v51 }
 0x9f5   : > { %v6256_v2 = vmax.f32 %v6224_v24, 0.0  ;;  %v4445_v25 = vmax.f32 %v4413_v17, 0.0 }
 0x9f6   : > { %v6125_v49 = vpop.f32.mrf.mxu1 }
 0x9f7   : > { %v6126_v33 = vadd.f32 %v6125_v49, %v17642_v62  ;;  %v6288_v15 = vadd.f32 %v6256_v2, %v4442_v55  ;;  %v6051_v52 = vpop.f32.mrf.mxu0  ;;  %v4322_v2 = vadd.f32 %v17570_v20, %v17568_v0 }
 0x9f9   : > { %v6191_v8 = vmul.f32 %v17584_v40, %v6126_v33 }
 0x9fb   : > { %v6225_v26 = vadd.f32 %v17588_v12, %v6191_v8 }
 0x9fd   : > { %v6257_v4 = vmax.f32 %v6225_v26, 0.0 }
 0x9fe   : > { %v6128_v36 = vpop.f32.mrf.mxu1 }
 0x9ff   : > { %v6289_v21 = vadd.f32 %v6257_v4, %v4443_v44  ;;  %v6129_v62 = vadd.f32 %v6128_v36, %v17653_v45  ;;  %v4412_v45 = vadd.f32 %v17586_v5, %v4378_v34  ;;  %v6054_v44 = vpop.f32.mrf.mxu0  ;;  %v4380_v4 = vmul.f32 %v17580_v42, %v17566_v28 }
 0xa00   : > { %v4382_v28 = vmul.f32 %v17580_v42, %v17572_v59 }
 0xa01   : > { %v17691_v3 = vpack.c.bf16 %v6289_v21, %v6288_v15  ;;  %6167 = vmatmul.bf16.gmra.mxu1 %v13901_v29  ;;  %v6192_v61 = vmul.f32 %v17584_v40, %v6129_v62  ;;  %v4444_v33 = vmax.f32 %v4412_v45, 0.0  ;;  %v4381_v29 = vmul.f32 %v17580_v42, %v4322_v2 }
 0xa02   : > { %v4416_v17 = vadd.f32 %v17586_v5, %v4382_v28 }
 0xa03   : > { %19714 = vst [vmem:[#allocation51_spill] sm:$0xff] %v17691_v3  ;;  %v6226_v46 = vadd.f32 %v17588_v12, %v6192_v61  ;;  %v4415_v62 = vadd.f32 %v17586_v5, %v4381_v29 }
 0xa04   : > { %v4448_v59 = vmax.f32 %v4416_v17, 0.0 }
 0xa05   : > { %v6258_v49 = vmax.f32 %v6226_v46, 0.0  ;;  %v4447_v34 = vmax.f32 %v4415_v62, 0.0 }
 0xa06   : > { %v6130_v43 = vpop.f32.mrf.mxu1 }
 0xa07   : > { %v6131_v57 = vadd.f32 %v6130_v43, %v6041_v11  ;;  %v6290_v37 = vadd.f32 %v6258_v49, %v4444_v33  ;;  %v17717_v46 = vpop.f32.mrf.mxu0 }
 0xa09   : > { %v6193_v1 = vmul.f32 %v17584_v40, %v6131_v57 }
 0xa0b   : > { %v6227_v24 = vadd.f32 %v17588_v12, %v6193_v1  ;;  %v4327_v1 = vadd.f32 %v17576_v27, %v17574_v38  ;;  %v4330_v27 = vadd.f32 %v17436_v58, %v17424_v41 }
 0xa0d   : > { %v6259_v35 = vmax.f32 %v6227_v24, 0.0  ;;  %v4383_v24 = vmul.f32 %v17580_v42, %v4327_v1 }
 0xa0e   : > { %v6133_v8 = vpop.f32.mrf.mxu1 }
 0xa0f   : > { %v6291_v9 = vadd.f32 %v6259_v35, %v4445_v25  ;;  %v6134_v11 = vadd.f32 %v6133_v8, %v6044_v54  ;;  %v4414_v54 = vadd.f32 %v17586_v5, %v4380_v4  ;;  %v6059_v38 = vpop.f32.mrf.mxu0 }
 0xa11   : > { %v17704_v26 = vpack.c.bf16 %v6291_v9, %v6290_v37  ;;  %6172 = vmatmul.bf16.gmra.mxu1 %v13909_v53  ;;  %v6194_v55 = vmul.f32 %v17584_v40, %v6134_v11  ;;  %v4446_v61 = vmax.f32 %v4414_v54, 0.0  ;;  %v4417_v53 = vadd.f32 %v17586_v5, %v4383_v24 }
 0xa13   : > { %19715 = vst [vmem:[#allocation52_spill] sm:$0xff] %v17704_v26  ;;  %v6228_v15 = vadd.f32 %v17588_v12, %v6194_v55  ;;  %v4449_v9 = vmax.f32 %v4417_v53, 0.0 }
 0xa15   : > { %v6260_v20 = vmax.f32 %v6228_v15, 0.0 }
 0xa16   : > { %v6135_v36 = vpop.f32.mrf.mxu1 }
 0xa17   : > { %v6136_v21 = vadd.f32 %v6135_v36, %v6046_v16  ;;  %v6292_v57 = vadd.f32 %v6260_v20, %v4446_v61  ;;  %v17745_v36 = vpop.f32.mrf.mxu0  ;;  %v14040_v20 = vld [vmem:[#allocation11 + $0x100] sm:$0xf] }
 0xa18   : > { %v13912_v61 = vld [vmem:[#allocation11] sm:$0xf] }
 0xa19   : > { %v6195_v0 = vmul.f32 %v17584_v40, %v6136_v21 }
 0xa1b   : > { %v6229_v13 = vadd.f32 %v17588_v12, %v6195_v0  ;;  %v4335_v0 = vadd.f32 %v17443_v7, %v17429_v23 }
 0xa1d   : > { %v6261_v51 = vmax.f32 %v6229_v13, 0.0  ;;  %v15881_v13 = vld [vmem:[#allocation11 + $0x104] sm:$0xf0] }
 0xa1e   : > { %v6138_v43 = vpop.f32.mrf.mxu1 }
 0xa1f   : > { %v6293_v16 = vadd.f32 %v6261_v51, %v4447_v34  ;;  %v6139_v45 = vadd.f32 %v6138_v43, %v6049_v22  ;;  %v15841_v34 = vld [vmem:[#allocation11 + $0x4] sm:$0xf0]  ;;  %v6064_v28 = vpop.f32.mrf.mxu0  ;;  %v4386_v51 = vmul.f32 %v17580_v42, %v4335_v0  ;;  %v13928_v0 = vld [vmem:[#allocation11 + $0x20] sm:$0xf] }
 0xa21   : > { %v17722_v18 = vpack.c.bf16 %v6293_v16, %v6292_v57  ;;  %v6196_v50 = vmul.f32 %v17584_v40, %v6139_v45  ;;  %v14041_v57 = vor.u32 %v15881_v13, %v14040_v20  ;;  %v13913_v16 = vor.u32 %v15841_v34, %v13912_v61  ;;  %v15845_v20 = vld [vmem:[#allocation11 + $0x24] sm:$0xf0] }
 0xa22   : > { %v4420_v23 = vadd.f32 %v17586_v5, %v4386_v51 }
 0xa23   : > { %19716 = vst [vmem:[#allocation53_spill] sm:$0xff] %v17722_v18  ;;  %v6230_v49 = vadd.f32 %v17588_v12, %v6196_v50  ;;  %6518 = vmatpush.bf16.msrb.mxu3 %v17722_v18  ;;  %6922 = vmatpush.bf16.msrb.mxu0 %v17722_v18 }
 0xa24   : > { %v4452_v1 = vmax.f32 %v4420_v23, 0.0 }
 0xa25   : > { %v6262_v33 = vmax.f32 %v6230_v49, 0.0 }
 0xa26   : > { %v6140_v22 = vpop.f32.mrf.mxu1 }
 0xa27   : > { %v6294_v25 = vadd.f32 %v6262_v33, %v4448_v59  ;;  %v6141_v35 = vadd.f32 %v6140_v22, %v6051_v52  ;;  %6519 = vmatpush.bf16.msrb.mxu3 %v17704_v26  ;;  %6923 = vmatpush.bf16.msrb.mxu0 %v17704_v26  ;;  %v4384_v52 = vmul.f32 %v17580_v42, %v4330_v27  ;;  %v17770_v59 = vpop.f32.mrf.mxu0  ;;  %v14048_v22 = vld [vmem:[#allocation11 + $0x110] sm:$0xf] }
 0xa28   : > { %v4340_v33 = vadd.f32 %v17450_v39, %v17438_v30 }
 0xa29   : > { %v6197_v8 = vmul.f32 %v17584_v40, %v6141_v35  ;;  %v4418_v41 = vadd.f32 %v17586_v5, %v4384_v52  ;;  %v13920_v35 = vld [vmem:[#allocation11 + $0x10] sm:$0xf] }
 0xa2a   : > { %v4388_v27 = vmul.f32 %v17580_v42, %v4340_v33  ;;  %v15847_v33 = vld [vmem:[#allocation11 + $0x34] sm:$0xf0] }
 0xa2b   : > { %v6231_v37 = vadd.f32 %v17588_v12, %v6197_v8  ;;  %6520 = vmatpush.bf16.msrb.mxu3 %v17691_v3  ;;  %6924 = vmatpush.bf16.msrb.mxu0 %v17691_v3  ;;  %v4450_v21 = vmax.f32 %v4418_v41, 0.0 }
 0xa2d   : > { %v6263_v11 = vmax.f32 %v6231_v37, 0.0 }
 0xa2e   : > { %v6143_v2 = vpop.f32.mrf.mxu1 }
 0xa2f   : > { %v6295_v55 = vadd.f32 %v6263_v11, %v4449_v9  ;;  %v6144_v4 = vadd.f32 %v6143_v2, %v6054_v44  ;;  %6521 = vmatpush.bf16.msrb.mxu3 %v17676_v32  ;;  %6925 = vmatpush.bf16.msrb.mxu0 %v17676_v32  ;;  %v6069_v9 = vpop.f32.mrf.mxu0  ;;  %v4422_v11 = vadd.f32 %v17586_v5, %v4388_v27 }
 0xa31   : > { %v17742_v58 = vpack.c.bf16 %v6295_v55, %v6294_v25  ;;  %v6198_v29 = vmul.f32 %v17584_v40, %v6144_v4  ;;  %v15883_v25 = vld [vmem:[#allocation11 + $0x114] sm:$0xf0]  ;;  %v4454_v39 = vmax.f32 %v4422_v11, 0.0 }
 0xa32   : > { %v14049_v8 = vor.u32 %v15883_v25, %v14048_v22 }
 0xa33   : > { %19717 = vst [vmem:[#allocation54_spill] sm:$0xff] %v17742_v58  ;;  %v6232_v15 = vadd.f32 %v17588_v12, %v6198_v29  ;;  %6522 = vmatpush.bf16.msrb.mxu3 %v17664_v48  ;;  %6926 = vmatpush.bf16.msrb.mxu0 %v17664_v48  ;;  %v4345_v29 = vadd.f32 %v17459_v10, %v17452_v47 }
 0xa35   : > { %v6264_v44 = vmax.f32 %v6232_v15, 0.0  ;;  %v4390_v13 = vmul.f32 %v17580_v42, %v4345_v29  ;;  %v14080_v29 = vld [vmem:[#allocation11 + $0x150] sm:$0xf] }
 0xa36   : > { %v17750_v54 = vpop.f32.mrf.mxu1 }
 0xa37   : > { %v17752_v62 = vadd.f32 %v6264_v44, %v4450_v21  ;;  %6523 = vmatpush.bf16.msrb.mxu3 %v17647_v31  ;;  %6927 = vmatpush.bf16.msrb.mxu0 %v17647_v31  ;;  %v17791_v15 = vpop.f32.mrf.mxu0  ;;  %v14056_v21 = vld [vmem:[#allocation11 + $0x120] sm:$0xf]  ;;  %v15885_v44 = vld [vmem:[#allocation11 + $0x124] sm:$0xf0] }
 0xa38   : > { %v14057_v34 = vor.u32 %v15885_v44, %v14056_v21  ;;  %v15891_v21 = vld [vmem:[#allocation11 + $0x154] sm:$0xf0]  ;;  %v13952_v44 = vld [vmem:[#allocation11 + $0x50] sm:$0xf] }
 0xa3b   : > { %6524 = vmatpush.bf16.msrb.mxu3 %v17628_v19  ;;  %6928 = vmatpush.bf16.msrb.mxu0 %v17628_v19 }
 0xa3e   : > { %v6148_v43 = vpop.f32.mrf.mxu1 }
 0xa3f   : > { %v6149_v45 = vadd.f32 %v6148_v43, %v6059_v38  ;;  %6525 = vmatpush.bf16.msrb.mxu3 %v17610_v6  ;;  %6929 = vmatpush.bf16.msrb.mxu0 %v17610_v6  ;;  %v15843_v38 = vld [vmem:[#allocation11 + $0x14] sm:$0xf0]  ;;  %v4424_v43 = vadd.f32 %v17586_v5, %v4390_v13  ;;  %v6074_v10 = vpop.f32.mrf.mxu0 }
 0xa40   : > { %v13921_v37 = vor.u32 %v15843_v38, %v13920_v35 }
 0xa41   : > { %v6200_v7 = vmul.f32 %v17584_v40, %v6149_v45 }
 0xa42   : > { %6930 = vmatmul.bf16.vlgmr.msrb.gmra.mxu0 %v14041_v57  ;;  %6526 = vmatmul.bf16.vlgmr.msrb.gmra.mxu3 %v13913_v16  ;;  %v4456_v16 = vmax.f32 %v4424_v43, 0.0  ;;  %v4362_v43 = vadd.f32 %v17487_v63, %v17485_v14  ;;  %v19722_v14 = vld [vmem:[#allocation36_spill] sm:$0xff]  ;;  %v19723_v63 = vld [vmem:[#allocation38_spill] sm:$0xff] }
 0xa43   : > { %7600 = vmatpush.bf16.msra.mxu0 %v17722_v18  ;;  %v6234_v17 = vadd.f32 %v17588_v12, %v6200_v7 }
 0xa45   : > { %v6266_v50 = vmax.f32 %v6234_v17, 0.0  ;;  %v14064_v17 = vld [vmem:[#allocation11 + $0x130] sm:$0xf] }
 0xa46   : > { %v17768_v49 = vpop.f32.mrf.mxu1 }
 0xa47   : > { %7601 = vmatpush.bf16.msra.mxu0 %v17704_v26  ;;  %v17772_v24 = vadd.f32 %v6266_v50, %v4452_v1  ;;  %v15887_v1 = vld [vmem:[#allocation11 + $0x134] sm:$0xf0]  ;;  %v13936_v50 = vld [vmem:[#allocation11 + $0x30] sm:$0xf]  ;;  %v6076_v22 = vpop.f32.mrf.mxu0 }
 0xa48   : > { %v14065_v35 = vor.u32 %v15887_v1, %v14064_v17  ;;  %v13937_v38 = vor.u32 %v15847_v33, %v13936_v50  ;;  %v19720_v50 = vld [vmem:[#allocation42_spill] sm:$0xff]  ;;  %v19721_v33 = vld [vmem:[#allocation43_spill] sm:$0xff] }
 0xa4b   : > { %7602 = vmatpush.bf16.msra.mxu0 %v17691_v3 }
 0xa4e   : > { %v6153_v53 = vpop.f32.mrf.mxu1 }
 0xa4f   : > { %7603 = vmatpush.bf16.msra.mxu0 %v17676_v32  ;;  %v6154_v52 = vadd.f32 %v6153_v53, %v6064_v28  ;;  %v13929_v28 = vor.u32 %v15845_v20, %v13928_v0  ;;  %v6079_v53 = vpop.f32.mrf.mxu0  ;;  %v15851_v0 = vld [vmem:[#allocation11 + $0x54] sm:$0xf0] }
 0xa51   : > { %v6202_v2 = vmul.f32 %v17584_v40, %v6154_v52  ;;  %v13944_v52 = vld [vmem:[#allocation11 + $0x40] sm:$0xf] }
 0xa52   : > { %6935 = vmatmul.bf16.gmra.mxu0 %v14049_v8  ;;  %6531 = vmatmul.bf16.gmra.mxu3 %v13921_v37  ;;  %v14072_v8 = vld [vmem:[#allocation11 + $0x140] sm:$0xf]  ;;  %v15889_v37 = vld [vmem:[#allocation11 + $0x144] sm:$0xf0] }
 0xa53   : > { %7604 = vmatpush.bf16.msra.mxu0 %v17664_v48  ;;  %v6236_v30 = vadd.f32 %v17588_v12, %v6202_v2  ;;  %v14073_v2 = vor.u32 %v15889_v37, %v14072_v8  ;;  %v4397_v8 = vmul.f32 %v17580_v42, %v4362_v43  ;;  %v4347_v37 = vadd.f32 %v19723_v63, %v19722_v14 }
 0xa55   : > { %v6268_v55 = vmax.f32 %v6236_v30, 0.0 }
 0xa56   : > { %v17784_v4 = vpop.f32.mrf.mxu1 }
 0xa57   : > { %7605 = vmatpush.bf16.msra.mxu0 %v17647_v31  ;;  %v17786_v41 = vadd.f32 %v6268_v55, %v4454_v39  ;;  %v6081_v39 = vpop.f32.mrf.mxu0  ;;  %v6156_v14 = vadd.f32 %v17784_v4, %v17770_v59  ;;  %v6151_v59 = vadd.f32 %v17768_v49, %v17745_v36 }
 0xa59   : > { %v6203_v4 = vmul.f32 %v17584_v40, %v6156_v14 }
 0xa5b   : > { %7606 = vmatpush.bf16.msra.mxu0 %v17628_v19 }
 0xa5e   : > { %v6158_v61 = vpop.f32.mrf.mxu1 }
 0xa5f   : > { %7607 = vmatpush.bf16.msra.mxu0 %v17610_v6  ;;  %v6159_v51 = vadd.f32 %v6158_v61, %v6069_v9  ;;  %v15849_v9 = vld [vmem:[#allocation11 + $0x44] sm:$0xf0]  ;;  %v6084_v20 = vpop.f32.mrf.mxu0  ;;  %v14081_v61 = vor.u32 %v15891_v21, %v14080_v29 }
 0xa60   : > { %v13945_v30 = vor.u32 %v15849_v9, %v13944_v52  ;;  %v19724_v52 = vld [vmem:[#allocation37_spill] sm:$0xff]  ;;  %v19725_v9 = vld [vmem:[#allocation39_spill] sm:$0xff] }
 0xa61   : > { %v6204_v57 = vmul.f32 %v17584_v40, %v6159_v51  ;;  %v4360_v51 = vadd.f32 %v17482_v56, %v17480_v60 }
 0xa62   : > { %6940 = vmatmul.bf16.gmra.mxu0 %v14057_v34  ;;  %6536 = vmatmul.bf16.gmra.mxu3 %v13929_v28  ;;  %v13953_v34 = vor.u32 %v15851_v0, %v13952_v44  ;;  %v19728_v0 = vld [vmem:[#allocation33_spill] sm:$0xff] }
 0xa63   : > { %v6238_v47 = vadd.f32 %v17588_v12, %v6204_v57 }
 0xa65   : > { %v6270_v45 = vmax.f32 %v6238_v47, 0.0  ;;  %v19718_v47 = vld [vmem:[#allocation44_spill] sm:$0xff] }
 0xa66   : > { %v6160_v23 = vpop.f32.mrf.mxu1 }
 0xa67   : > { %v17798_v7 = vadd.f32 %v6270_v45, %v4456_v16  ;;  %v19719_v16 = vld [vmem:[#allocation45_spill] sm:$0xff] }
 0xa68   : > { %v4357_v45 = vadd.f32 %v19719_v16, %v19718_v47 }
 0xa6e   : > { %v6163_v25 = vpop.f32.mrf.mxu1 }
 0xa6f   : > { %v6164_v21 = vadd.f32 %v6163_v25, %v6074_v10 }
 0xa72   : > { %6945 = vmatmul.bf16.gmra.mxu0 %v14065_v35  ;;  %6541 = vmatmul.bf16.gmra.mxu3 %v13937_v38  ;;  %v4355_v35 = vadd.f32 %v19721_v33, %v19720_v50  ;;  %v4396_v38 = vmul.f32 %v17580_v42, %v4360_v51  ;;  %v6161_v51 = vadd.f32 %v6160_v23, %v17791_v15 }
 0xa73   : > { %v6206_v50 = vmul.f32 %v17584_v40, %v6164_v21 }
 0xa74   : > { %v6205_v63 = vmul.f32 %v17584_v40, %v6161_v51 }
 0xa76   : > { %v6165_v27 = vpop.f32.mrf.mxu1 }
 0xa77   : > { %v6166_v60 = vadd.f32 %v6165_v27, %v6076_v22 }
 0xa79   : > { %v6207_v43 = vmul.f32 %v17584_v40, %v6166_v60 }
 0xa7e   : > { %v6168_v11 = vpop.f32.mrf.mxu1 }
 0xa7f   : > { %v6169_v17 = vadd.f32 %v6168_v11, %v6079_v53  ;;  %v19727_v53 = vld [vmem:[#allocation41_spill] sm:$0xff] }
 0xa81   : > { %v6208_v44 = vmul.f32 %v17584_v40, %v6169_v17  ;;  %v14088_v17 = vld [vmem:[#allocation11 + $0x160] sm:$0xf] }
 0xa82   : > { %6950 = vmatmul.bf16.gmra.mxu0 %v14073_v2  ;;  %6546 = vmatmul.bf16.gmra.mxu3 %v13945_v30  ;;  %v4350_v2 = vadd.f32 %v19725_v9, %v19724_v52  ;;  %v19726_v30 = vld [vmem:[#allocation40_spill] sm:$0xff] }
 0xa83   : > { %v4352_v11 = vadd.f32 %v19727_v53, %v19726_v30  ;;  %v6242_v15 = vadd.f32 %v17588_v12, %v6208_v44 }
 0xa84   : > { %v4392_v47 = vmul.f32 %v17580_v42, %v4350_v2 }
 0xa85   : > { %v4393_v16 = vmul.f32 %v17580_v42, %v4352_v11 }
 0xa86   : > { %v6170_v55 = vpop.f32.mrf.mxu1  ;;  %v4426_v44 = vadd.f32 %v17586_v5, %v4392_v47 }
 0xa87   : > { %v6171_v57 = vadd.f32 %v6170_v55, %v6081_v39  ;;  %v4395_v39 = vmul.f32 %v17580_v42, %v4357_v45  ;;  %v6086_v55 = vpop.f32.mrf.mxu0  ;;  %v4427_v2 = vadd.f32 %v17586_v5, %v4393_v16  ;;  %v6146_v16 = vadd.f32 %v17750_v54, %v17717_v46 }
 0xa88   : > { %v4458_v49 = vmax.f32 %v4426_v44, 0.0 }
 0xa89   : > { %v6209_v56 = vmul.f32 %v17584_v40, %v6171_v57  ;;  %v4391_v57 = vmul.f32 %v17580_v42, %v4347_v37  ;;  %v4429_v45 = vadd.f32 %v17586_v5, %v4395_v39  ;;  %v6241_v37 = vadd.f32 %v17588_v12, %v6207_v43 }
 0xa8a   : > { %v6240_v39 = vadd.f32 %v17588_v12, %v6206_v50  ;;  %v6199_v46 = vmul.f32 %v17584_v40, %v6146_v16  ;;  %v15877_v16 = vld [vmem:[#allocation12 + $0x9a8] sm:$0xff] }
 0xa8b   : > { %v6243_v10 = vadd.f32 %v17588_v12, %v6209_v56  ;;  %v4461_v30 = vmax.f32 %v4429_v45, 0.0  ;;  %v6201_v45 = vmul.f32 %v17584_v40, %v6151_v59 }
 0xa8c   : > { %v6272_v47 = vmax.f32 %v6240_v39, 0.0 }
 0xa8d   : > { %v6275_v52 = vmax.f32 %v6243_v10, 0.0  ;;  %v4425_v10 = vadd.f32 %v17586_v5, %v4391_v57  ;;  %v6235_v54 = vadd.f32 %v17588_v12, %v6201_v45 }
 0xa8e   : > { %v6173_v13 = vpop.f32.mrf.mxu1 }
 0xa8f   : > { %v6174_v28 = vadd.f32 %v6173_v13, %v6084_v20  ;;  %v19729_v20 = vld [vmem:[#allocation35_spill] sm:$0xff] }
 0xa90   : > { %v4342_v13 = vadd.f32 %v19729_v20, %v19728_v0  ;;  %v6273_v0 = vmax.f32 %v6241_v37, 0.0  ;;  %v6307_v20 = vadd.f32 %v6275_v52, %v4461_v30  ;;  %v14096_v37 = vld [vmem:[#allocation11 + $0x170] sm:$0xf]  ;;  %v15855_v30 = vld [vmem:[#allocation11 + $0x74] sm:$0xf0] }
 0xa91   : > { %v6210_v1 = vmul.f32 %v17584_v40, %v6174_v28  ;;  %v4431_v28 = vadd.f32 %v17586_v5, %v4397_v8 }
 0xa92   : > { %6955 = vmatmul.bf16.gmra.mxu0 %v14081_v61  ;;  %6551 = vmatmul.bf16.gmra.mxu3 %v13953_v34  ;;  %v4394_v61 = vmul.f32 %v17580_v42, %v4355_v35  ;;  %v4430_v34 = vadd.f32 %v17586_v5, %v4396_v38  ;;  %v13960_v35 = vld [vmem:[#allocation11 + $0x60] sm:$0xf]  ;;  %v15853_v38 = vld [vmem:[#allocation11 + $0x64] sm:$0xf0]  ;;  %v4389_v43 = vmul.f32 %v17580_v42, %v4342_v13 }
 0xa93   : > { %v6244_v22 = vadd.f32 %v17588_v12, %v6210_v1  ;;  %v15893_v1 = vld [vmem:[#allocation11 + $0x164] sm:$0xf0]  ;;  %v4463_v56 = vmax.f32 %v4431_v28, 0.0  ;;  %v13961_v11 = vor.u32 %v15853_v38, %v13960_v35  ;;  %v19731_v28 = vld [vmem:[#allocation34_spill] sm:$0xff]  ;;  %v6237_v13 = vadd.f32 %v17588_v12, %v6203_v4 }
 0xa94   : > { %v4428_v8 = vadd.f32 %v17586_v5, %v4394_v61  ;;  %v4462_v60 = vmax.f32 %v4430_v34, 0.0  ;;  %v14089_v53 = vor.u32 %v15893_v1, %v14088_v17  ;;  %v19730_v34 = vld [vmem:[#allocation31_spill] sm:$0xff]  ;;  %v4423_v50 = vadd.f32 %v17586_v5, %v4389_v43  ;;  %v13976_v43 = vld [vmem:[#allocation11 + $0x80] sm:$0xf] }
 0xa95   : > { %v6276_v23 = vmax.f32 %v6244_v22, 0.0  ;;  %v4337_v51 = vadd.f32 %v19731_v28, %v19730_v34  ;;  %v4457_v38 = vmax.f32 %v4425_v10, 0.0  ;;  %v14104_v34 = vld [vmem:[#allocation11 + $0x180] sm:$0xf]  ;;  %v15897_v28 = vld [vmem:[#allocation11 + $0x184] sm:$0xf0] }
 0xa96   : > { %v6175_v29 = vpop.f32.mrf.mxu1  ;;  %v4460_v22 = vmax.f32 %v4428_v8, 0.0  ;;  %v6304_v8 = vadd.f32 %v6272_v47, %v4458_v49  ;;  %v15857_v10 = vld [vmem:[#allocation11 + $0x84] sm:$0xf0]  ;;  %v14105_v47 = vor.u32 %v15897_v28, %v14104_v34  ;;  %v15878_v49 = vld [vmem:[#allocation12 + $0x9b0] sm:$0xff]  ;;  %v13938_v28 = vld [vmem:[#allocation11 + $0x38] sm:$0xf0] }
 0xa97   : > { %v6176_v27 = vadd.f32 %v6175_v29, %v6086_v55  ;;  %v6274_v55 = vmax.f32 %v6242_v15, 0.0  ;;  %v6308_v29 = vadd.f32 %v6276_v23, %v4462_v60  ;;  %v19732_v15 = vld [vmem:[#allocation30_spill] sm:$0xff]  ;;  %v19733_v23 = vld [vmem:[#allocation32_spill] sm:$0xff]  ;;  %v4387_v35 = vmul.f32 %v17580_v42, %v4337_v51  ;;  %v14042_v51 = vld [vmem:[#allocation11 + $0x108] sm:$0xf0] }
 0xa98   : > { %v6269_v60 = vmax.f32 %v6237_v13, 0.0  ;;  %v15876_v13 = vld [vmem:[#allocation12 + $0x9a0] sm:$0xff]  ;;  %v15846_v34 = vld [vmem:[#allocation11 + $0x34] sm:$0xf] }
 0xa99   : > { %v6211_v25 = vmul.f32 %v17584_v40, %v6176_v27  ;;  %v6239_v27 = vadd.f32 %v17588_v12, %v6205_v63  ;;  %v6306_v36 = vadd.f32 %v6274_v55, %v4460_v22  ;;  %v4455_v63 = vmax.f32 %v4423_v50, 0.0  ;;  %v13968_v40 = vld [vmem:[#allocation11 + $0x70] sm:$0xf]  ;;  %v13922_v50 = vld [vmem:[#allocation11 + $0x18] sm:$0xf0] }
 0xa9b   : > { %v6245_v33 = vadd.f32 %v17588_v12, %v6211_v25  ;;  %v4459_v25 = vmax.f32 %v4427_v2, 0.0  ;;  %v6271_v17 = vmax.f32 %v6239_v27, 0.0  ;;  %v17862_v57 = vpack.c.bf16 %v6307_v20, %v6306_v36  ;;  %v15895_v2 = vld [vmem:[#allocation11 + $0x174] sm:$0xf0]  ;;  %v13914_v20 = vld [vmem:[#allocation11 + $0x8] sm:$0xf0] }
 0xa9c   : > { %v6301_v39 = vadd.f32 %v6269_v60, %v4455_v63  ;;  %v15879_v27 = vld [vmem:[#allocation12 + $0x9b8] sm:$0xff]  ;;  %v13977_v36 = vor.u32 %v15857_v10, %v13976_v43  ;;  %v15886_v10 = vld [vmem:[#allocation11 + $0x134] sm:$0xf] }
 0xa9d   : > { %v6277_v9 = vmax.f32 %v6245_v33, 0.0  ;;  %v6305_v1 = vadd.f32 %v6273_v0, %v4459_v25  ;;  %v4332_v33 = vadd.f32 %v19733_v23, %v19732_v15  ;;  %v15840_v0 = vld [vmem:[#allocation11 + $0x4] sm:$0xf]  ;;  %v14112_v15 = vld [vmem:[#allocation11 + $0x190] sm:$0xf] }
 0xa9e   : > { %v13917_v25 = vor.u32 %v15840_v0, %v13914_v20  ;;  %v15899_v23 = vld [vmem:[#allocation11 + $0x194] sm:$0xf0] }
 0xa9f   : > { %v6309_v21 = vadd.f32 %v6277_v9, %v4463_v56  ;;  %v6303_v56 = vadd.f32 %v6271_v17, %v4457_v38  ;;  %v17873_v14 = vpack.c.bf16 %v6305_v1, %v6304_v8  ;;  %v4385_v52 = vmul.f32 %v17580_v42, %v4332_v33  ;;  %v15875_v17 = vld [vmem:[#allocation12 + $0x998] sm:$0xff]  ;;  %v15842_v1 = vld [vmem:[#allocation11 + $0x14] sm:$0xf]  ;;  %v13984_v38 = vld [vmem:[#allocation11 + $0x90] sm:$0xf] }
 0xaa0   : > { %v4421_v9 = vadd.f32 %v17586_v5, %v4387_v35  ;;  %v13969_v42 = vor.u32 %v15855_v30, %v13968_v40  ;;  %v15882_v33 = vld [vmem:[#allocation11 + $0x114] sm:$0xf]  ;;  %v14050_v35 = vld [vmem:[#allocation11 + $0x118] sm:$0xf0]  ;;  %v15859_v8 = vld [vmem:[#allocation11 + $0x94] sm:$0xf0]  ;;  %v14113_v60 = vor.u32 %v15899_v23, %v14112_v15 }
 0xaa1   : > { %v17849_v61 = vpack.c.bf16 %v6309_v21, %v6308_v29  ;;  %v17882_v55 = vpack.c.bf16 %v6303_v56, %v17798_v7  ;;  %v14097_v29 = vor.u32 %v15895_v2, %v14096_v37  ;;  %v4419_v21 = vadd.f32 %v17586_v5, %v4385_v52  ;;  %v15874_v37 = vld [vmem:[#allocation12 + $0x990] sm:$0xff]  ;;  %v15873_v52 = vld [vmem:[#allocation12 + $0x988] sm:$0xff]  ;;  %v15872_v2 = vld [vmem:[#allocation12 + $0x980] sm:$0xff] }
 0xaa2   : > { %6960 = vmatmul.bf16.gmra.mxu0 %v14089_v53  ;;  %6556 = vmatmul.bf16.gmra.mxu3 %v13961_v11  ;;  %v6233_v53 = vadd.f32 %v17588_v12, %v6199_v46  ;;  %v6267_v11 = vmax.f32 %v6235_v54, 0.0  ;;  %v4453_v44 = vmax.f32 %v4421_v9, 0.0  ;;  %v17889_v12 = vpack.c.bf16 %v6301_v39, %v17786_v41  ;;  %v15844_v30 = vld [vmem:[#allocation11 + $0x24] sm:$0xf]  ;;  %v15901_v39 = vld [vmem:[#allocation11 + $0x1a4] sm:$0xf0] }
 0xaa3   : > { %6607 = vmatpush.bf16.msrb.mxu2 %v17849_v61  ;;  %7011 = vmatpush.bf16.msra.mxu1 %v17849_v61  ;;  %v4451_v7 = vmax.f32 %v4419_v21, 0.0  ;;  %v13925_v54 = vor.u32 %v15842_v1, %v13922_v50  ;;  %v14053_v56 = vor.u32 %v15882_v33, %v14050_v35  ;;  %v13985_v63 = vor.u32 %v15859_v8, %v13984_v38  ;;  %v13992_v21 = vld [vmem:[#allocation11 + $0xa0] sm:$0xf]  ;;  %v15903_v43 = vld [vmem:[#allocation11 + $0x1b4] sm:$0xf0]  ;;  %v15918_v15 = vld [vmem:[#allocation12 + $0x9f0] sm:$0xff] }
 0xaa4   : > { %8262 = vmatpush.bf16.msrb.mxu0 %v17849_v61  ;;  %v6265_v22 = vmax.f32 %v6233_v53, 0.0  ;;  %v6299_v59 = vadd.f32 %v6267_v11, %v4453_v44  ;;  %v13930_v53 = vld [vmem:[#allocation11 + $0x28] sm:$0xf0]  ;;  %v14120_v11 = vld [vmem:[#allocation11 + $0x1a0] sm:$0xf]  ;;  %v15919_v1 = vld [vmem:[#allocation12 + $0x9f8] sm:$0xff] }
 0xaa5   : > { %v15861_v44 = vld [vmem:[#allocation11 + $0xa4] sm:$0xf0]  ;;  %7181 = vmatpush.bf16.msra.mxu3 %v15919_v1  ;;  %v15848_v35 = vld [vmem:[#allocation11 + $0x44] sm:$0xf]  ;;  %v13946_v38 = vld [vmem:[#allocation11 + $0x48] sm:$0xf0] }
 0xaa6   : > { %v6297_v5 = vadd.f32 %v6265_v22, %v4451_v7  ;;  %v17895_v4 = vpack.c.bf16 %v6299_v59, %v17772_v24  ;;  %v15880_v24 = vld [vmem:[#allocation11 + $0x104] sm:$0xf]  ;;  %v13933_v59 = vor.u32 %v15844_v30, %v13930_v53  ;;  %v14121_v7 = vor.u32 %v15901_v39, %v14120_v11  ;;  %v15917_v33 = vld [vmem:[#allocation12 + $0x9e8] sm:$0xff]  ;;  %v14136_v8 = vld [vmem:[#allocation11 + $0x1c0] sm:$0xf] }
 0xaa7   : > { %6608 = vmatpush.bf16.msrb.mxu2 %v17862_v57  ;;  %7012 = vmatpush.bf16.msra.mxu1 %v17862_v57  ;;  %v13949_v53 = vor.u32 %v15848_v35, %v13946_v38  ;;  %v15958_v35 = vld [vmem:[#allocation12 + $0xa30] sm:$0xff] }
 0xaa8   : > { %8263 = vmatpush.bf16.msrb.mxu0 %v17862_v57  ;;  %v17901_v41 = vpack.c.bf16 %v6297_v5, %v17752_v62  ;;  %v14045_v62 = vor.u32 %v15880_v24, %v14042_v51  ;;  %v14128_v51 = vld [vmem:[#allocation11 + $0x1b0] sm:$0xf] }
 0xaa9   : > { %7182 = vmatpush.bf16.msra.mxu3 %v15918_v15 }
 0xaab   : > { %6609 = vmatpush.bf16.msrb.mxu2 %v17873_v14  ;;  %7013 = vmatpush.bf16.msra.mxu1 %v17873_v14 }
 0xaac   : > { %8264 = vmatpush.bf16.msrb.mxu0 %v17873_v14 }
 0xaad   : > { %7183 = vmatpush.bf16.msra.mxu3 %v15917_v33 }
 0xaaf   : > { %6610 = vmatpush.bf16.msrb.mxu2 %v17882_v55  ;;  %7014 = vmatpush.bf16.msra.mxu1 %v17882_v55 }
 0xab0   : > { %8265 = vmatpush.bf16.msrb.mxu0 %v17882_v55 }
 0xab2   : > { %6965 = vmatmul.bf16.gmra.mxu0 %v14097_v29  ;;  %6561 = vmatmul.bf16.gmra.mxu3 %v13969_v42  ;;  %v15884_v29 = vld [vmem:[#allocation11 + $0x124] sm:$0xf]  ;;  %v14058_v42 = vld [vmem:[#allocation11 + $0x128] sm:$0xf0] }
 0xab3   : > { %6611 = vmatpush.bf16.msrb.mxu2 %v17889_v12  ;;  %7015 = vmatpush.bf16.msra.mxu1 %v17889_v12  ;;  %v14061_v5 = vor.u32 %v15884_v29, %v14058_v42  ;;  %v15915_v42 = vld [vmem:[#allocation12 + $0x9d8] sm:$0xff] }
 0xab4   : > { %8266 = vmatpush.bf16.msrb.mxu0 %v17889_v12 }
 0xab7   : > { %6612 = vmatpush.bf16.msrb.mxu2 %v17895_v4  ;;  %7016 = vmatpush.bf16.msra.mxu1 %v17895_v4 }
 0xab8   : > { %8267 = vmatpush.bf16.msrb.mxu0 %v17895_v4 }
 0xabb   : > { %6613 = vmatpush.bf16.msrb.mxu2 %v17901_v41  ;;  %7017 = vmatpush.bf16.msra.mxu1 %v17901_v41 }
 0xabc   : > { %8268 = vmatpush.bf16.msrb.mxu0 %v17901_v41 }
 0xabf   : > { %6614 = vmatpush.bf16.msrb.mxu2 %v17742_v58  ;;  %7018 = vmatpush.bf16.msra.mxu1 %v17742_v58  ;;  %v17922_v40 = vpop.f32.mrf.mxu0 }
 0xac0   : > { %8269 = vmatpush.bf16.msrb.mxu0 %v17742_v58 }
 0xac2   : > { %6615 = vmatmul.bf16.vlgmr.msrb.gmra.mxu2 %v13917_v25  ;;  %6970 = vmatmul.bf16.gmra.mxu0 %v14105_v47  ;;  %v14066_v25 = vld [vmem:[#allocation11 + $0x138] sm:$0xf0]  ;;  %v14000_v47 = vld [vmem:[#allocation11 + $0xb0] sm:$0xf] }
 0xac3   : > { %7318 = vmatpush.bf16.msra.mxu2 %v15879_v27  ;;  %7689 = vmatpush.bf16.msrb.mxu1 %v17849_v61  ;;  %v13993_v27 = vor.u32 %v15861_v44, %v13992_v21  ;;  %v15914_v44 = vld [vmem:[#allocation12 + $0x9d0] sm:$0xff] }
 0xac4   : > { %7019 = vmatmul.bf16.vlgmr.msra.gmra.mxu1 %v14045_v62  ;;  %6566 = vmatmul.bf16.gmra.mxu3 %v13977_v36  ;;  %v15863_v62 = vld [vmem:[#allocation11 + $0xb4] sm:$0xf0] }
 0xac5   : > { %v17911_v45 = vpop.f32.mrf.mxu3 }
 0xac7   : > { %7319 = vmatpush.bf16.msra.mxu2 %v15878_v49  ;;  %7690 = vmatpush.bf16.msrb.mxu1 %v17862_v57  ;;  %v17929_v0 = vpop.f32.mrf.mxu0  ;;  %v13941_v49 = vor.u32 %v15846_v34, %v13938_v28  ;;  %v14144_v34 = vld [vmem:[#allocation11 + $0x1d0] sm:$0xf] }
 0xacb   : > { %7320 = vmatpush.bf16.msra.mxu2 %v15877_v16  ;;  %7691 = vmatpush.bf16.msrb.mxu1 %v17873_v14  ;;  %v14129_v16 = vor.u32 %v15903_v43, %v14128_v51  ;;  %v15907_v51 = vld [vmem:[#allocation11 + $0x1d4] sm:$0xf0]  ;;  %v15890_v43 = vld [vmem:[#allocation11 + $0x154] sm:$0xf] }
 0xacd   : > { %v17915_v46 = vpop.f32.mrf.mxu3 }
 0xacf   : > { %7321 = vmatpush.bf16.msra.mxu2 %v15876_v13  ;;  %7692 = vmatpush.bf16.msrb.mxu1 %v17882_v55  ;;  %v17935_v24 = vpop.f32.mrf.mxu0  ;;  %v14069_v13 = vor.u32 %v15886_v10, %v14066_v25  ;;  %v14082_v10 = vld [vmem:[#allocation11 + $0x158] sm:$0xf0]  ;;  %v14016_v25 = vld [vmem:[#allocation11 + $0xd0] sm:$0xf] }
 0xad0   : > { %v14085_v1 = vor.u32 %v15890_v43, %v14082_v10  ;;  %v15954_v43 = vld [vmem:[#allocation12 + $0xa10] sm:$0xff] }
 0xad2   : > { %6620 = vmatmul.bf16.gmra.mxu2 %v13925_v54  ;;  %6975 = vmatmul.bf16.gmra.mxu0 %v14113_v60  ;;  %v15905_v60 = vld [vmem:[#allocation11 + $0x1c4] sm:$0xf0] }
 0xad3   : > { %7322 = vmatpush.bf16.msra.mxu2 %v15875_v17  ;;  %7693 = vmatpush.bf16.msrb.mxu1 %v17889_v12  ;;  %v14001_v17 = vor.u32 %v15863_v62, %v14000_v47  ;;  %v14137_v11 = vor.u32 %v15905_v60, %v14136_v8  ;;  %v15867_v47 = vld [vmem:[#allocation11 + $0xd4] sm:$0xf0]  ;;  %v15912_v62 = vld [vmem:[#allocation12 + $0x9c0] sm:$0xff]  ;;  %v15957_v8 = vld [vmem:[#allocation12 + $0xa28] sm:$0xff] }
 0xad4   : > { %7024 = vmatmul.bf16.gmra.mxu1 %v14053_v56  ;;  %6571 = vmatmul.bf16.gmra.mxu3 %v13985_v63  ;;  %v15888_v56 = vld [vmem:[#allocation11 + $0x144] sm:$0xf]  ;;  %v14074_v63 = vld [vmem:[#allocation11 + $0x148] sm:$0xf0]  ;;  %v14017_v15 = vor.u32 %v15867_v47, %v14016_v25  ;;  %v15854_v47 = vld [vmem:[#allocation11 + $0x74] sm:$0xf] }
 0xad5   : > { %v17919_v9 = vpop.f32.mrf.mxu3  ;;  %v14077_v39 = vor.u32 %v15888_v56, %v14074_v63  ;;  %v15956_v60 = vld [vmem:[#allocation12 + $0xa20] sm:$0xff]  ;;  %v13962_v63 = vld [vmem:[#allocation11 + $0x68] sm:$0xf0] }
 0xad6   : > { %v15852_v56 = vld [vmem:[#allocation11 + $0x64] sm:$0xf]  ;;  %v15953_v25 = vld [vmem:[#allocation12 + $0xa08] sm:$0xff] }
 0xad7   : > { %7323 = vmatpush.bf16.msra.mxu2 %v15874_v37  ;;  %7694 = vmatpush.bf16.msrb.mxu1 %v17895_v4  ;;  %v17941_v50 = vpop.f32.mrf.mxu0  ;;  %v14008_v37 = vld [vmem:[#allocation11 + $0xc0] sm:$0xf] }
 0xadb   : > { %7324 = vmatpush.bf16.msra.mxu2 %v15873_v52  ;;  %7695 = vmatpush.bf16.msrb.mxu1 %v17901_v41  ;;  %v15865_v52 = vld [vmem:[#allocation11 + $0xc4] sm:$0xf0] }
 0xadc   : > { %v14009_v29 = vor.u32 %v15865_v52, %v14008_v37  ;;  %v14152_v52 = vld [vmem:[#allocation11 + $0x1e0] sm:$0xf] }
 0xadd   : > { %v17926_v22 = vpop.f32.mrf.mxu3 }
 0xadf   : > { %7325 = vmatpush.bf16.msra.mxu2 %v15872_v2  ;;  %7696 = vmatpush.bf16.msrb.mxu1 %v17742_v58  ;;  %v17947_v54 = vpop.f32.mrf.mxu0  ;;  %v15916_v2 = vld [vmem:[#allocation12 + $0x9e0] sm:$0xff] }
 0xae0   : > { %7184 = vmatpush.bf16.msra.mxu3 %v15916_v2  ;;  %v15909_v2 = vld [vmem:[#allocation11 + $0x1e4] sm:$0xf0] }
 0xae2   : > { %6625 = vmatmul.bf16.gmra.mxu2 %v13933_v59  ;;  %6980 = vmatmul.bf16.gmra.mxu0 %v14121_v7  ;;  %v15913_v7 = vld [vmem:[#allocation12 + $0x9c8] sm:$0xff] }
 0xae3   : > { %8173 = vmatpush.bf16.msrb.mxu2 %v17722_v18 }
 0xae4   : > { %7029 = vmatmul.bf16.gmra.mxu1 %v14061_v5  ;;  %6576 = vmatmul.bf16.gmra.mxu3 %v13993_v27  ;;  %v15850_v5 = vld [vmem:[#allocation11 + $0x54] sm:$0xf]  ;;  %v13954_v27 = vld [vmem:[#allocation11 + $0x58] sm:$0xf0] }
 0xae5   : > { %v17932_v20 = vpop.f32.mrf.mxu3  ;;  %7185 = vmatpush.bf16.msra.mxu3 %v15915_v42 }
 0xae7   : > { %8174 = vmatpush.bf16.msrb.mxu2 %v17704_v26  ;;  %v17951_v21 = vpop.f32.mrf.mxu0 }
 0xae9   : > { %7186 = vmatpush.bf16.msra.mxu3 %v15914_v44  ;;  %v13965_v44 = vor.u32 %v15852_v56, %v13962_v63 }
 0xaeb   : > { %8175 = vmatpush.bf16.msrb.mxu2 %v17691_v3 }
 0xaed   : > { %v17938_v36 = vpop.f32.mrf.mxu3  ;;  %7187 = vmatpush.bf16.msra.mxu3 %v15913_v7  ;;  %v14153_v7 = vor.u32 %v15909_v2, %v14152_v52 }
 0xaef   : > { %8176 = vmatpush.bf16.msrb.mxu2 %v17676_v32  ;;  %v17955_v28 = vpop.f32.mrf.mxu0 }
 0xaf1   : > { %7188 = vmatpush.bf16.msra.mxu3 %v15912_v62  ;;  %v13970_v62 = vld [vmem:[#allocation11 + $0x78] sm:$0xf0] }
 0xaf2   : > { %6630 = vmatmul.bf16.gmra.mxu2 %v13941_v49  ;;  %6985 = vmatmul.bf16.gmra.mxu0 %v14129_v16  ;;  %v15959_v16 = vld [vmem:[#allocation12 + $0xa38] sm:$0xff]  ;;  %v13973_v63 = vor.u32 %v15854_v47, %v13970_v62 }
 0xaf3   : > { %8177 = vmatpush.bf16.msrb.mxu2 %v17664_v48 }
 0xaf4   : > { %7034 = vmatmul.bf16.gmra.mxu1 %v14069_v13  ;;  %6581 = vmatmul.bf16.gmra.mxu3 %v14001_v17  ;;  %v13957_v13 = vor.u32 %v15850_v5, %v13954_v27  ;;  %v14145_v17 = vor.u32 %v15907_v51, %v14144_v34  ;;  %v15955_v5 = vld [vmem:[#allocation12 + $0xa18] sm:$0xff] }
 0xaf5   : > { %v17944_v23 = vpop.f32.mrf.mxu3  ;;  %7859 = vmatpush.bf16.msrb.mxu3 %v15959_v16  ;;  %v15952_v16 = vld [vmem:[#allocation12 + $0xa00] sm:$0xff] }
 0xaf7   : > { %8178 = vmatpush.bf16.msrb.mxu2 %v17647_v31  ;;  %v17959_v33 = vpop.f32.mrf.mxu0 }
 0xaf9   : > { %7860 = vmatpush.bf16.msrb.mxu3 %v15958_v35  ;;  %v14098_v35 = vld [vmem:[#allocation11 + $0x178] sm:$0xf0] }
 0xafb   : > { %8179 = vmatpush.bf16.msrb.mxu2 %v17628_v19 }
 0xafd   : > { %v17949_v30 = vpop.f32.mrf.mxu3  ;;  %7861 = vmatpush.bf16.msrb.mxu3 %v15957_v8  ;;  %v14032_v8 = vld [vmem:[#allocation11 + $0xf0] sm:$0xf] }
 0xaff   : > { %8180 = vmatpush.bf16.msrb.mxu2 %v17610_v6  ;;  %v17963_v37 = vpop.f32.mrf.mxu0 }
 0xb01   : > { %7862 = vmatpush.bf16.msrb.mxu3 %v15956_v60  ;;  %v15871_v60 = vld [vmem:[#allocation11 + $0xf4] sm:$0xf0] }
 0xb02   : > { %6635 = vmatmul.bf16.gmra.mxu2 %v13949_v53  ;;  %6990 = vmatmul.bf16.gmra.mxu0 %v14137_v11  ;;  %v15892_v53 = vld [vmem:[#allocation11 + $0x164] sm:$0xf]  ;;  %v14090_v11 = vld [vmem:[#allocation11 + $0x168] sm:$0xf0] }
 0xb03   : > { %v14093_v27 = vor.u32 %v15892_v53, %v14090_v11  ;;  %v14033_v53 = vor.u32 %v15871_v60, %v14032_v8 }
 0xb04   : > { %7039 = vmatmul.bf16.gmra.mxu1 %v14077_v39  ;;  %6586 = vmatmul.bf16.gmra.mxu3 %v14009_v29  ;;  %v14024_v39 = vld [vmem:[#allocation11 + $0xe0] sm:$0xf]  ;;  %v15869_v29 = vld [vmem:[#allocation11 + $0xe4] sm:$0xf0] }
 0xb05   : > { %v17953_v59 = vpop.f32.mrf.mxu3  ;;  %v14025_v34 = vor.u32 %v15869_v29, %v14024_v39  ;;  %7863 = vmatpush.bf16.msrb.mxu3 %v15955_v5  ;;  %v15856_v29 = vld [vmem:[#allocation11 + $0x84] sm:$0xf]  ;;  %v15921_v5 = vld [vmem:[#allocation11 + $0x204] sm:$0xf0] }
 0xb07   : > { %v17967_v51 = vpop.f32.mrf.mxu0 }
 0xb09   : > { %7864 = vmatpush.bf16.msrb.mxu3 %v15954_v43  ;;  %v14106_v43 = vld [vmem:[#allocation11 + $0x188] sm:$0xf0] }
 0xb0d   : > { %v17957_v49 = vpop.f32.mrf.mxu3  ;;  %7865 = vmatpush.bf16.msrb.mxu3 %v15953_v25 }
 0xb11   : > { %7866 = vmatpush.bf16.msrb.mxu3 %v15952_v16 }
 0xb12   : > { %6640 = vmatmul.bf16.gmra.mxu2 %v13957_v13  ;;  %6995 = vmatmul.bf16.gmra.mxu0 %v14145_v17  ;;  %v14160_v13 = vld [vmem:[#allocation11 + $0x1f0] sm:$0xf]  ;;  %v15911_v17 = vld [vmem:[#allocation11 + $0x1f4] sm:$0xf0] }
 0xb13   : > { %v14161_v52 = vor.u32 %v15911_v17, %v14160_v13 }
 0xb14   : > { %7044 = vmatmul.bf16.gmra.mxu1 %v14085_v1  ;;  %6591 = vmatmul.bf16.gmra.mxu3 %v14017_v15  ;;  %v15894_v1 = vld [vmem:[#allocation11 + $0x174] sm:$0xf]  ;;  %v17971_v15 = vpop.f32.mrf.mxu0 }
 0xb15   : > { %v17961_v38 = vpop.f32.mrf.mxu3  ;;  %v14101_v2 = vor.u32 %v15894_v1, %v14098_v35 }
 0xb1c   : > { %v17975_v11 = vpop.f32.mrf.mxu0 }
 0xb1d   : > { %v17965_v42 = vpop.f32.mrf.mxu3 }
 0xb22   : > { %6645 = vmatmul.bf16.gmra.mxu2 %v13965_v44  ;;  %7000 = vmatmul.bf16.gmra.mxu0 %v14153_v7  ;;  %v13978_v44 = vld [vmem:[#allocation11 + $0x88] sm:$0xf0]  ;;  %v14232_v7 = vld [vmem:[#allocation11 + $0x200] sm:$0xf] }
 0xb23   : > { %v13981_v47 = vor.u32 %v15856_v29, %v13978_v44  ;;  %v14233_v62 = vor.u32 %v15921_v5, %v14232_v7  ;;  %v15898_v29 = vld [vmem:[#allocation11 + $0x194] sm:$0xf]  ;;  %v14114_v7 = vld [vmem:[#allocation11 + $0x198] sm:$0xf0]  ;;  %v14240_v5 = vld [vmem:[#allocation11 + $0x210] sm:$0xf] }
 0xb24   : > { %7049 = vmatmul.bf16.gmra.mxu1 %v14093_v27  ;;  %6596 = vmatmul.bf16.gmra.mxu3 %v14025_v34  ;;  %v17979_v27 = vpop.f32.mrf.mxu0  ;;  %v15896_v34 = vld [vmem:[#allocation11 + $0x184] sm:$0xf] }
 0xb25   : > { %v17969_v10 = vpop.f32.mrf.mxu3  ;;  %v14109_v16 = vor.u32 %v15896_v34, %v14106_v43  ;;  %v15923_v34 = vld [vmem:[#allocation11 + $0x214] sm:$0xf0] }
 0xb2c   : > { %v17983_v17 = vpop.f32.mrf.mxu0 }
 0xb2d   : > { %v17973_v56 = vpop.f32.mrf.mxu3 }
 0xb32   : > { %6650 = vmatmul.bf16.gmra.mxu2 %v13973_v63  ;;  %7005 = vmatmul.bf16.gmra.mxu0 %v14161_v52 }
 0xb34   : > { %7054 = vmatmul.bf16.gmra.mxu1 %v14101_v2  ;;  %6601 = vmatmul.bf16.gmra.mxu3 %v14033_v53  ;;  %v15858_v2 = vld [vmem:[#allocation11 + $0x94] sm:$0xf]  ;;  %v13986_v53 = vld [vmem:[#allocation11 + $0x98] sm:$0xf0]  ;;  %v17989_v44 = vpop.f32.mrf.mxu0 }
 0xb35   : > { %v17977_v39 = vpop.f32.mrf.mxu3 }
 0xb3d   : > { %v17981_v25 = vpop.f32.mrf.mxu3 }
 0xb41   : > { %v7020_v13 = vpop.f32.mrf.mxu1 }
 0xb42   : > { %6655 = vmatmul.bf16.gmra.mxu2 %v13981_v47  ;;  %7608 = vmatmul.bf16.vlgmr.msra.gmra.mxu0 %v14233_v62  ;;  %v7021_v60 = vadd.f32 %v7020_v13, %v17922_v40  ;;  %v14241_v13 = vor.u32 %v15923_v34, %v14240_v5  ;;  %v15900_v5 = vld [vmem:[#allocation11 + $0x1a4] sm:$0xf] }
 0xb44   : > { %7059 = vmatmul.bf16.gmra.mxu1 %v14109_v16  ;;  %v14117_v16 = vor.u32 %v15898_v29, %v14114_v7  ;;  %v15860_v29 = vld [vmem:[#allocation11 + $0xa4] sm:$0xf]  ;;  %v13994_v7 = vld [vmem:[#allocation11 + $0xa8] sm:$0xf0] }
 0xb45   : > { %v6616_v1 = vpop.f32.mrf.mxu2 }
 0xb46   : > { %v17992_v47 = vadd.f32 %v6616_v1, %v17911_v45  ;;  %v18003_v45 = vpop.f32.mrf.mxu0 }
 0xb47   : > { %v17985_v35 = vpop.f32.mrf.mxu3 }
 0xb49   : > { %v7022_v8 = vpop.f32.mrf.mxu1 }
 0xb4a   : > { %v7023_v63 = vadd.f32 %v7022_v8, %v17929_v0  ;;  %v13989_v0 = vor.u32 %v15858_v2, %v13986_v53 }
 0xb4c   : > { %v7100_v52 = vpack.c.bf16 %v7023_v63, %v7021_v60 }
 0xb4d   : > { %v6618_v43 = vpop.f32.mrf.mxu2 }
 0xb4e   : > { %7189 = vmatmul.bf16.vlgmr.msra.gmra.mxu3 %v7100_v52  ;;  %v17996_v40 = vadd.f32 %v6618_v43, %v17915_v46  ;;  %v18011_v34 = vpop.f32.mrf.mxu0  ;;  %v14122_v43 = vld [vmem:[#allocation11 + $0x1a8] sm:$0xf0] }
 0xb4f   : > { %8746 = vmatpush.bf16.msra.mxu3 %v17722_v18  ;;  %v17998_v62 = vpop.f32.mrf.mxu3 }
 0xb51   : > { %v7025_v60 = vpop.f32.mrf.mxu1 }
 0xb52   : > { %6660 = vmatmul.bf16.gmra.mxu2 %v13989_v0  ;;  %7613 = vmatmul.bf16.gmra.mxu0 %v14241_v13  ;;  %v7026_v52 = vadd.f32 %v7025_v60, %v17935_v24  ;;  %v14248_v0 = vld [vmem:[#allocation11 + $0x220] sm:$0xf] }
 0xb53   : > { %8747 = vmatpush.bf16.msra.mxu3 %v17704_v26 }
 0xb54   : > { %7064 = vmatmul.bf16.gmra.mxu1 %v14117_v16  ;;  %v15925_v16 = vld [vmem:[#allocation11 + $0x224] sm:$0xf0] }
 0xb55   : > { %v6621_v1 = vpop.f32.mrf.mxu2 }
 0xb56   : > { %v18014_v8 = vadd.f32 %v6621_v1, %v17919_v9  ;;  %v18025_v9 = vpop.f32.mrf.mxu0 }
 0xb57   : > { %8748 = vmatpush.bf16.msra.mxu3 %v17691_v3  ;;  %v18006_v46 = vpop.f32.mrf.mxu3 }
 0xb59   : > { %v7027_v63 = vpop.f32.mrf.mxu1 }
 0xb5a   : > { %v7028_v2 = vadd.f32 %v7027_v63, %v17941_v50  ;;  %v13997_v50 = vor.u32 %v15860_v29, %v13994_v7  ;;  %v14125_v63 = vor.u32 %v15900_v5, %v14122_v43  ;;  %v15862_v43 = vld [vmem:[#allocation11 + $0xb4] sm:$0xf] }
 0xb5b   : > { %8749 = vmatpush.bf16.msra.mxu3 %v17676_v32 }
 0xb5c   : > { %v7101_v53 = vpack.c.bf16 %v7028_v2, %v7026_v52  ;;  %v14249_v52 = vor.u32 %v15925_v16, %v14248_v0  ;;  %v14002_v0 = vld [vmem:[#allocation11 + $0xb8] sm:$0xf0]  ;;  %v15902_v16 = vld [vmem:[#allocation11 + $0x1b4] sm:$0xf] }
 0xb5d   : > { %v6623_v13 = vpop.f32.mrf.mxu2 }
 0xb5e   : > { %7194 = vmatmul.bf16.gmra.mxu3 %v7101_v53  ;;  %v18018_v24 = vadd.f32 %v6623_v13, %v17926_v22  ;;  %v18033_v13 = vpop.f32.mrf.mxu0 }
 0xb5f   : > { %8750 = vmatpush.bf16.msra.mxu3 %v17664_v48  ;;  %v18020_v60 = vpop.f32.mrf.mxu3 }
 0xb60   : > { %19734 = vst [vmem:[#allocation44_spill] sm:$0xff] %v18020_v60 }
 0xb61   : > { %v7030_v58 = vpop.f32.mrf.mxu1 }
 0xb62   : > { %6665 = vmatmul.bf16.gmra.mxu2 %v13997_v50  ;;  %7618 = vmatmul.bf16.gmra.mxu0 %v14249_v52  ;;  %v7031_v29 = vadd.f32 %v7030_v58, %v17947_v54  ;;  %v14130_v50 = vld [vmem:[#allocation11 + $0x1b8] sm:$0xf0]  ;;  %v15927_v52 = vld [vmem:[#allocation11 + $0x234] sm:$0xf0]  ;;  %v14005_v54 = vor.u32 %v15862_v43, %v14002_v0  ;;  %v15864_v0 = vld [vmem:[#allocation11 + $0xc4] sm:$0xf] }
 0xb63   : > { %8751 = vmatpush.bf16.msra.mxu3 %v17647_v31 }
 0xb64   : > { %7069 = vmatmul.bf16.gmra.mxu1 %v14125_v63  ;;  %v14256_v63 = vld [vmem:[#allocation11 + $0x230] sm:$0xf] }
 0xb65   : > { %v6626_v1 = vpop.f32.mrf.mxu2 }
 0xb67   : > { %8752 = vmatpush.bf16.msra.mxu3 %v17628_v19  ;;  %v18028_v22 = vpop.f32.mrf.mxu3 }
 0xb68   : > { %19735 = vst [vmem:[#allocation45_spill] sm:$0xff] %v18028_v22  ;;  %v18036_v22 = vadd.f32 %v6626_v1, %v17932_v20 }
 0xb69   : > { %v7032_v53 = vpop.f32.mrf.mxu1 }
 0xb6a   : > { %v7033_v7 = vadd.f32 %v7032_v53, %v17951_v21  ;;  %v14133_v53 = vor.u32 %v15902_v16, %v14130_v50  ;;  %v14010_v16 = vld [vmem:[#allocation11 + $0xc8] sm:$0xf0]  ;;  %v15904_v50 = vld [vmem:[#allocation11 + $0x1c4] sm:$0xf] }
 0xb6b   : > { %8753 = vmatpush.bf16.msra.mxu3 %v17610_v6 }
 0xb6c   : > { %v7102_v5 = vpack.c.bf16 %v7033_v7, %v7031_v29  ;;  %v14257_v29 = vor.u32 %v15927_v52, %v14256_v63  ;;  %v14138_v52 = vld [vmem:[#allocation11 + $0x1c8] sm:$0xf0] }
 0xb6d   : > { %v6628_v2 = vpop.f32.mrf.mxu2 }
 0xb6e   : > { %7199 = vmatmul.bf16.gmra.mxu3 %v7102_v5  ;;  %v18039_v58 = vadd.f32 %v6628_v2, %v17938_v36  ;;  %v18045_v5 = vpop.f32.mrf.mxu0 }
 0xb6f   : > { %v18041_v21 = vpop.f32.mrf.mxu3 }
 0xb70   : > { %19736 = vst [vmem:[#allocation42_spill] sm:$0xff] %v18041_v21 }
 0xb71   : > { %v7035_v6 = vpop.f32.mrf.mxu1 }
 0xb72   : > { %6670 = vmatmul.bf16.gmra.mxu2 %v14005_v54  ;;  %7623 = vmatmul.bf16.gmra.mxu0 %v14257_v29  ;;  %v7036_v36 = vadd.f32 %v7035_v6, %v17955_v28  ;;  %v14264_v54 = vld [vmem:[#allocation11 + $0x240] sm:$0xf]  ;;  %v14013_v6 = vor.u32 %v15864_v0, %v14010_v16 }
 0xb74   : > { %7074 = vmatmul.bf16.gmra.mxu1 %v14133_v53  ;;  %v15929_v53 = vld [vmem:[#allocation11 + $0x244] sm:$0xf0] }
 0xb75   : > { %v6631_v60 = vpop.f32.mrf.mxu2 }
 0xb76   : > { %v18051_v63 = vpop.f32.mrf.mxu0  ;;  %v18054_v7 = vadd.f32 %v6631_v60, %v17944_v23  ;;  %v15999_v23 = vld [vmem:[#allocation12 + $0xa78] sm:$0xff] }
 0xb77   : > { %v18047_v20 = vpop.f32.mrf.mxu3  ;;  %8432 = vmatpush.bf16.msra.mxu1 %v15999_v23 }
 0xb78   : > { %19737 = vst [vmem:[#allocation43_spill] sm:$0xff] %v18047_v20 }
 0xb79   : > { %v7037_v1 = vpop.f32.mrf.mxu1 }
 0xb7a   : > { %v7038_v2 = vadd.f32 %v7037_v1, %v17959_v33  ;;  %v14141_v33 = vor.u32 %v15904_v50, %v14138_v52  ;;  %v14265_v1 = vor.u32 %v15929_v53, %v14264_v54  ;;  %v15998_v50 = vld [vmem:[#allocation12 + $0xa70] sm:$0xff]  ;;  %v14018_v53 = vld [vmem:[#allocation11 + $0xd8] sm:$0xf0] }
 0xb7b   : > { %v15866_v54 = vld [vmem:[#allocation11 + $0xd4] sm:$0xf]  ;;  %8433 = vmatpush.bf16.msra.mxu1 %v15998_v50 }
 0xb7c   : > { %v7103_v43 = vpack.c.bf16 %v7038_v2, %v7036_v36  ;;  %v15931_v36 = vld [vmem:[#allocation11 + $0x254] sm:$0xf0] }
 0xb7d   : > { %v6633_v29 = vpop.f32.mrf.mxu2 }
 0xb7e   : > { %7204 = vmatmul.bf16.gmra.mxu3 %v7103_v43  ;;  %v18057_v20 = vadd.f32 %v6633_v29, %v17949_v30  ;;  %v18063_v43 = vpop.f32.mrf.mxu0  ;;  %v15906_v29 = vld [vmem:[#allocation11 + $0x1d4] sm:$0xf] }
 0xb7f   : > { %v18059_v28 = vpop.f32.mrf.mxu3 }
 0xb80   : > { %19738 = vst [vmem:[#allocation36_spill] sm:$0xff] %v18059_v28 }
 0xb81   : > { %v7040_v2 = vpop.f32.mrf.mxu1 }
 0xb82   : > { %6675 = vmatmul.bf16.gmra.mxu2 %v14013_v6  ;;  %7628 = vmatmul.bf16.gmra.mxu0 %v14265_v1  ;;  %v7041_v0 = vadd.f32 %v7040_v2, %v17963_v37  ;;  %v14272_v1 = vld [vmem:[#allocation11 + $0x250] sm:$0xf] }
 0xb84   : > { %7079 = vmatmul.bf16.gmra.mxu1 %v14141_v33  ;;  %v14146_v33 = vld [vmem:[#allocation11 + $0x1d8] sm:$0xf0] }
 0xb85   : > { %v6636_v21 = vpop.f32.mrf.mxu2 }
 0xb86   : > { %v18069_v6 = vpop.f32.mrf.mxu0  ;;  %v18072_v23 = vadd.f32 %v6636_v21, %v17953_v59 }
 0xb87   : > { %v18065_v60 = vpop.f32.mrf.mxu3  ;;  %19740 = vst [vmem:[#allocation37_spill] sm:$0xff] %v18069_v6  ;;  %v15996_v6 = vld [vmem:[#allocation12 + $0xa60] sm:$0xff] }
 0xb88   : > { %19739 = vst [vmem:[#allocation38_spill] sm:$0xff] %v18065_v60  ;;  %v15997_v60 = vld [vmem:[#allocation12 + $0xa68] sm:$0xff] }
 0xb89   : > { %v7042_v30 = vpop.f32.mrf.mxu1  ;;  %8434 = vmatpush.bf16.msra.mxu1 %v15997_v60 }
 0xb8a   : > { %v7043_v16 = vadd.f32 %v7042_v30, %v17967_v51  ;;  %v14021_v51 = vor.u32 %v15866_v54, %v14018_v53  ;;  %v14149_v30 = vor.u32 %v15906_v29, %v14146_v33  ;;  %v15994_v54 = vld [vmem:[#allocation12 + $0xa50] sm:$0xff]  ;;  %v15868_v29 = vld [vmem:[#allocation11 + $0xe4] sm:$0xf]  ;;  %v14026_v33 = vld [vmem:[#allocation11 + $0xe8] sm:$0xf0] }
 0xb8c   : > { %v7104_v52 = vpack.c.bf16 %v7043_v16, %v7041_v0  ;;  %v14273_v0 = vor.u32 %v15931_v36, %v14272_v1  ;;  %v15908_v1 = vld [vmem:[#allocation11 + $0x1e4] sm:$0xf] }
 0xb8d   : > { %v6638_v28 = vpop.f32.mrf.mxu2  ;;  %8435 = vmatpush.bf16.msra.mxu1 %v15996_v6  ;;  %v15933_v6 = vld [vmem:[#allocation11 + $0x264] sm:$0xf0] }
 0xb8e   : > { %7209 = vmatmul.bf16.gmra.mxu3 %v7104_v52  ;;  %v18075_v37 = vadd.f32 %v6638_v28, %v17957_v49  ;;  %v18081_v52 = vpop.f32.mrf.mxu0  ;;  %v15995_v49 = vld [vmem:[#allocation12 + $0xa58] sm:$0xff] }
 0xb8f   : > { %v18077_v2 = vpop.f32.mrf.mxu3 }
 0xb90   : > { %19741 = vst [vmem:[#allocation39_spill] sm:$0xff] %v18077_v2 }
 0xb91   : > { %v7045_v50 = vpop.f32.mrf.mxu1  ;;  %8436 = vmatpush.bf16.msra.mxu1 %v15995_v49 }
 0xb92   : > { %6680 = vmatmul.bf16.gmra.mxu2 %v14021_v51  ;;  %7633 = vmatmul.bf16.gmra.mxu0 %v14273_v0  ;;  %v7046_v36 = vadd.f32 %v7045_v50, %v17971_v15  ;;  %v14280_v0 = vld [vmem:[#allocation11 + $0x260] sm:$0xf] }
 0xb94   : > { %7084 = vmatmul.bf16.gmra.mxu1 %v14149_v30  ;;  %v14154_v30 = vld [vmem:[#allocation11 + $0x1e8] sm:$0xf0] }
 0xb95   : > { %v6641_v59 = vpop.f32.mrf.mxu2  ;;  %8437 = vmatpush.bf16.msra.mxu1 %v15994_v54  ;;  %v14157_v50 = vor.u32 %v15908_v1, %v14154_v30  ;;  %v15992_v54 = vld [vmem:[#allocation12 + $0xa40] sm:$0xff]  ;;  %v15870_v1 = vld [vmem:[#allocation11 + $0xf4] sm:$0xf]  ;;  %v14034_v30 = vld [vmem:[#allocation11 + $0xf8] sm:$0xf0] }
 0xb96   : > { %v18087_v51 = vpop.f32.mrf.mxu0  ;;  %v18090_v49 = vadd.f32 %v6641_v59, %v17961_v38 }
 0xb97   : > { %v18083_v21 = vpop.f32.mrf.mxu3 }
 0xb98   : > { %19742 = vst [vmem:[#allocation40_spill] sm:$0xff] %v18083_v21  ;;  %v15993_v21 = vld [vmem:[#allocation12 + $0xa48] sm:$0xff] }
 0xb99   : > { %v7047_v28 = vpop.f32.mrf.mxu1  ;;  %8438 = vmatpush.bf16.msra.mxu1 %v15993_v21 }
 0xb9a   : > { %v7048_v60 = vadd.f32 %v7047_v28, %v17975_v11  ;;  %v14029_v11 = vor.u32 %v15868_v29, %v14026_v33  ;;  %v14281_v28 = vor.u32 %v15933_v6, %v14280_v0  ;;  %v15910_v0 = vld [vmem:[#allocation11 + $0x1f4] sm:$0xf]  ;;  %v14162_v6 = vld [vmem:[#allocation11 + $0x1f8] sm:$0xf0] }
 0xb9c   : > { %v7105_v53 = vpack.c.bf16 %v7048_v60, %v7046_v36 }
 0xb9d   : > { %v6643_v16 = vpop.f32.mrf.mxu2  ;;  %8439 = vmatpush.bf16.msra.mxu1 %v15992_v54 }
 0xb9e   : > { %7214 = vmatmul.bf16.gmra.mxu3 %v7105_v53  ;;  %v18093_v15 = vadd.f32 %v6643_v16, %v17965_v42  ;;  %v18099_v53 = vpop.f32.mrf.mxu0 }
 0xb9f   : > { %v18097_v2 = vpop.f32.mrf.mxu3 }
 0xba1   : > { %v7050_v60 = vpop.f32.mrf.mxu1 }
 0xba2   : > { %6685 = vmatmul.bf16.gmra.mxu2 %v14029_v11  ;;  %7638 = vmatmul.bf16.gmra.mxu0 %v14281_v28  ;;  %v7051_v16 = vadd.f32 %v7050_v60, %v17979_v27  ;;  %v14288_v11 = vld [vmem:[#allocation11 + $0x270] sm:$0xf]  ;;  %v14165_v60 = vor.u32 %v15910_v0, %v14162_v6  ;;  %v15937_v0 = vld [vmem:[#allocation11 + $0x284] sm:$0xf0]  ;;  %v15920_v6 = vld [vmem:[#allocation11 + $0x204] sm:$0xf] }
 0xba4   : > { %7089 = vmatmul.bf16.gmra.mxu1 %v14157_v50  ;;  %v15935_v50 = vld [vmem:[#allocation11 + $0x274] sm:$0xf0] }
 0xba5   : > { %v6646_v38 = vpop.f32.mrf.mxu2 }
 0xba6   : > { %v18105_v21 = vpop.f32.mrf.mxu0  ;;  %v18108_v54 = vadd.f32 %v6646_v38, %v17969_v10 }
 0xba7   : > { %v18103_v29 = vpop.f32.mrf.mxu3 }
 0xba8   : > { %19743 = vst [vmem:[#allocation41_spill] sm:$0xff] %v18103_v29 }
 0xba9   : > { %v7052_v42 = vpop.f32.mrf.mxu1 }
 0xbaa   : > { %v7053_v59 = vadd.f32 %v7052_v42, %v17983_v17  ;;  %v14037_v17 = vor.u32 %v15870_v1, %v14034_v30  ;;  %v14289_v42 = vor.u32 %v15935_v50, %v14288_v11  ;;  %v14296_v30 = vld [vmem:[#allocation11 + $0x280] sm:$0xf]  ;;  %v14234_v11 = vld [vmem:[#allocation11 + $0x208] sm:$0xf0] }
 0xbac   : > { %v7106_v33 = vpack.c.bf16 %v7053_v59, %v7051_v16  ;;  %v14237_v16 = vor.u32 %v15920_v6, %v14234_v11 }
 0xbad   : > { %v6648_v28 = vpop.f32.mrf.mxu2 }
 0xbae   : > { %7219 = vmatmul.bf16.gmra.mxu3 %v7106_v33  ;;  %v18111_v27 = vadd.f32 %v6648_v28, %v17973_v56  ;;  %v18117_v29 = vpop.f32.mrf.mxu0 }
 0xbaf   : > { %v18115_v36 = vpop.f32.mrf.mxu3 }
 0xbb1   : > { %v7055_v59 = vpop.f32.mrf.mxu1 }
 0xbb2   : > { %6690 = vmatmul.bf16.gmra.mxu2 %v14037_v17  ;;  %7643 = vmatmul.bf16.gmra.mxu0 %v14289_v42  ;;  %v7056_v38 = vadd.f32 %v7055_v59, %v17989_v44  ;;  %v14297_v42 = vor.u32 %v15937_v0, %v14296_v30  ;;  %v15922_v30 = vld [vmem:[#allocation11 + $0x214] sm:$0xf]  ;;  %v14242_v0 = vld [vmem:[#allocation11 + $0x218] sm:$0xf0] }
 0xbb4   : > { %7094 = vmatmul.bf16.gmra.mxu1 %v14165_v60 }
 0xbb5   : > { %v6651_v33 = vpop.f32.mrf.mxu2 }
 0xbb6   : > { %v18122_v28 = vadd.f32 %v6651_v33, %v17977_v39  ;;  %v18129_v44 = vpop.f32.mrf.mxu0 }
 0xbb7   : > { %v18127_v60 = vpop.f32.mrf.mxu3 }
 0xbb9   : > { %v7057_v10 = vpop.f32.mrf.mxu1 }
 0xbba   : > { %v7058_v56 = vadd.f32 %v7057_v10, %v18003_v45  ;;  %v19744_v10 = vpack.c.bf16 %v17996_v40, %v17992_v47  ;;  %v15926_v45 = vld [vmem:[#allocation11 + $0x234] sm:$0xf] }
 0xbbc   : > { %v7107_v1 = vpack.c.bf16 %v7058_v56, %v7056_v38 }
 0xbbd   : > { %v6653_v50 = vpop.f32.mrf.mxu2 }
 0xbbe   : > { %7224 = vmatmul.bf16.gmra.mxu3 %v7107_v1  ;;  %v18125_v17 = vadd.f32 %v6653_v50, %v17981_v25  ;;  %v18144_v47 = vpop.f32.mrf.mxu0  ;;  %v15939_v1 = vld [vmem:[#allocation11 + $0x294] sm:$0xf0]  ;;  %v14245_v50 = vor.u32 %v15922_v30, %v14242_v0  ;;  %v14250_v30 = vld [vmem:[#allocation11 + $0x228] sm:$0xf0] }
 0xbbf   : > { %v18140_v25 = vpop.f32.mrf.mxu3 }
 0xbc1   : > { %v7060_v59 = vpop.f32.mrf.mxu1 }
 0xbc2   : > { %7326 = vmatmul.bf16.vlgmr.msra.gmra.mxu2 %v19744_v10  ;;  %7648 = vmatmul.bf16.gmra.mxu0 %v14297_v42  ;;  %v7061_v38 = vadd.f32 %v7060_v59, %v18011_v34  ;;  %v19752_v42 = vpack.c.bf16 %v18039_v58, %v18036_v22  ;;  %v19754_v58 = vld [vmem:[#allocation45_spill] sm:$0xff] }
 0xbc3   : > { %8835 = vmatpush.bf16.msra.mxu2 %v17849_v61 }
 0xbc4   : > { %7697 = vmatmul.bf16.vlgmr.msrb.gmra.mxu1 %v14237_v16  ;;  %v14304_v16 = vld [vmem:[#allocation11 + $0x290] sm:$0xf] }
 0xbc5   : > { %9319 = vmatpush.bf16.msrb.mxu1 %v17722_v18  ;;  %v6656_v39 = vpop.f32.mrf.mxu2 }
 0xbc6   : > { %v18149_v11 = vadd.f32 %v6656_v39, %v17985_v35  ;;  %v18163_v35 = vpop.f32.mrf.mxu0 }
 0xbc7   : > { %8836 = vmatpush.bf16.msra.mxu2 %v17862_v57 }
 0xbc9   : > { %9320 = vmatpush.bf16.msrb.mxu1 %v17704_v26  ;;  %v7062_v33 = vpop.f32.mrf.mxu1 }
 0xbca   : > { %v7063_v56 = vadd.f32 %v7062_v33, %v18025_v9  ;;  %v14305_v9 = vor.u32 %v15939_v1, %v14304_v16  ;;  %v19746_v33 = vpack.c.bf16 %v18018_v24, %v18014_v8  ;;  %v15941_v16 = vld [vmem:[#allocation11 + $0x2a4] sm:$0xf0]  ;;  %v15924_v1 = vld [vmem:[#allocation11 + $0x224] sm:$0xf] }
 0xbcb   : > { %8837 = vmatpush.bf16.msra.mxu2 %v17873_v14 }
 0xbcc   : > { %v7108_v40 = vpack.c.bf16 %v7063_v56, %v7061_v38 }
 0xbcd   : > { %9321 = vmatpush.bf16.msrb.mxu1 %v17691_v3  ;;  %v6658_v6 = vpop.f32.mrf.mxu2 }
 0xbce   : > { %7229 = vmatmul.bf16.gmra.mxu3 %v7108_v40  ;;  %v18152_v34 = vadd.f32 %v6658_v6, %v17998_v62  ;;  %v14312_v40 = vld [vmem:[#allocation11 + $0x2a0] sm:$0xf]  ;;  %v18175_v6 = vpop.f32.mrf.mxu0 }
 0xbcf   : > { %8838 = vmatpush.bf16.msra.mxu2 %v17882_v55 }
 0xbd1   : > { %9322 = vmatpush.bf16.msrb.mxu1 %v17676_v32  ;;  %v7065_v59 = vpop.f32.mrf.mxu1  ;;  %v18158_v10 = vpop.f32.mrf.mxu3 }
 0xbd2   : > { %19745 = vst [vmem:[#allocation33_spill] sm:$0xff] %v18158_v10  ;;  %7331 = vmatmul.bf16.gmra.mxu2 %v19746_v33  ;;  %7653 = vmatmul.bf16.gmra.mxu0 %v14305_v9  ;;  %v7066_v56 = vadd.f32 %v7065_v59, %v18033_v13  ;;  %v14253_v59 = vor.u32 %v15924_v1, %v14250_v30  ;;  %v15943_v33 = vld [vmem:[#allocation11 + $0x2b4] sm:$0xf0] }
 0xbd3   : > { %8839 = vmatpush.bf16.msra.mxu2 %v17889_v12 }
 0xbd4   : > { %7702 = vmatmul.bf16.gmra.mxu1 %v14245_v50  ;;  %v19748_v50 = vld [vmem:[#allocation44_spill] sm:$0xff] }
 0xbd5   : > { %9323 = vmatpush.bf16.msrb.mxu1 %v17664_v48  ;;  %v6661_v62 = vpop.f32.mrf.mxu2 }
 0xbd6   : > { %v18178_v9 = vadd.f32 %v6661_v62, %v18006_v46  ;;  %v18192_v62 = vpop.f32.mrf.mxu0 }
 0xbd7   : > { %8840 = vmatpush.bf16.msra.mxu2 %v17895_v4 }
 0xbd9   : > { %9324 = vmatpush.bf16.msrb.mxu1 %v17647_v31  ;;  %v7067_v39 = vpop.f32.mrf.mxu1  ;;  %v18169_v38 = vpop.f32.mrf.mxu3 }
 0xbda   : > { %19747 = vst [vmem:[#allocation35_spill] sm:$0xff] %v18169_v38  ;;  %v7068_v8 = vadd.f32 %v7067_v39, %v18045_v5  ;;  %v14313_v5 = vor.u32 %v15941_v16, %v14312_v40  ;;  %v19749_v39 = vld [vmem:[#allocation54_spill] sm:$0xff] }
 0xbdb   : > { %8841 = vmatpush.bf16.msra.mxu2 %v17901_v41 }
 0xbdc   : > { %v7109_v24 = vpack.c.bf16 %v7068_v8, %v7066_v56  ;;  %v19750_v56 = vld [vmem:[#allocation46_spill] sm:$0xff] }
 0xbdd   : > { %9325 = vmatpush.bf16.msrb.mxu1 %v17628_v19  ;;  %v6663_v0 = vpop.f32.mrf.mxu2 }
 0xbde   : > { %7234 = vmatmul.bf16.gmra.mxu3 %v7109_v24  ;;  %v18181_v13 = vadd.f32 %v6663_v0, %v19748_v50  ;;  %v14320_v50 = vld [vmem:[#allocation11 + $0x2b0] sm:$0xf] }
 0xbdf   : > { %8842 = vmatpush.bf16.msra.mxu2 %v19749_v39  ;;  %v14321_v38 = vor.u32 %v15943_v33, %v14320_v50  ;;  %v19759_v33 = vld [vmem:[#allocation37_spill] sm:$0xff] }
 0xbe1   : > { %9326 = vmatpush.bf16.msrb.mxu1 %v19750_v56  ;;  %v7070_v8 = vpop.f32.mrf.mxu1  ;;  %v18187_v24 = vpop.f32.mrf.mxu3 }
 0xbe2   : > { %19751 = vst [vmem:[#allocation31_spill] sm:$0xff] %v18187_v24  ;;  %7336 = vmatmul.bf16.gmra.mxu2 %v19752_v42  ;;  %7658 = vmatmul.bf16.gmra.mxu0 %v14313_v5  ;;  %v7071_v1 = vadd.f32 %v7070_v8, %v18051_v63  ;;  %v14258_v24 = vld [vmem:[#allocation11 + $0x238] sm:$0xf0]  ;;  %v19755_v5 = vld [vmem:[#allocation42_spill] sm:$0xff]  ;;  %v15928_v63 = vld [vmem:[#allocation11 + $0x244] sm:$0xf] }
 0xbe3   : > { %v14261_v10 = vor.u32 %v15926_v45, %v14258_v24 }
 0xbe4   : > { %7707 = vmatmul.bf16.gmra.mxu1 %v14253_v59 }
 0xbe5   : > { %v6666_v46 = vpop.f32.mrf.mxu2 }
 0xbe6   : > { %v18199_v42 = vadd.f32 %v6666_v46, %v19754_v58 }
 0xbe9   : > { %v7072_v40 = vpop.f32.mrf.mxu1  ;;  %v18194_v16 = vpop.f32.mrf.mxu3 }
 0xbea   : > { %19753 = vst [vmem:[#allocation34_spill] sm:$0xff] %v18194_v16  ;;  %v7073_v30 = vadd.f32 %v7072_v40, %v18063_v43  ;;  %v18208_v40 = vpop.f32.mrf.mxu0 }
 0xbec   : > { %v7110_v0 = vpack.c.bf16 %v7073_v30, %v7071_v1  ;;  %v19757_v1 = vpack.c.bf16 %v18057_v20, %v18054_v7  ;;  %v19760_v20 = vld [vmem:[#allocation43_spill] sm:$0xff] }
 0xbed   : > { %v6668_v22 = vpop.f32.mrf.mxu2 }
 0xbee   : > { %7239 = vmatmul.bf16.gmra.mxu3 %v7110_v0  ;;  %v18202_v59 = vadd.f32 %v6668_v22, %v19755_v5  ;;  %v14328_v22 = vld [vmem:[#allocation11 + $0x2c0] sm:$0xf]  ;;  %v15945_v5 = vld [vmem:[#allocation11 + $0x2c4] sm:$0xf0] }
 0xbf1   : > { %v7075_v8 = vpop.f32.mrf.mxu1  ;;  %v18206_v43 = vpop.f32.mrf.mxu3 }
 0xbf2   : > { %19756 = vst [vmem:[#allocation30_spill] sm:$0xff] %v18206_v43  ;;  %7341 = vmatmul.bf16.gmra.mxu2 %v19757_v1  ;;  %7663 = vmatmul.bf16.gmra.mxu0 %v14321_v38  ;;  %v7076_v45 = vadd.f32 %v7075_v8, %v19759_v33  ;;  %v18217_v58 = vpop.f32.mrf.mxu0  ;;  %v14266_v43 = vld [vmem:[#allocation11 + $0x248] sm:$0xf0]  ;;  %v19763_v33 = vpack.c.bf16 %v18075_v37, %v18072_v23  ;;  %v15947_v23 = vld [vmem:[#allocation11 + $0x2d4] sm:$0xf0] }
 0xbf3   : > { %v14269_v16 = vor.u32 %v15928_v63, %v14266_v43  ;;  %v15930_v37 = vld [vmem:[#allocation11 + $0x254] sm:$0xf] }
 0xbf4   : > { %7712 = vmatmul.bf16.gmra.mxu1 %v14261_v10  ;;  %v19761_v10 = vld [vmem:[#allocation36_spill] sm:$0xff] }
 0xbf5   : > { %v6671_v46 = vpop.f32.mrf.mxu2 }
 0xbf6   : > { %v18220_v38 = vadd.f32 %v6671_v46, %v19760_v20  ;;  %v14336_v20 = vld [vmem:[#allocation11 + $0x2d0] sm:$0xf] }
 0xbf9   : > { %v7077_v30 = vpop.f32.mrf.mxu1  ;;  %v18213_v0 = vpop.f32.mrf.mxu3 }
 0xbfa   : > { %19758 = vst [vmem:[#allocation32_spill] sm:$0xff] %v18213_v0  ;;  %v7078_v24 = vadd.f32 %v7077_v30, %v18081_v52  ;;  %v14329_v0 = vor.u32 %v15945_v5, %v14328_v22  ;;  %v18232_v46 = vpop.f32.mrf.mxu0  ;;  %v16038_v5 = vld [vmem:[#allocation12 + $0xab0] sm:$0xff] }
 0xbfc   : > { %v7111_v50 = vpack.c.bf16 %v7078_v24, %v7076_v45  ;;  %v16039_v24 = vld [vmem:[#allocation12 + $0xab8] sm:$0xff] }
 0xbfd   : > { %v6673_v7 = vpop.f32.mrf.mxu2  ;;  %9005 = vmatpush.bf16.msra.mxu0 %v16039_v24  ;;  %v19766_v24 = vld [vmem:[#allocation39_spill] sm:$0xff] }
 0xbfe   : > { %7244 = vmatmul.bf16.gmra.mxu3 %v7111_v50  ;;  %v18223_v1 = vadd.f32 %v6673_v7, %v19761_v10  ;;  %v16037_v10 = vld [vmem:[#allocation12 + $0xaa8] sm:$0xff] }
 0xc01   : > { %v7080_v8 = vpop.f32.mrf.mxu1  ;;  %v18227_v30 = vpop.f32.mrf.mxu3  ;;  %9006 = vmatpush.bf16.msra.mxu0 %v16038_v5  ;;  %v19767_v5 = vpack.c.bf16 %v18093_v15, %v18090_v49  ;;  %v15949_v49 = vld [vmem:[#allocation11 + $0x2e4] sm:$0xf0]  ;;  %v15932_v15 = vld [vmem:[#allocation11 + $0x264] sm:$0xf] }
 0xc02   : > { %19762 = vst [vmem:[#allocation44_spill] sm:$0xff] %v18227_v30  ;;  %7346 = vmatmul.bf16.gmra.mxu2 %v19763_v33  ;;  %7668 = vmatmul.bf16.gmra.mxu0 %v14329_v0  ;;  %v7081_v63 = vadd.f32 %v7080_v8, %v18087_v51  ;;  %v14274_v0 = vld [vmem:[#allocation11 + $0x258] sm:$0xf0]  ;;  %v19765_v33 = vld [vmem:[#allocation38_spill] sm:$0xff]  ;;  %v18244_v8 = vpop.f32.mrf.mxu0 }
 0xc03   : > { %v14277_v51 = vor.u32 %v15930_v37, %v14274_v0 }
 0xc04   : > { %7717 = vmatmul.bf16.gmra.mxu1 %v14269_v16 }
 0xc05   : > { %v6676_v45 = vpop.f32.mrf.mxu2  ;;  %9007 = vmatpush.bf16.msra.mxu0 %v16037_v10  ;;  %v16034_v10 = vld [vmem:[#allocation12 + $0xa90] sm:$0xff] }
 0xc06   : > { %v18239_v52 = vadd.f32 %v6676_v45, %v19765_v33 }
 0xc09   : > { %v7082_v50 = vpop.f32.mrf.mxu1  ;;  %v18234_v22 = vpop.f32.mrf.mxu3 }
 0xc0a   : > { %19764 = vst [vmem:[#allocation54_spill] sm:$0xff] %v18234_v22  ;;  %v7083_v43 = vadd.f32 %v7082_v50, %v18099_v53  ;;  %v14337_v22 = vor.u32 %v15947_v23, %v14336_v20 }
 0xc0c   : > { %v7112_v7 = vpack.c.bf16 %v7083_v43, %v7081_v63  ;;  %v16036_v43 = vld [vmem:[#allocation12 + $0xaa0] sm:$0xff] }
 0xc0d   : > { %v6678_v16 = vpop.f32.mrf.mxu2  ;;  %9008 = vmatpush.bf16.msra.mxu0 %v16036_v43  ;;  %v16033_v43 = vld [vmem:[#allocation12 + $0xa88] sm:$0xff] }
 0xc0e   : > { %7249 = vmatmul.bf16.gmra.mxu3 %v7112_v7  ;;  %v18242_v30 = vadd.f32 %v6678_v16, %v19766_v24  ;;  %v16035_v7 = vld [vmem:[#allocation12 + $0xa98] sm:$0xff]  ;;  %v18257_v16 = vpop.f32.mrf.mxu0  ;;  %v14344_v24 = vld [vmem:[#allocation11 + $0x2e0] sm:$0xf] }
 0xc11   : > { %v7085_v50 = vpop.f32.mrf.mxu1  ;;  %v18248_v63 = vpop.f32.mrf.mxu3  ;;  %9009 = vmatpush.bf16.msra.mxu0 %v16035_v7 }
 0xc12   : > { %7351 = vmatmul.bf16.gmra.mxu2 %v19767_v5  ;;  %7673 = vmatmul.bf16.gmra.mxu0 %v14337_v22  ;;  %v7086_v37 = vadd.f32 %v7085_v50, %v18105_v21  ;;  %v14282_v22 = vld [vmem:[#allocation11 + $0x268] sm:$0xf0]  ;;  %v19768_v5 = vld [vmem:[#allocation40_spill] sm:$0xff]  ;;  %v14345_v21 = vor.u32 %v15949_v49, %v14344_v24  ;;  %v14290_v50 = vld [vmem:[#allocation11 + $0x278] sm:$0xf0] }
 0xc14   : > { %7722 = vmatmul.bf16.gmra.mxu1 %v14277_v51 }
 0xc15   : > { %v6681_v45 = vpop.f32.mrf.mxu2  ;;  %9010 = vmatpush.bf16.msra.mxu0 %v16034_v10  ;;  %v19769_v10 = vpack.c.bf16 %v18111_v27, %v18108_v54 }
 0xc16   : > { %v18260_v53 = vadd.f32 %v6681_v45, %v19768_v5  ;;  %v18272_v45 = vpop.f32.mrf.mxu0  ;;  %v15934_v5 = vld [vmem:[#allocation11 + $0x274] sm:$0xf] }
 0xc19   : > { %v7087_v20 = vpop.f32.mrf.mxu1  ;;  %v18253_v23 = vpop.f32.mrf.mxu3  ;;  %9011 = vmatpush.bf16.msra.mxu0 %v16033_v43  ;;  %v15951_v43 = vld [vmem:[#allocation11 + $0x2f4] sm:$0xf0] }
 0xc1a   : > { %v7088_v0 = vadd.f32 %v7087_v20, %v18117_v29  ;;  %v14285_v29 = vor.u32 %v15932_v15, %v14282_v22 }
 0xc1c   : > { %v7113_v33 = vpack.c.bf16 %v7088_v0, %v7086_v37  ;;  %v16032_v0 = vld [vmem:[#allocation12 + $0xa80] sm:$0xff] }
 0xc1d   : > { %v6683_v51 = vpop.f32.mrf.mxu2  ;;  %9012 = vmatpush.bf16.msra.mxu0 %v16032_v0 }
 0xc1e   : > { %7254 = vmatmul.bf16.gmra.mxu3 %v7113_v33  ;;  %v18263_v7 = vadd.f32 %v6683_v51, %v18097_v2  ;;  %v14352_v51 = vld [vmem:[#allocation11 + $0x2f0] sm:$0xf]  ;;  %v18278_v27 = vpop.f32.mrf.mxu0 }
 0xc21   : > { %v7090_v20 = vpop.f32.mrf.mxu1  ;;  %v18267_v37 = vpop.f32.mrf.mxu3 }
 0xc22   : > { %7356 = vmatmul.bf16.gmra.mxu2 %v19769_v10  ;;  %7678 = vmatmul.bf16.gmra.mxu0 %v14345_v21  ;;  %v7091_v49 = vadd.f32 %v7090_v20, %v18129_v44  ;;  %v19771_v21 = vld [vmem:[#allocation41_spill] sm:$0xff]  ;;  %v14353_v10 = vor.u32 %v15951_v43, %v14352_v51  ;;  %v15936_v43 = vld [vmem:[#allocation11 + $0x284] sm:$0xf] }
 0xc24   : > { %7727 = vmatmul.bf16.gmra.mxu1 %v14285_v29 }
 0xc25   : > { %v6686_v2 = vpop.f32.mrf.mxu2 }
 0xc26   : > { %v18281_v29 = vadd.f32 %v6686_v2, %v19771_v21  ;;  %v18293_v2 = vpop.f32.mrf.mxu0  ;;  %v14394_v21 = vld [vmem:[#allocation11 + $0x308] sm:$0xf0] }
 0xc29   : > { %v7092_v33 = vpop.f32.mrf.mxu1  ;;  %v18274_v24 = vpop.f32.mrf.mxu3 }
 0xc2a   : > { %19770 = vst [vmem:[#allocation45_spill] sm:$0xff] %v18274_v24  ;;  %v7093_v15 = vadd.f32 %v7092_v33, %v18144_v47  ;;  %v14293_v24 = vor.u32 %v15934_v5, %v14290_v50  ;;  %v19772_v33 = vpack.c.bf16 %v18125_v17, %v18122_v28  ;;  %v14298_v5 = vld [vmem:[#allocation11 + $0x288] sm:$0xf0] }
 0xc2c   : > { %v7114_v22 = vpack.c.bf16 %v7093_v15, %v7091_v49 }
 0xc2d   : > { %v6688_v54 = vpop.f32.mrf.mxu2 }
 0xc2e   : > { %7259 = vmatmul.bf16.gmra.mxu3 %v7114_v22  ;;  %v18284_v0 = vadd.f32 %v6688_v54, %v18115_v36  ;;  %v15960_v54 = vld [vmem:[#allocation11 + $0x304] sm:$0xf] }
 0xc31   : > { %v7095_v47 = vpop.f32.mrf.mxu1  ;;  %v18288_v20 = vpop.f32.mrf.mxu3 }
 0xc32   : > { %7361 = vmatmul.bf16.gmra.mxu2 %v19772_v33  ;;  %7683 = vmatmul.bf16.gmra.mxu0 %v14353_v10  ;;  %v7096_v50 = vadd.f32 %v7095_v47, %v18163_v35  ;;  %v14301_v10 = vor.u32 %v15936_v43, %v14298_v5  ;;  %v14397_v33 = vor.u32 %v15960_v54, %v14394_v21 }
 0xc34   : > { %7732 = vmatmul.bf16.gmra.mxu1 %v14293_v24 }
 0xc35   : > { %v6691_v49 = vpop.f32.mrf.mxu2 }
 0xc36   : > { %v18300_v17 = vadd.f32 %v6691_v49, %v18127_v60 }
 0xc39   : > { %v7097_v15 = vpop.f32.mrf.mxu1  ;;  %v18295_v36 = vpop.f32.mrf.mxu3 }
 0xc3a   : > { %v7098_v22 = vadd.f32 %v7097_v15, %v18175_v6  ;;  %v18309_v15 = vpop.f32.mrf.mxu0 }
 0xc3c   : > { %v7115_v51 = vpack.c.bf16 %v7098_v22, %v7096_v50  ;;  %v19773_v50 = vpack.c.bf16 %v18152_v34, %v18149_v11  ;;  %v15938_v11 = vld [vmem:[#allocation11 + $0x294] sm:$0xf]  ;;  %v14306_v34 = vld [vmem:[#allocation11 + $0x298] sm:$0xf0] }
 0xc3d   : > { %v6693_v28 = vpop.f32.mrf.mxu2  ;;  %v14309_v54 = vor.u32 %v15938_v11, %v14306_v34 }
 0xc3e   : > { %7264 = vmatmul.bf16.gmra.mxu3 %v7115_v51  ;;  %v18303_v24 = vadd.f32 %v6693_v28, %v18140_v25 }
 0xc41   : > { %v18307_v47 = vpop.f32.mrf.mxu3  ;;  %v7698_v6 = vpop.f32.mrf.mxu1 }
 0xc42   : > { %7366 = vmatmul.bf16.gmra.mxu2 %v19773_v50  ;;  %8270 = vmatmul.bf16.vlgmr.msrb.gmra.mxu0 %v14397_v33  ;;  %v7699_v22 = vadd.f32 %v7698_v6, %v18192_v62  ;;  %v19774_v62 = vpack.c.bf16 %v18181_v13, %v18178_v9  ;;  %v15940_v13 = vld [vmem:[#allocation11 + $0x2a4] sm:$0xf] }
 0xc43   : > { %9892 = vmatpush.bf16.msrb.mxu0 %v17722_v18  ;;  %v14402_v18 = vld [vmem:[#allocation11 + $0x318] sm:$0xf0] }
 0xc44   : > { %7737 = vmatmul.bf16.gmra.mxu1 %v14301_v10 }
 0xc45   : > { %v18315_v60 = vpop.f32.mrf.mxu2 }
 0xc47   : > { %9893 = vmatpush.bf16.msrb.mxu0 %v17704_v26  ;;  %v15962_v26 = vld [vmem:[#allocation11 + $0x314] sm:$0xf] }
 0xc49   : > { %v18318_v25 = vpop.f32.mrf.mxu3  ;;  %v7700_v49 = vpop.f32.mrf.mxu1 }
 0xc4a   : > { %v7701_v51 = vadd.f32 %v7700_v49, %v18208_v40  ;;  %v14314_v49 = vld [vmem:[#allocation11 + $0x2a8] sm:$0xf0] }
 0xc4b   : > { %9894 = vmatpush.bf16.msrb.mxu0 %v17691_v3 }
 0xc4c   : > { %v7778_v43 = vpack.c.bf16 %v7701_v51, %v7699_v22  ;;  %v14317_v51 = vor.u32 %v15940_v13, %v14314_v49 }
 0xc4d   : > { %v18323_v5 = vpop.f32.mrf.mxu2 }
 0xc4e   : > { %7867 = vmatmul.bf16.vlgmr.msrb.gmra.mxu3 %v7778_v43 }
 0xc4f   : > { %9408 = vmatpush.bf16.msrb.mxu3 %v17849_v61  ;;  %9895 = vmatpush.bf16.msrb.mxu0 %v17676_v32 }
 0xc51   : > { %v18327_v21 = vpop.f32.mrf.mxu3  ;;  %v7703_v28 = vpop.f32.mrf.mxu1 }
 0xc52   : > { %7371 = vmatmul.bf16.gmra.mxu2 %v19774_v62  ;;  %v7704_v6 = vadd.f32 %v7703_v28, %v18217_v58 }
 0xc53   : > { %9409 = vmatpush.bf16.msrb.mxu3 %v17862_v57  ;;  %9896 = vmatpush.bf16.msrb.mxu0 %v17664_v48 }
 0xc54   : > { %7742 = vmatmul.bf16.gmra.mxu1 %v14309_v54 }
 0xc55   : > { %v18334_v40 = vpop.f32.mrf.mxu2 }
 0xc57   : > { %9410 = vmatpush.bf16.msrb.mxu3 %v17873_v14  ;;  %9897 = vmatpush.bf16.msrb.mxu0 %v17647_v31  ;;  %v15948_v31 = vld [vmem:[#allocation11 + $0x2e4] sm:$0xf] }
 0xc59   : > { %v18338_v10 = vpop.f32.mrf.mxu3  ;;  %v7705_v33 = vpop.f32.mrf.mxu1 }
 0xc5a   : > { %v7706_v50 = vadd.f32 %v7705_v33, %v18232_v46  ;;  %v19775_v46 = vpack.c.bf16 %v18202_v59, %v18199_v42  ;;  %v7634_v33 = vpop.f32.mrf.mxu0 }
 0xc5b   : > { %9411 = vmatpush.bf16.msrb.mxu3 %v17882_v55  ;;  %9898 = vmatpush.bf16.msrb.mxu0 %v17628_v19 }
 0xc5c   : > { %v7779_v9 = vpack.c.bf16 %v7706_v50, %v7704_v6  ;;  %v15942_v50 = vld [vmem:[#allocation11 + $0x2b4] sm:$0xf] }
 0xc5d   : > { %v18344_v22 = vpop.f32.mrf.mxu2 }
 0xc5e   : > { %7872 = vmatmul.bf16.gmra.mxu3 %v7779_v9  ;;  %v14322_v9 = vld [vmem:[#allocation11 + $0x2b8] sm:$0xf0] }
 0xc5f   : > { %9412 = vmatpush.bf16.msrb.mxu3 %v17889_v12  ;;  %9899 = vmatpush.bf16.msrb.mxu0 %v19750_v56  ;;  %v14325_v59 = vor.u32 %v15942_v50, %v14322_v9  ;;  %v15944_v50 = vld [vmem:[#allocation11 + $0x2c4] sm:$0xf]  ;;  %v14330_v9 = vld [vmem:[#allocation11 + $0x2c8] sm:$0xf0] }
 0xc60   : > { %v14333_v44 = vor.u32 %v15944_v50, %v14330_v9  ;;  %v15946_v50 = vld [vmem:[#allocation11 + $0x2d4] sm:$0xf]  ;;  %v14338_v9 = vld [vmem:[#allocation11 + $0x2d8] sm:$0xf0] }
 0xc61   : > { %v18348_v43 = vpop.f32.mrf.mxu3  ;;  %v7708_v58 = vpop.f32.mrf.mxu1  ;;  %v14341_v19 = vor.u32 %v15946_v50, %v14338_v9  ;;  %v14346_v50 = vld [vmem:[#allocation11 + $0x2e8] sm:$0xf0] }
 0xc62   : > { %7376 = vmatmul.bf16.gmra.mxu2 %v19775_v46  ;;  %v7709_v28 = vadd.f32 %v7708_v58, %v18244_v8  ;;  %v19776_v46 = vpack.c.bf16 %v18223_v1, %v18220_v38  ;;  %v14349_v48 = vor.u32 %v15948_v31, %v14346_v50  ;;  %v14354_v31 = vld [vmem:[#allocation11 + $0x2f8] sm:$0xf0] }
 0xc63   : > { %9413 = vmatpush.bf16.msrb.mxu3 %v17895_v4 }
 0xc64   : > { %7747 = vmatmul.bf16.gmra.mxu1 %v14317_v51  ;;  %v7636_v51 = vpop.f32.mrf.mxu0 }
 0xc65   : > { %v18354_v11 = vpop.f32.mrf.mxu2 }
 0xc67   : > { %9414 = vmatpush.bf16.msrb.mxu3 %v17901_v41 }
 0xc69   : > { %v18357_v34 = vpop.f32.mrf.mxu3  ;;  %v7710_v54 = vpop.f32.mrf.mxu1 }
 0xc6a   : > { %v7711_v62 = vadd.f32 %v7710_v54, %v18257_v16 }
 0xc6b   : > { %9415 = vmatpush.bf16.msrb.mxu3 %v19749_v39 }
 0xc6c   : > { %v7780_v6 = vpack.c.bf16 %v7711_v62, %v7709_v28  ;;  %v7639_v62 = vpop.f32.mrf.mxu0 }
 0xc6d   : > { %v18362_v42 = vpop.f32.mrf.mxu2 }
 0xc6e   : > { %7877 = vmatmul.bf16.gmra.mxu3 %v7780_v6 }
 0xc71   : > { %v18364_v13 = vpop.f32.mrf.mxu3  ;;  %v7713_v49 = vpop.f32.mrf.mxu1 }
 0xc72   : > { %7381 = vmatmul.bf16.gmra.mxu2 %v19776_v46  ;;  %v7714_v54 = vadd.f32 %v7713_v49, %v18272_v45  ;;  %v19777_v46 = vpack.c.bf16 %v18242_v30, %v18239_v52 }
 0xc74   : > { %7752 = vmatmul.bf16.gmra.mxu1 %v14325_v59  ;;  %v7641_v59 = vpop.f32.mrf.mxu0 }
 0xc75   : > { %v18369_v8 = vpop.f32.mrf.mxu2 }
 0xc79   : > { %v18371_v16 = vpop.f32.mrf.mxu3  ;;  %v7715_v58 = vpop.f32.mrf.mxu1 }
 0xc7a   : > { %v7716_v28 = vadd.f32 %v7715_v58, %v18278_v27 }
 0xc7c   : > { %v7781_v6 = vpack.c.bf16 %v7716_v28, %v7714_v54  ;;  %v7644_v28 = vpop.f32.mrf.mxu0 }
 0xc7d   : > { %v18375_v35 = vpop.f32.mrf.mxu2 }
 0xc7e   : > { %7882 = vmatmul.bf16.gmra.mxu3 %v7781_v6 }
 0xc81   : > { %v18377_v38 = vpop.f32.mrf.mxu3  ;;  %v7718_v1 = vpop.f32.mrf.mxu1 }
 0xc82   : > { %7386 = vmatmul.bf16.gmra.mxu2 %v19777_v46  ;;  %v7719_v58 = vadd.f32 %v7718_v1, %v18293_v2  ;;  %v19780_v46 = vpack.c.bf16 %v18263_v7, %v18260_v53 }
 0xc84   : > { %7757 = vmatmul.bf16.gmra.mxu1 %v14333_v44  ;;  %v7646_v44 = vpop.f32.mrf.mxu0 }
 0xc85   : > { %v18382_v45 = vpop.f32.mrf.mxu2 }
 0xc89   : > { %v18384_v27 = vpop.f32.mrf.mxu3  ;;  %v7720_v49 = vpop.f32.mrf.mxu1 }
 0xc8a   : > { %19778 = vst [vmem:[#allocation42_spill] sm:$0xff] %v18384_v27  ;;  %v7721_v54 = vadd.f32 %v7720_v49, %v18309_v15 }
 0xc8c   : > { %v7782_v6 = vpack.c.bf16 %v7721_v54, %v7719_v58  ;;  %v7649_v54 = vpop.f32.mrf.mxu0 }
 0xc8d   : > { %v18388_v56 = vpop.f32.mrf.mxu2 }
 0xc8e   : > { %7887 = vmatmul.bf16.gmra.mxu3 %v7782_v6 }
 0xc91   : > { %v18390_v52 = vpop.f32.mrf.mxu3  ;;  %v7723_v30 = vpop.f32.mrf.mxu1 }
 0xc92   : > { %19779 = vst [vmem:[#allocation37_spill] sm:$0xff] %v18390_v52  ;;  %7391 = vmatmul.bf16.gmra.mxu2 %v19780_v46  ;;  %v7724_v49 = vadd.f32 %v7723_v30, %v7634_v33 }
 0xc94   : > { %7762 = vmatmul.bf16.gmra.mxu1 %v14341_v19  ;;  %v7651_v7 = vpop.f32.mrf.mxu0  ;;  %v19783_v19 = vpack.c.bf16 %v18284_v0, %v18281_v29  ;;  %v14405_v0 = vor.u32 %v15962_v26, %v14402_v18 }
 0xc95   : > { %v18395_v2 = vpop.f32.mrf.mxu2 }
 0xc96   : > { %8275 = vmatmul.bf16.gmra.mxu0 %v14405_v0 }
 0xc99   : > { %v18397_v15 = vpop.f32.mrf.mxu3  ;;  %v7725_v1 = vpop.f32.mrf.mxu1 }
 0xc9a   : > { %19781 = vst [vmem:[#allocation43_spill] sm:$0xff] %v18397_v15  ;;  %v7726_v58 = vadd.f32 %v7725_v1, %v7636_v51 }
 0xc9c   : > { %v7783_v6 = vpack.c.bf16 %v7726_v58, %v7724_v49  ;;  %v7654_v49 = vpop.f32.mrf.mxu0 }
 0xc9d   : > { %v18399_v9 = vpop.f32.mrf.mxu2 }
 0xc9e   : > { %7892 = vmatmul.bf16.gmra.mxu3 %v7783_v6  ;;  %v15950_v6 = vld [vmem:[#allocation11 + $0x2f4] sm:$0xf] }
 0xc9f   : > { %v14357_v3 = vor.u32 %v15950_v6, %v14354_v31  ;;  %v14392_v6 = vld [vmem:[#allocation11 + $0x300] sm:$0xf]  ;;  %v15961_v31 = vld [vmem:[#allocation11 + $0x304] sm:$0xf0] }
 0xca0   : > { %v14393_v18 = vor.u32 %v15961_v31, %v14392_v6  ;;  %v14400_v6 = vld [vmem:[#allocation11 + $0x310] sm:$0xf]  ;;  %v15963_v31 = vld [vmem:[#allocation11 + $0x314] sm:$0xf0] }
 0xca1   : > { %v18401_v32 = vpop.f32.mrf.mxu3  ;;  %v7728_v53 = vpop.f32.mrf.mxu1 }
 0xca2   : > { %19782 = vst [vmem:[#allocation36_spill] sm:$0xff] %v18401_v32  ;;  %7396 = vmatmul.bf16.gmra.mxu2 %v19783_v19  ;;  %v7729_v30 = vadd.f32 %v7728_v53, %v7639_v62 }
 0xca4   : > { %7767 = vmatmul.bf16.gmra.mxu1 %v14349_v48  ;;  %v7656_v19 = vpop.f32.mrf.mxu0 }
 0xca5   : > { %v18406_v46 = vpop.f32.mrf.mxu2 }
 0xca9   : > { %v18408_v33 = vpop.f32.mrf.mxu3  ;;  %v7730_v51 = vpop.f32.mrf.mxu1 }
 0xcaa   : > { %19784 = vst [vmem:[#allocation38_spill] sm:$0xff] %v18408_v33  ;;  %v7731_v1 = vadd.f32 %v7730_v51, %v7641_v59  ;;  %v19786_v33 = vpack.c.bf16 %v18303_v24, %v18300_v17  ;;  %v15964_v17 = vld [vmem:[#allocation11 + $0x324] sm:$0xf]  ;;  %v14410_v24 = vld [vmem:[#allocation11 + $0x328] sm:$0xf0] }
 0xcab   : > { %v14413_v0 = vor.u32 %v15964_v17, %v14410_v24  ;;  %v19790_v17 = vld [vmem:[#allocation33_spill] sm:$0xff]  ;;  %v15966_v24 = vld [vmem:[#allocation11 + $0x334] sm:$0xf] }
 0xcac   : > { %v7784_v58 = vpack.c.bf16 %v7731_v1, %v7729_v30  ;;  %v18421_v1 = vpop.f32.mrf.mxu0 }
 0xcad   : > { %v18410_v50 = vpop.f32.mrf.mxu2  ;;  %8280 = vmatmul.bf16.gmra.mxu0 %v14413_v0  ;;  %v14418_v0 = vld [vmem:[#allocation11 + $0x338] sm:$0xf0] }
 0xcae   : > { %7897 = vmatmul.bf16.gmra.mxu3 %v7784_v58 }
 0xcb1   : > { %v18412_v29 = vpop.f32.mrf.mxu3  ;;  %v7733_v48 = vpop.f32.mrf.mxu1 }
 0xcb2   : > { %19785 = vst [vmem:[#allocation39_spill] sm:$0xff] %v18412_v29  ;;  %7401 = vmatmul.bf16.gmra.mxu2 %v19786_v33  ;;  %v7734_v51 = vadd.f32 %v7733_v48, %v7644_v28 }
 0xcb4   : > { %7772 = vmatmul.bf16.gmra.mxu1 %v14357_v3  ;;  %v7661_v29 = vpop.f32.mrf.mxu0 }
 0xcb5   : > { %v18417_v62 = vpop.f32.mrf.mxu2 }
 0xcb9   : > { %v18419_v59 = vpop.f32.mrf.mxu3  ;;  %v7735_v53 = vpop.f32.mrf.mxu1 }
 0xcba   : > { %19787 = vst [vmem:[#allocation40_spill] sm:$0xff] %v18419_v59  ;;  %v7736_v30 = vadd.f32 %v7735_v53, %v7646_v44 }
 0xcbc   : > { %v7785_v58 = vpack.c.bf16 %v7736_v30, %v7734_v51  ;;  %v18431_v30 = vpop.f32.mrf.mxu0 }
 0xcbd   : > { %v18423_v26 = vpop.f32.mrf.mxu2 }
 0xcbe   : > { %7902 = vmatmul.bf16.gmra.mxu3 %v7785_v58 }
 0xcc1   : > { %v18425_v33 = vpop.f32.mrf.mxu3  ;;  %v7738_v3 = vpop.f32.mrf.mxu1 }
 0xcc2   : > { %19788 = vst [vmem:[#allocation41_spill] sm:$0xff] %v18425_v33  ;;  %8181 = vmatmul.bf16.vlgmr.msrb.gmra.mxu2 %v14393_v18  ;;  %v7739_v53 = vadd.f32 %v7738_v3, %v7649_v54  ;;  %v14401_v33 = vor.u32 %v15963_v31, %v14400_v6  ;;  %v7328_v18 = vadd.f32 %v18315_v60, %v19790_v17  ;;  %v19792_v3 = vld [vmem:[#allocation35_spill] sm:$0xff] }
 0xcc4   : > { %v7666_v54 = vpop.f32.mrf.mxu0 }
 0xcc5   : > { %v18427_v28 = vpop.f32.mrf.mxu2 }
 0xcc9   : > { %v18429_v44 = vpop.f32.mrf.mxu3  ;;  %v7740_v48 = vpop.f32.mrf.mxu1 }
 0xcca   : > { %19789 = vst [vmem:[#allocation55_spill] sm:$0xff] %v18429_v44  ;;  %v7741_v51 = vadd.f32 %v7740_v48, %v7651_v7  ;;  %v14421_v44 = vor.u32 %v15966_v24, %v14418_v0  ;;  %v7330_v48 = vadd.f32 %v18323_v5, %v19792_v3  ;;  %v14408_v24 = vld [vmem:[#allocation11 + $0x320] sm:$0xf]  ;;  %v14426_v5 = vld [vmem:[#allocation11 + $0x348] sm:$0xf0] }
 0xccc   : > { %v7786_v58 = vpack.c.bf16 %v7741_v51, %v7739_v53  ;;  %8285 = vmatmul.bf16.gmra.mxu0 %v14421_v44  ;;  %v18445_v31 = vpop.f32.mrf.mxu0  ;;  %v19794_v44 = vld [vmem:[#allocation31_spill] sm:$0xff] }
 0xccd   : > { %v18433_v59 = vpop.f32.mrf.mxu2  ;;  %v7333_v0 = vadd.f32 %v18334_v40, %v19794_v44  ;;  %v15967_v44 = vld [vmem:[#allocation11 + $0x334] sm:$0xf0] }
 0xcce   : > { %7907 = vmatmul.bf16.gmra.mxu3 %v7786_v58 }
 0xcd1   : > { %v7743_v32 = vpop.f32.mrf.mxu1  ;;  %v7868_v15 = vpop.f32.mrf.mxu3 }
 0xcd2   : > { %v18437_v52 = vadd.f32 %v7868_v15, %v7328_v18  ;;  %8186 = vmatmul.bf16.gmra.mxu2 %v14401_v33  ;;  %v7744_v58 = vadd.f32 %v7743_v32, %v7654_v49  ;;  %v15965_v15 = vld [vmem:[#allocation11 + $0x324] sm:$0xf0] }
 0xcd3   : > { %v14409_v33 = vor.u32 %v15965_v15, %v14408_v24 }
 0xcd4   : > { %19791 = vst [vmem:[#allocation33_spill] sm:$0xff] %v18437_v52  ;;  %v15968_v52 = vld [vmem:[#allocation11 + $0x344] sm:$0xf] }
 0xcd5   : > { %v18439_v7 = vpop.f32.mrf.mxu2  ;;  %v14429_v32 = vor.u32 %v15968_v52, %v14426_v5  ;;  %v19798_v5 = vld [vmem:[#allocation30_spill] sm:$0xff] }
 0xcd9   : > { %v7745_v53 = vpop.f32.mrf.mxu1  ;;  %v7870_v51 = vpop.f32.mrf.mxu3 }
 0xcda   : > { %v7746_v6 = vadd.f32 %v7745_v53, %v7656_v19  ;;  %v18443_v60 = vadd.f32 %v7870_v51, %v7330_v48  ;;  %v7671_v19 = vpop.f32.mrf.mxu0  ;;  %v19796_v53 = vld [vmem:[#allocation34_spill] sm:$0xff] }
 0xcdb   : > { %v7335_v51 = vadd.f32 %v18344_v22, %v19796_v53  ;;  %v15970_v22 = vld [vmem:[#allocation11 + $0x354] sm:$0xf]  ;;  %v14434_v53 = vld [vmem:[#allocation11 + $0x358] sm:$0xf0] }
 0xcdc   : > { %19793 = vst [vmem:[#allocation35_spill] sm:$0xff] %v18443_v60  ;;  %v7787_v17 = vpack.c.bf16 %v7746_v6, %v7744_v58  ;;  %8290 = vmatmul.bf16.gmra.mxu0 %v14429_v32  ;;  %v7338_v32 = vadd.f32 %v18354_v11, %v19798_v5 }
 0xcdd   : > { %v18447_v18 = vpop.f32.mrf.mxu2 }
 0xcde   : > { %7912 = vmatmul.bf16.gmra.mxu3 %v7787_v17 }
 0xce1   : > { %v7748_v3 = vpop.f32.mrf.mxu1  ;;  %v7873_v27 = vpop.f32.mrf.mxu3 }
 0xce2   : > { %v18451_v49 = vadd.f32 %v7873_v27, %v7333_v0  ;;  %8191 = vmatmul.bf16.gmra.mxu2 %v14409_v33  ;;  %v7749_v17 = vadd.f32 %v7748_v3, %v18421_v1  ;;  %v18460_v15 = vpop.f32.mrf.mxu0  ;;  %v14416_v27 = vld [vmem:[#allocation11 + $0x330] sm:$0xf]  ;;  %v14437_v1 = vor.u32 %v15970_v22, %v14434_v53  ;;  %v19801_v53 = vld [vmem:[#allocation44_spill] sm:$0xff] }
 0xce3   : > { %v14417_v0 = vor.u32 %v15967_v44, %v14416_v27 }
 0xce4   : > { %19795 = vst [vmem:[#allocation31_spill] sm:$0xff] %v18451_v49 }
 0xce5   : > { %v18453_v48 = vpop.f32.mrf.mxu2 }
 0xce9   : > { %v7750_v58 = vpop.f32.mrf.mxu1  ;;  %v7875_v6 = vpop.f32.mrf.mxu3 }
 0xcea   : > { %v7751_v40 = vadd.f32 %v7750_v58, %v7661_v29  ;;  %v18458_v24 = vadd.f32 %v7875_v6, %v7335_v51  ;;  %v7676_v3 = vpop.f32.mrf.mxu0  ;;  %v19800_v58 = vld [vmem:[#allocation32_spill] sm:$0xff] }
 0xceb   : > { %v7340_v6 = vadd.f32 %v18362_v42, %v19800_v58  ;;  %v15972_v42 = vld [vmem:[#allocation11 + $0x364] sm:$0xf]  ;;  %v14442_v58 = vld [vmem:[#allocation11 + $0x368] sm:$0xf0] }
 0xcec   : > { %19797 = vst [vmem:[#allocation34_spill] sm:$0xff] %v18458_v24  ;;  %v7788_v52 = vpack.c.bf16 %v7751_v40, %v7749_v17  ;;  %8295 = vmatmul.bf16.gmra.mxu0 %v14437_v1  ;;  %v7343_v1 = vadd.f32 %v18369_v8, %v19801_v53  ;;  %v14432_v53 = vld [vmem:[#allocation11 + $0x350] sm:$0xf] }
 0xced   : > { %v18462_v33 = vpop.f32.mrf.mxu2 }
 0xcee   : > { %7917 = vmatmul.bf16.gmra.mxu3 %v7788_v52 }
 0xcf1   : > { %v7753_v49 = vpop.f32.mrf.mxu1  ;;  %v7878_v60 = vpop.f32.mrf.mxu3 }
 0xcf2   : > { %v18466_v29 = vadd.f32 %v7878_v60, %v7338_v32  ;;  %8196 = vmatmul.bf16.gmra.mxu2 %v14417_v0  ;;  %v7754_v52 = vadd.f32 %v7753_v49, %v18431_v30  ;;  %v18475_v44 = vpop.f32.mrf.mxu0  ;;  %v14424_v60 = vld [vmem:[#allocation11 + $0x340] sm:$0xf]  ;;  %v15969_v32 = vld [vmem:[#allocation11 + $0x344] sm:$0xf0]  ;;  %v14445_v30 = vor.u32 %v15972_v42, %v14442_v58  ;;  %v15971_v42 = vld [vmem:[#allocation11 + $0x354] sm:$0xf0]  ;;  %v7348_v58 = vadd.f32 %v18382_v45, %v18248_v63 }
 0xcf3   : > { %v14425_v22 = vor.u32 %v15969_v32, %v14424_v60 }
 0xcf4   : > { %19799 = vst [vmem:[#allocation30_spill] sm:$0xff] %v18466_v29 }
 0xcf5   : > { %v18468_v51 = vpop.f32.mrf.mxu2 }
 0xcf9   : > { %v7755_v17 = vpop.f32.mrf.mxu1  ;;  %v7880_v40 = vpop.f32.mrf.mxu3 }
 0xcfa   : > { %v7756_v11 = vadd.f32 %v7755_v17, %v7666_v54  ;;  %v18473_v27 = vadd.f32 %v7880_v40, %v7340_v6  ;;  %v7681_v49 = vpop.f32.mrf.mxu0  ;;  %v19803_v17 = vld [vmem:[#allocation54_spill] sm:$0xff] }
 0xcfb   : > { %v7345_v40 = vadd.f32 %v18375_v35, %v19803_v17  ;;  %v15974_v35 = vld [vmem:[#allocation11 + $0x374] sm:$0xf] }
 0xcfc   : > { %v7789_v5 = vpack.c.bf16 %v7756_v11, %v7754_v52  ;;  %8300 = vmatmul.bf16.gmra.mxu0 %v14445_v30  ;;  %v14450_v30 = vld [vmem:[#allocation11 + $0x378] sm:$0xf0] }
 0xcfd   : > { %v18477_v0 = vpop.f32.mrf.mxu2 }
 0xcfe   : > { %7922 = vmatmul.bf16.gmra.mxu3 %v7789_v5 }
 0xd01   : > { %v7758_v29 = vpop.f32.mrf.mxu1  ;;  %v7883_v24 = vpop.f32.mrf.mxu3 }
 0xd02   : > { %v18481_v54 = vadd.f32 %v7883_v24, %v7343_v1  ;;  %8201 = vmatmul.bf16.gmra.mxu2 %v14425_v22  ;;  %v7759_v5 = vadd.f32 %v7758_v29, %v18445_v31  ;;  %v18492_v22 = vpop.f32.mrf.mxu0  ;;  %v14433_v1 = vor.u32 %v15971_v42, %v14432_v53  ;;  %v14453_v31 = vor.u32 %v15974_v35, %v14450_v30  ;;  %v14440_v53 = vld [vmem:[#allocation11 + $0x360] sm:$0xf]  ;;  %v15973_v42 = vld [vmem:[#allocation11 + $0x364] sm:$0xf0] }
 0xd04   : > { %19802 = vst [vmem:[#allocation32_spill] sm:$0xff] %v18481_v54 }
 0xd05   : > { %v18483_v6 = vpop.f32.mrf.mxu2 }
 0xd09   : > { %v7760_v52 = vpop.f32.mrf.mxu1  ;;  %v7885_v11 = vpop.f32.mrf.mxu3 }
 0xd0a   : > { %v7761_v8 = vadd.f32 %v7760_v52, %v7671_v19  ;;  %v18488_v60 = vadd.f32 %v7885_v11, %v7345_v40  ;;  %v7350_v40 = vadd.f32 %v18388_v56, %v18253_v23  ;;  %v7686_v52 = vpop.f32.mrf.mxu0  ;;  %v15976_v56 = vld [vmem:[#allocation11 + $0x384] sm:$0xf]  ;;  %v14458_v23 = vld [vmem:[#allocation11 + $0x388] sm:$0xf0] }
 0xd0c   : > { %v7790_v32 = vpack.c.bf16 %v7761_v8, %v7759_v5  ;;  %8305 = vmatmul.bf16.gmra.mxu0 %v14453_v31 }
 0xd0d   : > { %v18490_v24 = vpop.f32.mrf.mxu2 }
 0xd0e   : > { %7927 = vmatmul.bf16.gmra.mxu3 %v7790_v32 }
 0xd11   : > { %v7763_v17 = vpop.f32.mrf.mxu1  ;;  %v7888_v54 = vpop.f32.mrf.mxu3 }
 0xd12   : > { %v18496_v19 = vadd.f32 %v7888_v54, %v7348_v58  ;;  %8206 = vmatmul.bf16.gmra.mxu2 %v14433_v1  ;;  %v7764_v8 = vadd.f32 %v7763_v17, %v18460_v15  ;;  %v14441_v1 = vor.u32 %v15973_v42, %v14440_v53  ;;  %v7353_v58 = vadd.f32 %v18395_v2, %v18267_v37  ;;  %v18509_v35 = vpop.f32.mrf.mxu0  ;;  %v14448_v42 = vld [vmem:[#allocation11 + $0x370] sm:$0xf] }
 0xd13   : > { %v14461_v15 = vor.u32 %v15976_v56, %v14458_v23  ;;  %v15975_v56 = vld [vmem:[#allocation11 + $0x374] sm:$0xf0]  ;;  %v7358_v23 = vadd.f32 %v18406_v46, %v18288_v20 }
 0xd15   : > { %v18498_v29 = vpop.f32.mrf.mxu2 }
 0xd19   : > { %v7765_v11 = vpop.f32.mrf.mxu1  ;;  %v7890_v5 = vpop.f32.mrf.mxu3 }
 0xd1a   : > { %v7766_v63 = vadd.f32 %v7765_v11, %v7676_v3  ;;  %v18503_v45 = vadd.f32 %v7890_v5, %v7350_v40  ;;  %v19805_v40 = vld [vmem:[#allocation45_spill] sm:$0xff]  ;;  %v8273_v5 = vpop.f32.mrf.mxu0 }
 0xd1b   : > { %v7355_v11 = vadd.f32 %v18399_v9, %v19805_v40  ;;  %v15978_v9 = vld [vmem:[#allocation11 + $0x394] sm:$0xf] }
 0xd1c   : > { %v7791_v32 = vpack.c.bf16 %v7766_v63, %v7764_v8  ;;  %8310 = vmatmul.bf16.gmra.mxu0 %v14461_v15  ;;  %v14466_v15 = vld [vmem:[#allocation11 + $0x398] sm:$0xf0] }
 0xd1d   : > { %v18505_v54 = vpop.f32.mrf.mxu2 }
 0xd1e   : > { %7932 = vmatmul.bf16.gmra.mxu3 %v7791_v32 }
 0xd21   : > { %v7768_v30 = vpop.f32.mrf.mxu1  ;;  %v7893_v31 = vpop.f32.mrf.mxu3 }
 0xd22   : > { %v18511_v3 = vadd.f32 %v7893_v31, %v7353_v58  ;;  %8211 = vmatmul.bf16.gmra.mxu2 %v14441_v1  ;;  %v7769_v37 = vadd.f32 %v7768_v30, %v18475_v44  ;;  %v14449_v1 = vor.u32 %v15975_v56, %v14448_v42  ;;  %v18524_v31 = vpop.f32.mrf.mxu0  ;;  %v14469_v44 = vor.u32 %v15978_v9, %v14466_v15  ;;  %v14456_v42 = vld [vmem:[#allocation11 + $0x380] sm:$0xf]  ;;  %v14474_v9 = vld [vmem:[#allocation11 + $0x3a8] sm:$0xf0] }
 0xd24   : > { %19804 = vst [vmem:[#allocation44_spill] sm:$0xff] %v18511_v3 }
 0xd25   : > { %v18513_v17 = vpop.f32.mrf.mxu2 }
 0xd29   : > { %v7770_v8 = vpop.f32.mrf.mxu1  ;;  %v7895_v63 = vpop.f32.mrf.mxu3 }
 0xd2a   : > { %v7771_v2 = vadd.f32 %v7770_v8, %v7681_v49  ;;  %v18518_v32 = vadd.f32 %v7895_v63, %v7355_v11  ;;  %v7360_v11 = vadd.f32 %v18410_v50, %v18295_v36  ;;  %v18532_v8 = vpop.f32.mrf.mxu0  ;;  %v15980_v50 = vld [vmem:[#allocation11 + $0x3a4] sm:$0xf] }
 0xd2c   : > { %v7792_v53 = vpack.c.bf16 %v7771_v2, %v7769_v37  ;;  %8315 = vmatmul.bf16.gmra.mxu0 %v14469_v44  ;;  %v14477_v44 = vor.u32 %v15980_v50, %v14474_v9  ;;  %v7368_v50 = vadd.f32 %v18427_v28, %v18327_v21  ;;  %v7370_v21 = vadd.f32 %v18433_v59, %v18338_v10 }
 0xd2d   : > { %v18520_v58 = vpop.f32.mrf.mxu2  ;;  %v7373_v10 = vadd.f32 %v18439_v7, %v18348_v43  ;;  %v7375_v43 = vadd.f32 %v18447_v18, %v18357_v34  ;;  %v7378_v34 = vadd.f32 %v18453_v48, %v18364_v13  ;;  %v7380_v13 = vadd.f32 %v18462_v33, %v18371_v16  ;;  %v15988_v16 = vld [vmem:[#allocation11 + $0x3e4] sm:$0xf]  ;;  %v14506_v33 = vld [vmem:[#allocation11 + $0x3e8] sm:$0xf0] }
 0xd2e   : > { %7937 = vmatmul.bf16.gmra.mxu3 %v7792_v53 }
 0xd31   : > { %v7773_v40 = vpop.f32.mrf.mxu1  ;;  %v7898_v3 = vpop.f32.mrf.mxu3 }
 0xd32   : > { %v18526_v49 = vadd.f32 %v7898_v3, %v7358_v23  ;;  %8216 = vmatmul.bf16.gmra.mxu2 %v14449_v1  ;;  %v7774_v46 = vadd.f32 %v7773_v40, %v18492_v22  ;;  %v15977_v3 = vld [vmem:[#allocation11 + $0x384] sm:$0xf0]  ;;  %v7363_v23 = vadd.f32 %v18417_v62, %v18307_v47  ;;  %v18541_v36 = vpop.f32.mrf.mxu0  ;;  %v14552_v40 = vld [vmem:[#allocation11 + $0x400] sm:$0xf] }
 0xd33   : > { %v14457_v1 = vor.u32 %v15977_v3, %v14456_v42 }
 0xd35   : > { %v18528_v30 = vpop.f32.mrf.mxu2 }
 0xd39   : > { %v7775_v63 = vpop.f32.mrf.mxu1  ;;  %v7900_v20 = vpop.f32.mrf.mxu3 }
 0xd3a   : > { %v7776_v37 = vadd.f32 %v7775_v63, %v7686_v52  ;;  %v18535_v2 = vadd.f32 %v7900_v20, %v7360_v11  ;;  %v16001_v11 = vld [vmem:[#allocation11 + $0x404] sm:$0xf0]  ;;  %v7365_v63 = vadd.f32 %v18423_v26, %v18318_v25  ;;  %v18547_v20 = vpop.f32.mrf.mxu0  ;;  %v15982_v25 = vld [vmem:[#allocation11 + $0x3b4] sm:$0xf]  ;;  %v14482_v26 = vld [vmem:[#allocation11 + $0x3b8] sm:$0xf0] }
 0xd3b   : > { %v14553_v62 = vor.u32 %v16001_v11, %v14552_v40 }
 0xd3c   : > { %v7793_v53 = vpack.c.bf16 %v7776_v37, %v7774_v46  ;;  %8320 = vmatmul.bf16.gmra.mxu0 %v14477_v44  ;;  %v14464_v37 = vld [vmem:[#allocation11 + $0x390] sm:$0xf] }
 0xd3d   : > { %v18537_v56 = vpop.f32.mrf.mxu2 }
 0xd3e   : > { %7942 = vmatmul.bf16.gmra.mxu3 %v7793_v53  ;;  %v15979_v53 = vld [vmem:[#allocation11 + $0x394] sm:$0xf0] }
 0xd41   : > { %v7903_v15 = vpop.f32.mrf.mxu3 }
 0xd42   : > { %v18543_v22 = vadd.f32 %v7903_v15, %v7363_v23  ;;  %8221 = vmatmul.bf16.gmra.mxu2 %v14457_v1  ;;  %v14465_v23 = vor.u32 %v15979_v53, %v14464_v37  ;;  %v14472_v37 = vld [vmem:[#allocation11 + $0x3a0] sm:$0xf]  ;;  %v15981_v53 = vld [vmem:[#allocation11 + $0x3a4] sm:$0xf0] }
 0xd45   : > { %v8182_v52 = vpop.f32.mrf.mxu2 }
 0xd46   : > { %v8272_v3 = vadd.f32 %v18509_v35, %v8182_v52  ;;  %v16003_v52 = vld [vmem:[#allocation11 + $0x414] sm:$0xf0] }
 0xd49   : > { %v7905_v46 = vpop.f32.mrf.mxu3  ;;  %v18554_v9 = vpop.f32.mrf.mxu0 }
 0xd4a   : > { %v18549_v47 = vadd.f32 %v7905_v46, %v7365_v63  ;;  %v14485_v63 = vor.u32 %v15982_v25, %v14482_v26  ;;  %v14490_v25 = vld [vmem:[#allocation11 + $0x3c8] sm:$0xf0] }
 0xd4c   : > { %8325 = vmatmul.bf16.gmra.mxu0 %v14485_v63 }
 0xd4d   : > { %v8184_v42 = vpop.f32.mrf.mxu2 }
 0xd4e   : > { %8754 = vmatmul.bf16.vlgmr.msra.gmra.mxu3 %v14553_v62  ;;  %v8274_v1 = vadd.f32 %v8273_v5, %v8184_v42  ;;  %v14560_v5 = vld [vmem:[#allocation11 + $0x410] sm:$0xf] }
 0xd4f   : > { %v14561_v62 = vor.u32 %v16003_v52, %v14560_v5 }
 0xd50   : > { %v8351_v15 = vpack.c.bf16 %v8274_v1, %v8272_v3 }
 0xd51   : > { %v7908_v44 = vpop.f32.mrf.mxu3  ;;  %v18562_v28 = vpop.f32.mrf.mxu0 }
 0xd52   : > { %v18556_v46 = vadd.f32 %v7908_v44, %v7368_v50  ;;  %8226 = vmatmul.bf16.gmra.mxu2 %v14465_v23  ;;  %8440 = vmatmul.bf16.vlgmr.msra.gmra.mxu1 %v8351_v15  ;;  %v14473_v23 = vor.u32 %v15981_v53, %v14472_v37  ;;  %v15984_v50 = vld [vmem:[#allocation11 + $0x3c4] sm:$0xf] }
 0xd53   : > { %9981 = vmatpush.bf16.msra.mxu1 %v17849_v61  ;;  %v14493_v44 = vor.u32 %v15984_v50, %v14490_v25 }
 0xd55   : > { %v8187_v35 = vpop.f32.mrf.mxu2 }
 0xd56   : > { %v8277_v3 = vadd.f32 %v18524_v31, %v8187_v35  ;;  %v16005_v35 = vld [vmem:[#allocation11 + $0x424] sm:$0xf0] }
 0xd57   : > { %9982 = vmatpush.bf16.msra.mxu1 %v17862_v57 }
 0xd59   : > { %v7910_v40 = vpop.f32.mrf.mxu3  ;;  %v18572_v59 = vpop.f32.mrf.mxu0 }
 0xd5a   : > { %v18564_v11 = vadd.f32 %v7910_v40, %v7370_v21  ;;  %v14480_v40 = vld [vmem:[#allocation11 + $0x3b0] sm:$0xf] }
 0xd5b   : > { %9983 = vmatpush.bf16.msra.mxu1 %v17873_v14 }
 0xd5c   : > { %8330 = vmatmul.bf16.gmra.mxu0 %v14493_v44 }
 0xd5d   : > { %v8189_v42 = vpop.f32.mrf.mxu2 }
 0xd5e   : > { %8759 = vmatmul.bf16.gmra.mxu3 %v14561_v62  ;;  %v8279_v1 = vadd.f32 %v18532_v8, %v8189_v42  ;;  %v14568_v8 = vld [vmem:[#allocation11 + $0x420] sm:$0xf]  ;;  %v15983_v62 = vld [vmem:[#allocation11 + $0x3b4] sm:$0xf0] }
 0xd5f   : > { %9984 = vmatpush.bf16.msra.mxu1 %v17882_v55  ;;  %v14569_v21 = vor.u32 %v16005_v35, %v14568_v8  ;;  %v14488_v35 = vld [vmem:[#allocation11 + $0x3c0] sm:$0xf] }
 0xd60   : > { %v8352_v26 = vpack.c.bf16 %v8279_v1, %v8277_v3  ;;  %v14481_v3 = vor.u32 %v15983_v62, %v14480_v40  ;;  %v15986_v1 = vld [vmem:[#allocation11 + $0x3d4] sm:$0xf] }
 0xd61   : > { %v7913_v15 = vpop.f32.mrf.mxu3  ;;  %v18580_v7 = vpop.f32.mrf.mxu0 }
 0xd62   : > { %v18574_v63 = vadd.f32 %v7913_v15, %v7373_v10  ;;  %8231 = vmatmul.bf16.gmra.mxu2 %v14473_v23  ;;  %8445 = vmatmul.bf16.gmra.mxu1 %v8352_v26  ;;  %v14498_v23 = vld [vmem:[#allocation11 + $0x3d8] sm:$0xf0]  ;;  %v16007_v15 = vld [vmem:[#allocation11 + $0x434] sm:$0xf0] }
 0xd63   : > { %9985 = vmatpush.bf16.msra.mxu1 %v17889_v12  ;;  %v14501_v25 = vor.u32 %v15986_v1, %v14498_v23 }
 0xd65   : > { %v8192_v31 = vpop.f32.mrf.mxu2 }
 0xd66   : > { %v8282_v53 = vadd.f32 %v18541_v36, %v8192_v31 }
 0xd67   : > { %9986 = vmatpush.bf16.msra.mxu1 %v17895_v4 }
 0xd69   : > { %v7915_v5 = vpop.f32.mrf.mxu3  ;;  %v18590_v18 = vpop.f32.mrf.mxu0 }
 0xd6a   : > { %v18582_v52 = vadd.f32 %v7915_v5, %v7375_v43  ;;  %v15985_v43 = vld [vmem:[#allocation11 + $0x3c4] sm:$0xf0] }
 0xd6b   : > { %9987 = vmatpush.bf16.msra.mxu1 %v17901_v41  ;;  %v14489_v62 = vor.u32 %v15985_v43, %v14488_v35  ;;  %v16077_v35 = vld [vmem:[#allocation12 + $0xae8] sm:$0xff] }
 0xd6c   : > { %8335 = vmatmul.bf16.gmra.mxu0 %v14501_v25 }
 0xd6d   : > { %v8194_v37 = vpop.f32.mrf.mxu2 }
 0xd6e   : > { %8764 = vmatmul.bf16.gmra.mxu3 %v14569_v21  ;;  %v8284_v42 = vadd.f32 %v18547_v20, %v8194_v37  ;;  %v14576_v20 = vld [vmem:[#allocation11 + $0x430] sm:$0xf]  ;;  %v7383_v37 = vadd.f32 %v18468_v51, %v18377_v38 }
 0xd6f   : > { %9988 = vmatpush.bf16.msra.mxu1 %v19749_v39  ;;  %v14577_v8 = vor.u32 %v16007_v15, %v14576_v20  ;;  %v16078_v20 = vld [vmem:[#allocation12 + $0xaf0] sm:$0xff] }
 0xd70   : > { %v8353_v10 = vpack.c.bf16 %v8284_v42, %v8282_v53 }
 0xd71   : > { %v7918_v50 = vpop.f32.mrf.mxu3  ;;  %v18596_v48 = vpop.f32.mrf.mxu0 }
 0xd72   : > { %v18592_v26 = vadd.f32 %v7918_v50, %v7378_v34  ;;  %8236 = vmatmul.bf16.gmra.mxu2 %v14481_v3  ;;  %8450 = vmatmul.bf16.gmra.mxu1 %v8353_v10  ;;  %v14509_v34 = vor.u32 %v15988_v16, %v14506_v33  ;;  %v14584_v10 = vld [vmem:[#allocation11 + $0x440] sm:$0xf]  ;;  %v19806_v50 = vld [vmem:[#allocation42_spill] sm:$0xff] }
 0xd73   : > { %v7385_v25 = vadd.f32 %v18477_v0, %v19806_v50  ;;  %v19807_v0 = vld [vmem:[#allocation37_spill] sm:$0xff] }
 0xd75   : > { %v8197_v36 = vpop.f32.mrf.mxu2 }
 0xd76   : > { %v8287_v21 = vadd.f32 %v18554_v9, %v8197_v36  ;;  %v16079_v9 = vld [vmem:[#allocation12 + $0xaf8] sm:$0xff] }
 0xd77   : > { %9578 = vmatpush.bf16.msrb.mxu2 %v16079_v9 }
 0xd79   : > { %v7920_v44 = vpop.f32.mrf.mxu3  ;;  %v18604_v53 = vpop.f32.mrf.mxu0 }
 0xd7a   : > { %v18598_v31 = vadd.f32 %v7920_v44, %v7380_v13  ;;  %v14496_v13 = vld [vmem:[#allocation11 + $0x3d0] sm:$0xf]  ;;  %v15987_v44 = vld [vmem:[#allocation11 + $0x3d4] sm:$0xf0] }
 0xd7b   : > { %9579 = vmatpush.bf16.msrb.mxu2 %v16078_v20  ;;  %v14504_v20 = vld [vmem:[#allocation11 + $0x3e0] sm:$0xf] }
 0xd7c   : > { %8340 = vmatmul.bf16.gmra.mxu0 %v14509_v34  ;;  %v16076_v34 = vld [vmem:[#allocation12 + $0xae0] sm:$0xff] }
 0xd7d   : > { %v8199_v5 = vpop.f32.mrf.mxu2 }
 0xd7e   : > { %8769 = vmatmul.bf16.gmra.mxu3 %v14577_v8  ;;  %v8289_v40 = vadd.f32 %v18562_v28, %v8199_v5  ;;  %v16009_v28 = vld [vmem:[#allocation11 + $0x444] sm:$0xf0] }
 0xd7f   : > { %v14585_v36 = vor.u32 %v16009_v28, %v14584_v10  ;;  %9580 = vmatpush.bf16.msrb.mxu2 %v16077_v35  ;;  %v16011_v10 = vld [vmem:[#allocation11 + $0x454] sm:$0xf0]  ;;  %v16073_v35 = vld [vmem:[#allocation12 + $0xac8] sm:$0xff] }
 0xd80   : > { %v8354_v42 = vpack.c.bf16 %v8289_v40, %v8287_v21  ;;  %v14497_v21 = vor.u32 %v15987_v44, %v14496_v13  ;;  %v7388_v40 = vadd.f32 %v18483_v6, %v19807_v0  ;;  %v19808_v6 = vld [vmem:[#allocation43_spill] sm:$0xff]  ;;  %v15989_v13 = vld [vmem:[#allocation11 + $0x3e4] sm:$0xf0]  ;;  %v19809_v0 = vld [vmem:[#allocation36_spill] sm:$0xff] }
 0xd81   : > { %v7923_v3 = vpop.f32.mrf.mxu3  ;;  %v18612_v15 = vpop.f32.mrf.mxu0  ;;  %v7390_v28 = vadd.f32 %v18490_v24, %v19808_v6  ;;  %v7393_v24 = vadd.f32 %v18498_v29, %v19809_v0  ;;  %v15991_v6 = vld [vmem:[#allocation11 + $0x3f4] sm:$0xf0] }
 0xd82   : > { %v18606_v1 = vadd.f32 %v7923_v3, %v7383_v37  ;;  %8241 = vmatmul.bf16.gmra.mxu2 %v14489_v62  ;;  %8455 = vmatmul.bf16.gmra.mxu1 %v8354_v42  ;;  %v15990_v62 = vld [vmem:[#allocation11 + $0x3f4] sm:$0xf]  ;;  %v14514_v37 = vld [vmem:[#allocation11 + $0x3f8] sm:$0xf0]  ;;  %v16015_v0 = vld [vmem:[#allocation11 + $0x474] sm:$0xf0] }
 0xd83   : > { %v14517_v42 = vor.u32 %v15990_v62, %v14514_v37  ;;  %9581 = vmatpush.bf16.msrb.mxu2 %v16076_v34  ;;  %v16013_v34 = vld [vmem:[#allocation11 + $0x464] sm:$0xf0] }
 0xd85   : > { %v8202_v23 = vpop.f32.mrf.mxu2 }
 0xd86   : > { %v8292_v43 = vadd.f32 %v18572_v59, %v8202_v23  ;;  %v14592_v23 = vld [vmem:[#allocation11 + $0x450] sm:$0xf] }
 0xd89   : > { %v7925_v38 = vpop.f32.mrf.mxu3  ;;  %v18620_v9 = vpop.f32.mrf.mxu0 }
 0xd8a   : > { %v18610_v51 = vadd.f32 %v7925_v38, %v7385_v25  ;;  %v14593_v38 = vor.u32 %v16011_v10, %v14592_v23  ;;  %v14512_v10 = vld [vmem:[#allocation11 + $0x3f0] sm:$0xf] }
 0xd8c   : > { %8345 = vmatmul.bf16.gmra.mxu0 %v14517_v42  ;;  %v14600_v42 = vld [vmem:[#allocation11 + $0x460] sm:$0xf] }
 0xd8d   : > { %v8204_v8 = vpop.f32.mrf.mxu2  ;;  %v14601_v29 = vor.u32 %v16013_v34, %v14600_v42 }
 0xd8e   : > { %8774 = vmatmul.bf16.gmra.mxu3 %v14585_v36  ;;  %v8294_v5 = vadd.f32 %v18580_v7, %v8204_v8  ;;  %v16075_v7 = vld [vmem:[#allocation12 + $0xad8] sm:$0xff]  ;;  %v16074_v36 = vld [vmem:[#allocation12 + $0xad0] sm:$0xff] }
 0xd8f   : > { %9582 = vmatpush.bf16.msrb.mxu2 %v16075_v7  ;;  %v19810_v7 = vld [vmem:[#allocation38_spill] sm:$0xff] }
 0xd90   : > { %v8355_v16 = vpack.c.bf16 %v8294_v5, %v8292_v43 }
 0xd91   : > { %v7928_v33 = vpop.f32.mrf.mxu3  ;;  %v8308_v8 = vpop.f32.mrf.mxu0 }
 0xd92   : > { %v18618_v3 = vadd.f32 %v7928_v33, %v7388_v40  ;;  %8246 = vmatmul.bf16.gmra.mxu2 %v14497_v21  ;;  %8460 = vmatmul.bf16.gmra.mxu1 %v8355_v16  ;;  %v14505_v21 = vor.u32 %v15989_v13, %v14504_v20  ;;  %v16072_v16 = vld [vmem:[#allocation12 + $0xac0] sm:$0xff]  ;;  %v19812_v20 = vld [vmem:[#allocation39_spill] sm:$0xff] }
 0xd93   : > { %9583 = vmatpush.bf16.msrb.mxu2 %v16074_v36  ;;  %v14513_v36 = vor.u32 %v15991_v6, %v14512_v10  ;;  %v7398_v13 = vadd.f32 %v18513_v17, %v19812_v20  ;;  %v16017_v20 = vld [vmem:[#allocation11 + $0x484] sm:$0xf0] }
 0xd95   : > { %v8207_v59 = vpop.f32.mrf.mxu2 }
 0xd96   : > { %v8297_v43 = vadd.f32 %v18590_v18, %v8207_v59  ;;  %v7395_v18 = vadd.f32 %v18505_v54, %v19810_v7 }
 0xd97   : > { %9584 = vmatpush.bf16.msrb.mxu2 %v16073_v35 }
 0xd99   : > { %v7930_v50 = vpop.f32.mrf.mxu3 }
 0xd9a   : > { %v18624_v25 = vadd.f32 %v7930_v50, %v7390_v28 }
 0xd9b   : > { %9585 = vmatpush.bf16.msrb.mxu2 %v16072_v16  ;;  %v16000_v16 = vld [vmem:[#allocation11 + $0x404] sm:$0xf] }
 0xd9d   : > { %v8209_v44 = vpop.f32.mrf.mxu2 }
 0xd9e   : > { %8779 = vmatmul.bf16.gmra.mxu3 %v14593_v38  ;;  %v8299_v5 = vadd.f32 %v18596_v48, %v8209_v44  ;;  %v8311_v48 = vpop.f32.mrf.mxu0 }
 0xda0   : > { %v8356_v40 = vpack.c.bf16 %v8299_v5, %v8297_v43 }
 0xda1   : > { %v7933_v62 = vpop.f32.mrf.mxu3 }
 0xda2   : > { %v18630_v37 = vadd.f32 %v7933_v62, %v7393_v24  ;;  %8251 = vmatmul.bf16.gmra.mxu2 %v14505_v21  ;;  %8465 = vmatmul.bf16.gmra.mxu1 %v8356_v40  ;;  %v14608_v21 = vld [vmem:[#allocation11 + $0x470] sm:$0xf]  ;;  %v19814_v24 = vld [vmem:[#allocation40_spill] sm:$0xff] }
 0xda3   : > { %v7400_v40 = vadd.f32 %v18520_v58, %v19814_v24  ;;  %v19818_v58 = vld [vmem:[#allocation53_spill] sm:$0xff] }
 0xda5   : > { %v8212_v33 = vpop.f32.mrf.mxu2 }
 0xda6   : > { %v8302_v50 = vadd.f32 %v18604_v53, %v8212_v33  ;;  %v8313_v43 = vpop.f32.mrf.mxu0  ;;  %v14554_v33 = vld [vmem:[#allocation11 + $0x408] sm:$0xf0] }
 0xda9   : > { %v7935_v59 = vpop.f32.mrf.mxu3 }
 0xdaa   : > { %v18634_v23 = vadd.f32 %v7935_v59, %v7395_v18  ;;  %v14557_v18 = vor.u32 %v16000_v16, %v14554_v33  ;;  %v19816_v59 = vld [vmem:[#allocation41_spill] sm:$0xff]  ;;  %v19823_v16 = vld [vmem:[#allocation50_spill] sm:$0xff] }
 0xdac   : > { %19811 = vst [vmem:[#allocation54_spill] sm:$0xff] %v18634_v23  ;;  %v19843_v23 = vld [vmem:[#allocation44_spill] sm:$0xff] }
 0xdad   : > { %v8214_v28 = vpop.f32.mrf.mxu2 }
 0xdae   : > { %8784 = vmatmul.bf16.gmra.mxu3 %v14601_v29  ;;  %v8304_v38 = vadd.f32 %v18612_v15, %v8214_v28  ;;  %v14609_v15 = vor.u32 %v16015_v0, %v14608_v21  ;;  %v8316_v17 = vpop.f32.mrf.mxu0  ;;  %v7403_v29 = vadd.f32 %v18528_v30, %v19816_v59  ;;  %v16002_v21 = vld [vmem:[#allocation11 + $0x414] sm:$0xf]  ;;  %v14562_v0 = vld [vmem:[#allocation11 + $0x418] sm:$0xf0]  ;;  %v19826_v59 = vld [vmem:[#allocation49_spill] sm:$0xff] }
 0xdb0   : > { %v8357_v44 = vpack.c.bf16 %v8304_v38, %v8302_v50 }
 0xdb1   : > { %v7938_v35 = vpop.f32.mrf.mxu3 }
 0xdb2   : > { %v18640_v54 = vadd.f32 %v7938_v35, %v7398_v13  ;;  %8256 = vmatmul.bf16.gmra.mxu2 %v14513_v36  ;;  %8470 = vmatmul.bf16.gmra.mxu1 %v8357_v44  ;;  %v14616_v36 = vld [vmem:[#allocation11 + $0x480] sm:$0xf]  ;;  %v19819_v13 = vld [vmem:[#allocation55_spill] sm:$0xff] }
 0xdb3   : > { %v14617_v30 = vor.u32 %v16017_v20, %v14616_v36 }
 0xdb4   : > { %19813 = vst [vmem:[#allocation45_spill] sm:$0xff] %v18640_v54 }
 0xdb5   : > { %v8217_v5 = vpop.f32.mrf.mxu2 }
 0xdb6   : > { %v8307_v34 = vadd.f32 %v18620_v9, %v8217_v5  ;;  %v8318_v38 = vpop.f32.mrf.mxu0  ;;  %v7405_v9 = vadd.f32 %v18537_v56, %v19819_v13  ;;  %v19822_v5 = vld [vmem:[#allocation51_spill] sm:$0xff] }
 0xdb9   : > { %v7940_v53 = vpop.f32.mrf.mxu3 }
 0xdba   : > { %v18644_v62 = vadd.f32 %v7940_v53, %v7400_v40 }
 0xdbc   : > { %19815 = vst [vmem:[#allocation42_spill] sm:$0xff] %v18644_v62 }
 0xdbd   : > { %v8219_v42 = vpop.f32.mrf.mxu2 }
 0xdbe   : > { %8789 = vmatmul.bf16.gmra.mxu3 %v14609_v15  ;;  %v8309_v7 = vadd.f32 %v8308_v8, %v8219_v42  ;;  %v19820_v8 = vld [vmem:[#allocation52_spill] sm:$0xff]  ;;  %v14565_v15 = vor.u32 %v16002_v21, %v14562_v0  ;;  %v8321_v42 = vpop.f32.mrf.mxu0  ;;  %v14570_v21 = vld [vmem:[#allocation11 + $0x428] sm:$0xf0] }
 0xdc0   : > { %v8358_v10 = vpack.c.bf16 %v8309_v7, %v8307_v34  ;;  %v19824_v34 = vld [vmem:[#allocation33_spill] sm:$0xff] }
 0xdc1   : > { %v7943_v6 = vpop.f32.mrf.mxu3 }
 0xdc2   : > { %v18649_v28 = vadd.f32 %v7943_v6, %v7403_v29  ;;  %8475 = vmatmul.bf16.gmra.mxu1 %v8358_v10  ;;  %8843 = vmatmul.bf16.vlgmr.msra.gmra.mxu2 %v14557_v18  ;;  %v14624_v10 = vld [vmem:[#allocation11 + $0x490] sm:$0xf]  ;;  %v16019_v6 = vld [vmem:[#allocation11 + $0x494] sm:$0xf0] }
 0xdc3   : > { %10465 = vmatpush.bf16.msra.mxu2 %v19818_v58  ;;  %v14625_v13 = vor.u32 %v16019_v6, %v14624_v10 }
 0xdc4   : > { %19817 = vst [vmem:[#allocation37_spill] sm:$0xff] %v18649_v28 }
 0xdc5   : > { %v8222_v50 = vpop.f32.mrf.mxu2 }
 0xdc6   : > { %v8312_v40 = vadd.f32 %v8311_v48, %v8222_v50  ;;  %v19827_v48 = vld [vmem:[#allocation48_spill] sm:$0xff]  ;;  %v19828_v50 = vld [vmem:[#allocation35_spill] sm:$0xff] }
 0xdc7   : > { %10466 = vmatpush.bf16.msra.mxu2 %v19820_v8 }
 0xdc9   : > { %v7945_v44 = vpop.f32.mrf.mxu3 }
 0xdca   : > { %v18655_v35 = vadd.f32 %v7945_v44, %v7405_v9  ;;  %v8323_v9 = vpop.f32.mrf.mxu0  ;;  %v19830_v44 = vld [vmem:[#allocation47_spill] sm:$0xff] }
 0xdcb   : > { %10467 = vmatpush.bf16.msra.mxu2 %v19822_v5 }
 0xdcc   : > { %19821 = vst [vmem:[#allocation43_spill] sm:$0xff] %v18655_v35  ;;  %v19834_v35 = vld [vmem:[#allocation34_spill] sm:$0xff] }
 0xdcd   : > { %v8224_v24 = vpop.f32.mrf.mxu2 }
 0xdce   : > { %8794 = vmatmul.bf16.gmra.mxu3 %v14617_v30  ;;  %v8314_v53 = vadd.f32 %v8313_v43, %v8224_v24  ;;  %v16004_v30 = vld [vmem:[#allocation11 + $0x424] sm:$0xf] }
 0xdcf   : > { %10468 = vmatpush.bf16.msra.mxu2 %v19823_v16  ;;  %v8441_v33 = vpop.f32.mrf.mxu1 }
 0xdd0   : > { %v8359_v56 = vpack.c.bf16 %v8314_v53, %v8312_v40  ;;  %v18660_v7 = vadd.f32 %v8441_v33, %v19824_v34  ;;  %v14573_v53 = vor.u32 %v16004_v30, %v14570_v21  ;;  %v19832_v34 = vld [vmem:[#allocation31_spill] sm:$0xff]  ;;  %v16006_v30 = vld [vmem:[#allocation11 + $0x434] sm:$0xf] }
 0xdd1   : > { %v18662_v18 = vpop.f32.mrf.mxu3  ;;  %v14578_v21 = vld [vmem:[#allocation11 + $0x438] sm:$0xf0] }
 0xdd2   : > { %19825 = vst [vmem:[#allocation36_spill] sm:$0xff] %v18660_v7  ;;  %8480 = vmatmul.bf16.gmra.mxu1 %v8359_v56  ;;  %8848 = vmatmul.bf16.gmra.mxu2 %v14565_v15  ;;  %v19831_v15 = vld [vmem:[#allocation46_spill] sm:$0xff]  ;;  %v8326_v10 = vpop.f32.mrf.mxu0  ;;  %v16021_v7 = vld [vmem:[#allocation11 + $0x4a4] sm:$0xf0] }
 0xdd3   : > { %10469 = vmatpush.bf16.msra.mxu2 %v19826_v59 }
 0xdd5   : > { %v8227_v29 = vpop.f32.mrf.mxu2 }
 0xdd6   : > { %v8317_v24 = vadd.f32 %v8316_v17, %v8227_v29 }
 0xdd7   : > { %10470 = vmatpush.bf16.msra.mxu2 %v19827_v48  ;;  %v8443_v43 = vpop.f32.mrf.mxu1 }
 0xdd8   : > { %v18667_v36 = vadd.f32 %v8443_v43, %v19828_v50 }
 0xdd9   : > { %v18669_v20 = vpop.f32.mrf.mxu3 }
 0xdda   : > { %19829 = vst [vmem:[#allocation38_spill] sm:$0xff] %v18667_v36  ;;  %v14632_v36 = vld [vmem:[#allocation11 + $0x4a0] sm:$0xf] }
 0xddb   : > { %10471 = vmatpush.bf16.msra.mxu2 %v19830_v44  ;;  %v14633_v29 = vor.u32 %v16021_v7, %v14632_v36  ;;  %v16023_v7 = vld [vmem:[#allocation11 + $0x4b4] sm:$0xf0] }
 0xddd   : > { %v8229_v0 = vpop.f32.mrf.mxu2 }
 0xdde   : > { %8799 = vmatmul.bf16.gmra.mxu3 %v14625_v13  ;;  %v8319_v40 = vadd.f32 %v8318_v38, %v8229_v0 }
 0xddf   : > { %10472 = vmatpush.bf16.msra.mxu2 %v19831_v15  ;;  %v8446_v33 = vpop.f32.mrf.mxu1 }
 0xde0   : > { %v8360_v56 = vpack.c.bf16 %v8319_v40, %v8317_v24  ;;  %v18674_v43 = vadd.f32 %v8446_v33, %v19832_v34  ;;  %v8328_v24 = vpop.f32.mrf.mxu0 }
 0xde1   : > { %v18676_v50 = vpop.f32.mrf.mxu3 }
 0xde2   : > { %19833 = vst [vmem:[#allocation39_spill] sm:$0xff] %v18674_v43  ;;  %8485 = vmatmul.bf16.gmra.mxu1 %v8360_v56  ;;  %8853 = vmatmul.bf16.gmra.mxu2 %v14573_v53  ;;  %v14581_v56 = vor.u32 %v16006_v30, %v14578_v21  ;;  %v19836_v43 = vld [vmem:[#allocation30_spill] sm:$0xff]  ;;  %v14586_v30 = vld [vmem:[#allocation11 + $0x448] sm:$0xf0] }
 0xde5   : > { %v8232_v6 = vpop.f32.mrf.mxu2 }
 0xde6   : > { %v8322_v40 = vadd.f32 %v8321_v42, %v8232_v6  ;;  %v16008_v6 = vld [vmem:[#allocation11 + $0x444] sm:$0xf] }
 0xde7   : > { %v8448_v13 = vpop.f32.mrf.mxu1 }
 0xde8   : > { %v18679_v17 = vadd.f32 %v8448_v13, %v19834_v35  ;;  %v14640_v13 = vld [vmem:[#allocation11 + $0x4b0] sm:$0xf] }
 0xde9   : > { %v18681_v38 = vpop.f32.mrf.mxu3 }
 0xdea   : > { %19835 = vst [vmem:[#allocation40_spill] sm:$0xff] %v18679_v17  ;;  %v8331_v17 = vpop.f32.mrf.mxu0 }
 0xded   : > { %v8234_v0 = vpop.f32.mrf.mxu2 }
 0xdee   : > { %8804 = vmatmul.bf16.gmra.mxu3 %v14633_v29  ;;  %v8324_v33 = vadd.f32 %v8323_v9, %v8234_v0  ;;  %v14641_v9 = vor.u32 %v16023_v7, %v14640_v13  ;;  %v16025_v13 = vld [vmem:[#allocation11 + $0x4c4] sm:$0xf0] }
 0xdef   : > { %v8451_v53 = vpop.f32.mrf.mxu1 }
 0xdf0   : > { %v8361_v34 = vpack.c.bf16 %v8324_v33, %v8322_v40  ;;  %v18684_v28 = vadd.f32 %v8451_v53, %v19836_v43  ;;  %v14589_v40 = vor.u32 %v16008_v6, %v14586_v30  ;;  %v19839_v53 = vld [vmem:[#allocation32_spill] sm:$0xff]  ;;  %v14594_v6 = vld [vmem:[#allocation11 + $0x458] sm:$0xf0] }
 0xdf1   : > { %v18686_v62 = vpop.f32.mrf.mxu3 }
 0xdf2   : > { %19837 = vst [vmem:[#allocation41_spill] sm:$0xff] %v18684_v28  ;;  %8490 = vmatmul.bf16.gmra.mxu1 %v8361_v34  ;;  %8858 = vmatmul.bf16.gmra.mxu2 %v14581_v56  ;;  %v8333_v54 = vpop.f32.mrf.mxu0 }
 0xdf5   : > { %v8237_v35 = vpop.f32.mrf.mxu2 }
 0xdf6   : > { %v8327_v21 = vadd.f32 %v8326_v10, %v8237_v35  ;;  %v16010_v35 = vld [vmem:[#allocation11 + $0x454] sm:$0xf] }
 0xdf7   : > { %v8453_v36 = vpop.f32.mrf.mxu1 }
 0xdf8   : > { %v18689_v29 = vadd.f32 %v8453_v36, %v18473_v27  ;;  %v14648_v36 = vld [vmem:[#allocation11 + $0x4c0] sm:$0xf] }
 0xdf9   : > { %v18691_v42 = vpop.f32.mrf.mxu3 }
 0xdfa   : > { %19838 = vst [vmem:[#allocation53_spill] sm:$0xff] %v18689_v29  ;;  %v8336_v30 = vpop.f32.mrf.mxu0 }
 0xdfd   : > { %v8239_v43 = vpop.f32.mrf.mxu2 }
 0xdfe   : > { %8809 = vmatmul.bf16.gmra.mxu3 %v14641_v9  ;;  %v8329_v0 = vadd.f32 %v8328_v24, %v8239_v43  ;;  %v14649_v24 = vor.u32 %v16025_v13, %v14648_v36 }
 0xdff   : > { %v8456_v33 = vpop.f32.mrf.mxu1 }
 0xe00   : > { %v8362_v56 = vpack.c.bf16 %v8329_v0, %v8327_v21  ;;  %v18694_v34 = vadd.f32 %v8456_v33, %v19839_v53  ;;  %v14597_v33 = vor.u32 %v16010_v35, %v14594_v6  ;;  %v16116_v6 = vld [vmem:[#allocation12 + $0xb20] sm:$0xff] }
 0xe01   : > { %v18696_v28 = vpop.f32.mrf.mxu3 }
 0xe02   : > { %19840 = vst [vmem:[#allocation55_spill] sm:$0xff] %v18694_v34  ;;  %8495 = vmatmul.bf16.gmra.mxu1 %v8362_v56  ;;  %8863 = vmatmul.bf16.gmra.mxu2 %v14589_v40  ;;  %v16119_v40 = vld [vmem:[#allocation12 + $0xb38] sm:$0xff]  ;;  %v8338_v13 = vpop.f32.mrf.mxu0 }
 0xe03   : > { %10151 = vmatpush.bf16.msra.mxu3 %v16119_v40 }
 0xe05   : > { %v8242_v27 = vpop.f32.mrf.mxu2 }
 0xe06   : > { %v8332_v21 = vadd.f32 %v8331_v17, %v8242_v27 }
 0xe07   : > { %v8458_v7 = vpop.f32.mrf.mxu1 }
 0xe08   : > { %v18699_v9 = vadd.f32 %v8458_v7, %v18488_v60  ;;  %v16118_v60 = vld [vmem:[#allocation12 + $0xb30] sm:$0xff] }
 0xe09   : > { %v18701_v10 = vpop.f32.mrf.mxu3  ;;  %10152 = vmatpush.bf16.msra.mxu3 %v16118_v60  ;;  %v14656_v7 = vld [vmem:[#allocation11 + $0x4d0] sm:$0xf] }
 0xe0a   : > { %19841 = vst [vmem:[#allocation52_spill] sm:$0xff] %v18699_v9  ;;  %v8341_v60 = vpop.f32.mrf.mxu0 }
 0xe0d   : > { %v8244_v43 = vpop.f32.mrf.mxu2 }
 0xe0e   : > { %8814 = vmatmul.bf16.gmra.mxu3 %v14649_v24  ;;  %v8334_v0 = vadd.f32 %v8333_v54, %v8244_v43  ;;  %v16027_v24 = vld [vmem:[#allocation11 + $0x4d4] sm:$0xf0]  ;;  %v16117_v54 = vld [vmem:[#allocation12 + $0xb28] sm:$0xff]  ;;  %v16012_v43 = vld [vmem:[#allocation11 + $0x464] sm:$0xf] }
 0xe0f   : > { %v8461_v56 = vpop.f32.mrf.mxu1  ;;  %10153 = vmatpush.bf16.msra.mxu3 %v16117_v54  ;;  %v14664_v54 = vld [vmem:[#allocation11 + $0x4e0] sm:$0xf] }
 0xe10   : > { %v8363_v53 = vpack.c.bf16 %v8334_v0, %v8332_v21  ;;  %v18704_v34 = vadd.f32 %v8461_v56, %v18496_v19  ;;  %v14657_v19 = vor.u32 %v16027_v24, %v14656_v7  ;;  %v14602_v21 = vld [vmem:[#allocation11 + $0x468] sm:$0xf0]  ;;  %v16114_v7 = vld [vmem:[#allocation12 + $0xb10] sm:$0xff] }
 0xe11   : > { %v18706_v29 = vpop.f32.mrf.mxu3  ;;  %v14605_v40 = vor.u32 %v16012_v43, %v14602_v21  ;;  %v16014_v21 = vld [vmem:[#allocation11 + $0x474] sm:$0xf] }
 0xe12   : > { %19842 = vst [vmem:[#allocation51_spill] sm:$0xff] %v18704_v34  ;;  %8500 = vmatmul.bf16.gmra.mxu1 %v8363_v53  ;;  %8868 = vmatmul.bf16.gmra.mxu2 %v14597_v33  ;;  %v16115_v34 = vld [vmem:[#allocation12 + $0xb18] sm:$0xff] }
 0xe13   : > { %10154 = vmatpush.bf16.msra.mxu3 %v16116_v6 }
 0xe15   : > { %v8247_v36 = vpop.f32.mrf.mxu2 }
 0xe16   : > { %v8337_v33 = vadd.f32 %v8336_v30, %v8247_v36  ;;  %v16113_v36 = vld [vmem:[#allocation12 + $0xb08] sm:$0xff] }
 0xe17   : > { %v8463_v17 = vpop.f32.mrf.mxu1  ;;  %10155 = vmatpush.bf16.msra.mxu3 %v16115_v34 }
 0xe18   : > { %v18709_v27 = vadd.f32 %v8463_v17, %v18503_v45 }
 0xe19   : > { %v18711_v35 = vpop.f32.mrf.mxu3 }
 0xe1b   : > { %10156 = vmatpush.bf16.msra.mxu3 %v16114_v7 }
 0xe1d   : > { %v8249_v0 = vpop.f32.mrf.mxu2 }
 0xe1e   : > { %8819 = vmatmul.bf16.gmra.mxu3 %v14657_v19  ;;  %v8339_v56 = vadd.f32 %v8338_v13, %v8249_v0  ;;  %v16029_v19 = vld [vmem:[#allocation11 + $0x4e4] sm:$0xf0]  ;;  %v14610_v0 = vld [vmem:[#allocation11 + $0x478] sm:$0xf0] }
 0xe1f   : > { %v8466_v53 = vpop.f32.mrf.mxu1  ;;  %v14665_v43 = vor.u32 %v16029_v19, %v14664_v54  ;;  %10157 = vmatpush.bf16.msra.mxu3 %v16113_v36  ;;  %v16031_v36 = vld [vmem:[#allocation11 + $0x4f4] sm:$0xf0] }
 0xe20   : > { %v8364_v9 = vpack.c.bf16 %v8339_v56, %v8337_v33  ;;  %v18714_v45 = vadd.f32 %v8466_v53, %v19843_v23  ;;  %v8343_v23 = vpop.f32.mrf.mxu0 }
 0xe21   : > { %v18716_v17 = vpop.f32.mrf.mxu3 }
 0xe22   : > { %19844 = vst [vmem:[#allocation50_spill] sm:$0xff] %v18714_v45  ;;  %8505 = vmatmul.bf16.gmra.mxu1 %v8364_v9  ;;  %8873 = vmatmul.bf16.gmra.mxu2 %v14605_v40  ;;  %v16112_v9 = vld [vmem:[#allocation12 + $0xb00] sm:$0xff]  ;;  %v14613_v40 = vor.u32 %v16014_v21, %v14610_v0  ;;  %v14618_v21 = vld [vmem:[#allocation11 + $0x488] sm:$0xf0] }
 0xe23   : > { %10158 = vmatpush.bf16.msra.mxu3 %v16112_v9 }
 0xe25   : > { %v8252_v24 = vpop.f32.mrf.mxu2 }
 0xe26   : > { %v8342_v33 = vadd.f32 %v8341_v60, %v8252_v24 }
 0xe27   : > { %v8468_v30 = vpop.f32.mrf.mxu1 }
 0xe28   : > { %v18719_v13 = vadd.f32 %v8468_v30, %v18518_v32  ;;  %v8346_v54 = vpop.f32.mrf.mxu0  ;;  %v14672_v30 = vld [vmem:[#allocation11 + $0x4f0] sm:$0xf] }
 0xe29   : > { %v18721_v6 = vpop.f32.mrf.mxu3  ;;  %v14673_v24 = vor.u32 %v16031_v36, %v14672_v30  ;;  %v14714_v30 = vld [vmem:[#allocation11 + $0x508] sm:$0xf0] }
 0xe2a   : > { %19845 = vst [vmem:[#allocation33_spill] sm:$0xff] %v18719_v13 }
 0xe2d   : > { %v8254_v34 = vpop.f32.mrf.mxu2 }
 0xe2e   : > { %8824 = vmatmul.bf16.gmra.mxu3 %v14665_v43  ;;  %v8344_v56 = vadd.f32 %v8343_v23, %v8254_v34  ;;  %v16016_v23 = vld [vmem:[#allocation11 + $0x484] sm:$0xf] }
 0xe2f   : > { %v8471_v53 = vpop.f32.mrf.mxu1 }
 0xe30   : > { %v8365_v7 = vpack.c.bf16 %v8344_v56, %v8342_v33  ;;  %v18724_v45 = vadd.f32 %v8471_v53, %v18526_v49  ;;  %v8348_v0 = vpop.f32.mrf.mxu0  ;;  %v14621_v33 = vor.u32 %v16016_v23, %v14618_v21  ;;  %v14626_v23 = vld [vmem:[#allocation11 + $0x498] sm:$0xf0]  ;;  %v14712_v21 = vld [vmem:[#allocation11 + $0x500] sm:$0xf] }
 0xe31   : > { %v18726_v32 = vpop.f32.mrf.mxu3 }
 0xe32   : > { %8510 = vmatmul.bf16.gmra.mxu1 %v8365_v7  ;;  %8878 = vmatmul.bf16.gmra.mxu2 %v14613_v40 }
 0xe35   : > { %v8257_v19 = vpop.f32.mrf.mxu2 }
 0xe36   : > { %v8347_v9 = vadd.f32 %v8346_v54, %v8257_v19  ;;  %v16018_v19 = vld [vmem:[#allocation11 + $0x494] sm:$0xf] }
 0xe37   : > { %v8473_v13 = vpop.f32.mrf.mxu1 }
 0xe38   : > { %v18729_v43 = vadd.f32 %v8473_v13, %v18535_v2  ;;  %v16040_v13 = vld [vmem:[#allocation11 + $0x504] sm:$0xf] }
 0xe39   : > { %v18731_v60 = vpop.f32.mrf.mxu3  ;;  %v14717_v54 = vor.u32 %v16040_v13, %v14714_v30 }
 0xe3a   : > { %19846 = vst [vmem:[#allocation49_spill] sm:$0xff] %v18729_v43 }
 0xe3d   : > { %v8259_v49 = vpop.f32.mrf.mxu2 }
 0xe3e   : > { %8829 = vmatmul.bf16.gmra.mxu3 %v14673_v24  ;;  %v8349_v34 = vadd.f32 %v8348_v0, %v8259_v49  ;;  %v16041_v49 = vld [vmem:[#allocation11 + $0x504] sm:$0xf0] }
 0xe3f   : > { %v8476_v56 = vpop.f32.mrf.mxu1 }
 0xe40   : > { %v8366_v40 = vpack.c.bf16 %v8349_v34, %v8347_v9  ;;  %v18734_v53 = vadd.f32 %v8476_v56, %v18543_v22  ;;  %v14629_v34 = vor.u32 %v16018_v19, %v14626_v23  ;;  %v14713_v56 = vor.u32 %v16041_v49, %v14712_v21  ;;  %v14720_v19 = vld [vmem:[#allocation11 + $0x510] sm:$0xf]  ;;  %v16043_v23 = vld [vmem:[#allocation11 + $0x514] sm:$0xf0] }
 0xe41   : > { %v18736_v7 = vpop.f32.mrf.mxu3 }
 0xe42   : > { %8515 = vmatmul.bf16.gmra.mxu1 %v8366_v40  ;;  %8883 = vmatmul.bf16.gmra.mxu2 %v14621_v33 }
 0xe45   : > { %v8844_v2 = vpop.f32.mrf.mxu2 }
 0xe46   : > { %v8845_v0 = vadd.f32 %v8844_v2, %v18662_v18 }
 0xe47   : > { %v8478_v36 = vpop.f32.mrf.mxu1 }
 0xe48   : > { %v18739_v24 = vadd.f32 %v8478_v36, %v18549_v47 }
 0xe49   : > { %v18741_v43 = vpop.f32.mrf.mxu3 }
 0xe4d   : > { %v8846_v22 = vpop.f32.mrf.mxu2 }
 0xe4e   : > { %9416 = vmatmul.bf16.vlgmr.msrb.gmra.mxu3 %v14717_v54  ;;  %v8847_v9 = vadd.f32 %v8846_v22, %v18669_v20  ;;  %v14722_v20 = vld [vmem:[#allocation11 + $0x518] sm:$0xf0]  ;;  %v14634_v54 = vld [vmem:[#allocation11 + $0x4a8] sm:$0xf0] }
 0xe4f   : > { %11038 = vmatpush.bf16.msrb.mxu3 %v19818_v58  ;;  %v8481_v33 = vpop.f32.mrf.mxu1  ;;  %v16042_v58 = vld [vmem:[#allocation11 + $0x514] sm:$0xf] }
 0xe50   : > { %v8924_v47 = vpack.c.bf16 %v8847_v9, %v8845_v0  ;;  %v18747_v40 = vadd.f32 %v8481_v33, %v18556_v46  ;;  %v14725_v36 = vor.u32 %v16042_v58, %v14722_v20  ;;  %v14721_v0 = vor.u32 %v16043_v23, %v14720_v19  ;;  %v14728_v58 = vld [vmem:[#allocation11 + $0x520] sm:$0xf]  ;;  %v16045_v20 = vld [vmem:[#allocation11 + $0x524] sm:$0xf0] }
 0xe51   : > { %v18749_v13 = vpop.f32.mrf.mxu3 }
 0xe52   : > { %8888 = vmatmul.bf16.gmra.mxu2 %v14629_v34  ;;  %9013 = vmatmul.bf16.vlgmr.msra.gmra.mxu0 %v8924_v47 }
 0xe53   : > { %11039 = vmatpush.bf16.msrb.mxu3 %v19820_v8  ;;  %9327 = vmatmul.bf16.vlgmr.msrb.gmra.mxu1 %v14713_v56  ;;  %v16020_v8 = vld [vmem:[#allocation11 + $0x4a4] sm:$0xf] }
 0xe54   : > { %10554 = vmatpush.bf16.msra.mxu0 %v17849_v61  ;;  %v14637_v49 = vor.u32 %v16020_v8, %v14634_v54  ;;  %v14729_v54 = vor.u32 %v16045_v20, %v14728_v58 }
 0xe55   : > { %v8849_v18 = vpop.f32.mrf.mxu2 }
 0xe56   : > { %v8850_v21 = vadd.f32 %v8849_v18, %v18676_v50  ;;  %v16044_v50 = vld [vmem:[#allocation11 + $0x524] sm:$0xf]  ;;  %v14642_v18 = vld [vmem:[#allocation11 + $0x4b8] sm:$0xf0] }
 0xe57   : > { %11040 = vmatpush.bf16.msrb.mxu3 %v19822_v5  ;;  %v8483_v2 = vpop.f32.mrf.mxu1 }
 0xe58   : > { %10555 = vmatpush.bf16.msra.mxu0 %v17862_v57  ;;  %v18756_v46 = vadd.f32 %v8483_v2, %v18564_v11 }
 0xe59   : > { %v18758_v30 = vpop.f32.mrf.mxu3 }
 0xe5b   : > { %11041 = vmatpush.bf16.msrb.mxu3 %v19823_v16 }
 0xe5c   : > { %10556 = vmatpush.bf16.msra.mxu0 %v17873_v14 }
 0xe5d   : > { %v8851_v5 = vpop.f32.mrf.mxu2 }
 0xe5e   : > { %9421 = vmatmul.bf16.gmra.mxu3 %v14725_v36  ;;  %v8852_v11 = vadd.f32 %v8851_v5, %v18681_v38  ;;  %v14730_v38 = vld [vmem:[#allocation11 + $0x528] sm:$0xf0] }
 0xe5f   : > { %11042 = vmatpush.bf16.msrb.mxu3 %v19826_v59  ;;  %v8486_v22 = vpop.f32.mrf.mxu1  ;;  %v14733_v47 = vor.u32 %v16044_v50, %v14730_v38 }
 0xe60   : > { %v8925_v9 = vpack.c.bf16 %v8852_v11, %v8850_v21  ;;  %10557 = vmatpush.bf16.msra.mxu0 %v17882_v55  ;;  %v18767_v16 = vadd.f32 %v8486_v22, %v18574_v63  ;;  %v16046_v21 = vld [vmem:[#allocation11 + $0x534] sm:$0xf]  ;;  %v14738_v11 = vld [vmem:[#allocation11 + $0x538] sm:$0xf0] }
 0xe61   : > { %v18769_v34 = vpop.f32.mrf.mxu3  ;;  %v14741_v22 = vor.u32 %v16046_v21, %v14738_v11 }
 0xe62   : > { %8893 = vmatmul.bf16.gmra.mxu2 %v14637_v49  ;;  %9018 = vmatmul.bf16.gmra.mxu0 %v8925_v9  ;;  %v14650_v9 = vld [vmem:[#allocation11 + $0x4c8] sm:$0xf0] }
 0xe63   : > { %11043 = vmatpush.bf16.msrb.mxu3 %v19827_v48  ;;  %9332 = vmatmul.bf16.gmra.mxu1 %v14721_v0  ;;  %v16022_v48 = vld [vmem:[#allocation11 + $0x4b4] sm:$0xf]  ;;  %v16024_v0 = vld [vmem:[#allocation11 + $0x4c4] sm:$0xf] }
 0xe64   : > { %10558 = vmatpush.bf16.msra.mxu0 %v17889_v12  ;;  %v14645_v8 = vor.u32 %v16022_v48, %v14642_v18 }
 0xe65   : > { %v8854_v59 = vpop.f32.mrf.mxu2 }
 0xe66   : > { %v8855_v2 = vadd.f32 %v8854_v59, %v18686_v62  ;;  %v14736_v59 = vld [vmem:[#allocation11 + $0x530] sm:$0xf] }
 0xe67   : > { %11044 = vmatpush.bf16.msrb.mxu3 %v19830_v44  ;;  %v8488_v33 = vpop.f32.mrf.mxu1 }
 0xe68   : > { %10559 = vmatpush.bf16.msra.mxu0 %v17895_v4  ;;  %v18776_v63 = vadd.f32 %v8488_v33, %v18582_v52 }
 0xe69   : > { %v18778_v56 = vpop.f32.mrf.mxu3 }
 0xe6b   : > { %11045 = vmatpush.bf16.msrb.mxu3 %v19831_v15 }
 0xe6c   : > { %10560 = vmatpush.bf16.msra.mxu0 %v17901_v41 }
 0xe6d   : > { %v8856_v44 = vpop.f32.mrf.mxu2 }
 0xe6e   : > { %9426 = vmatmul.bf16.gmra.mxu3 %v14733_v47  ;;  %v8857_v36 = vadd.f32 %v8856_v44, %v18691_v42  ;;  %v14653_v47 = vor.u32 %v16024_v0, %v14650_v9 }
 0xe6f   : > { %v8491_v52 = vpop.f32.mrf.mxu1 }
 0xe70   : > { %v8926_v19 = vpack.c.bf16 %v8857_v36, %v8855_v2  ;;  %10561 = vmatpush.bf16.msra.mxu0 %v19749_v39  ;;  %v18786_v15 = vadd.f32 %v8491_v52, %v18592_v26  ;;  %v16047_v26 = vld [vmem:[#allocation11 + $0x534] sm:$0xf0]  ;;  %v16048_v2 = vld [vmem:[#allocation11 + $0x544] sm:$0xf]  ;;  %v14746_v36 = vld [vmem:[#allocation11 + $0x548] sm:$0xf0] }
 0xe71   : > { %v18788_v23 = vpop.f32.mrf.mxu3  ;;  %v14737_v18 = vor.u32 %v16047_v26, %v14736_v59  ;;  %v14749_v52 = vor.u32 %v16048_v2, %v14746_v36 }
 0xe72   : > { %8898 = vmatmul.bf16.gmra.mxu2 %v14645_v8  ;;  %9023 = vmatmul.bf16.gmra.mxu0 %v8926_v19  ;;  %v14658_v19 = vld [vmem:[#allocation11 + $0x4d8] sm:$0xf0] }
 0xe73   : > { %9337 = vmatmul.bf16.gmra.mxu1 %v14729_v54  ;;  %v16026_v54 = vld [vmem:[#allocation11 + $0x4d4] sm:$0xf] }
 0xe75   : > { %v8859_v5 = vpop.f32.mrf.mxu2 }
 0xe76   : > { %v8860_v38 = vadd.f32 %v8859_v5, %v18696_v28  ;;  %v14744_v5 = vld [vmem:[#allocation11 + $0x540] sm:$0xf] }
 0xe77   : > { %v8493_v62 = vpop.f32.mrf.mxu1 }
 0xe78   : > { %v18791_v42 = vadd.f32 %v8493_v62, %v18598_v31 }
 0xe79   : > { %v18793_v49 = vpop.f32.mrf.mxu3 }
 0xe7d   : > { %v8861_v50 = vpop.f32.mrf.mxu2 }
 0xe7e   : > { %9431 = vmatmul.bf16.gmra.mxu3 %v14741_v22  ;;  %v8862_v33 = vadd.f32 %v8861_v50, %v18701_v10  ;;  %v14661_v22 = vor.u32 %v16026_v54, %v14658_v19 }
 0xe7f   : > { %v8496_v48 = vpop.f32.mrf.mxu1 }
 0xe80   : > { %v8927_v58 = vpack.c.bf16 %v8862_v33, %v8860_v38  ;;  %v18798_v31 = vadd.f32 %v8496_v48, %v18606_v1  ;;  %v16049_v1 = vld [vmem:[#allocation11 + $0x544] sm:$0xf0]  ;;  %v16050_v38 = vld [vmem:[#allocation11 + $0x554] sm:$0xf]  ;;  %v14754_v33 = vld [vmem:[#allocation11 + $0x558] sm:$0xf0] }
 0xe81   : > { %v18800_v20 = vpop.f32.mrf.mxu3  ;;  %v14745_v9 = vor.u32 %v16049_v1, %v14744_v5  ;;  %v14757_v48 = vor.u32 %v16050_v38, %v14754_v33  ;;  %v14760_v38 = vld [vmem:[#allocation11 + $0x560] sm:$0xf] }
 0xe82   : > { %8903 = vmatmul.bf16.gmra.mxu2 %v14653_v47  ;;  %9028 = vmatmul.bf16.gmra.mxu0 %v8927_v58  ;;  %v14666_v58 = vld [vmem:[#allocation11 + $0x4e8] sm:$0xf0] }
 0xe83   : > { %9342 = vmatmul.bf16.gmra.mxu1 %v14737_v18  ;;  %v16028_v18 = vld [vmem:[#allocation11 + $0x4e4] sm:$0xf] }
 0xe85   : > { %v8864_v44 = vpop.f32.mrf.mxu2 }
 0xe86   : > { %v8865_v11 = vadd.f32 %v8864_v44, %v18706_v29  ;;  %v14752_v44 = vld [vmem:[#allocation11 + $0x550] sm:$0xf] }
 0xe87   : > { %v8498_v8 = vpop.f32.mrf.mxu1 }
 0xe88   : > { %v18803_v28 = vadd.f32 %v8498_v8, %v18610_v51 }
 0xe89   : > { %v18805_v10 = vpop.f32.mrf.mxu3 }
 0xe8d   : > { %v8866_v21 = vpop.f32.mrf.mxu2 }
 0xe8e   : > { %9436 = vmatmul.bf16.gmra.mxu3 %v14749_v52  ;;  %v8867_v62 = vadd.f32 %v8866_v21, %v18711_v35  ;;  %v14669_v52 = vor.u32 %v16028_v18, %v14666_v58 }
 0xe8f   : > { %v8501_v0 = vpop.f32.mrf.mxu1 }
 0xe90   : > { %v8928_v59 = vpack.c.bf16 %v8867_v62, %v8865_v11  ;;  %v18810_v51 = vadd.f32 %v8501_v0, %v18618_v3  ;;  %v16051_v3 = vld [vmem:[#allocation11 + $0x554] sm:$0xf0]  ;;  %v16052_v11 = vld [vmem:[#allocation11 + $0x564] sm:$0xf]  ;;  %v14762_v62 = vld [vmem:[#allocation11 + $0x568] sm:$0xf0] }
 0xe91   : > { %v18812_v26 = vpop.f32.mrf.mxu3  ;;  %v14753_v19 = vor.u32 %v16051_v3, %v14752_v44  ;;  %v19847_v0 = vld [vmem:[#allocation54_spill] sm:$0xff] }
 0xe92   : > { %8908 = vmatmul.bf16.gmra.mxu2 %v14661_v22  ;;  %9033 = vmatmul.bf16.gmra.mxu0 %v8928_v59  ;;  %v16030_v59 = vld [vmem:[#allocation11 + $0x4f4] sm:$0xf] }
 0xe93   : > { %9347 = vmatmul.bf16.gmra.mxu1 %v14745_v9  ;;  %v14765_v9 = vor.u32 %v16052_v11, %v14762_v62  ;;  %v19849_v11 = vld [vmem:[#allocation42_spill] sm:$0xff] }
 0xe94   : > { %v14768_v62 = vld [vmem:[#allocation11 + $0x570] sm:$0xf] }
 0xe95   : > { %v8869_v50 = vpop.f32.mrf.mxu2 }
 0xe96   : > { %v8870_v36 = vadd.f32 %v8869_v50, %v18716_v17  ;;  %v14674_v50 = vld [vmem:[#allocation11 + $0x4f8] sm:$0xf0] }
 0xe97   : > { %v8503_v47 = vpop.f32.mrf.mxu1  ;;  %v14677_v18 = vor.u32 %v16030_v59, %v14674_v50 }
 0xe98   : > { %v18815_v29 = vadd.f32 %v8503_v47, %v18624_v25 }
 0xe99   : > { %v18817_v35 = vpop.f32.mrf.mxu3 }
 0xe9d   : > { %v8871_v2 = vpop.f32.mrf.mxu2 }
 0xe9e   : > { %9441 = vmatmul.bf16.gmra.mxu3 %v14757_v48  ;;  %v8872_v8 = vadd.f32 %v8871_v2, %v18721_v6  ;;  %v19848_v2 = vld [vmem:[#allocation45_spill] sm:$0xff] }
 0xe9f   : > { %v8506_v54 = vpop.f32.mrf.mxu1 }
 0xea0   : > { %v8929_v5 = vpack.c.bf16 %v8872_v8, %v8870_v36  ;;  %v18822_v25 = vadd.f32 %v8506_v54, %v18630_v37  ;;  %v16053_v37 = vld [vmem:[#allocation11 + $0x564] sm:$0xf0]  ;;  %v16054_v54 = vld [vmem:[#allocation11 + $0x574] sm:$0xf] }
 0xea1   : > { %v18824_v1 = vpop.f32.mrf.mxu3  ;;  %v14761_v44 = vor.u32 %v16053_v37, %v14760_v38 }
 0xea2   : > { %8913 = vmatmul.bf16.gmra.mxu2 %v14669_v52  ;;  %9038 = vmatmul.bf16.gmra.mxu0 %v8929_v5 }
 0xea3   : > { %9352 = vmatmul.bf16.gmra.mxu1 %v14753_v19  ;;  %v14770_v19 = vld [vmem:[#allocation11 + $0x578] sm:$0xf0] }
 0xea5   : > { %v8874_v21 = vpop.f32.mrf.mxu2 }
 0xea6   : > { %v8875_v47 = vadd.f32 %v8874_v21, %v18726_v32  ;;  %v14773_v21 = vor.u32 %v16054_v54, %v14770_v19  ;;  %v16057_v19 = vld [vmem:[#allocation11 + $0x584] sm:$0xf0] }
 0xea7   : > { %v8508_v22 = vpop.f32.mrf.mxu1 }
 0xea8   : > { %v18827_v17 = vadd.f32 %v8508_v22, %v19847_v0  ;;  %v16055_v22 = vld [vmem:[#allocation11 + $0x574] sm:$0xf0] }
 0xea9   : > { %v18829_v6 = vpop.f32.mrf.mxu3  ;;  %v14769_v38 = vor.u32 %v16055_v22, %v14768_v62 }
 0xead   : > { %v8876_v33 = vpop.f32.mrf.mxu2 }
 0xeae   : > { %9446 = vmatmul.bf16.gmra.mxu3 %v14765_v9  ;;  %v8877_v48 = vadd.f32 %v8876_v33, %v18731_v60  ;;  %v19850_v33 = vld [vmem:[#allocation37_spill] sm:$0xff] }
 0xeaf   : > { %v8511_v58 = vpop.f32.mrf.mxu1 }
 0xeb0   : > { %v8930_v3 = vpack.c.bf16 %v8877_v48, %v8875_v47  ;;  %v18834_v36 = vadd.f32 %v8511_v58, %v19848_v2  ;;  %v16056_v58 = vld [vmem:[#allocation11 + $0x584] sm:$0xf]  ;;  %v19851_v2 = vld [vmem:[#allocation43_spill] sm:$0xff] }
 0xeb1   : > { %v18836_v8 = vpop.f32.mrf.mxu3 }
 0xeb2   : > { %8918 = vmatmul.bf16.gmra.mxu2 %v14677_v18  ;;  %9043 = vmatmul.bf16.gmra.mxu0 %v8930_v3 }
 0xeb3   : > { %9357 = vmatmul.bf16.gmra.mxu1 %v14761_v44  ;;  %v14778_v44 = vld [vmem:[#allocation11 + $0x588] sm:$0xf0] }
 0xeb5   : > { %v8879_v52 = vpop.f32.mrf.mxu2 }
 0xeb6   : > { %v8880_v9 = vadd.f32 %v8879_v52, %v18736_v7  ;;  %v14776_v52 = vld [vmem:[#allocation11 + $0x580] sm:$0xf] }
 0xeb7   : > { %v8513_v5 = vpop.f32.mrf.mxu1  ;;  %v14777_v62 = vor.u32 %v16057_v19, %v14776_v52 }
 0xeb8   : > { %v18839_v32 = vadd.f32 %v8513_v5, %v19849_v11 }
 0xeb9   : > { %v18841_v60 = vpop.f32.mrf.mxu3 }
 0xebd   : > { %v8881_v0 = vpop.f32.mrf.mxu2 }
 0xebe   : > { %9451 = vmatmul.bf16.gmra.mxu3 %v14773_v21  ;;  %v8882_v59 = vadd.f32 %v8881_v0, %v18741_v43  ;;  %v14781_v43 = vor.u32 %v16056_v58, %v14778_v44  ;;  %v14786_v58 = vld [vmem:[#allocation11 + $0x598] sm:$0xf0] }
 0xebf   : > { %v8516_v50 = vpop.f32.mrf.mxu1 }
 0xec0   : > { %v8931_v37 = vpack.c.bf16 %v8882_v59, %v8880_v9  ;;  %v18846_v47 = vadd.f32 %v8516_v50, %v19850_v33  ;;  %v19853_v59 = vld [vmem:[#allocation36_spill] sm:$0xff]  ;;  %v16058_v33 = vld [vmem:[#allocation11 + $0x594] sm:$0xf] }
 0xec1   : > { %v18848_v48 = vpop.f32.mrf.mxu3 }
 0xec2   : > { %9048 = vmatmul.bf16.gmra.mxu0 %v8931_v37 }
 0xec3   : > { %9362 = vmatmul.bf16.gmra.mxu1 %v14769_v38 }
 0xec5   : > { %v8884_v18 = vpop.f32.mrf.mxu2 }
 0xec6   : > { %v8885_v11 = vadd.f32 %v8884_v18, %v18749_v13 }
 0xec7   : > { %v8518_v3 = vpop.f32.mrf.mxu1 }
 0xec8   : > { %v18851_v54 = vadd.f32 %v8518_v3, %v19851_v2  ;;  %v19854_v2 = vld [vmem:[#allocation38_spill] sm:$0xff] }
 0xec9   : > { %v18853_v7 = vpop.f32.mrf.mxu3 }
 0xeca   : > { %19852 = vst [vmem:[#allocation48_spill] sm:$0xff] %v18851_v54  ;;  %v19855_v54 = vld [vmem:[#allocation39_spill] sm:$0xff] }
 0xecd   : > { %v8886_v5 = vpop.f32.mrf.mxu2 }
 0xece   : > { %9456 = vmatmul.bf16.gmra.mxu3 %v14781_v43  ;;  %v8887_v21 = vadd.f32 %v8886_v5, %v18758_v30  ;;  %v14789_v30 = vor.u32 %v16058_v33, %v14786_v58  ;;  %v16060_v58 = vld [vmem:[#allocation11 + $0x5a4] sm:$0xf] }
 0xecf   : > { %v9014_v0 = vpop.f32.mrf.mxu0 }
 0xed0   : > { %v8932_v22 = vpack.c.bf16 %v8887_v21, %v8885_v11  ;;  %v9328_v9 = vpop.f32.mrf.mxu1  ;;  %v18858_v50 = vadd.f32 %v9014_v0, %v19853_v59  ;;  %v14784_v11 = vld [vmem:[#allocation11 + $0x590] sm:$0xf]  ;;  %v16059_v21 = vld [vmem:[#allocation11 + $0x594] sm:$0xf0] }
 0xed1   : > { %v9417_v38 = vpop.f32.mrf.mxu3 }
 0xed2   : > { %9053 = vmatmul.bf16.gmra.mxu0 %v8932_v22  ;;  %v9418_v18 = vadd.f32 %v9417_v38, %v9328_v9 }
 0xed3   : > { %9367 = vmatmul.bf16.gmra.mxu1 %v14777_v62 }
 0xed5   : > { %v8889_v37 = vpop.f32.mrf.mxu2 }
 0xed6   : > { %v8890_v22 = vadd.f32 %v8889_v37, %v18769_v34  ;;  %v14794_v34 = vld [vmem:[#allocation11 + $0x5a8] sm:$0xf0] }
 0xed7   : > { %v9016_v44 = vpop.f32.mrf.mxu0 }
 0xed8   : > { %v9330_v3 = vpop.f32.mrf.mxu1  ;;  %v18861_v43 = vadd.f32 %v9016_v44, %v19854_v2  ;;  %v14785_v2 = vor.u32 %v16059_v21, %v14784_v11 }
 0xed9   : > { %v9419_v13 = vpop.f32.mrf.mxu3 }
 0xeda   : > { %v9420_v52 = vadd.f32 %v9419_v13, %v9330_v3 }
 0xedc   : > { %v9497_v19 = vpack.c.bf16 %v9420_v52, %v9418_v18 }
 0xedd   : > { %v8891_v5 = vpop.f32.mrf.mxu2 }
 0xede   : > { %9461 = vmatmul.bf16.gmra.mxu3 %v14789_v30  ;;  %9586 = vmatmul.bf16.vlgmr.msrb.gmra.mxu2 %v9497_v19  ;;  %v8892_v62 = vadd.f32 %v8891_v5, %v18778_v56  ;;  %v14797_v30 = vor.u32 %v16060_v58, %v14794_v34  ;;  %v14792_v19 = vld [vmem:[#allocation11 + $0x5a0] sm:$0xf]  ;;  %v16061_v5 = vld [vmem:[#allocation11 + $0x5a4] sm:$0xf0] }
 0xedf   : > { %11127 = vmatpush.bf16.msrb.mxu2 %v17849_v61  ;;  %v9019_v59 = vpop.f32.mrf.mxu0  ;;  %v19856_v61 = vld [vmem:[#allocation40_spill] sm:$0xff] }
 0xee0   : > { %v8933_v0 = vpack.c.bf16 %v8892_v62, %v8890_v22  ;;  %v9333_v44 = vpop.f32.mrf.mxu1  ;;  %v18867_v33 = vadd.f32 %v9019_v59, %v19855_v54  ;;  %v19857_v59 = vld [vmem:[#allocation41_spill] sm:$0xff] }
 0xee1   : > { %v9422_v9 = vpop.f32.mrf.mxu3 }
 0xee2   : > { %9058 = vmatmul.bf16.gmra.mxu0 %v8933_v0  ;;  %v9423_v18 = vadd.f32 %v9422_v9, %v9333_v44  ;;  %v14793_v0 = vor.u32 %v16061_v5, %v14792_v19  ;;  %v16062_v9 = vld [vmem:[#allocation11 + $0x5b4] sm:$0xf] }
 0xee3   : > { %11128 = vmatpush.bf16.msrb.mxu2 %v17862_v57  ;;  %9372 = vmatmul.bf16.gmra.mxu1 %v14785_v2 }
 0xee5   : > { %v8894_v38 = vpop.f32.mrf.mxu2 }
 0xee6   : > { %v8895_v11 = vadd.f32 %v8894_v38, %v18788_v23  ;;  %v14802_v23 = vld [vmem:[#allocation11 + $0x5b8] sm:$0xf0] }
 0xee7   : > { %11129 = vmatpush.bf16.msrb.mxu2 %v17873_v14  ;;  %v9021_v56 = vpop.f32.mrf.mxu0 }
 0xee8   : > { %v9335_v37 = vpop.f32.mrf.mxu1  ;;  %v18872_v3 = vadd.f32 %v9021_v56, %v19856_v61  ;;  %v14805_v56 = vor.u32 %v16062_v9, %v14802_v23 }
 0xee9   : > { %v9424_v13 = vpop.f32.mrf.mxu3 }
 0xeea   : > { %v9425_v54 = vadd.f32 %v9424_v13, %v9335_v37 }
 0xeeb   : > { %11130 = vmatpush.bf16.msrb.mxu2 %v17882_v55 }
 0xeec   : > { %v9498_v52 = vpack.c.bf16 %v9425_v54, %v9423_v18  ;;  %v16063_v18 = vld [vmem:[#allocation11 + $0x5b4] sm:$0xf0] }
 0xeed   : > { %v8896_v57 = vpop.f32.mrf.mxu2 }
 0xeee   : > { %9466 = vmatmul.bf16.gmra.mxu3 %v14797_v30  ;;  %9591 = vmatmul.bf16.gmra.mxu2 %v9498_v52  ;;  %v8897_v14 = vadd.f32 %v8896_v57, %v18793_v49  ;;  %v14800_v30 = vld [vmem:[#allocation11 + $0x5b0] sm:$0xf] }
 0xeef   : > { %11131 = vmatpush.bf16.msrb.mxu2 %v17889_v12  ;;  %v9024_v22 = vpop.f32.mrf.mxu0  ;;  %v19858_v12 = vld [vmem:[#allocation53_spill] sm:$0xff]  ;;  %v14801_v5 = vor.u32 %v16063_v18, %v14800_v30  ;;  %v19861_v18 = vld [vmem:[#allocation51_spill] sm:$0xff] }
 0xef0   : > { %v8934_v21 = vpack.c.bf16 %v8897_v14, %v8895_v11  ;;  %v9338_v62 = vpop.f32.mrf.mxu1  ;;  %v18879_v44 = vadd.f32 %v9024_v22, %v19857_v59  ;;  %v19859_v11 = vld [vmem:[#allocation55_spill] sm:$0xff]  ;;  %v16064_v22 = vld [vmem:[#allocation11 + $0x5c4] sm:$0xf] }
 0xef1   : > { %v9427_v55 = vpop.f32.mrf.mxu3 }
 0xef2   : > { %9063 = vmatmul.bf16.gmra.mxu0 %v8934_v21  ;;  %v9428_v37 = vadd.f32 %v9427_v55, %v9338_v62  ;;  %v14810_v62 = vld [vmem:[#allocation11 + $0x5c8] sm:$0xf0]  ;;  %v19860_v55 = vld [vmem:[#allocation52_spill] sm:$0xff] }
 0xef3   : > { %11132 = vmatpush.bf16.msrb.mxu2 %v17895_v4  ;;  %9377 = vmatmul.bf16.gmra.mxu1 %v14793_v0 }
 0xef5   : > { %v8899_v2 = vpop.f32.mrf.mxu2 }
 0xef6   : > { %v8900_v54 = vadd.f32 %v8899_v2, %v18800_v20 }
 0xef7   : > { %11133 = vmatpush.bf16.msrb.mxu2 %v17901_v41  ;;  %v9026_v49 = vpop.f32.mrf.mxu0 }
 0xef8   : > { %v9340_v38 = vpop.f32.mrf.mxu1  ;;  %v18884_v58 = vadd.f32 %v9026_v49, %v19858_v12  ;;  %v14808_v12 = vld [vmem:[#allocation11 + $0x5c0] sm:$0xf] }
 0xef9   : > { %v9429_v34 = vpop.f32.mrf.mxu3 }
 0xefa   : > { %v9430_v61 = vadd.f32 %v9429_v34, %v9340_v38  ;;  %v16065_v34 = vld [vmem:[#allocation11 + $0x5c4] sm:$0xf0] }
 0xefb   : > { %11134 = vmatpush.bf16.msrb.mxu2 %v19749_v39  ;;  %v14809_v30 = vor.u32 %v16065_v34, %v14808_v12 }
 0xefc   : > { %v9499_v13 = vpack.c.bf16 %v9430_v61, %v9428_v37 }
 0xefd   : > { %v8901_v4 = vpop.f32.mrf.mxu2 }
 0xefe   : > { %9471 = vmatmul.bf16.gmra.mxu3 %v14805_v56  ;;  %9596 = vmatmul.bf16.gmra.mxu2 %v9499_v13  ;;  %v8902_v41 = vadd.f32 %v8901_v4, %v18805_v10  ;;  %v14813_v10 = vor.u32 %v16064_v22, %v14810_v62 }
 0xeff   : > { %v9029_v57 = vpop.f32.mrf.mxu0 }
 0xf00   : > { %v8935_v52 = vpack.c.bf16 %v8902_v41, %v8900_v54  ;;  %v9343_v19 = vpop.f32.mrf.mxu1  ;;  %v18890_v14 = vadd.f32 %v9029_v57, %v19859_v11  ;;  %v16066_v57 = vld [vmem:[#allocation11 + $0x5d4] sm:$0xf] }
 0xf01   : > { %v9432_v21 = vpop.f32.mrf.mxu3 }
 0xf02   : > { %9068 = vmatmul.bf16.gmra.mxu0 %v8935_v52  ;;  %v9433_v9 = vadd.f32 %v9432_v21, %v9343_v19  ;;  %v14818_v19 = vld [vmem:[#allocation11 + $0x5d8] sm:$0xf0] }
 0xf03   : > { %9382 = vmatmul.bf16.gmra.mxu1 %v14801_v5 }
 0xf05   : > { %v8904_v39 = vpop.f32.mrf.mxu2 }
 0xf06   : > { %v8905_v56 = vadd.f32 %v8904_v39, %v18812_v26 }
 0xf07   : > { %v9031_v0 = vpop.f32.mrf.mxu0 }
 0xf08   : > { %v9345_v59 = vpop.f32.mrf.mxu1  ;;  %v18893_v20 = vadd.f32 %v9031_v0, %v19860_v55  ;;  %v16067_v55 = vld [vmem:[#allocation11 + $0x5d4] sm:$0xf0] }
 0xf09   : > { %v9434_v2 = vpop.f32.mrf.mxu3 }
 0xf0a   : > { %v9435_v23 = vadd.f32 %v9434_v2, %v9345_v59  ;;  %v14816_v59 = vld [vmem:[#allocation11 + $0x5d0] sm:$0xf] }
 0xf0c   : > { %v9500_v49 = vpack.c.bf16 %v9435_v23, %v9433_v9 }
 0xf0d   : > { %v8906_v38 = vpop.f32.mrf.mxu2 }
 0xf0e   : > { %9476 = vmatmul.bf16.gmra.mxu3 %v14813_v10  ;;  %9601 = vmatmul.bf16.gmra.mxu2 %v9500_v49  ;;  %v8907_v37 = vadd.f32 %v8906_v38, %v18817_v35  ;;  %v14821_v35 = vor.u32 %v16066_v57, %v14818_v19  ;;  %v14817_v38 = vor.u32 %v16067_v55, %v14816_v59 }
 0xf0f   : > { %v9034_v13 = vpop.f32.mrf.mxu0 }
 0xf10   : > { %v8936_v61 = vpack.c.bf16 %v8907_v37, %v8905_v56  ;;  %v9348_v4 = vpop.f32.mrf.mxu1  ;;  %v18898_v54 = vadd.f32 %v9034_v13, %v19861_v18  ;;  %v16068_v37 = vld [vmem:[#allocation11 + $0x5e4] sm:$0xf] }
 0xf11   : > { %v9437_v41 = vpop.f32.mrf.mxu3 }
 0xf12   : > { %9073 = vmatmul.bf16.gmra.mxu0 %v8936_v61  ;;  %v9438_v39 = vadd.f32 %v9437_v41, %v9348_v4  ;;  %v14826_v61 = vld [vmem:[#allocation11 + $0x5e8] sm:$0xf0] }
 0xf13   : > { %9387 = vmatmul.bf16.gmra.mxu1 %v14809_v30  ;;  %v19863_v30 = vld [vmem:[#allocation33_spill] sm:$0xff] }
 0xf15   : > { %v8909_v52 = vpop.f32.mrf.mxu2 }
 0xf16   : > { %v8910_v2 = vadd.f32 %v8909_v52, %v18824_v1 }
 0xf17   : > { %v9036_v5 = vpop.f32.mrf.mxu0 }
 0xf18   : > { %v9350_v11 = vpop.f32.mrf.mxu1  ;;  %v18901_v26 = vadd.f32 %v9036_v5, %v18709_v27  ;;  %v19862_v27 = vld [vmem:[#allocation50_spill] sm:$0xff]  ;;  %v14824_v5 = vld [vmem:[#allocation11 + $0x5e0] sm:$0xf] }
 0xf19   : > { %v9439_v21 = vpop.f32.mrf.mxu3 }
 0xf1a   : > { %v9440_v22 = vadd.f32 %v9439_v21, %v9350_v11  ;;  %v16069_v11 = vld [vmem:[#allocation11 + $0x5e4] sm:$0xf0] }
 0xf1c   : > { %v9501_v62 = vpack.c.bf16 %v9440_v22, %v9438_v39 }
 0xf1d   : > { %v8911_v0 = vpop.f32.mrf.mxu2 }
 0xf1e   : > { %9481 = vmatmul.bf16.gmra.mxu3 %v14821_v35  ;;  %9606 = vmatmul.bf16.gmra.mxu2 %v9501_v62  ;;  %v8912_v10 = vadd.f32 %v8911_v0, %v18829_v6  ;;  %v14829_v6 = vor.u32 %v16068_v37, %v14826_v61  ;;  %v14825_v0 = vor.u32 %v16069_v11, %v14824_v5 }
 0xf1f   : > { %v9039_v23 = vpop.f32.mrf.mxu0 }
 0xf20   : > { %v8937_v9 = vpack.c.bf16 %v8912_v10, %v8910_v2  ;;  %v9353_v49 = vpop.f32.mrf.mxu1  ;;  %v18906_v12 = vadd.f32 %v9039_v23, %v19862_v27  ;;  %v16070_v10 = vld [vmem:[#allocation11 + $0x5f4] sm:$0xf] }
 0xf21   : > { %v9442_v34 = vpop.f32.mrf.mxu3 }
 0xf22   : > { %9078 = vmatmul.bf16.gmra.mxu0 %v8937_v9  ;;  %v9443_v41 = vadd.f32 %v9442_v34, %v9353_v49  ;;  %v14834_v9 = vld [vmem:[#allocation11 + $0x5f8] sm:$0xf0] }
 0xf23   : > { %9392 = vmatmul.bf16.gmra.mxu1 %v14817_v38  ;;  %v19864_v38 = vld [vmem:[#allocation49_spill] sm:$0xff] }
 0xf25   : > { %v8914_v56 = vpop.f32.mrf.mxu2 }
 0xf26   : > { %v8915_v21 = vadd.f32 %v8914_v56, %v18836_v8 }
 0xf27   : > { %v9041_v13 = vpop.f32.mrf.mxu0 }
 0xf28   : > { %v9355_v4 = vpop.f32.mrf.mxu1  ;;  %v18909_v1 = vadd.f32 %v9041_v13, %v19863_v30  ;;  %v16071_v13 = vld [vmem:[#allocation11 + $0x5f4] sm:$0xf0] }
 0xf29   : > { %v9444_v18 = vpop.f32.mrf.mxu3 }
 0xf2a   : > { %v9445_v52 = vadd.f32 %v9444_v18, %v9355_v4 }
 0xf2c   : > { %v9502_v57 = vpack.c.bf16 %v9445_v52, %v9443_v41 }
 0xf2d   : > { %v8916_v19 = vpop.f32.mrf.mxu2 }
 0xf2e   : > { %9486 = vmatmul.bf16.gmra.mxu3 %v14829_v6  ;;  %9611 = vmatmul.bf16.gmra.mxu2 %v9502_v57  ;;  %v8917_v35 = vadd.f32 %v8916_v19, %v18841_v60  ;;  %v14837_v60 = vor.u32 %v16070_v10, %v14834_v9 }
 0xf2f   : > { %v9044_v22 = vpop.f32.mrf.mxu0 }
 0xf30   : > { %v8938_v39 = vpack.c.bf16 %v8917_v35, %v8915_v21  ;;  %v9358_v62 = vpop.f32.mrf.mxu1  ;;  %v18914_v59 = vadd.f32 %v9044_v22, %v18724_v45  ;;  %v14832_v45 = vld [vmem:[#allocation11 + $0x5f0] sm:$0xf] }
 0xf31   : > { %v9447_v55 = vpop.f32.mrf.mxu3  ;;  %v14833_v52 = vor.u32 %v16071_v13, %v14832_v45  ;;  %v16083_v45 = vld [vmem:[#allocation11 + $0x614] sm:$0xf0]  ;;  %v16082_v13 = vld [vmem:[#allocation11 + $0x614] sm:$0xf] }
 0xf32   : > { %9083 = vmatmul.bf16.gmra.mxu0 %v8938_v39  ;;  %v9448_v34 = vadd.f32 %v9447_v55, %v9358_v62  ;;  %v16081_v62 = vld [vmem:[#allocation11 + $0x604] sm:$0xf0]  ;;  %v14874_v55 = vld [vmem:[#allocation11 + $0x608] sm:$0xf0] }
 0xf33   : > { %9397 = vmatmul.bf16.gmra.mxu1 %v14825_v0  ;;  %v16080_v0 = vld [vmem:[#allocation11 + $0x604] sm:$0xf] }
 0xf34   : > { %v14877_v9 = vor.u32 %v16080_v0, %v14874_v55  ;;  %v14888_v0 = vld [vmem:[#allocation11 + $0x620] sm:$0xf]  ;;  %v16085_v55 = vld [vmem:[#allocation11 + $0x624] sm:$0xf0] }
 0xf35   : > { %v8919_v2 = vpop.f32.mrf.mxu2 }
 0xf36   : > { %v8920_v4 = vadd.f32 %v8919_v2, %v18848_v48 }
 0xf37   : > { %v9046_v23 = vpop.f32.mrf.mxu0 }
 0xf38   : > { %v9360_v49 = vpop.f32.mrf.mxu1  ;;  %v18917_v8 = vadd.f32 %v9046_v23, %v19864_v38 }
 0xf39   : > { %v9449_v27 = vpop.f32.mrf.mxu3 }
 0xf3a   : > { %v9450_v56 = vadd.f32 %v9449_v27, %v9360_v49 }
 0xf3c   : > { %v9503_v37 = vpack.c.bf16 %v9450_v56, %v9448_v34 }
 0xf3d   : > { %v8921_v61 = vpop.f32.mrf.mxu2 }
 0xf3e   : > { %9491 = vmatmul.bf16.gmra.mxu3 %v14837_v60  ;;  %9616 = vmatmul.bf16.gmra.mxu2 %v9503_v37  ;;  %v8922_v30 = vadd.f32 %v8921_v61, %v18853_v7  ;;  %v14872_v7 = vld [vmem:[#allocation11 + $0x600] sm:$0xf]  ;;  %v14880_v61 = vld [vmem:[#allocation11 + $0x610] sm:$0xf] }
 0xf3f   : > { %v9049_v6 = vpop.f32.mrf.mxu0  ;;  %v14873_v2 = vor.u32 %v16081_v62, %v14872_v7 }
 0xf40   : > { %v8939_v18 = vpack.c.bf16 %v8922_v30, %v8920_v4  ;;  %v9363_v41 = vpop.f32.mrf.mxu1  ;;  %v18922_v57 = vadd.f32 %v9049_v6, %v18734_v53  ;;  %v14882_v4 = vld [vmem:[#allocation11 + $0x618] sm:$0xf0]  ;;  %v14881_v30 = vor.u32 %v16083_v45, %v14880_v61 }
 0xf41   : > { %v9452_v19 = vpop.f32.mrf.mxu3 }
 0xf42   : > { %9088 = vmatmul.bf16.gmra.mxu0 %v8939_v18  ;;  %v9453_v48 = vadd.f32 %v9452_v19, %v9363_v41  ;;  %v14885_v18 = vor.u32 %v16082_v13, %v14882_v4 }
 0xf43   : > { %9402 = vmatmul.bf16.gmra.mxu1 %v14833_v52 }
 0xf47   : > { %v9051_v5 = vpop.f32.mrf.mxu0 }
 0xf48   : > { %v9365_v11 = vpop.f32.mrf.mxu1  ;;  %v18925_v21 = vadd.f32 %v9051_v5, %v18739_v24 }
 0xf49   : > { %v9454_v35 = vpop.f32.mrf.mxu3 }
 0xf4a   : > { %v9455_v39 = vadd.f32 %v9454_v35, %v9365_v11 }
 0xf4c   : > { %v9504_v22 = vpack.c.bf16 %v9455_v39, %v9453_v48 }
 0xf4e   : > { %9621 = vmatmul.bf16.gmra.mxu2 %v9504_v22 }
 0xf4f   : > { %v9054_v53 = vpop.f32.mrf.mxu0 }
 0xf50   : > { %v9368_v10 = vpop.f32.mrf.mxu1  ;;  %v18928_v23 = vadd.f32 %v9054_v53, %v18747_v40  ;;  %v14889_v53 = vor.u32 %v16085_v55, %v14888_v0 }
 0xf51   : > { %v9457_v49 = vpop.f32.mrf.mxu3 }
 0xf52   : > { %9900 = vmatmul.bf16.vlgmr.msrb.gmra.mxu0 %v14873_v2  ;;  %v9458_v34 = vadd.f32 %v9457_v49, %v9368_v10  ;;  %v16084_v2 = vld [vmem:[#allocation11 + $0x624] sm:$0xf] }
 0xf53   : > { %9989 = vmatmul.bf16.vlgmr.msra.gmra.mxu1 %v14877_v9 }
 0xf57   : > { %v9056_v24 = vpop.f32.mrf.mxu0 }
 0xf58   : > { %v9370_v38 = vpop.f32.mrf.mxu1  ;;  %v18931_v27 = vadd.f32 %v9056_v24, %v18756_v46 }
 0xf59   : > { %v9459_v60 = vpop.f32.mrf.mxu3 }
 0xf5a   : > { %v9460_v56 = vadd.f32 %v9459_v60, %v9370_v38 }
 0xf5c   : > { %v9505_v37 = vpack.c.bf16 %v9460_v56, %v9458_v34 }
 0xf5e   : > { %9626 = vmatmul.bf16.gmra.mxu2 %v9505_v37 }
 0xf5f   : > { %v9059_v40 = vpop.f32.mrf.mxu0 }
 0xf60   : > { %v18934_v6 = vadd.f32 %v9059_v40, %v18767_v16  ;;  %v9373_v41 = vpop.f32.mrf.mxu1  ;;  %v16087_v40 = vld [vmem:[#allocation11 + $0x634] sm:$0xf0] }
 0xf61   : > { %v9462_v52 = vpop.f32.mrf.mxu3  ;;  %v9587_v19 = vpop.f32.mrf.mxu2 }
 0xf62   : > { %v18937_v46 = vadd.f32 %v9587_v19, %v18858_v50  ;;  %9905 = vmatmul.bf16.gmra.mxu0 %v14881_v30  ;;  %v9463_v39 = vadd.f32 %v9462_v52, %v9373_v41  ;;  %v14890_v50 = vld [vmem:[#allocation11 + $0x628] sm:$0xf0]  ;;  %v14896_v30 = vld [vmem:[#allocation11 + $0x630] sm:$0xf] }
 0xf63   : > { %9994 = vmatmul.bf16.gmra.mxu1 %v14885_v18  ;;  %v14893_v9 = vor.u32 %v16084_v2, %v14890_v50  ;;  %v16086_v18 = vld [vmem:[#allocation11 + $0x634] sm:$0xf]  ;;  %v14897_v41 = vor.u32 %v16087_v40, %v14896_v30 }
 0xf67   : > { %v9061_v5 = vpop.f32.mrf.mxu0 }
 0xf68   : > { %v18940_v11 = vadd.f32 %v9061_v5, %v18776_v63  ;;  %v9375_v35 = vpop.f32.mrf.mxu1 }
 0xf69   : > { %v9464_v48 = vpop.f32.mrf.mxu3  ;;  %v9589_v7 = vpop.f32.mrf.mxu2 }
 0xf6a   : > { %v9465_v22 = vadd.f32 %v9464_v48, %v9375_v35  ;;  %v18943_v16 = vadd.f32 %v9589_v7, %v18861_v43 }
 0xf6c   : > { %v9506_v62 = vpack.c.bf16 %v9465_v22, %v9463_v39 }
 0xf6e   : > { %9631 = vmatmul.bf16.gmra.mxu2 %v9506_v62 }
 0xf6f   : > { %v9064_v10 = vpop.f32.mrf.mxu0 }
 0xf70   : > { %v18946_v63 = vadd.f32 %v9064_v10, %v18786_v15  ;;  %v9378_v49 = vpop.f32.mrf.mxu1  ;;  %v16089_v10 = vld [vmem:[#allocation11 + $0x644] sm:$0xf0] }
 0xf71   : > { %v9467_v24 = vpop.f32.mrf.mxu3  ;;  %v9592_v38 = vpop.f32.mrf.mxu2 }
 0xf72   : > { %v18949_v60 = vadd.f32 %v9592_v38, %v18867_v33  ;;  %9910 = vmatmul.bf16.gmra.mxu0 %v14889_v53  ;;  %v9468_v61 = vadd.f32 %v9467_v24, %v9378_v49  ;;  %v14898_v33 = vld [vmem:[#allocation11 + $0x638] sm:$0xf0]  ;;  %v14904_v53 = vld [vmem:[#allocation11 + $0x640] sm:$0xf] }
 0xf73   : > { %9999 = vmatmul.bf16.gmra.mxu1 %v14893_v9  ;;  %v14901_v19 = vor.u32 %v16086_v18, %v14898_v33  ;;  %v16088_v9 = vld [vmem:[#allocation11 + $0x644] sm:$0xf]  ;;  %v14905_v49 = vor.u32 %v16089_v10, %v14904_v53 }
 0xf77   : > { %v9066_v43 = vpop.f32.mrf.mxu0 }
 0xf78   : > { %v18952_v34 = vadd.f32 %v9066_v43, %v18791_v42  ;;  %v9380_v56 = vpop.f32.mrf.mxu1 }
 0xf79   : > { %v9469_v37 = vpop.f32.mrf.mxu3  ;;  %v9594_v13 = vpop.f32.mrf.mxu2 }
 0xf7a   : > { %v9470_v45 = vadd.f32 %v9469_v37, %v9380_v56  ;;  %v18955_v15 = vadd.f32 %v9594_v13, %v18872_v3 }
 0xf7c   : > { %v9507_v4 = vpack.c.bf16 %v9470_v45, %v9468_v61 }
 0xf7e   : > { %9636 = vmatmul.bf16.gmra.mxu2 %v9507_v4 }
 0xf7f   : > { %v9069_v52 = vpop.f32.mrf.mxu0 }
 0xf80   : > { %v18958_v42 = vadd.f32 %v9069_v52, %v18798_v31  ;;  %v9383_v5 = vpop.f32.mrf.mxu1  ;;  %v16091_v52 = vld [vmem:[#allocation11 + $0x654] sm:$0xf0] }
 0xf81   : > { %v9472_v35 = vpop.f32.mrf.mxu3  ;;  %v9597_v48 = vpop.f32.mrf.mxu2 }
 0xf82   : > { %v18961_v39 = vadd.f32 %v9597_v48, %v18879_v44  ;;  %9915 = vmatmul.bf16.gmra.mxu0 %v14897_v41  ;;  %v9473_v0 = vadd.f32 %v9472_v35, %v9383_v5  ;;  %v14906_v44 = vld [vmem:[#allocation11 + $0x648] sm:$0xf0]  ;;  %v14912_v41 = vld [vmem:[#allocation11 + $0x650] sm:$0xf] }
 0xf83   : > { %10004 = vmatmul.bf16.gmra.mxu1 %v14901_v19  ;;  %v14909_v38 = vor.u32 %v16088_v9, %v14906_v44  ;;  %v16090_v19 = vld [vmem:[#allocation11 + $0x654] sm:$0xf]  ;;  %v14913_v5 = vor.u32 %v16091_v52, %v14912_v41 }
 0xf87   : > { %v9071_v3 = vpop.f32.mrf.mxu0 }
 0xf88   : > { %v18964_v22 = vadd.f32 %v9071_v3, %v18803_v28  ;;  %v9385_v7 = vpop.f32.mrf.mxu1 }
 0xf89   : > { %v9474_v62 = vpop.f32.mrf.mxu3  ;;  %v9599_v2 = vpop.f32.mrf.mxu2 }
 0xf8a   : > { %v9475_v55 = vadd.f32 %v9474_v62, %v9385_v7  ;;  %v18967_v31 = vadd.f32 %v9599_v2, %v18884_v58 }
 0xf8c   : > { %v9508_v50 = vpack.c.bf16 %v9475_v55, %v9473_v0 }
 0xf8e   : > { %9641 = vmatmul.bf16.gmra.mxu2 %v9508_v50 }
 0xf8f   : > { %v9074_v24 = vpop.f32.mrf.mxu0 }
 0xf90   : > { %v18970_v28 = vadd.f32 %v9074_v24, %v18810_v51  ;;  %v9388_v43 = vpop.f32.mrf.mxu1  ;;  %v16093_v24 = vld [vmem:[#allocation11 + $0x664] sm:$0xf0] }
 0xf91   : > { %v9477_v56 = vpop.f32.mrf.mxu3  ;;  %v9602_v37 = vpop.f32.mrf.mxu2 }
 0xf92   : > { %v18973_v61 = vadd.f32 %v9602_v37, %v18890_v14  ;;  %9920 = vmatmul.bf16.gmra.mxu0 %v14905_v49  ;;  %v9478_v30 = vadd.f32 %v9477_v56, %v9388_v43  ;;  %v14914_v14 = vld [vmem:[#allocation11 + $0x658] sm:$0xf0]  ;;  %v14920_v49 = vld [vmem:[#allocation11 + $0x660] sm:$0xf] }
 0xf93   : > { %10009 = vmatmul.bf16.gmra.mxu1 %v14909_v38  ;;  %v14917_v48 = vor.u32 %v16090_v19, %v14914_v14  ;;  %v16092_v38 = vld [vmem:[#allocation11 + $0x664] sm:$0xf]  ;;  %v14921_v43 = vor.u32 %v16093_v24, %v14920_v49 }
 0xf97   : > { %v9076_v58 = vpop.f32.mrf.mxu0 }
 0xf98   : > { %v18976_v45 = vadd.f32 %v9076_v58, %v18815_v29  ;;  %v9390_v13 = vpop.f32.mrf.mxu1 }
 0xf99   : > { %v9479_v4 = vpop.f32.mrf.mxu3  ;;  %v9604_v18 = vpop.f32.mrf.mxu2 }
 0xf9a   : > { %v9480_v40 = vadd.f32 %v9479_v4, %v9390_v13  ;;  %v18979_v51 = vadd.f32 %v9604_v18, %v18893_v20 }
 0xf9c   : > { %v9509_v33 = vpack.c.bf16 %v9480_v40, %v9478_v30 }
 0xf9e   : > { %9646 = vmatmul.bf16.gmra.mxu2 %v9509_v33 }
 0xf9f   : > { %v9079_v35 = vpop.f32.mrf.mxu0 }
 0xfa0   : > { %v18982_v29 = vadd.f32 %v9079_v35, %v18822_v25  ;;  %v9393_v3 = vpop.f32.mrf.mxu1  ;;  %v16095_v35 = vld [vmem:[#allocation11 + $0x674] sm:$0xf0] }
 0xfa1   : > { %v9482_v7 = vpop.f32.mrf.mxu3  ;;  %v9607_v62 = vpop.f32.mrf.mxu2 }
 0xfa2   : > { %v18985_v0 = vadd.f32 %v9607_v62, %v18898_v54  ;;  %9925 = vmatmul.bf16.gmra.mxu0 %v14913_v5  ;;  %v9483_v53 = vadd.f32 %v9482_v7, %v9393_v3  ;;  %v14922_v54 = vld [vmem:[#allocation11 + $0x668] sm:$0xf0]  ;;  %v14928_v5 = vld [vmem:[#allocation11 + $0x670] sm:$0xf] }
 0xfa3   : > { %10014 = vmatmul.bf16.gmra.mxu1 %v14917_v48  ;;  %v14925_v37 = vor.u32 %v16092_v38, %v14922_v54  ;;  %v16094_v48 = vld [vmem:[#allocation11 + $0x674] sm:$0xf]  ;;  %v14929_v3 = vor.u32 %v16095_v35, %v14928_v5 }
 0xfa7   : > { %v9081_v20 = vpop.f32.mrf.mxu0 }
 0xfa8   : > { %v18988_v55 = vadd.f32 %v9081_v20, %v18827_v17  ;;  %v9395_v2 = vpop.f32.mrf.mxu1 }
 0xfa9   : > { %v9484_v50 = vpop.f32.mrf.mxu3  ;;  %v9609_v9 = vpop.f32.mrf.mxu2 }
 0xfaa   : > { %v9485_v10 = vadd.f32 %v9484_v50, %v9395_v2  ;;  %v18991_v25 = vadd.f32 %v9609_v9, %v18901_v26 }
 0xfac   : > { %v9510_v44 = vpack.c.bf16 %v9485_v10, %v9483_v53  ;;  %v19865_v10 = vld [vmem:[#allocation48_spill] sm:$0xff] }
 0xfae   : > { %9651 = vmatmul.bf16.gmra.mxu2 %v9510_v44 }
 0xfaf   : > { %v9084_v56 = vpop.f32.mrf.mxu0 }
 0xfb0   : > { %v18994_v17 = vadd.f32 %v9084_v56, %v18834_v36  ;;  %v9398_v58 = vpop.f32.mrf.mxu1  ;;  %v14936_v56 = vld [vmem:[#allocation11 + $0x680] sm:$0xf] }
 0xfb1   : > { %v9487_v13 = vpop.f32.mrf.mxu3  ;;  %v9612_v4 = vpop.f32.mrf.mxu2 }
 0xfb2   : > { %v18997_v30 = vadd.f32 %v9612_v4, %v18906_v12  ;;  %9930 = vmatmul.bf16.gmra.mxu0 %v14921_v43  ;;  %v9488_v41 = vadd.f32 %v9487_v13, %v9398_v58  ;;  %v14930_v12 = vld [vmem:[#allocation11 + $0x678] sm:$0xf0]  ;;  %v16096_v58 = vld [vmem:[#allocation11 + $0x684] sm:$0xf] }
 0xfb3   : > { %10019 = vmatmul.bf16.gmra.mxu1 %v14925_v37  ;;  %v14933_v62 = vor.u32 %v16094_v48, %v14930_v12  ;;  %v16097_v37 = vld [vmem:[#allocation11 + $0x684] sm:$0xf0] }
 0xfb4   : > { %v14937_v13 = vor.u32 %v16097_v37, %v14936_v56 }
 0xfb7   : > { %v9086_v26 = vpop.f32.mrf.mxu0 }
 0xfb8   : > { %v19000_v40 = vadd.f32 %v9086_v26, %v18839_v32  ;;  %v9400_v18 = vpop.f32.mrf.mxu1 }
 0xfb9   : > { %v9489_v33 = vpop.f32.mrf.mxu3  ;;  %v9614_v19 = vpop.f32.mrf.mxu2 }
 0xfba   : > { %v9490_v52 = vadd.f32 %v9489_v33, %v9400_v18  ;;  %v19003_v36 = vadd.f32 %v9614_v19, %v18909_v1  ;;  %v16121_v19 = vld [vmem:[#allocation11 + $0x704] sm:$0xf0] }
 0xfbc   : > { %v9511_v14 = vpack.c.bf16 %v9490_v52, %v9488_v41  ;;  %v15032_v52 = vld [vmem:[#allocation11 + $0x700] sm:$0xf] }
 0xfbd   : > { %v15033_v12 = vor.u32 %v16121_v19, %v15032_v52  ;;  %v14954_v52 = vld [vmem:[#allocation11 + $0x6a8] sm:$0xf0] }
 0xfbe   : > { %9656 = vmatmul.bf16.gmra.mxu2 %v9511_v14 }
 0xfbf   : > { %v9089_v7 = vpop.f32.mrf.mxu0 }
 0xfc0   : > { %v19006_v32 = vadd.f32 %v9089_v7, %v18846_v47  ;;  %v9403_v20 = vpop.f32.mrf.mxu1 }
 0xfc1   : > { %v9492_v2 = vpop.f32.mrf.mxu3  ;;  %v9617_v50 = vpop.f32.mrf.mxu2 }
 0xfc2   : > { %v19009_v53 = vadd.f32 %v9617_v50, %v18914_v59  ;;  %9935 = vmatmul.bf16.gmra.mxu0 %v14929_v3  ;;  %v9493_v24 = vadd.f32 %v9492_v2, %v9403_v20  ;;  %v14938_v59 = vld [vmem:[#allocation11 + $0x688] sm:$0xf0]  ;;  %v16099_v20 = vld [vmem:[#allocation11 + $0x694] sm:$0xf0]  ;;  %v16098_v2 = vld [vmem:[#allocation11 + $0x694] sm:$0xf] }
 0xfc3   : > { %10024 = vmatmul.bf16.gmra.mxu1 %v14933_v62  ;;  %v14941_v26 = vor.u32 %v16096_v58, %v14938_v59  ;;  %v14944_v62 = vld [vmem:[#allocation11 + $0x690] sm:$0xf]  ;;  %v14946_v50 = vld [vmem:[#allocation11 + $0x698] sm:$0xf0] }
 0xfc7   : > { %v9091_v1 = vpop.f32.mrf.mxu0 }
 0xfc8   : > { %v19012_v9 = vadd.f32 %v9091_v1, %v19865_v10  ;;  %v9405_v44 = vpop.f32.mrf.mxu1  ;;  %v14949_v10 = vor.u32 %v16098_v2, %v14946_v50 }
 0xfc9   : > { %v9494_v49 = vpop.f32.mrf.mxu3  ;;  %v9619_v54 = vpop.f32.mrf.mxu2 }
 0xfca   : > { %v9495_v38 = vadd.f32 %v9494_v49, %v9405_v44  ;;  %v19015_v47 = vadd.f32 %v9619_v54, %v18917_v8 }
 0xfcc   : > { %v9512_v43 = vpack.c.bf16 %v9495_v38, %v9493_v24  ;;  %v15040_v38 = vld [vmem:[#allocation11 + $0x710] sm:$0xf] }
 0xfce   : > { %9661 = vmatmul.bf16.gmra.mxu2 %v9512_v43 }
 0xfcf   : > { %v9901_v4 = vpop.f32.mrf.mxu0 }
 0xfd0   : > { %v9990_v18 = vpop.f32.mrf.mxu1 }
 0xfd1   : > { %v9622_v33 = vpop.f32.mrf.mxu2  ;;  %v9991_v5 = vadd.f32 %v9990_v18, %v9901_v4  ;;  %v16101_v18 = vld [vmem:[#allocation11 + $0x6a4] sm:$0xf0] }
 0xfd2   : > { %v19018_v41 = vadd.f32 %v9622_v33, %v18922_v57  ;;  %9940 = vmatmul.bf16.gmra.mxu0 %v14937_v13  ;;  %v14945_v57 = vor.u32 %v16099_v20, %v14944_v62  ;;  %v16100_v33 = vld [vmem:[#allocation11 + $0x6a4] sm:$0xf] }
 0xfd3   : > { %10029 = vmatmul.bf16.gmra.mxu1 %v14941_v26  ;;  %v14952_v26 = vld [vmem:[#allocation11 + $0x6a0] sm:$0xf] }
 0xfd7   : > { %v9903_v8 = vpop.f32.mrf.mxu0 }
 0xfd8   : > { %v9992_v14 = vpop.f32.mrf.mxu1 }
 0xfd9   : > { %v9624_v35 = vpop.f32.mrf.mxu2  ;;  %v9993_v48 = vadd.f32 %v9992_v14, %v9903_v8  ;;  %v14957_v8 = vor.u32 %v16100_v33, %v14954_v52 }
 0xfda   : > { %v19021_v3 = vadd.f32 %v9624_v35, %v18925_v21  ;;  %v16123_v21 = vld [vmem:[#allocation11 + $0x714] sm:$0xf0] }
 0xfdb   : > { %v10070_v7 = vpack.c.bf16 %v9993_v48, %v9991_v5  ;;  %v15041_v59 = vor.u32 %v16123_v21, %v15040_v38  ;;  %v15048_v48 = vld [vmem:[#allocation11 + $0x720] sm:$0xf]  ;;  %v14962_v38 = vld [vmem:[#allocation11 + $0x6b8] sm:$0xf0] }
 0xfdd   : > { %10159 = vmatmul.bf16.vlgmr.msra.gmra.mxu3 %v10070_v7 }
 0xfde   : > { %10473 = vmatmul.bf16.vlgmr.msra.gmra.mxu2 %v15033_v12 }
 0xfdf   : > { %v9906_v1 = vpop.f32.mrf.mxu0 }
 0xfe0   : > { %v9995_v44 = vpop.f32.mrf.mxu1 }
 0xfe1   : > { %v9627_v49 = vpop.f32.mrf.mxu2  ;;  %v9996_v56 = vadd.f32 %v9995_v44, %v9906_v1  ;;  %v16103_v44 = vld [vmem:[#allocation11 + $0x6b4] sm:$0xf0] }
 0xfe2   : > { %v19024_v24 = vadd.f32 %v9627_v49, %v18928_v23  ;;  %9945 = vmatmul.bf16.gmra.mxu0 %v14945_v57  ;;  %v14953_v23 = vor.u32 %v16101_v18, %v14952_v26  ;;  %v16102_v49 = vld [vmem:[#allocation11 + $0x6b4] sm:$0xf] }
 0xfe3   : > { %10034 = vmatmul.bf16.gmra.mxu1 %v14949_v10  ;;  %v14960_v10 = vld [vmem:[#allocation11 + $0x6b0] sm:$0xf] }
 0xfe7   : > { %v9908_v54 = vpop.f32.mrf.mxu0 }
 0xfe8   : > { %v9997_v43 = vpop.f32.mrf.mxu1 }
 0xfe9   : > { %v9629_v37 = vpop.f32.mrf.mxu2  ;;  %v9998_v58 = vadd.f32 %v9997_v43, %v9908_v54  ;;  %v14965_v54 = vor.u32 %v16102_v49, %v14962_v38 }
 0xfea   : > { %v19027_v13 = vadd.f32 %v9629_v37, %v18931_v27  ;;  %v16125_v27 = vld [vmem:[#allocation11 + $0x724] sm:$0xf0] }
 0xfeb   : > { %v10071_v4 = vpack.c.bf16 %v9998_v58, %v9996_v56  ;;  %v15049_v50 = vor.u32 %v16125_v27, %v15048_v48  ;;  %v15056_v58 = vld [vmem:[#allocation11 + $0x730] sm:$0xf]  ;;  %v14970_v48 = vld [vmem:[#allocation11 + $0x6c8] sm:$0xf0] }
 0xfed   : > { %10164 = vmatmul.bf16.gmra.mxu3 %v10071_v4 }
 0xfee   : > { %10478 = vmatmul.bf16.gmra.mxu2 %v15041_v59 }
 0xfef   : > { %v9911_v19 = vpop.f32.mrf.mxu0 }
 0xff0   : > { %v10000_v14 = vpop.f32.mrf.mxu1 }
 0xff1   : > { %v9632_v5 = vpop.f32.mrf.mxu2  ;;  %v10001_v62 = vadd.f32 %v10000_v14, %v9911_v19  ;;  %v16105_v14 = vld [vmem:[#allocation11 + $0x6c4] sm:$0xf0] }
 0xff2   : > { %v19030_v35 = vadd.f32 %v9632_v5, %v18934_v6  ;;  %9950 = vmatmul.bf16.gmra.mxu0 %v14953_v23  ;;  %v14961_v6 = vor.u32 %v16103_v44, %v14960_v10  ;;  %v16104_v5 = vld [vmem:[#allocation11 + $0x6c4] sm:$0xf] }
 0xff3   : > { %10039 = vmatmul.bf16.gmra.mxu1 %v14957_v8  ;;  %v14968_v8 = vld [vmem:[#allocation11 + $0x6c0] sm:$0xf] }
 0xff7   : > { %v9913_v12 = vpop.f32.mrf.mxu0 }
 0xff8   : > { %v10002_v7 = vpop.f32.mrf.mxu1 }
 0xff9   : > { %v9634_v20 = vpop.f32.mrf.mxu2  ;;  %v10003_v2 = vadd.f32 %v10002_v7, %v9913_v12  ;;  %v14973_v12 = vor.u32 %v16104_v5, %v14970_v48 }
 0xffa   : > { %v19033_v57 = vadd.f32 %v9634_v20, %v18940_v11  ;;  %v16127_v11 = vld [vmem:[#allocation11 + $0x734] sm:$0xf0] }
 0xffb   : > { %v10072_v1 = vpack.c.bf16 %v10003_v2, %v10001_v62  ;;  %v15057_v52 = vor.u32 %v16127_v11, %v15056_v58  ;;  %v15064_v2 = vld [vmem:[#allocation11 + $0x740] sm:$0xf]  ;;  %v14978_v58 = vld [vmem:[#allocation11 + $0x6d8] sm:$0xf0] }
 0xffd   : > { %10169 = vmatmul.bf16.gmra.mxu3 %v10072_v1 }
 0xffe   : > { %10483 = vmatmul.bf16.gmra.mxu2 %v15049_v50 }
 0xfff   : > { %v9916_v21 = vpop.f32.mrf.mxu0 }
0x1000   : > { %v10005_v43 = vpop.f32.mrf.mxu1 }
0x1001   : > { %v9637_v56 = vpop.f32.mrf.mxu2  ;;  %v10006_v26 = vadd.f32 %v10005_v43, %v9916_v21  ;;  %v16107_v43 = vld [vmem:[#allocation11 + $0x6d4] sm:$0xf0] }
0x1002   : > { %v19036_v37 = vadd.f32 %v9637_v56, %v18946_v63  ;;  %9955 = vmatmul.bf16.gmra.mxu0 %v14961_v6  ;;  %v14969_v63 = vor.u32 %v16105_v14, %v14968_v8  ;;  %v16106_v56 = vld [vmem:[#allocation11 + $0x6d4] sm:$0xf] }
0x1003   : > { %10044 = vmatmul.bf16.gmra.mxu1 %v14965_v54  ;;  %v14976_v54 = vld [vmem:[#allocation11 + $0x6d0] sm:$0xf] }
0x1007   : > { %v9918_v59 = vpop.f32.mrf.mxu0 }
0x1008   : > { %v10007_v4 = vpop.f32.mrf.mxu1 }
0x1009   : > { %v9639_v18 = vpop.f32.mrf.mxu2  ;;  %v10008_v33 = vadd.f32 %v10007_v4, %v9918_v59  ;;  %v14981_v59 = vor.u32 %v16106_v56, %v14978_v58 }
0x100a   : > { %v19039_v23 = vadd.f32 %v9639_v18, %v18952_v34  ;;  %v16129_v34 = vld [vmem:[#allocation11 + $0x744] sm:$0xf0] }
0x100b   : > { %v10073_v19 = vpack.c.bf16 %v10008_v33, %v10006_v26  ;;  %v15065_v38 = vor.u32 %v16129_v34, %v15064_v2  ;;  %v15072_v33 = vld [vmem:[#allocation11 + $0x750] sm:$0xf]  ;;  %v14986_v2 = vld [vmem:[#allocation11 + $0x6e8] sm:$0xf0] }
0x100d   : > { %10174 = vmatmul.bf16.gmra.mxu3 %v10073_v19 }
0x100e   : > { %10488 = vmatmul.bf16.gmra.mxu2 %v15057_v52 }
0x100f   : > { %v9921_v27 = vpop.f32.mrf.mxu0 }
0x1010   : > { %v10010_v7 = vpop.f32.mrf.mxu1 }
0x1011   : > { %v9642_v62 = vpop.f32.mrf.mxu2  ;;  %v10011_v10 = vadd.f32 %v10010_v7, %v9921_v27  ;;  %v16109_v7 = vld [vmem:[#allocation11 + $0x6e4] sm:$0xf0] }
0x1012   : > { %v19042_v20 = vadd.f32 %v9642_v62, %v18958_v42  ;;  %9960 = vmatmul.bf16.gmra.mxu0 %v14969_v63  ;;  %v14977_v42 = vor.u32 %v16107_v43, %v14976_v54  ;;  %v16108_v62 = vld [vmem:[#allocation11 + $0x6e4] sm:$0xf] }
0x1013   : > { %10049 = vmatmul.bf16.gmra.mxu1 %v14973_v12  ;;  %v14984_v12 = vld [vmem:[#allocation11 + $0x6e0] sm:$0xf] }
0x1017   : > { %v9923_v50 = vpop.f32.mrf.mxu0 }
0x1018   : > { %v10012_v1 = vpop.f32.mrf.mxu1 }
0x1019   : > { %v9644_v44 = vpop.f32.mrf.mxu2  ;;  %v10013_v49 = vadd.f32 %v10012_v1, %v9923_v50  ;;  %v14989_v50 = vor.u32 %v16108_v62, %v14986_v2 }
0x101a   : > { %v19045_v6 = vadd.f32 %v9644_v44, %v18964_v22  ;;  %v16131_v22 = vld [vmem:[#allocation11 + $0x754] sm:$0xf0] }
0x101b   : > { %v10074_v21 = vpack.c.bf16 %v10013_v49, %v10011_v10  ;;  %v15073_v48 = vor.u32 %v16131_v22, %v15072_v33  ;;  %v15080_v49 = vld [vmem:[#allocation11 + $0x760] sm:$0xf]  ;;  %v14994_v33 = vld [vmem:[#allocation11 + $0x6f8] sm:$0xf0] }
0x101d   : > { %10179 = vmatmul.bf16.gmra.mxu3 %v10074_v21 }
0x101e   : > { %10493 = vmatmul.bf16.gmra.mxu2 %v15065_v38 }
0x101f   : > { %v9926_v11 = vpop.f32.mrf.mxu0 }
0x1020   : > { %v10015_v4 = vpop.f32.mrf.mxu1 }
0x1021   : > { %v9647_v26 = vpop.f32.mrf.mxu2  ;;  %v10016_v8 = vadd.f32 %v10015_v4, %v9926_v11  ;;  %v16111_v4 = vld [vmem:[#allocation11 + $0x6f4] sm:$0xf0] }
0x1022   : > { %v19048_v18 = vadd.f32 %v9647_v26, %v18970_v28  ;;  %9965 = vmatmul.bf16.gmra.mxu0 %v14977_v42  ;;  %v14985_v28 = vor.u32 %v16109_v7, %v14984_v12  ;;  %v16110_v26 = vld [vmem:[#allocation11 + $0x6f4] sm:$0xf] }
0x1023   : > { %10054 = vmatmul.bf16.gmra.mxu1 %v14981_v59  ;;  %v14992_v59 = vld [vmem:[#allocation11 + $0x6f0] sm:$0xf] }
0x1027   : > { %v9928_v52 = vpop.f32.mrf.mxu0 }
0x1028   : > { %v10017_v19 = vpop.f32.mrf.mxu1 }
0x1029   : > { %v9649_v14 = vpop.f32.mrf.mxu2  ;;  %v10018_v5 = vadd.f32 %v10017_v19, %v9928_v52  ;;  %v14997_v52 = vor.u32 %v16110_v26, %v14994_v33  ;;  %v16122_v33 = vld [vmem:[#allocation11 + $0x714] sm:$0xf] }
0x102a   : > { %v19051_v63 = vadd.f32 %v9649_v14, %v18976_v45  ;;  %v16133_v45 = vld [vmem:[#allocation11 + $0x764] sm:$0xf0] }
0x102b   : > { %v10075_v27 = vpack.c.bf16 %v10018_v5, %v10016_v8  ;;  %v15081_v58 = vor.u32 %v16133_v45, %v15080_v49  ;;  %v15088_v5 = vld [vmem:[#allocation11 + $0x770] sm:$0xf] }
0x102d   : > { %10184 = vmatmul.bf16.gmra.mxu3 %v10075_v27 }
0x102e   : > { %10498 = vmatmul.bf16.gmra.mxu2 %v15073_v48 }
0x102f   : > { %v9931_v34 = vpop.f32.mrf.mxu0 }
0x1030   : > { %v10020_v1 = vpop.f32.mrf.mxu1 }
0x1031   : > { %v9652_v10 = vpop.f32.mrf.mxu2  ;;  %v10021_v54 = vadd.f32 %v10020_v1, %v9931_v34  ;;  %v15034_v1 = vld [vmem:[#allocation11 + $0x708] sm:$0xf0] }
0x1032   : > { %v19054_v44 = vadd.f32 %v9652_v10, %v18982_v29  ;;  %9970 = vmatmul.bf16.gmra.mxu0 %v14985_v28  ;;  %v14993_v29 = vor.u32 %v16111_v4, %v14992_v59 }
0x1033   : > { %10059 = vmatmul.bf16.gmra.mxu1 %v14989_v50  ;;  %v16120_v50 = vld [vmem:[#allocation11 + $0x704] sm:$0xf] }
0x1037   : > { %v9933_v38 = vpop.f32.mrf.mxu0 }
0x1038   : > { %v10022_v21 = vpop.f32.mrf.mxu1 }
0x1039   : > { %v9654_v43 = vpop.f32.mrf.mxu2  ;;  %v10023_v56 = vadd.f32 %v10022_v21, %v9933_v38  ;;  %v15096_v21 = vld [vmem:[#allocation11 + $0x780] sm:$0xf] }
0x103a   : > { %v19057_v42 = vadd.f32 %v9654_v43, %v18988_v55  ;;  %v16135_v55 = vld [vmem:[#allocation11 + $0x774] sm:$0xf0] }
0x103b   : > { %v10076_v11 = vpack.c.bf16 %v10023_v56, %v10021_v54  ;;  %v15089_v2 = vor.u32 %v16135_v55, %v15088_v5  ;;  %v16137_v54 = vld [vmem:[#allocation11 + $0x784] sm:$0xf0]  ;;  %v15104_v55 = vld [vmem:[#allocation11 + $0x790] sm:$0xf] }
0x103c   : > { %v15097_v59 = vor.u32 %v16137_v54, %v15096_v21 }
0x103d   : > { %10189 = vmatmul.bf16.gmra.mxu3 %v10076_v11 }
0x103e   : > { %10503 = vmatmul.bf16.gmra.mxu2 %v15081_v58 }
0x103f   : > { %v9936_v22 = vpop.f32.mrf.mxu0 }
0x1040   : > { %v10025_v19 = vpop.f32.mrf.mxu1 }
0x1041   : > { %v9657_v8 = vpop.f32.mrf.mxu2  ;;  %v10026_v12 = vadd.f32 %v10025_v19, %v9936_v22 }
0x1042   : > { %v19060_v14 = vadd.f32 %v9657_v8, %v18994_v17  ;;  %9975 = vmatmul.bf16.gmra.mxu0 %v14993_v29  ;;  %v15037_v17 = vor.u32 %v16120_v50, %v15034_v1  ;;  %v15042_v29 = vld [vmem:[#allocation11 + $0x718] sm:$0xf0] }
0x1043   : > { %10064 = vmatmul.bf16.gmra.mxu1 %v14997_v52  ;;  %v15045_v22 = vor.u32 %v16122_v33, %v15042_v29 }
0x1047   : > { %v9938_v48 = vpop.f32.mrf.mxu0 }
0x1048   : > { %v10027_v27 = vpop.f32.mrf.mxu1 }
0x1049   : > { %v9659_v7 = vpop.f32.mrf.mxu2  ;;  %v10028_v62 = vadd.f32 %v10027_v27, %v9938_v48  ;;  %v16139_v48 = vld [vmem:[#allocation11 + $0x794] sm:$0xf0] }
0x104a   : > { %v19063_v28 = vadd.f32 %v9659_v7, %v19000_v40  ;;  %v15105_v50 = vor.u32 %v16139_v48, %v15104_v55 }
0x104b   : > { %v10077_v34 = vpack.c.bf16 %v10028_v62, %v10026_v12 }
0x104d   : > { %10194 = vmatmul.bf16.gmra.mxu3 %v10077_v34 }
0x104e   : > { %10508 = vmatmul.bf16.gmra.mxu2 %v15089_v2 }
0x104f   : > { %v9941_v10 = vpop.f32.mrf.mxu0 }
0x1050   : > { %v10030_v49 = vpop.f32.mrf.mxu1 }
0x1051   : > { %v9662_v45 = vpop.f32.mrf.mxu2  ;;  %v10031_v58 = vadd.f32 %v10030_v49, %v9941_v10 }
0x1052   : > { %v19066_v38 = vadd.f32 %v9662_v45, %v19006_v32  ;;  %10562 = vmatmul.bf16.vlgmr.msra.gmra.mxu0 %v15037_v17  ;;  %v16124_v17 = vld [vmem:[#allocation11 + $0x724] sm:$0xf] }
0x1057   : > { %v9943_v43 = vpop.f32.mrf.mxu0 }
0x1058   : > { %v10032_v56 = vpop.f32.mrf.mxu1 }
0x1059   : > { %v9664_v40 = vpop.f32.mrf.mxu2  ;;  %v10033_v11 = vadd.f32 %v10032_v56, %v9943_v43  ;;  %v16141_v56 = vld [vmem:[#allocation11 + $0x7a4] sm:$0xf0] }
0x105a   : > { %v19069_v4 = vadd.f32 %v9664_v40, %v19012_v9 }
0x105b   : > { %v10078_v26 = vpack.c.bf16 %v10033_v11, %v10031_v58 }
0x105d   : > { %10199 = vmatmul.bf16.gmra.mxu3 %v10078_v26 }
0x105e   : > { %10513 = vmatmul.bf16.gmra.mxu2 %v15097_v59 }
0x105f   : > { %v9946_v32 = vpop.f32.mrf.mxu0 }
0x1060   : > { %v10035_v52 = vpop.f32.mrf.mxu1  ;;  %v10160_v19 = vpop.f32.mrf.mxu3 }
0x1061   : > { %v19072_v8 = vadd.f32 %v10160_v19, %v18937_v46  ;;  %v19074_v5 = vpop.f32.mrf.mxu2  ;;  %v10036_v7 = vadd.f32 %v10035_v52, %v9946_v32  ;;  %v15050_v46 = vld [vmem:[#allocation11 + $0x728] sm:$0xf0]  ;;  %v16126_v52 = vld [vmem:[#allocation11 + $0x734] sm:$0xf] }
0x1062   : > { %10567 = vmatmul.bf16.gmra.mxu0 %v15045_v22  ;;  %v15053_v10 = vor.u32 %v16124_v17, %v15050_v46 }
0x1067   : > { %v9948_v27 = vpop.f32.mrf.mxu0 }
0x1068   : > { %v10037_v9 = vpop.f32.mrf.mxu1  ;;  %v10162_v12 = vpop.f32.mrf.mxu3 }
0x1069   : > { %v10038_v62 = vadd.f32 %v10037_v9, %v9948_v27  ;;  %v19077_v2 = vadd.f32 %v10162_v12, %v18943_v16  ;;  %v19079_v34 = vpop.f32.mrf.mxu2  ;;  %v15112_v16 = vld [vmem:[#allocation11 + $0x7a0] sm:$0xf] }
0x106a   : > { %v15113_v22 = vor.u32 %v16141_v56, %v15112_v16  ;;  %v16128_v16 = vld [vmem:[#allocation11 + $0x744] sm:$0xf] }
0x106b   : > { %v10079_v1 = vpack.c.bf16 %v10038_v62, %v10036_v7  ;;  %v16143_v7 = vld [vmem:[#allocation11 + $0x7b4] sm:$0xf0] }
0x106d   : > { %10204 = vmatmul.bf16.gmra.mxu3 %v10079_v1 }
0x106e   : > { %10518 = vmatmul.bf16.gmra.mxu2 %v15105_v50 }
0x106f   : > { %v9951_v49 = vpop.f32.mrf.mxu0 }
0x1070   : > { %v10040_v45 = vpop.f32.mrf.mxu1  ;;  %v10165_v21 = vpop.f32.mrf.mxu3 }
0x1071   : > { %v19082_v54 = vadd.f32 %v10165_v21, %v18949_v60  ;;  %v19084_v43 = vpop.f32.mrf.mxu2  ;;  %v10041_v59 = vadd.f32 %v10040_v45, %v9951_v49  ;;  %v15058_v60 = vld [vmem:[#allocation11 + $0x738] sm:$0xf0] }
0x1072   : > { %10572 = vmatmul.bf16.gmra.mxu0 %v15053_v10  ;;  %v15061_v19 = vor.u32 %v16126_v52, %v15058_v60 }
0x1077   : > { %v9953_v58 = vpop.f32.mrf.mxu0 }
0x1078   : > { %v10042_v40 = vpop.f32.mrf.mxu1  ;;  %v10167_v11 = vpop.f32.mrf.mxu3 }
0x1079   : > { %v10043_v26 = vadd.f32 %v10042_v40, %v9953_v58  ;;  %v19087_v33 = vadd.f32 %v10167_v11, %v18955_v15  ;;  %v19089_v29 = vpop.f32.mrf.mxu2  ;;  %v15120_v15 = vld [vmem:[#allocation11 + $0x7b0] sm:$0xf] }
0x107a   : > { %v15121_v45 = vor.u32 %v16143_v7, %v15120_v15 }
0x107b   : > { %v10080_v32 = vpack.c.bf16 %v10043_v26, %v10041_v59 }
0x107d   : > { %10209 = vmatmul.bf16.gmra.mxu3 %v10080_v32 }
0x107e   : > { %10523 = vmatmul.bf16.gmra.mxu2 %v15113_v22  ;;  %v16145_v22 = vld [vmem:[#allocation11 + $0x7c4] sm:$0xf0] }
0x107f   : > { %v9956_v55 = vpop.f32.mrf.mxu0 }
0x1080   : > { %v10045_v48 = vpop.f32.mrf.mxu1  ;;  %v10170_v27 = vpop.f32.mrf.mxu3 }
0x1081   : > { %v19092_v9 = vadd.f32 %v10170_v27, %v18961_v39  ;;  %v19094_v12 = vpop.f32.mrf.mxu2  ;;  %v10046_v17 = vadd.f32 %v10045_v48, %v9956_v55  ;;  %v15066_v39 = vld [vmem:[#allocation11 + $0x748] sm:$0xf0] }
0x1082   : > { %10577 = vmatmul.bf16.gmra.mxu0 %v15061_v19  ;;  %v15069_v56 = vor.u32 %v16128_v16, %v15066_v39  ;;  %v16157_v39 = vld [vmem:[#allocation12 + $0xb68] sm:$0xff] }
0x1087   : > { %v9958_v62 = vpop.f32.mrf.mxu0 }
0x1088   : > { %v10047_v50 = vpop.f32.mrf.mxu1  ;;  %v10172_v1 = vpop.f32.mrf.mxu3 }
0x1089   : > { %v10048_v46 = vadd.f32 %v10047_v50, %v9958_v62  ;;  %v19097_v10 = vadd.f32 %v10172_v1, %v18967_v31  ;;  %v19099_v49 = vpop.f32.mrf.mxu2  ;;  %v15128_v31 = vld [vmem:[#allocation11 + $0x7c0] sm:$0xf]  ;;  %v16130_v62 = vld [vmem:[#allocation11 + $0x754] sm:$0xf]  ;;  %v16159_v50 = vld [vmem:[#allocation12 + $0xb78] sm:$0xff] }
0x108a   : > { %v15129_v15 = vor.u32 %v16145_v22, %v15128_v31  ;;  %10724 = vmatpush.bf16.msrb.mxu1 %v16159_v50 }
0x108b   : > { %v10081_v21 = vpack.c.bf16 %v10048_v46, %v10046_v17 }
0x108d   : > { %10214 = vmatmul.bf16.gmra.mxu3 %v10081_v21 }
0x108e   : > { %10528 = vmatmul.bf16.gmra.mxu2 %v15121_v45 }
0x108f   : > { %v9961_v58 = vpop.f32.mrf.mxu0 }
0x1090   : > { %v10050_v40 = vpop.f32.mrf.mxu1  ;;  %v10175_v11 = vpop.f32.mrf.mxu3 }
0x1091   : > { %v19102_v59 = vadd.f32 %v10175_v11, %v18973_v61  ;;  %v19104_v26 = vpop.f32.mrf.mxu2  ;;  %v10051_v19 = vadd.f32 %v10050_v40, %v9961_v58  ;;  %v15074_v61 = vld [vmem:[#allocation11 + $0x758] sm:$0xf0]  ;;  %v16147_v58 = vld [vmem:[#allocation11 + $0x7d4] sm:$0xf0] }
0x1092   : > { %10582 = vmatmul.bf16.gmra.mxu0 %v15069_v56  ;;  %v15077_v1 = vor.u32 %v16130_v62, %v15074_v61  ;;  %v15136_v56 = vld [vmem:[#allocation11 + $0x7d0] sm:$0xf]  ;;  %v16155_v62 = vld [vmem:[#allocation12 + $0xb58] sm:$0xff] }
0x1097   : > { %v9963_v32 = vpop.f32.mrf.mxu0 }
0x1098   : > { %v10052_v52 = vpop.f32.mrf.mxu1  ;;  %v10177_v60 = vpop.f32.mrf.mxu3 }
0x1099   : > { %v10053_v55 = vadd.f32 %v10052_v52, %v9963_v32  ;;  %v19107_v48 = vadd.f32 %v10177_v60, %v18979_v51  ;;  %v19109_v27 = vpop.f32.mrf.mxu2  ;;  %v16158_v51 = vld [vmem:[#allocation12 + $0xb70] sm:$0xff] }
0x109a   : > { %10725 = vmatpush.bf16.msrb.mxu1 %v16158_v51  ;;  %v16153_v51 = vld [vmem:[#allocation12 + $0xb48] sm:$0xff] }
0x109b   : > { %v10082_v7 = vpack.c.bf16 %v10053_v55, %v10051_v19  ;;  %v16156_v19 = vld [vmem:[#allocation12 + $0xb60] sm:$0xff] }
0x109d   : > { %10219 = vmatmul.bf16.gmra.mxu3 %v10082_v7  ;;  %v15082_v7 = vld [vmem:[#allocation11 + $0x768] sm:$0xf0] }
0x109e   : > { %10533 = vmatmul.bf16.gmra.mxu2 %v15129_v15  ;;  %10726 = vmatpush.bf16.msrb.mxu1 %v16157_v39  ;;  %v16132_v15 = vld [vmem:[#allocation11 + $0x764] sm:$0xf]  ;;  %v15144_v39 = vld [vmem:[#allocation11 + $0x7e0] sm:$0xf] }
0x109f   : > { %v9966_v17 = vpop.f32.mrf.mxu0  ;;  %v15085_v61 = vor.u32 %v16132_v15, %v15082_v7  ;;  %v16134_v15 = vld [vmem:[#allocation11 + $0x774] sm:$0xf]  ;;  %v15090_v7 = vld [vmem:[#allocation11 + $0x778] sm:$0xf0] }
0x10a0   : > { %v10055_v46 = vpop.f32.mrf.mxu1  ;;  %v10180_v45 = vpop.f32.mrf.mxu3 }
0x10a1   : > { %v19112_v21 = vadd.f32 %v10180_v45, %v18985_v0  ;;  %v19114_v16 = vpop.f32.mrf.mxu2  ;;  %v10056_v22 = vadd.f32 %v10055_v46, %v9966_v17  ;;  %v15137_v0 = vor.u32 %v16147_v58, %v15136_v56  ;;  %v16154_v45 = vld [vmem:[#allocation12 + $0xb50] sm:$0xff]  ;;  %v16149_v56 = vld [vmem:[#allocation11 + $0x7e4] sm:$0xf0] }
0x10a2   : > { %10587 = vmatmul.bf16.gmra.mxu0 %v15077_v1  ;;  %10727 = vmatpush.bf16.msrb.mxu1 %v16156_v19  ;;  %v16152_v19 = vld [vmem:[#allocation12 + $0xb40] sm:$0xff] }
0x10a6   : > { %10728 = vmatpush.bf16.msrb.mxu1 %v16155_v62  ;;  %v15093_v62 = vor.u32 %v16134_v15, %v15090_v7 }
0x10a7   : > { %v9968_v40 = vpop.f32.mrf.mxu0 }
0x10a8   : > { %v10057_v11 = vpop.f32.mrf.mxu1  ;;  %v10182_v31 = vpop.f32.mrf.mxu3 }
0x10a9   : > { %v10058_v32 = vadd.f32 %v10057_v11, %v9968_v40  ;;  %v19117_v52 = vadd.f32 %v10182_v31, %v18991_v25  ;;  %v19119_v60 = vpop.f32.mrf.mxu2 }
0x10aa   : > { %10729 = vmatpush.bf16.msrb.mxu1 %v16154_v45 }
0x10ab   : > { %v10083_v55 = vpack.c.bf16 %v10058_v32, %v10056_v22 }
0x10ad   : > { %10224 = vmatmul.bf16.gmra.mxu3 %v10083_v55 }
0x10ae   : > { %10538 = vmatmul.bf16.gmra.mxu2 %v15137_v0  ;;  %10730 = vmatpush.bf16.msrb.mxu1 %v16153_v51  ;;  %v16151_v51 = vld [vmem:[#allocation11 + $0x7f4] sm:$0xf0] }
0x10af   : > { %v9971_v50 = vpop.f32.mrf.mxu0 }
0x10b0   : > { %v10060_v1 = vpop.f32.mrf.mxu1  ;;  %v10185_v17 = vpop.f32.mrf.mxu3 }
0x10b1   : > { %v19122_v46 = vadd.f32 %v10185_v17, %v18997_v30  ;;  %v19124_v25 = vpop.f32.mrf.mxu2  ;;  %v10061_v31 = vadd.f32 %v10060_v1, %v9971_v50  ;;  %v15145_v30 = vor.u32 %v16149_v56, %v15144_v39 }
0x10b2   : > { %10592 = vmatmul.bf16.gmra.mxu0 %v15085_v61  ;;  %10731 = vmatpush.bf16.msrb.mxu1 %v16152_v19 }
0x10b7   : > { %v9973_v58 = vpop.f32.mrf.mxu0 }
0x10b8   : > { %v10062_v40 = vpop.f32.mrf.mxu1  ;;  %v10187_v11 = vpop.f32.mrf.mxu3 }
0x10b9   : > { %v10063_v22 = vadd.f32 %v10062_v40, %v9973_v58  ;;  %v19127_v32 = vadd.f32 %v10187_v11, %v19003_v36  ;;  %v19129_v0 = vpop.f32.mrf.mxu2  ;;  %v15152_v36 = vld [vmem:[#allocation11 + $0x7f0] sm:$0xf] }
0x10bb   : > { %19866 = vst [vmem:[#allocation35_spill] sm:$0xff] %v19127_v32  ;;  %v10084_v55 = vpack.c.bf16 %v10063_v22, %v10061_v31 }
0x10bd   : > { %10229 = vmatmul.bf16.gmra.mxu3 %v10084_v55  ;;  %v16136_v55 = vld [vmem:[#allocation11 + $0x784] sm:$0xf] }
0x10be   : > { %10543 = vmatmul.bf16.gmra.mxu2 %v15145_v30  ;;  %v15153_v30 = vor.u32 %v16151_v51, %v15152_v36 }
0x10bf   : > { %v9976_v61 = vpop.f32.mrf.mxu0 }
0x10c0   : > { %v10065_v17 = vpop.f32.mrf.mxu1  ;;  %v10190_v45 = vpop.f32.mrf.mxu3 }
0x10c1   : > { %v19132_v50 = vadd.f32 %v10190_v45, %v19009_v53  ;;  %v19134_v1 = vpop.f32.mrf.mxu2  ;;  %v10066_v40 = vadd.f32 %v10065_v17, %v9976_v61  ;;  %v15098_v53 = vld [vmem:[#allocation11 + $0x788] sm:$0xf0]  ;;  %v15192_v61 = vld [vmem:[#allocation11 + $0x800] sm:$0xf]  ;;  %v16160_v17 = vld [vmem:[#allocation11 + $0x804] sm:$0xf] }
0x10c2   : > { %10597 = vmatmul.bf16.gmra.mxu0 %v15093_v62  ;;  %v15101_v15 = vor.u32 %v16136_v55, %v15098_v53  ;;  %v16138_v55 = vld [vmem:[#allocation11 + $0x794] sm:$0xf]  ;;  %v15106_v53 = vld [vmem:[#allocation11 + $0x798] sm:$0xf0] }
0x10c7   : > { %v9978_v39 = vpop.f32.mrf.mxu0 }
0x10c8   : > { %v10067_v56 = vpop.f32.mrf.mxu1  ;;  %v10192_v58 = vpop.f32.mrf.mxu3 }
0x10c9   : > { %v10068_v11 = vadd.f32 %v10067_v56, %v9978_v39  ;;  %v19137_v31 = vadd.f32 %v10192_v58, %v19015_v47  ;;  %v19139_v22 = vpop.f32.mrf.mxu2  ;;  %v16161_v47 = vld [vmem:[#allocation11 + $0x804] sm:$0xf0]  ;;  %v15194_v39 = vld [vmem:[#allocation11 + $0x808] sm:$0xf0] }
0x10cb   : > { %19867 = vst [vmem:[#allocation47_spill] sm:$0xff] %v19137_v31  ;;  %v10085_v19 = vpack.c.bf16 %v10068_v11, %v10066_v40 }
0x10cd   : > { %10234 = vmatmul.bf16.gmra.mxu3 %v10085_v19 }
0x10ce   : > { %10548 = vmatmul.bf16.gmra.mxu2 %v15153_v30  ;;  %v15197_v30 = vor.u32 %v16160_v17, %v15194_v39 }
0x10cf   : > { %v10563_v7 = vpop.f32.mrf.mxu0 }
0x10d0   : > { %v10195_v62 = vpop.f32.mrf.mxu3  ;;  %v10564_v36 = vadd.f32 %v10563_v7, %v19074_v5  ;;  %v16163_v7 = vld [vmem:[#allocation11 + $0x814] sm:$0xf0] }
0x10d1   : > { %v19142_v45 = vadd.f32 %v10195_v62, %v19018_v41  ;;  %v19144_v32 = vpop.f32.mrf.mxu2  ;;  %v15193_v41 = vor.u32 %v16161_v47, %v15192_v61  ;;  %v15202_v61 = vld [vmem:[#allocation11 + $0x818] sm:$0xf0] }
0x10d2   : > { %10602 = vmatmul.bf16.gmra.mxu0 %v15101_v15  ;;  %v15109_v15 = vor.u32 %v16138_v55, %v15106_v53 }
0x10d7   : > { %v10565_v56 = vpop.f32.mrf.mxu0 }
0x10d8   : > { %v10197_v51 = vpop.f32.mrf.mxu3  ;;  %v10566_v58 = vadd.f32 %v10565_v56, %v19079_v34  ;;  %v16162_v56 = vld [vmem:[#allocation11 + $0x814] sm:$0xf] }
0x10d9   : > { %v19149_v40 = vadd.f32 %v10197_v51, %v19021_v3  ;;  %v19151_v11 = vpop.f32.mrf.mxu2  ;;  %v15200_v3 = vld [vmem:[#allocation11 + $0x810] sm:$0xf] }
0x10da   : > { %v10643_v19 = vpack.c.bf16 %v10566_v58, %v10564_v36 }
0x10dc   : > { %10732 = vmatmul.bf16.vlgmr.msrb.gmra.mxu1 %v10643_v19  ;;  %v15114_v19 = vld [vmem:[#allocation11 + $0x7a8] sm:$0xf0] }
0x10dd   : > { %11046 = vmatmul.bf16.vlgmr.msrb.gmra.mxu3 %v15193_v41 }
0x10de   : > { %11135 = vmatmul.bf16.vlgmr.msrb.gmra.mxu2 %v15197_v30  ;;  %v16140_v30 = vld [vmem:[#allocation11 + $0x7a4] sm:$0xf] }
0x10df   : > { %v10568_v62 = vpop.f32.mrf.mxu0  ;;  %v15117_v55 = vor.u32 %v16140_v30, %v15114_v19  ;;  %v15122_v30 = vld [vmem:[#allocation11 + $0x7b8] sm:$0xf0] }
0x10e0   : > { %v10200_v31 = vpop.f32.mrf.mxu3  ;;  %v10569_v17 = vadd.f32 %v10568_v62, %v19084_v43  ;;  %v16165_v62 = vld [vmem:[#allocation11 + $0x824] sm:$0xf0] }
0x10e1   : > { %v19154_v5 = vadd.f32 %v10200_v31, %v19024_v24  ;;  %v19156_v34 = vpop.f32.mrf.mxu2  ;;  %v15201_v24 = vor.u32 %v16163_v7, %v15200_v3  ;;  %v15205_v31 = vor.u32 %v16162_v56, %v15202_v61  ;;  %v15210_v3 = vld [vmem:[#allocation11 + $0x828] sm:$0xf0] }
0x10e2   : > { %10607 = vmatmul.bf16.gmra.mxu0 %v15109_v15 }
0x10e7   : > { %v10570_v47 = vpop.f32.mrf.mxu0 }
0x10e8   : > { %v10202_v39 = vpop.f32.mrf.mxu3  ;;  %v10571_v36 = vadd.f32 %v10570_v47, %v19089_v29  ;;  %v16164_v47 = vld [vmem:[#allocation11 + $0x824] sm:$0xf] }
0x10e9   : > { %v19161_v51 = vadd.f32 %v10202_v39, %v19027_v13  ;;  %v19163_v58 = vpop.f32.mrf.mxu2  ;;  %v15208_v13 = vld [vmem:[#allocation11 + $0x820] sm:$0xf] }
0x10ea   : > { %v10644_v41 = vpack.c.bf16 %v10571_v36, %v10569_v17 }
0x10ec   : > { %10737 = vmatmul.bf16.gmra.mxu1 %v10644_v41  ;;  %v16142_v41 = vld [vmem:[#allocation11 + $0x7b4] sm:$0xf] }
0x10ed   : > { %11051 = vmatmul.bf16.gmra.mxu3 %v15201_v24  ;;  %v15213_v24 = vor.u32 %v16164_v47, %v15210_v3  ;;  %v15125_v19 = vor.u32 %v16142_v41, %v15122_v30  ;;  %v15130_v41 = vld [vmem:[#allocation11 + $0x7c8] sm:$0xf0] }
0x10ee   : > { %11140 = vmatmul.bf16.gmra.mxu2 %v15205_v31 }
0x10ef   : > { %v10573_v53 = vpop.f32.mrf.mxu0 }
0x10f0   : > { %v10205_v15 = vpop.f32.mrf.mxu3  ;;  %v10574_v56 = vadd.f32 %v10573_v53, %v19094_v12  ;;  %v16167_v53 = vld [vmem:[#allocation11 + $0x834] sm:$0xf0] }
0x10f1   : > { %v19166_v43 = vadd.f32 %v10205_v15, %v19030_v35  ;;  %v19168_v29 = vpop.f32.mrf.mxu2  ;;  %v15209_v35 = vor.u32 %v16165_v62, %v15208_v13  ;;  %v15218_v13 = vld [vmem:[#allocation11 + $0x838] sm:$0xf0] }
0x10f2   : > { %10612 = vmatmul.bf16.gmra.mxu0 %v15117_v55 }
0x10f7   : > { %v10575_v7 = vpop.f32.mrf.mxu0 }
0x10f8   : > { %v10207_v61 = vpop.f32.mrf.mxu3  ;;  %v10576_v17 = vadd.f32 %v10575_v7, %v19099_v49  ;;  %v16166_v7 = vld [vmem:[#allocation11 + $0x834] sm:$0xf] }
0x10f9   : > { %v19173_v39 = vadd.f32 %v10207_v61, %v19033_v57  ;;  %v19175_v36 = vpop.f32.mrf.mxu2  ;;  %v15216_v57 = vld [vmem:[#allocation11 + $0x830] sm:$0xf] }
0x10fa   : > { %v10645_v31 = vpack.c.bf16 %v10576_v17, %v10574_v56 }
0x10fc   : > { %10742 = vmatmul.bf16.gmra.mxu1 %v10645_v31  ;;  %v16144_v31 = vld [vmem:[#allocation11 + $0x7c4] sm:$0xf] }
0x10fd   : > { %11056 = vmatmul.bf16.gmra.mxu3 %v15209_v35  ;;  %v15221_v35 = vor.u32 %v16166_v7, %v15218_v13  ;;  %v15133_v30 = vor.u32 %v16144_v31, %v15130_v41  ;;  %v15138_v31 = vld [vmem:[#allocation11 + $0x7d8] sm:$0xf0] }
0x10fe   : > { %11145 = vmatmul.bf16.gmra.mxu2 %v15213_v24 }
0x10ff   : > { %v10578_v55 = vpop.f32.mrf.mxu0 }
0x1100   : > { %v10210_v15 = vpop.f32.mrf.mxu3  ;;  %v10579_v47 = vadd.f32 %v10578_v55, %v19104_v26  ;;  %v16169_v55 = vld [vmem:[#allocation11 + $0x844] sm:$0xf0] }
0x1101   : > { %v19178_v12 = vadd.f32 %v10210_v15, %v19036_v37  ;;  %v19180_v49 = vpop.f32.mrf.mxu2  ;;  %v15217_v37 = vor.u32 %v16167_v53, %v15216_v57  ;;  %v15226_v57 = vld [vmem:[#allocation11 + $0x848] sm:$0xf0] }
0x1102   : > { %10617 = vmatmul.bf16.gmra.mxu0 %v15125_v19 }
0x1107   : > { %v10580_v62 = vpop.f32.mrf.mxu0 }
0x1108   : > { %v10212_v3 = vpop.f32.mrf.mxu3  ;;  %v10581_v56 = vadd.f32 %v10580_v62, %v19109_v27  ;;  %v16168_v62 = vld [vmem:[#allocation11 + $0x844] sm:$0xf] }
0x1109   : > { %v19185_v61 = vadd.f32 %v10212_v3, %v19039_v23  ;;  %v19187_v17 = vpop.f32.mrf.mxu2  ;;  %v15224_v23 = vld [vmem:[#allocation11 + $0x840] sm:$0xf] }
0x110a   : > { %v10646_v24 = vpack.c.bf16 %v10581_v56, %v10579_v47 }
0x110c   : > { %10747 = vmatmul.bf16.gmra.mxu1 %v10646_v24  ;;  %v16146_v24 = vld [vmem:[#allocation11 + $0x7d4] sm:$0xf] }
0x110d   : > { %11061 = vmatmul.bf16.gmra.mxu3 %v15217_v37  ;;  %v15229_v37 = vor.u32 %v16168_v62, %v15226_v57  ;;  %v15141_v41 = vor.u32 %v16146_v24, %v15138_v31  ;;  %v15146_v24 = vld [vmem:[#allocation11 + $0x7e8] sm:$0xf0]  ;;  %v16199_v31 = vld [vmem:[#allocation12 + $0xbb8] sm:$0xff] }
0x110e   : > { %11150 = vmatmul.bf16.gmra.mxu2 %v15221_v35  ;;  %11297 = vmatpush.bf16.msrb.mxu0 %v16199_v31 }
0x110f   : > { %v10583_v19 = vpop.f32.mrf.mxu0 }
0x1110   : > { %v10215_v15 = vpop.f32.mrf.mxu3  ;;  %v10584_v7 = vadd.f32 %v10583_v19, %v19114_v16  ;;  %v16171_v19 = vld [vmem:[#allocation11 + $0x854] sm:$0xf0] }
0x1111   : > { %v19190_v26 = vadd.f32 %v10215_v15, %v19042_v20  ;;  %v19192_v27 = vpop.f32.mrf.mxu2  ;;  %v15225_v20 = vor.u32 %v16169_v55, %v15224_v23  ;;  %v15234_v23 = vld [vmem:[#allocation11 + $0x858] sm:$0xf0] }
0x1112   : > { %10622 = vmatmul.bf16.gmra.mxu0 %v15133_v30 }
0x1117   : > { %v10585_v53 = vpop.f32.mrf.mxu0 }
0x1118   : > { %v10217_v13 = vpop.f32.mrf.mxu3  ;;  %v10586_v47 = vadd.f32 %v10585_v53, %v19119_v60  ;;  %v16170_v53 = vld [vmem:[#allocation11 + $0x854] sm:$0xf] }
0x1119   : > { %v19197_v3 = vadd.f32 %v10217_v13, %v19045_v6  ;;  %v19199_v56 = vpop.f32.mrf.mxu2  ;;  %v15232_v6 = vld [vmem:[#allocation11 + $0x850] sm:$0xf] }
0x111a   : > { %v10647_v35 = vpack.c.bf16 %v10586_v47, %v10584_v7 }
0x111c   : > { %10752 = vmatmul.bf16.gmra.mxu1 %v10647_v35  ;;  %v16148_v35 = vld [vmem:[#allocation11 + $0x7e4] sm:$0xf] }
0x111d   : > { %11066 = vmatmul.bf16.gmra.mxu3 %v15225_v20  ;;  %v15237_v20 = vor.u32 %v16170_v53, %v15234_v23  ;;  %v16173_v53 = vld [vmem:[#allocation11 + $0x864] sm:$0xf0]  ;;  %v16172_v23 = vld [vmem:[#allocation11 + $0x864] sm:$0xf] }
0x111e   : > { %11155 = vmatmul.bf16.gmra.mxu2 %v15229_v37 }
0x111f   : > { %v10588_v30 = vpop.f32.mrf.mxu0 }
0x1120   : > { %v10220_v15 = vpop.f32.mrf.mxu3  ;;  %v10589_v62 = vadd.f32 %v10588_v30, %v19124_v25  ;;  %v16198_v30 = vld [vmem:[#allocation12 + $0xbb0] sm:$0xff] }
0x1121   : > { %v19202_v16 = vadd.f32 %v10220_v15, %v19048_v18  ;;  %v19204_v60 = vpop.f32.mrf.mxu2  ;;  %v15233_v18 = vor.u32 %v16171_v19, %v15232_v6  ;;  %11298 = vmatpush.bf16.msrb.mxu0 %v16198_v30  ;;  %v16197_v6 = vld [vmem:[#allocation12 + $0xba8] sm:$0xff]  ;;  %v15240_v19 = vld [vmem:[#allocation11 + $0x860] sm:$0xf]  ;;  %v16195_v30 = vld [vmem:[#allocation12 + $0xb98] sm:$0xff] }
0x1122   : > { %10627 = vmatmul.bf16.gmra.mxu0 %v15141_v41  ;;  %v15149_v41 = vor.u32 %v16148_v35, %v15146_v24  ;;  %v16196_v24 = vld [vmem:[#allocation12 + $0xba0] sm:$0xff] }
0x1125   : > { %11299 = vmatpush.bf16.msrb.mxu0 %v16197_v6 }
0x1127   : > { %v10590_v55 = vpop.f32.mrf.mxu0 }
0x1128   : > { %v10222_v57 = vpop.f32.mrf.mxu3  ;;  %v10591_v7 = vadd.f32 %v10590_v55, %v19129_v0  ;;  %v15242_v55 = vld [vmem:[#allocation11 + $0x868] sm:$0xf0] }
0x1129   : > { %v19209_v13 = vadd.f32 %v10222_v57, %v19051_v63  ;;  %v19211_v47 = vpop.f32.mrf.mxu2  ;;  %v15245_v35 = vor.u32 %v16172_v23, %v15242_v55  ;;  %11300 = vmatpush.bf16.msrb.mxu0 %v16196_v24  ;;  %v15248_v23 = vld [vmem:[#allocation11 + $0x870] sm:$0xf]  ;;  %v16175_v55 = vld [vmem:[#allocation11 + $0x874] sm:$0xf0] }
0x112a   : > { %v10648_v37 = vpack.c.bf16 %v10591_v7, %v10589_v62 }
0x112c   : > { %10757 = vmatmul.bf16.gmra.mxu1 %v10648_v37  ;;  %v15241_v37 = vor.u32 %v16173_v53, %v15240_v19  ;;  %v16194_v19 = vld [vmem:[#allocation12 + $0xb90] sm:$0xff]  ;;  %v16193_v53 = vld [vmem:[#allocation12 + $0xb88] sm:$0xff] }
0x112d   : > { %11071 = vmatmul.bf16.gmra.mxu3 %v15233_v18  ;;  %11301 = vmatpush.bf16.msrb.mxu0 %v16195_v30 }
0x112e   : > { %11160 = vmatmul.bf16.gmra.mxu2 %v15237_v20 }
0x112f   : > { %v10593_v15 = vpop.f32.mrf.mxu0 }
0x1130   : > { %v10225_v25 = vpop.f32.mrf.mxu3  ;;  %v10594_v57 = vadd.f32 %v10593_v15, %v19134_v1 }
0x1131   : > { %v19214_v0 = vadd.f32 %v10225_v25, %v19054_v44  ;;  %v19216_v63 = vpop.f32.mrf.mxu2  ;;  %v15154_v25 = vld [vmem:[#allocation11 + $0x7f8] sm:$0xf0]  ;;  %11302 = vmatpush.bf16.msrb.mxu0 %v16194_v19  ;;  %v16176_v19 = vld [vmem:[#allocation11 + $0x884] sm:$0xf] }
0x1132   : > { %10632 = vmatmul.bf16.gmra.mxu0 %v15149_v41  ;;  %v16150_v41 = vld [vmem:[#allocation11 + $0x7f4] sm:$0xf] }
0x1133   : > { %v15157_v1 = vor.u32 %v16150_v41, %v15154_v25  ;;  %v16192_v25 = vld [vmem:[#allocation12 + $0xb80] sm:$0xff] }
0x1135   : > { %11303 = vmatpush.bf16.msrb.mxu0 %v16193_v53  ;;  %v15258_v53 = vld [vmem:[#allocation11 + $0x888] sm:$0xf0] }
0x1137   : > { %v10595_v62 = vpop.f32.mrf.mxu0 }
0x1138   : > { %v10227_v7 = vpop.f32.mrf.mxu3  ;;  %v10596_v18 = vadd.f32 %v10595_v62, %v19139_v22  ;;  %v16174_v62 = vld [vmem:[#allocation11 + $0x874] sm:$0xf] }
0x1139   : > { %v19221_v44 = vadd.f32 %v10227_v7, %v19057_v42  ;;  %v19223_v20 = vpop.f32.mrf.mxu2  ;;  %11304 = vmatpush.bf16.msrb.mxu0 %v16192_v25 }
0x113a   : > { %v10649_v31 = vpack.c.bf16 %v10596_v18, %v10594_v57  ;;  %v15250_v57 = vld [vmem:[#allocation11 + $0x878] sm:$0xf0] }
0x113b   : > { %v15253_v41 = vor.u32 %v16174_v62, %v15250_v57 }
0x113c   : > { %10762 = vmatmul.bf16.gmra.mxu1 %v10649_v31  ;;  %v15249_v31 = vor.u32 %v16175_v55, %v15248_v23 }
0x113d   : > { %11076 = vmatmul.bf16.gmra.mxu3 %v15241_v37 }
0x113e   : > { %11165 = vmatmul.bf16.gmra.mxu2 %v15245_v35 }
0x113f   : > { %v10598_v15 = vpop.f32.mrf.mxu0 }
0x1140   : > { %v10230_v22 = vpop.f32.mrf.mxu3  ;;  %v10599_v18 = vadd.f32 %v10598_v15, %v19144_v32 }
0x1141   : > { %v19226_v42 = vadd.f32 %v10230_v22, %v19060_v14  ;;  %v19228_v6 = vpop.f32.mrf.mxu2 }
0x1142   : > { %10637 = vmatmul.bf16.gmra.mxu0 %v15157_v1 }
0x1147   : > { %v10600_v7 = vpop.f32.mrf.mxu0 }
0x1148   : > { %v10232_v37 = vpop.f32.mrf.mxu3  ;;  %v10601_v35 = vadd.f32 %v10600_v7, %v19151_v11  ;;  %v15256_v11 = vld [vmem:[#allocation11 + $0x880] sm:$0xf] }
0x1149   : > { %v19233_v14 = vadd.f32 %v10232_v37, %v19063_v28  ;;  %v19235_v24 = vpop.f32.mrf.mxu2  ;;  %v16177_v28 = vld [vmem:[#allocation11 + $0x884] sm:$0xf0] }
0x114a   : > { %v10650_v30 = vpack.c.bf16 %v10601_v35, %v10599_v18  ;;  %v15261_v35 = vor.u32 %v16176_v19, %v15258_v53 }
0x114c   : > { %10767 = vmatmul.bf16.gmra.mxu1 %v10650_v30 }
0x114d   : > { %11081 = vmatmul.bf16.gmra.mxu3 %v15249_v31 }
0x114e   : > { %11170 = vmatmul.bf16.gmra.mxu2 %v15253_v41 }
0x114f   : > { %v10603_v1 = vpop.f32.mrf.mxu0 }
0x1150   : > { %v10235_v22 = vpop.f32.mrf.mxu3  ;;  %v10604_v23 = vadd.f32 %v10603_v1, %v19156_v34 }
0x1151   : > { %v19238_v32 = vadd.f32 %v10235_v22, %v19066_v38  ;;  %v19240_v15 = vpop.f32.mrf.mxu2  ;;  %v15257_v38 = vor.u32 %v16177_v28, %v15256_v11  ;;  %v16179_v22 = vld [vmem:[#allocation11 + $0x894] sm:$0xf0] }
0x1157   : > { %v10605_v7 = vpop.f32.mrf.mxu0 }
0x1158   : > { %v10237_v55 = vpop.f32.mrf.mxu3  ;;  %v10606_v62 = vadd.f32 %v10605_v7, %v19163_v58  ;;  %v16178_v7 = vld [vmem:[#allocation11 + $0x894] sm:$0xf] }
0x1159   : > { %v19245_v57 = vadd.f32 %v10237_v55, %v19069_v4  ;;  %v19247_v18 = vpop.f32.mrf.mxu2  ;;  %v10733_v37 = vpop.f32.mrf.mxu1  ;;  %v15264_v4 = vld [vmem:[#allocation11 + $0x890] sm:$0xf]  ;;  %v15266_v55 = vld [vmem:[#allocation11 + $0x898] sm:$0xf0] }
0x115a   : > { %v10651_v31 = vpack.c.bf16 %v10606_v62, %v10604_v23  ;;  %v19250_v41 = vadd.f32 %v10733_v37, %v19072_v8  ;;  %v15265_v62 = vor.u32 %v16179_v22, %v15264_v4  ;;  %v15269_v37 = vor.u32 %v16178_v7, %v15266_v55  ;;  %v15272_v4 = vld [vmem:[#allocation11 + $0x8a0] sm:$0xf]  ;;  %v16181_v22 = vld [vmem:[#allocation11 + $0x8a4] sm:$0xf0] }
0x115b   : > { %19868 = vst [vmem:[#allocation46_spill] sm:$0xff] %v19245_v57 }
0x115c   : > { %10772 = vmatmul.bf16.gmra.mxu1 %v10651_v31 }
0x115d   : > { %11086 = vmatmul.bf16.gmra.mxu3 %v15257_v38 }
0x115e   : > { %11175 = vmatmul.bf16.gmra.mxu2 %v15261_v35 }
0x115f   : > { %v10608_v25 = vpop.f32.mrf.mxu0 }
0x1160   : > { %v11047_v34 = vpop.f32.mrf.mxu3  ;;  %v10609_v28 = vadd.f32 %v10608_v25, %v19168_v29 }
0x1161   : > { %v11136_v30 = vpop.f32.mrf.mxu2  ;;  %v10735_v1 = vpop.f32.mrf.mxu1 }
0x1162   : > { %v19253_v58 = vadd.f32 %v10735_v1, %v19077_v2  ;;  %v11137_v38 = vadd.f32 %v11136_v30, %v11047_v34  ;;  %v16180_v34 = vld [vmem:[#allocation11 + $0x8a4] sm:$0xf]  ;;  %v15274_v30 = vld [vmem:[#allocation11 + $0x8a8] sm:$0xf0] }
0x1167   : > { %v10610_v11 = vpop.f32.mrf.mxu0 }
0x1168   : > { %v10611_v8 = vadd.f32 %v10610_v11, %v19175_v36  ;;  %v11049_v19 = vpop.f32.mrf.mxu3 }
0x1169   : > { %v11138_v53 = vpop.f32.mrf.mxu2  ;;  %v10738_v23 = vpop.f32.mrf.mxu1 }
0x116a   : > { %v10652_v35 = vpack.c.bf16 %v10611_v8, %v10609_v28  ;;  %v11139_v31 = vadd.f32 %v11138_v53, %v11049_v19  ;;  %v19258_v2 = vadd.f32 %v10738_v23, %v19082_v54  ;;  %v15273_v53 = vor.u32 %v16181_v22, %v15272_v4  ;;  %v16183_v4 = vld [vmem:[#allocation11 + $0x8b4] sm:$0xf0] }
0x116b   : > { %v15277_v23 = vor.u32 %v16180_v34, %v15274_v30 }
0x116c   : > { %v11216_v1 = vpack.c.bf16 %v11139_v31, %v11137_v38  ;;  %10777 = vmatmul.bf16.gmra.mxu1 %v10652_v35 }
0x116d   : > { %11091 = vmatmul.bf16.gmra.mxu3 %v15265_v62 }
0x116e   : > { %11180 = vmatmul.bf16.gmra.mxu2 %v15269_v37  ;;  %11305 = vmatmul.bf16.vlgmr.msrb.gmra.mxu0 %v11216_v1 }
0x116f   : > { %v10613_v57 = vpop.f32.mrf.mxu0 }
0x1170   : > { %v11052_v29 = vpop.f32.mrf.mxu3  ;;  %v10614_v54 = vadd.f32 %v10613_v57, %v19180_v49 }
0x1171   : > { %v11141_v25 = vpop.f32.mrf.mxu2  ;;  %v10740_v36 = vpop.f32.mrf.mxu1 }
0x1172   : > { %v19261_v11 = vadd.f32 %v10740_v36, %v19087_v33  ;;  %v11142_v62 = vadd.f32 %v11141_v25, %v11052_v29  ;;  %v15280_v36 = vld [vmem:[#allocation11 + $0x8b0] sm:$0xf]  ;;  %v16182_v29 = vld [vmem:[#allocation11 + $0x8b4] sm:$0xf]  ;;  %v15282_v25 = vld [vmem:[#allocation11 + $0x8b8] sm:$0xf0] }
0x1177   : > { %v10615_v7 = vpop.f32.mrf.mxu0 }
0x1178   : > { %v10616_v55 = vadd.f32 %v10615_v7, %v19187_v17  ;;  %v11054_v28 = vpop.f32.mrf.mxu3 }
0x1179   : > { %v11143_v8 = vpop.f32.mrf.mxu2  ;;  %v10743_v19 = vpop.f32.mrf.mxu1 }
0x117a   : > { %v10653_v37 = vpack.c.bf16 %v10616_v55, %v10614_v54  ;;  %v11144_v38 = vadd.f32 %v11143_v8, %v11054_v28  ;;  %v19266_v33 = vadd.f32 %v10743_v19, %v19092_v9  ;;  %v15281_v55 = vor.u32 %v16183_v4, %v15280_v36 }
0x117b   : > { %v15285_v28 = vor.u32 %v16182_v29, %v15282_v25 }
0x117c   : > { %v11217_v35 = vpack.c.bf16 %v11144_v38, %v11142_v62  ;;  %10782 = vmatmul.bf16.gmra.mxu1 %v10653_v37 }
0x117d   : > { %11096 = vmatmul.bf16.gmra.mxu3 %v15273_v53 }
0x117e   : > { %11185 = vmatmul.bf16.gmra.mxu2 %v15277_v23  ;;  %11310 = vmatmul.bf16.gmra.mxu0 %v11217_v35  ;;  %v15288_v35 = vld [vmem:[#allocation11 + $0x8c0] sm:$0xf] }
0x117f   : > { %v10618_v31 = vpop.f32.mrf.mxu0 }
0x1180   : > { %v11057_v49 = vpop.f32.mrf.mxu3  ;;  %v10619_v9 = vadd.f32 %v10618_v31, %v19192_v27  ;;  %v16185_v31 = vld [vmem:[#allocation11 + $0x8c4] sm:$0xf0] }
0x1181   : > { %v11146_v57 = vpop.f32.mrf.mxu2  ;;  %v10745_v17 = vpop.f32.mrf.mxu1 }
0x1182   : > { %v19269_v1 = vadd.f32 %v10745_v17, %v19097_v10  ;;  %v11147_v8 = vadd.f32 %v11146_v57, %v11057_v49  ;;  %v16184_v49 = vld [vmem:[#allocation11 + $0x8c4] sm:$0xf]  ;;  %v15290_v57 = vld [vmem:[#allocation11 + $0x8c8] sm:$0xf0] }
0x1187   : > { %v10620_v22 = vpop.f32.mrf.mxu0 }
0x1188   : > { %v10621_v34 = vadd.f32 %v10620_v22, %v19199_v56  ;;  %v11059_v30 = vpop.f32.mrf.mxu3  ;;  %v15289_v22 = vor.u32 %v16185_v31, %v15288_v35 }
0x1189   : > { %v11148_v7 = vpop.f32.mrf.mxu2  ;;  %v10748_v54 = vpop.f32.mrf.mxu1 }
0x118a   : > { %v10654_v19 = vpack.c.bf16 %v10621_v34, %v10619_v9  ;;  %v11149_v53 = vadd.f32 %v11148_v7, %v11059_v30  ;;  %v19274_v10 = vadd.f32 %v10748_v54, %v19102_v59  ;;  %v15293_v9 = vor.u32 %v16184_v49, %v15290_v57 }
0x118c   : > { %v11218_v23 = vpack.c.bf16 %v11149_v53, %v11147_v8  ;;  %10787 = vmatmul.bf16.gmra.mxu1 %v10654_v19  ;;  %v15296_v8 = vld [vmem:[#allocation11 + $0x8d0] sm:$0xf]  ;;  %v16187_v19 = vld [vmem:[#allocation11 + $0x8d4] sm:$0xf0]  ;;  %v16186_v53 = vld [vmem:[#allocation11 + $0x8d4] sm:$0xf] }
0x118d   : > { %11101 = vmatmul.bf16.gmra.mxu3 %v15281_v55  ;;  %v15297_v31 = vor.u32 %v16187_v19, %v15296_v8 }
0x118e   : > { %11190 = vmatmul.bf16.gmra.mxu2 %v15285_v28  ;;  %11315 = vmatmul.bf16.gmra.mxu0 %v11218_v23  ;;  %v15298_v23 = vld [vmem:[#allocation11 + $0x8d8] sm:$0xf0] }
0x118f   : > { %v10623_v62 = vpop.f32.mrf.mxu0  ;;  %v15301_v49 = vor.u32 %v16186_v53, %v15298_v23 }
0x1190   : > { %v11062_v27 = vpop.f32.mrf.mxu3  ;;  %v10624_v59 = vadd.f32 %v10623_v62, %v19204_v60 }
0x1191   : > { %v11151_v37 = vpop.f32.mrf.mxu2  ;;  %v10750_v56 = vpop.f32.mrf.mxu1 }
0x1192   : > { %v19277_v38 = vadd.f32 %v10750_v56, %v19107_v48  ;;  %v11152_v34 = vadd.f32 %v11151_v37, %v11062_v27 }
0x1197   : > { %v10625_v17 = vpop.f32.mrf.mxu0 }
0x1198   : > { %v10626_v36 = vadd.f32 %v10625_v17, %v19211_v47  ;;  %v11064_v4 = vpop.f32.mrf.mxu3 }
0x1199   : > { %v11153_v29 = vpop.f32.mrf.mxu2  ;;  %v10753_v25 = vpop.f32.mrf.mxu1 }
0x119a   : > { %v10655_v30 = vpack.c.bf16 %v10626_v36, %v10624_v59  ;;  %v11154_v7 = vadd.f32 %v11153_v29, %v11064_v4  ;;  %v19282_v48 = vadd.f32 %v10753_v25, %v19112_v21 }
0x119c   : > { %v11219_v54 = vpack.c.bf16 %v11154_v7, %v11152_v34  ;;  %10792 = vmatmul.bf16.gmra.mxu1 %v10655_v30  ;;  %v16188_v34 = vld [vmem:[#allocation11 + $0x8e4] sm:$0xf]  ;;  %v15306_v30 = vld [vmem:[#allocation11 + $0x8e8] sm:$0xf0] }
0x119d   : > { %11106 = vmatmul.bf16.gmra.mxu3 %v15289_v22  ;;  %v15304_v22 = vld [vmem:[#allocation11 + $0x8e0] sm:$0xf]  ;;  %v15309_v19 = vor.u32 %v16188_v34, %v15306_v30 }
0x119e   : > { %11195 = vmatmul.bf16.gmra.mxu2 %v15293_v9  ;;  %11320 = vmatmul.bf16.gmra.mxu0 %v11219_v54  ;;  %v16189_v9 = vld [vmem:[#allocation11 + $0x8e4] sm:$0xf0] }
0x119f   : > { %v10628_v55 = vpop.f32.mrf.mxu0  ;;  %v15305_v8 = vor.u32 %v16189_v9, %v15304_v22 }
0x11a0   : > { %v11067_v60 = vpop.f32.mrf.mxu3  ;;  %v10629_v27 = vadd.f32 %v10628_v55, %v19216_v63 }
0x11a1   : > { %v11156_v28 = vpop.f32.mrf.mxu2  ;;  %v19284_v47 = vpop.f32.mrf.mxu1 }
0x11a2   : > { %v11157_v57 = vadd.f32 %v11156_v28, %v11067_v60 }
0x11a7   : > { %v10630_v62 = vpop.f32.mrf.mxu0 }
0x11a8   : > { %v10631_v21 = vadd.f32 %v10630_v62, %v19223_v20  ;;  %v11069_v37 = vpop.f32.mrf.mxu3 }
0x11a9   : > { %v11158_v56 = vpop.f32.mrf.mxu2  ;;  %v10758_v35 = vpop.f32.mrf.mxu1 }
0x11aa   : > { %v10656_v17 = vpack.c.bf16 %v10631_v21, %v10629_v27  ;;  %v11159_v59 = vadd.f32 %v11158_v56, %v11069_v37  ;;  %v19289_v36 = vadd.f32 %v10758_v35, %v19122_v46  ;;  %v16207_v37 = vld [vmem:[#allocation12 + $0xbf8] sm:$0xff] }
0x11ab   : > { %11631 = vmatpush.bf16.msra.mxu1 %v16207_v37  ;;  %v16200_v37 = vld [vmem:[#allocation12 + $0xbc0] sm:$0xff] }
0x11ac   : > { %v11220_v4 = vpack.c.bf16 %v11159_v59, %v11157_v57  ;;  %10797 = vmatmul.bf16.gmra.mxu1 %v10656_v17  ;;  %v15312_v57 = vld [vmem:[#allocation11 + $0x8f0] sm:$0xf]  ;;  %v16191_v17 = vld [vmem:[#allocation11 + $0x8f4] sm:$0xf0]  ;;  %v16190_v59 = vld [vmem:[#allocation11 + $0x8f4] sm:$0xf] }
0x11ad   : > { %11111 = vmatmul.bf16.gmra.mxu3 %v15297_v31  ;;  %v16206_v31 = vld [vmem:[#allocation12 + $0xbf0] sm:$0xff]  ;;  %v15313_v34 = vor.u32 %v16191_v17, %v15312_v57 }
0x11ae   : > { %11200 = vmatmul.bf16.gmra.mxu2 %v15301_v49  ;;  %11325 = vmatmul.bf16.gmra.mxu0 %v11220_v4  ;;  %v16205_v49 = vld [vmem:[#allocation12 + $0xbe8] sm:$0xff] }
0x11af   : > { %v10633_v29 = vpop.f32.mrf.mxu0  ;;  %11632 = vmatpush.bf16.msra.mxu1 %v16206_v31 }
0x11b0   : > { %v11072_v63 = vpop.f32.mrf.mxu3  ;;  %v10634_v54 = vadd.f32 %v10633_v29, %v19228_v6 }
0x11b1   : > { %v11161_v25 = vpop.f32.mrf.mxu2  ;;  %v19291_v20 = vpop.f32.mrf.mxu1 }
0x11b2   : > { %v11162_v53 = vadd.f32 %v11161_v25, %v11072_v63 }
0x11b3   : > { %11633 = vmatpush.bf16.msra.mxu1 %v16205_v49 }
0x11b7   : > { %v10635_v7 = vpop.f32.mrf.mxu0 }
0x11b8   : > { %v10636_v46 = vadd.f32 %v10635_v7, %v19235_v24  ;;  %v11074_v55 = vpop.f32.mrf.mxu3  ;;  %v16204_v7 = vld [vmem:[#allocation12 + $0xbe0] sm:$0xff] }
0x11b9   : > { %v11163_v60 = vpop.f32.mrf.mxu2  ;;  %v10763_v28 = vpop.f32.mrf.mxu1  ;;  %11634 = vmatpush.bf16.msra.mxu1 %v16204_v7 }
0x11ba   : > { %v10657_v23 = vpack.c.bf16 %v10636_v46, %v10634_v54  ;;  %v11164_v62 = vadd.f32 %v11163_v60, %v11074_v55  ;;  %v19296_v27 = vadd.f32 %v10763_v28, %v19132_v50  ;;  %v15314_v50 = vld [vmem:[#allocation11 + $0x8f8] sm:$0xf0] }
0x11bb   : > { %v15317_v30 = vor.u32 %v16190_v59, %v15314_v50 }
0x11bc   : > { %v11221_v21 = vpack.c.bf16 %v11164_v62, %v11162_v53  ;;  %10802 = vmatmul.bf16.gmra.mxu1 %v10657_v23  ;;  %v16202_v53 = vld [vmem:[#allocation12 + $0xbd0] sm:$0xff]  ;;  %v16201_v23 = vld [vmem:[#allocation12 + $0xbc8] sm:$0xff] }
0x11bd   : > { %11116 = vmatmul.bf16.gmra.mxu3 %v15305_v8 }
0x11be   : > { %11205 = vmatmul.bf16.gmra.mxu2 %v15309_v19  ;;  %11330 = vmatmul.bf16.gmra.mxu0 %v11221_v21 }
0x11bf   : > { %v10638_v6 = vpop.f32.mrf.mxu0 }
0x11c0   : > { %v11077_v24 = vpop.f32.mrf.mxu3  ;;  %v10639_v29 = vadd.f32 %v10638_v6, %v19240_v15  ;;  %v16203_v15 = vld [vmem:[#allocation12 + $0xbd8] sm:$0xff] }
0x11c1   : > { %v11166_v56 = vpop.f32.mrf.mxu2  ;;  %v19298_v35 = vpop.f32.mrf.mxu1  ;;  %11635 = vmatpush.bf16.msra.mxu1 %v16203_v15 }
0x11c2   : > { %v11167_v54 = vadd.f32 %v11166_v56, %v11077_v24 }
0x11c5   : > { %11636 = vmatpush.bf16.msra.mxu1 %v16202_v53 }
0x11c7   : > { %v10640_v4 = vpop.f32.mrf.mxu0 }
0x11c8   : > { %v10641_v63 = vadd.f32 %v10640_v4, %v19247_v18  ;;  %v11079_v25 = vpop.f32.mrf.mxu3 }
0x11c9   : > { %v11168_v22 = vpop.f32.mrf.mxu2  ;;  %v10768_v9 = vpop.f32.mrf.mxu1  ;;  %11637 = vmatpush.bf16.msra.mxu1 %v16201_v23 }
0x11ca   : > { %v10658_v46 = vpack.c.bf16 %v10641_v63, %v10639_v29  ;;  %v11169_v55 = vadd.f32 %v11168_v22, %v11079_v25  ;;  %v19303_v60 = vadd.f32 %v10768_v9, %v19142_v45  ;;  %v19315_v22 = vld [vmem:[#allocation14 + $0x4] ss:$0 sm:$0xff] }
0x11cc   : > { %v11222_v28 = vpack.c.bf16 %v11169_v55, %v11167_v54  ;;  %10807 = vmatmul.bf16.gmra.mxu1 %v10658_v46 }
0x11cd   : > { %11121 = vmatmul.bf16.gmra.mxu3 %v15313_v34  ;;  %11638 = vmatpush.bf16.msra.mxu1 %v16200_v37 }
0x11ce   : > { %11210 = vmatmul.bf16.gmra.mxu2 %v15317_v30  ;;  %11335 = vmatmul.bf16.gmra.mxu0 %v11222_v28  ;;  %v19318_v30 = vld [vmem:[#allocation15 + $0x4] ss:$0 sm:$0xff] }
0x11d0   : > { %v11082_v18 = vpop.f32.mrf.mxu3 }
0x11d1   : > { %v11171_v8 = vpop.f32.mrf.mxu2  ;;  %v19305_v19 = vpop.f32.mrf.mxu1 }
0x11d2   : > { %v11172_v6 = vadd.f32 %v11171_v8, %v11082_v18 }
0x11d8   : > { %v11084_v62 = vpop.f32.mrf.mxu3 }
0x11d9   : > { %v11173_v21 = vpop.f32.mrf.mxu2  ;;  %v10773_v45 = vpop.f32.mrf.mxu1 }
0x11da   : > { %v11174_v24 = vadd.f32 %v11173_v21, %v11084_v62  ;;  %v19308_v56 = vadd.f32 %v10773_v45, %v19154_v5 }
0x11dc   : > { %v11223_v31 = vpack.c.bf16 %v11174_v24, %v11172_v6 }
0x11de   : > { %11340 = vmatmul.bf16.gmra.mxu0 %v11223_v31 }
0x11e0   : > { %v11087_v49 = vpop.f32.mrf.mxu3 }
0x11e1   : > { %v11176_v57 = vpop.f32.mrf.mxu2  ;;  %v19310_v17 = vpop.f32.mrf.mxu1 }
0x11e2   : > { %v11177_v29 = vadd.f32 %v11176_v57, %v11087_v49 }
0x11e8   : > { %v11089_v59 = vpop.f32.mrf.mxu3 }
0x11e9   : > { %v11178_v50 = vpop.f32.mrf.mxu2  ;;  %v10778_v4 = vpop.f32.mrf.mxu1 }
0x11ea   : > { %v11179_v63 = vadd.f32 %v11178_v50, %v11089_v59  ;;  %v19313_v25 = vadd.f32 %v10778_v4, %v19166_v43 }
0x11eb   : > { %v11306_v5 = vpop.f32.mrf.mxu0 }
0x11ec   : > { %v11224_v9 = vpack.c.bf16 %v11179_v63, %v11177_v29  ;;  %v11386_v34 = vadd.f32 %v11306_v5, %v19250_v41 }
0x11ee   : > { %v11420_v7 = vmul.f32 %v19315_v22, %v11386_v34  ;;  %11345 = vmatmul.bf16.gmra.mxu0 %v11224_v9 }
0x11f0   : > { %v11454_v54 = vadd.f32 %v19318_v30, %v11420_v7  ;;  %v11092_v46 = vpop.f32.mrf.mxu3 }
0x11f1   : > { %v11181_v43 = vpop.f32.mrf.mxu2  ;;  %v19328_v55 = vpop.f32.mrf.mxu1 }
0x11f2   : > { %v11486_v28 = vmax.f32 %v11454_v54, 0.0  ;;  %v11182_v21 = vadd.f32 %v11181_v43, %v11092_v46 }
0x11f3   : > { %v11308_v41 = vpop.f32.mrf.mxu0 }
0x11f4   : > { %11518 = vst [vmem:[%s19326_s27] sm:$0xff] %v11486_v28  ;;  %v11387_v15 = vadd.f32 %v11308_v41, %v19253_v58 }
0x11f6   : > { %v11421_v18 = vmul.f32 %v19315_v22, %v11387_v15 }
0x11f8   : > { %v11455_v8 = vadd.f32 %v19318_v30, %v11421_v18  ;;  %v11094_v53 = vpop.f32.mrf.mxu3 }
0x11f9   : > { %v11183_v23 = vpop.f32.mrf.mxu2  ;;  %v10783_v62 = vpop.f32.mrf.mxu1 }
0x11fa   : > { %v11487_v45 = vmax.f32 %v11455_v8, 0.0  ;;  %v11184_v37 = vadd.f32 %v11183_v23, %v11094_v53  ;;  %v19335_v6 = vadd.f32 %v10783_v62, %v19178_v12 }
0x11fb   : > { %v11311_v24 = vpop.f32.mrf.mxu0 }
0x11fc   : > { %11519 = vst [vmem:[%s19326_s27 + $0x8] sm:$0xff] %v11487_v45  ;;  %v11550_v31 = vpack.c.bf16 %v11487_v45, %v11486_v28  ;;  %v11225_v49 = vpack.c.bf16 %v11184_v37, %v11182_v21  ;;  %v11388_v58 = vadd.f32 %v11311_v24, %v19258_v2 }
0x11fe   : > { %v11422_v57 = vmul.f32 %v19315_v22, %v11388_v58  ;;  %11350 = vmatmul.bf16.gmra.mxu0 %v11225_v49  ;;  %11639 = vmatmul.bf16.vlgmr.msra.gmra.mxu1 %v11550_v31 }
0x1200   : > { %v11456_v59 = vadd.f32 %v19318_v30, %v11422_v57  ;;  %v11097_v50 = vpop.f32.mrf.mxu3 }
0x1201   : > { %v11186_v4 = vpop.f32.mrf.mxu2  ;;  %v19341_v29 = vpop.f32.mrf.mxu1 }
0x1202   : > { %v11488_v63 = vmax.f32 %v11456_v59, 0.0  ;;  %v11187_v46 = vadd.f32 %v11186_v4, %v11097_v50 }
0x1203   : > { %v11313_v12 = vpop.f32.mrf.mxu0 }
0x1204   : > { %11520 = vst [vmem:[%s19326_s27 + $0x10] sm:$0xff] %v11488_v63  ;;  %v11389_v5 = vadd.f32 %v11313_v12, %v19261_v11 }
0x1206   : > { %v11423_v9 = vmul.f32 %v19315_v22, %v11389_v5 }
0x1208   : > { %v11457_v2 = vadd.f32 %v19318_v30, %v11423_v9  ;;  %v11099_v34 = vpop.f32.mrf.mxu3 }
0x1209   : > { %v11188_v7 = vpop.f32.mrf.mxu2  ;;  %v10788_v54 = vpop.f32.mrf.mxu1 }
0x120a   : > { %v11189_v43 = vadd.f32 %v11188_v7, %v11099_v34  ;;  %v19348_v28 = vadd.f32 %v10788_v54, %v19190_v26  ;;  %v11489_v41 = vmax.f32 %v11457_v2, 0.0 }
0x120b   : > { %v11316_v15 = vpop.f32.mrf.mxu0 }
0x120c   : > { %v11226_v18 = vpack.c.bf16 %v11189_v43, %v11187_v46  ;;  %v11390_v8 = vadd.f32 %v11316_v15, %v19266_v33  ;;  %11521 = vst [vmem:[%s19326_s27 + $0x18] sm:$0xff] %v11489_v41  ;;  %v11551_v11 = vpack.c.bf16 %v11489_v41, %v11488_v63 }
0x120e   : > { %v11424_v53 = vmul.f32 %v19315_v22, %v11390_v8  ;;  %11355 = vmatmul.bf16.gmra.mxu0 %v11226_v18  ;;  %11644 = vmatmul.bf16.gmra.mxu1 %v11551_v11 }
0x1210   : > { %v11458_v23 = vadd.f32 %v19318_v30, %v11424_v53  ;;  %v11102_v62 = vpop.f32.mrf.mxu3 }
0x1211   : > { %v11191_v21 = vpop.f32.mrf.mxu2  ;;  %v19354_v45 = vpop.f32.mrf.mxu1 }
0x1212   : > { %v11490_v26 = vmax.f32 %v11458_v23, 0.0  ;;  %v11192_v59 = vadd.f32 %v11191_v21, %v11102_v62 }
0x1213   : > { %v11318_v37 = vpop.f32.mrf.mxu0 }
0x1214   : > { %11522 = vst [vmem:[%s19326_s27 + $0x20] sm:$0xff] %v11490_v26  ;;  %v11391_v24 = vadd.f32 %v11318_v37, %v19269_v1 }
0x1216   : > { %v11425_v33 = vmul.f32 %v19315_v22, %v11391_v24 }
0x1218   : > { %v11459_v31 = vadd.f32 %v19318_v30, %v11425_v33  ;;  %v11104_v49 = vpop.f32.mrf.mxu3 }
0x1219   : > { %v11193_v58 = vpop.f32.mrf.mxu2  ;;  %v10793_v57 = vpop.f32.mrf.mxu1 }
0x121a   : > { %v11194_v50 = vadd.f32 %v11193_v58, %v11104_v49  ;;  %v19361_v4 = vadd.f32 %v10793_v57, %v19202_v16  ;;  %v11491_v63 = vmax.f32 %v11459_v31, 0.0 }
0x121b   : > { %v11321_v12 = vpop.f32.mrf.mxu0 }
0x121c   : > { %v11227_v5 = vpack.c.bf16 %v11194_v50, %v11192_v59  ;;  %v11392_v9 = vadd.f32 %v11321_v12, %v19274_v10  ;;  %11523 = vst [vmem:[%s19326_s27 + $0x28] sm:$0xff] %v11491_v63  ;;  %v11552_v1 = vpack.c.bf16 %v11491_v63, %v11490_v26 }
0x121e   : > { %v11426_v2 = vmul.f32 %v19315_v22, %v11392_v9  ;;  %11360 = vmatmul.bf16.gmra.mxu0 %v11227_v5  ;;  %11649 = vmatmul.bf16.gmra.mxu1 %v11552_v1 }
0x1220   : > { %v11460_v34 = vadd.f32 %v19318_v30, %v11426_v2  ;;  %v11107_v7 = vpop.f32.mrf.mxu3 }
0x1221   : > { %v11196_v54 = vpop.f32.mrf.mxu2  ;;  %v19367_v46 = vpop.f32.mrf.mxu1 }
0x1222   : > { %v11492_v16 = vmax.f32 %v11460_v34, 0.0  ;;  %v11197_v53 = vadd.f32 %v11196_v54, %v11107_v7 }
0x1223   : > { %v11323_v43 = vpop.f32.mrf.mxu0 }
0x1224   : > { %11524 = vst [vmem:[%s19326_s27 + $0x30] sm:$0xff] %v11492_v16  ;;  %v11393_v41 = vadd.f32 %v11323_v43, %v19277_v38 }
0x1226   : > { %v11427_v10 = vmul.f32 %v19315_v22, %v11393_v41 }
0x1228   : > { %v11461_v15 = vadd.f32 %v19318_v30, %v11427_v10  ;;  %v11109_v18 = vpop.f32.mrf.mxu3 }
0x1229   : > { %v11198_v8 = vpop.f32.mrf.mxu2  ;;  %v10798_v11 = vpop.f32.mrf.mxu1 }
0x122a   : > { %v11199_v23 = vadd.f32 %v11198_v8, %v11109_v18  ;;  %v19374_v62 = vadd.f32 %v10798_v11, %v19214_v0  ;;  %v11493_v21 = vmax.f32 %v11461_v15, 0.0  ;;  %v10822_v0 = vadd.f32 %v19284_v47, %v19117_v52  ;;  %v19869_v11 = vld [vmem:[#allocation35_spill] sm:$0xff] }
0x122b   : > { %v11326_v26 = vpop.f32.mrf.mxu0 }
0x122c   : > { %v11228_v37 = vpack.c.bf16 %v11199_v23, %v11197_v53  ;;  %v11394_v24 = vadd.f32 %v11326_v26, %v19282_v48  ;;  %11525 = vst [vmem:[%s19326_s27 + $0x38] sm:$0xff] %v11493_v21  ;;  %v11553_v38 = vpack.c.bf16 %v11493_v21, %v11492_v16 }
0x122e   : > { %v11428_v33 = vmul.f32 %v19315_v22, %v11394_v24  ;;  %11365 = vmatmul.bf16.gmra.mxu0 %v11228_v37  ;;  %11654 = vmatmul.bf16.gmra.mxu1 %v11553_v38 }
0x1230   : > { %v11462_v31 = vadd.f32 %v19318_v30, %v11428_v33  ;;  %v11112_v49 = vpop.f32.mrf.mxu3 }
0x1231   : > { %v11201_v58 = vpop.f32.mrf.mxu2  ;;  %v19380_v57 = vpop.f32.mrf.mxu1 }
0x1232   : > { %v11494_v59 = vmax.f32 %v11462_v31, 0.0  ;;  %v11202_v2 = vadd.f32 %v11201_v58, %v11112_v49 }
0x1233   : > { %v11328_v50 = vpop.f32.mrf.mxu0 }
0x1234   : > { %11526 = vst [vmem:[%s19326_s27 + $0x40] sm:$0xff] %v11494_v59  ;;  %v11395_v48 = vadd.f32 %v11328_v50, %v10822_v0 }
0x1236   : > { %v11429_v63 = vmul.f32 %v19315_v22, %v11395_v48 }
0x1238   : > { %v11463_v12 = vadd.f32 %v19318_v30, %v11429_v63  ;;  %v11114_v5 = vpop.f32.mrf.mxu3 }
0x1239   : > { %v11203_v9 = vpop.f32.mrf.mxu2  ;;  %v10803_v1 = vpop.f32.mrf.mxu1 }
0x123a   : > { %v11495_v34 = vmax.f32 %v11463_v12, 0.0  ;;  %v11204_v7 = vadd.f32 %v11203_v9, %v11114_v5  ;;  %v19388_v54 = vadd.f32 %v10803_v1, %v19226_v42  ;;  %v10824_v42 = vadd.f32 %v19291_v20, %v19869_v11  ;;  %v19870_v9 = vld [vmem:[#allocation47_spill] sm:$0xff] }
0x123b   : > { %v11331_v16 = vpop.f32.mrf.mxu0  ;;  %v10826_v1 = vadd.f32 %v19298_v35, %v19870_v9 }
0x123c   : > { %11527 = vst [vmem:[%s19326_s27 + $0x48] sm:$0xff] %v11495_v34  ;;  %v11229_v52 = vpack.c.bf16 %v11204_v7, %v11202_v2  ;;  %v11396_v47 = vadd.f32 %v11331_v16, %v19289_v36  ;;  %v11554_v43 = vpack.c.bf16 %v11495_v34, %v11494_v59 }
0x123e   : > { %v11430_v41 = vmul.f32 %v19315_v22, %v11396_v47  ;;  %11370 = vmatmul.bf16.gmra.mxu0 %v11229_v52  ;;  %11659 = vmatmul.bf16.gmra.mxu1 %v11554_v43 }
0x1240   : > { %v11464_v10 = vadd.f32 %v19318_v30, %v11430_v41  ;;  %v11117_v15 = vpop.f32.mrf.mxu3 }
0x1241   : > { %v11206_v18 = vpop.f32.mrf.mxu2  ;;  %v19394_v8 = vpop.f32.mrf.mxu1 }
0x1242   : > { %v11496_v53 = vmax.f32 %v11464_v10, 0.0  ;;  %v11207_v33 = vadd.f32 %v11206_v18, %v11117_v15 }
0x1243   : > { %v11333_v23 = vpop.f32.mrf.mxu0 }
0x1244   : > { %11528 = vst [vmem:[%s19326_s27 + $0x50] sm:$0xff] %v11496_v53  ;;  %v11397_v21 = vadd.f32 %v11333_v23, %v10824_v42 }
0x1246   : > { %v11431_v36 = vmul.f32 %v19315_v22, %v11397_v21 }
0x1248   : > { %v11465_v26 = vadd.f32 %v19318_v30, %v11431_v36  ;;  %v11119_v37 = vpop.f32.mrf.mxu3 }
0x1249   : > { %v11208_v24 = vpop.f32.mrf.mxu2  ;;  %v10808_v38 = vpop.f32.mrf.mxu1 }
0x124a   : > { %v11497_v31 = vmax.f32 %v11465_v26, 0.0  ;;  %v11209_v49 = vadd.f32 %v11208_v24, %v11119_v37  ;;  %v19402_v58 = vadd.f32 %v10808_v38, %v19238_v32 }
0x124b   : > { %v11336_v0 = vpop.f32.mrf.mxu0 }
0x124c   : > { %11529 = vst [vmem:[%s19326_s27 + $0x58] sm:$0xff] %v11497_v31  ;;  %v11230_v20 = vpack.c.bf16 %v11209_v49, %v11207_v33  ;;  %v11398_v59 = vadd.f32 %v11336_v0, %v19296_v27  ;;  %v11555_v50 = vpack.c.bf16 %v11497_v31, %v11496_v53  ;;  %v10828_v53 = vadd.f32 %v19305_v19, %v19149_v40 }
0x124d   : > { %v10830_v19 = vadd.f32 %v19310_v17, %v19161_v51 }
0x124e   : > { %v11432_v48 = vmul.f32 %v19315_v22, %v11398_v59  ;;  %11375 = vmatmul.bf16.gmra.mxu0 %v11230_v20  ;;  %11664 = vmatmul.bf16.gmra.mxu1 %v11555_v50 }
0x1250   : > { %v11466_v63 = vadd.f32 %v19318_v30, %v11432_v48  ;;  %v11122_v12 = vpop.f32.mrf.mxu3  ;;  %v19433_v48 = vld [vmem:[#allocation14 + $0x5] ss:$0 sm:$0xff] }
0x1251   : > { %v11211_v5 = vpop.f32.mrf.mxu2  ;;  %v19428_v0 = vpop.f32.mrf.mxu1 }
0x1252   : > { %v11498_v32 = vmax.f32 %v11466_v63, 0.0  ;;  %v11212_v47 = vadd.f32 %v11211_v5, %v11122_v12  ;;  %v19435_v12 = vld [vmem:[#allocation15 + $0x5] ss:$0 sm:$0xff] }
0x1253   : > { %v11338_v2 = vpop.f32.mrf.mxu0 }
0x1254   : > { %11530 = vst [vmem:[%s19326_s27 + $0x60] sm:$0xff] %v11498_v32  ;;  %v11399_v34 = vadd.f32 %v11338_v2, %v10826_v1 }
0x1256   : > { %v11433_v7 = vmul.f32 %v19315_v22, %v11399_v34 }
0x1258   : > { %v11467_v27 = vadd.f32 %v19318_v30, %v11433_v7  ;;  %v11124_v16 = vpop.f32.mrf.mxu3 }
0x1259   : > { %v11213_v52 = vpop.f32.mrf.mxu2 }
0x125a   : > { %v11499_v43 = vmax.f32 %v11467_v27, 0.0  ;;  %v11214_v41 = vadd.f32 %v11213_v52, %v11124_v16 }
0x125b   : > { %v11341_v10 = vpop.f32.mrf.mxu0 }
0x125c   : > { %11531 = vst [vmem:[%s19326_s27 + $0x68] sm:$0xff] %v11499_v43  ;;  %v11231_v15 = vpack.c.bf16 %v11214_v41, %v11212_v47  ;;  %v11400_v35 = vadd.f32 %v11341_v10, %v19303_v60  ;;  %v11556_v18 = vpack.c.bf16 %v11499_v43, %v11498_v32 }
0x125e   : > { %v11434_v11 = vmul.f32 %v19315_v22, %v11400_v35  ;;  %11380 = vmatmul.bf16.gmra.mxu0 %v11231_v15  ;;  %11669 = vmatmul.bf16.gmra.mxu1 %v11556_v18 }
0x1260   : > { %v11468_v42 = vadd.f32 %v19318_v30, %v11434_v11 }
0x1262   : > { %v11500_v23 = vmax.f32 %v11468_v42, 0.0 }
0x1263   : > { %v11343_v21 = vpop.f32.mrf.mxu0 }
0x1264   : > { %11532 = vst [vmem:[%s19326_s27 + $0x70] sm:$0xff] %v11500_v23  ;;  %v11401_v36 = vadd.f32 %v11343_v21, %v10828_v53  ;;  %v10834_v21 = vadd.f32 %v19341_v29, %v19185_v61 }
0x1266   : > { %v11435_v26 = vmul.f32 %v19315_v22, %v11401_v36 }
0x1268   : > { %v11469_v37 = vadd.f32 %v19318_v30, %v11435_v26 }
0x126a   : > { %v11501_v60 = vmax.f32 %v11469_v37, 0.0 }
0x126b   : > { %v11346_v24 = vpop.f32.mrf.mxu0 }
0x126c   : > { %11533 = vst [vmem:[%s19326_s27 + $0x78] sm:$0xff] %v11501_v60  ;;  %v11402_v38 = vadd.f32 %v11346_v24, %v19308_v56  ;;  %v11557_v33 = vpack.c.bf16 %v11501_v60, %v11500_v23 }
0x126e   : > { %v11436_v31 = vmul.f32 %v19315_v22, %v11402_v38  ;;  %11674 = vmatmul.bf16.gmra.mxu1 %v11557_v33 }
0x1270   : > { %v11470_v40 = vadd.f32 %v19318_v30, %v11436_v31 }
0x1272   : > { %v11502_v49 = vmax.f32 %v11470_v40, 0.0 }
0x1273   : > { %v11348_v20 = vpop.f32.mrf.mxu0 }
0x1274   : > { %11534 = vst [vmem:[%s19326_s27 + $0x80] sm:$0xff] %v11502_v49  ;;  %v11403_v59 = vadd.f32 %v11348_v20, %v10830_v19 }
0x1276   : > { %v11437_v50 = vmul.f32 %v19315_v22, %v11403_v59 }
0x1278   : > { %v11471_v56 = vadd.f32 %v19318_v30, %v11437_v50 }
0x127a   : > { %v11503_v63 = vmax.f32 %v11471_v56, 0.0  ;;  %v10836_v56 = vadd.f32 %v19354_v45, %v19197_v3 }
0x127b   : > { %v11351_v5 = vpop.f32.mrf.mxu0  ;;  %v11640_v9 = vpop.f32.mrf.mxu1 }
0x127c   : > { %11535 = vst [vmem:[%s19326_s27 + $0x88] sm:$0xff] %v11503_v63  ;;  %v11404_v51 = vadd.f32 %v11351_v5, %v19313_v25  ;;  %v11722_v17 = vmul.f32 %v19433_v48, %v11640_v9  ;;  %v11558_v1 = vpack.c.bf16 %v11503_v63, %v11502_v49  ;;  %v10832_v25 = vadd.f32 %v19328_v55, %v19173_v39 }
0x127e   : > { %v11438_v32 = vmul.f32 %v19315_v22, %v11404_v51  ;;  %v11756_v2 = vadd.f32 %v19435_v12, %v11722_v17  ;;  %11679 = vmatmul.bf16.gmra.mxu1 %v11558_v1 }
0x1280   : > { %v11472_v34 = vadd.f32 %v19318_v30, %v11438_v32  ;;  %11788 = vst [vmem:[%s19444_s6] sm:$0xff] %v11756_v2 }
0x1282   : > { %v11504_v7 = vmax.f32 %v11472_v34, 0.0 }
0x1283   : > { %v11353_v27 = vpop.f32.mrf.mxu0  ;;  %v11642_v16 = vpop.f32.mrf.mxu1 }
0x1284   : > { %11536 = vst [vmem:[%s19326_s27 + $0x90] sm:$0xff] %v11504_v7  ;;  %v11405_v52 = vadd.f32 %v11353_v27, %v10832_v25  ;;  %v11723_v47 = vmul.f32 %v19433_v48, %v11642_v16 }
0x1286   : > { %v11439_v43 = vmul.f32 %v19315_v22, %v11405_v52  ;;  %v11757_v41 = vadd.f32 %v19435_v12, %v11723_v47  ;;  %v10838_v47 = vadd.f32 %v19367_v46, %v19209_v13 }
0x1288   : > { %v11473_v10 = vadd.f32 %v19318_v30, %v11439_v43  ;;  %11789 = vst [vmem:[%s19444_s6 + $0x8] sm:$0xff] %v11757_v41 }
0x128a   : > { %v11505_v15 = vmax.f32 %v11473_v10, 0.0 }
0x128b   : > { %v11356_v35 = vpop.f32.mrf.mxu0  ;;  %v11645_v18 = vpop.f32.mrf.mxu1 }
0x128c   : > { %11537 = vst [vmem:[%s19326_s27 + $0x98] sm:$0xff] %v11505_v15  ;;  %v11406_v39 = vadd.f32 %v11356_v35, %v19335_v6  ;;  %v11724_v55 = vmul.f32 %v19433_v48, %v11645_v18  ;;  %v11559_v11 = vpack.c.bf16 %v11505_v15, %v11504_v7 }
0x128e   : > { %v11440_v42 = vmul.f32 %v19315_v22, %v11406_v39  ;;  %v11758_v53 = vadd.f32 %v19435_v12, %v11724_v55  ;;  %11684 = vmatmul.bf16.gmra.mxu1 %v11559_v11 }
0x1290   : > { %v11474_v23 = vadd.f32 %v19318_v30, %v11440_v42  ;;  %11790 = vst [vmem:[%s19444_s6 + $0x10] sm:$0xff] %v11758_v53 }
0x1292   : > { %v11506_v36 = vmax.f32 %v11474_v23, 0.0 }
0x1293   : > { %v11358_v26 = vpop.f32.mrf.mxu0  ;;  %v11647_v37 = vpop.f32.mrf.mxu1 }
0x1294   : > { %11538 = vst [vmem:[%s19326_s27 + $0xa0] sm:$0xff] %v11506_v36  ;;  %v11407_v6 = vadd.f32 %v11358_v26, %v10834_v21  ;;  %v11725_v60 = vmul.f32 %v19433_v48, %v11647_v37  ;;  %v10840_v26 = vadd.f32 %v19380_v57, %v19221_v44 }
0x1296   : > { %v11441_v24 = vmul.f32 %v19315_v22, %v11407_v6  ;;  %v11759_v38 = vadd.f32 %v19435_v12, %v11725_v60 }
0x1298   : > { %v11475_v33 = vadd.f32 %v19318_v30, %v11441_v24  ;;  %11791 = vst [vmem:[%s19444_s6 + $0x18] sm:$0xff] %v11759_v38 }
0x129a   : > { %v11507_v31 = vmax.f32 %v11475_v33, 0.0 }
0x129b   : > { %v11361_v40 = vpop.f32.mrf.mxu0  ;;  %v11650_v19 = vpop.f32.mrf.mxu1 }
0x129c   : > { %11539 = vst [vmem:[%s19326_s27 + $0xa8] sm:$0xff] %v11507_v31  ;;  %v11408_v61 = vadd.f32 %v11361_v40, %v19348_v28  ;;  %v11726_v29 = vmul.f32 %v19433_v48, %v11650_v19  ;;  %v11560_v49 = vpack.c.bf16 %v11507_v31, %v11506_v36 }
0x129e   : > { %v11442_v20 = vmul.f32 %v19315_v22, %v11408_v61  ;;  %v11760_v59 = vadd.f32 %v19435_v12, %v11726_v29  ;;  %11689 = vmatmul.bf16.gmra.mxu1 %v11560_v49 }
0x12a0   : > { %v11476_v50 = vadd.f32 %v19318_v30, %v11442_v20  ;;  %11792 = vst [vmem:[%s19444_s6 + $0x20] sm:$0xff] %v11760_v59 }
0x12a2   : > { %v11508_v63 = vmax.f32 %v11476_v50, 0.0  ;;  %v10842_v50 = vadd.f32 %v19394_v8, %v19233_v14 }
0x12a3   : > { %v11363_v5 = vpop.f32.mrf.mxu0  ;;  %v11652_v9 = vpop.f32.mrf.mxu1 }
0x12a4   : > { %11540 = vst [vmem:[%s19326_s27 + $0xb0] sm:$0xff] %v11508_v63  ;;  %v11409_v28 = vadd.f32 %v11363_v5, %v10836_v56  ;;  %v11727_v51 = vmul.f32 %v19433_v48, %v11652_v9 }
0x12a6   : > { %v11443_v17 = vmul.f32 %v19315_v22, %v11409_v28  ;;  %v11761_v1 = vadd.f32 %v19435_v12, %v11727_v51 }
0x12a8   : > { %v11477_v32 = vadd.f32 %v19318_v30, %v11443_v17  ;;  %11793 = vst [vmem:[%s19444_s6 + $0x28] sm:$0xff] %v11761_v1 }
0x12aa   : > { %v11509_v2 = vmax.f32 %v11477_v32, 0.0 }
0x12ab   : > { %v11366_v34 = vpop.f32.mrf.mxu0  ;;  %v11655_v25 = vpop.f32.mrf.mxu1 }
0x12ac   : > { %11541 = vst [vmem:[%s19326_s27 + $0xb8] sm:$0xff] %v11509_v2  ;;  %v11410_v3 = vadd.f32 %v11366_v34, %v19361_v4  ;;  %v11728_v45 = vmul.f32 %v19433_v48, %v11655_v25  ;;  %v11561_v7 = vpack.c.bf16 %v11509_v2, %v11508_v63 }
0x12ae   : > { %v11444_v27 = vmul.f32 %v19315_v22, %v11410_v3  ;;  %v11762_v16 = vadd.f32 %v19435_v12, %v11728_v45  ;;  %11694 = vmatmul.bf16.gmra.mxu1 %v11561_v7  ;;  %v19871_v7 = vld [vmem:[#allocation46_spill] sm:$0xff] }
0x12b0   : > { %v11478_v52 = vadd.f32 %v19318_v30, %v11444_v27  ;;  %11794 = vst [vmem:[%s19444_s6 + $0x30] sm:$0xff] %v11762_v16  ;;  %v10844_v27 = vadd.f32 %v19428_v0, %v19871_v7 }
0x12b2   : > { %v11510_v43 = vmax.f32 %v11478_v52, 0.0 }
0x12b3   : > { %v11368_v41 = vpop.f32.mrf.mxu0  ;;  %v11657_v10 = vpop.f32.mrf.mxu1 }
0x12b4   : > { %11542 = vst [vmem:[%s19326_s27 + $0xc0] sm:$0xff] %v11510_v43  ;;  %v11411_v4 = vadd.f32 %v11368_v41, %v10838_v47  ;;  %v11729_v15 = vmul.f32 %v19433_v48, %v11657_v10 }
0x12b6   : > { %v11445_v35 = vmul.f32 %v19315_v22, %v11411_v4  ;;  %v11763_v18 = vadd.f32 %v19435_v12, %v11729_v15 }
0x12b8   : > { %v11479_v39 = vadd.f32 %v19318_v30, %v11445_v35  ;;  %11795 = vst [vmem:[%s19444_s6 + $0x38] sm:$0xff] %v11763_v18 }
0x12ba   : > { %v11511_v55 = vmax.f32 %v11479_v39, 0.0 }
0x12bb   : > { %v11371_v11 = vpop.f32.mrf.mxu0  ;;  %v11660_v42 = vpop.f32.mrf.mxu1 }
0x12bc   : > { %11543 = vst [vmem:[%s19326_s27 + $0xc8] sm:$0xff] %v11511_v55  ;;  %v11412_v13 = vadd.f32 %v11371_v11, %v19374_v62  ;;  %v11730_v46 = vmul.f32 %v19433_v48, %v11660_v42  ;;  %v11562_v53 = vpack.c.bf16 %v11511_v55, %v11510_v43 }
0x12be   : > { %v11446_v23 = vmul.f32 %v19315_v22, %v11412_v13  ;;  %v11764_v21 = vadd.f32 %v19435_v12, %v11730_v46  ;;  %11699 = vmatmul.bf16.gmra.mxu1 %v11562_v53 }
0x12c0   : > { %v11480_v36 = vadd.f32 %v19318_v30, %v11446_v23  ;;  %11796 = vst [vmem:[%s19444_s6 + $0x40] sm:$0xff] %v11764_v21 }
0x12c2   : > { %v11512_v37 = vmax.f32 %v11480_v36, 0.0 }
0x12c3   : > { %v11373_v6 = vpop.f32.mrf.mxu0  ;;  %v11662_v60 = vpop.f32.mrf.mxu1 }
0x12c4   : > { %11544 = vst [vmem:[%s19326_s27 + $0xd0] sm:$0xff] %v11512_v37  ;;  %v11413_v62 = vadd.f32 %v11373_v6, %v10840_v26  ;;  %v11731_v24 = vmul.f32 %v19433_v48, %v11662_v60 }
0x12c6   : > { %v11447_v38 = vmul.f32 %v19315_v22, %v11413_v62  ;;  %v11765_v33 = vadd.f32 %v19435_v12, %v11731_v24 }
0x12c8   : > { %v11481_v31 = vadd.f32 %v19318_v30, %v11447_v38  ;;  %11797 = vst [vmem:[%s19444_s6 + $0x48] sm:$0xff] %v11765_v33 }
0x12ca   : > { %v11513_v40 = vmax.f32 %v11481_v31, 0.0 }
0x12cb   : > { %v11376_v19 = vpop.f32.mrf.mxu0  ;;  %v11665_v61 = vpop.f32.mrf.mxu1 }
0x12cc   : > { %11545 = vst [vmem:[%s19326_s27 + $0xd8] sm:$0xff] %v11513_v40  ;;  %v11414_v44 = vadd.f32 %v11376_v19, %v19388_v54  ;;  %v11732_v57 = vmul.f32 %v19433_v48, %v11665_v61  ;;  %v11563_v29 = vpack.c.bf16 %v11513_v40, %v11512_v37 }
0x12ce   : > { %v11448_v49 = vmul.f32 %v19315_v22, %v11414_v44  ;;  %v11766_v20 = vadd.f32 %v19435_v12, %v11732_v57  ;;  %11704 = vmatmul.bf16.gmra.mxu1 %v11563_v29 }
0x12d0   : > { %v11482_v59 = vadd.f32 %v19318_v30, %v11448_v49  ;;  %11798 = vst [vmem:[%s19444_s6 + $0x50] sm:$0xff] %v11766_v20 }
0x12d2   : > { %v11514_v56 = vmax.f32 %v11482_v59, 0.0 }
0x12d3   : > { %v11378_v63 = vpop.f32.mrf.mxu0  ;;  %v11667_v5 = vpop.f32.mrf.mxu1 }
0x12d4   : > { %11546 = vst [vmem:[%s19326_s27 + $0xe0] sm:$0xff] %v11514_v56  ;;  %v11415_v54 = vadd.f32 %v11378_v63, %v10842_v50  ;;  %v11733_v9 = vmul.f32 %v19433_v48, %v11667_v5 }
0x12d6   : > { %v11449_v28 = vmul.f32 %v19315_v22, %v11415_v54  ;;  %v11767_v51 = vadd.f32 %v19435_v12, %v11733_v9 }
0x12d8   : > { %v11483_v17 = vadd.f32 %v19318_v30, %v11449_v28  ;;  %11799 = vst [vmem:[%s19444_s6 + $0x58] sm:$0xff] %v11767_v51 }
0x12da   : > { %v11515_v1 = vmax.f32 %v11483_v17, 0.0 }
0x12db   : > { %v11381_v32 = vpop.f32.mrf.mxu0  ;;  %v11670_v2 = vpop.f32.mrf.mxu1 }
0x12dc   : > { %11547 = vst [vmem:[%s19326_s27 + $0xe8] sm:$0xff] %v11515_v1  ;;  %v11416_v14 = vadd.f32 %v11381_v32, %v19402_v58  ;;  %v11734_v8 = vmul.f32 %v19433_v48, %v11670_v2  ;;  %v11564_v34 = vpack.c.bf16 %v11515_v1, %v11514_v56 }
0x12de   : > { %v11450_v25 = vmul.f32 %v19315_v22, %v11416_v14  ;;  %v11768_v3 = vadd.f32 %v19435_v12, %v11734_v8  ;;  %11709 = vmatmul.bf16.gmra.mxu1 %v11564_v34 }
0x12e0   : > { %v11484_v45 = vadd.f32 %v19318_v30, %v11450_v25  ;;  %11800 = vst [vmem:[%s19444_s6 + $0x60] sm:$0xff] %v11768_v3 }
0x12e2   : > { %v11516_v16 = vmax.f32 %v11484_v45, 0.0 }
0x12e3   : > { %v11383_v52 = vpop.f32.mrf.mxu0  ;;  %v11672_v58 = vpop.f32.mrf.mxu1 }
0x12e4   : > { %11548 = vst [vmem:[%s19326_s27 + $0xf0] sm:$0xff] %v11516_v16  ;;  %v11417_v47 = vadd.f32 %v11383_v52, %v10844_v27  ;;  %v11735_v43 = vmul.f32 %v19433_v48, %v11672_v58 }
0x12e6   : > { %v11451_v41 = vmul.f32 %v19315_v22, %v11417_v47  ;;  %v11769_v10 = vadd.f32 %v19435_v12, %v11735_v43 }
0x12e8   : > { %v11485_v4 = vadd.f32 %v19318_v30, %v11451_v41  ;;  %11801 = vst [vmem:[%s19444_s6 + $0x68] sm:$0xff] %v11769_v10 }
0x12ea   : > { %v11517_v15 = vmax.f32 %v11485_v4, 0.0 }
0x12eb   : > { %v11675_v35 = vpop.f32.mrf.mxu1 }
0x12ec   : > { %11549 = vst [vmem:[%s19326_s27 + $0xf8] sm:$0xff] %v11517_v15  ;;  %v11736_v0 = vmul.f32 %v19433_v48, %v11675_v35  ;;  %v11565_v18 = vpack.c.bf16 %v11517_v15, %v11516_v16 }
0x12ee   : > { %v11770_v39 = vadd.f32 %v19435_v12, %v11736_v0  ;;  %11714 = vmatmul.bf16.gmra.mxu1 %v11565_v18 }
0x12f0   : > { %11802 = vst [vmem:[%s19444_s6 + $0x70] sm:$0xff] %v11770_v39 }
0x12f3   : > { %v11677_v22 = vpop.f32.mrf.mxu1 }
0x12f4   : > { %v11737_v55 = vmul.f32 %v19433_v48, %v11677_v22 }
0x12f6   : > { %v11771_v30 = vadd.f32 %v19435_v12, %v11737_v55 }
0x12f8   : > { %11803 = vst [vmem:[%s19444_s6 + $0x78] sm:$0xff] %v11771_v30 }
0x12f9   : > { %16630 = shalt.err (!%p16627_p8)
}
0x12fa   : > { %s16699_s17 = smov 128   ;;  %s16700_s27 = smov 8  }
0x12fb   : > { %16257 = dma.vmem_to_hbm [thread:$0]  (%p16804_p5), %s11852_s30, 256, %s11854_s10, %s11826_s29, %s16699_s17, %s16699_s17, %s16700_s27   ;;  %v11680_v11 = vpop.f32.mrf.mxu1 }
0x12fc   : > { %v11738_v42 = vmul.f32 %v19433_v48, %v11680_v11 }
0x12fe   : > { %v11772_v13 = vadd.f32 %v19435_v12, %v11738_v42 }
0x1300   : > { %11804 = vst [vmem:[%s19444_s6 + $0x80] sm:$0xff] %v11772_v13 }
0x1303   : > { %v11682_v46 = vpop.f32.mrf.mxu1 }
0x1304   : > { %v11739_v53 = vmul.f32 %v19433_v48, %v11682_v46 }
0x1306   : > { %v11773_v23 = vadd.f32 %v19435_v12, %v11739_v53 }
0x1308   : > { %11805 = vst [vmem:[%s19444_s6 + $0x88] sm:$0xff] %v11773_v23 }
0x130b   : > { %v11685_v21 = vpop.f32.mrf.mxu1 }
0x130c   : > { %v11740_v36 = vmul.f32 %v19433_v48, %v11685_v21 }
0x130e   : > { %v11774_v26 = vadd.f32 %v19435_v12, %v11740_v36 }
0x1310   : > { %11806 = vst [vmem:[%s19444_s6 + $0x90] sm:$0xff] %v11774_v26 }
0x1313   : > { %v11687_v37 = vpop.f32.mrf.mxu1 }
0x1314   : > { %v11741_v6 = vmul.f32 %v19433_v48, %v11687_v37 }
0x1316   : > { %v11775_v60 = vadd.f32 %v19435_v12, %v11741_v6 }
0x1318   : > { %11807 = vst [vmem:[%s19444_s6 + $0x98] sm:$0xff] %v11775_v60 }
0x131b   : > { %v11690_v62 = vpop.f32.mrf.mxu1 }
0x131c   : > { %v11742_v24 = vmul.f32 %v19433_v48, %v11690_v62 }
0x131e   : > { %v11776_v38 = vadd.f32 %v19435_v12, %v11742_v24 }
0x1320   : > { %11808 = vst [vmem:[%s19444_s6 + $0xa0] sm:$0xff] %v11776_v38 }
0x1323   : > { %v11692_v33 = vpop.f32.mrf.mxu1 }
0x1324   : > { %v11743_v31 = vmul.f32 %v19433_v48, %v11692_v33 }
0x1326   : > { %v11777_v40 = vadd.f32 %v19435_v12, %v11743_v31 }
0x1328   : > { %11809 = vst [vmem:[%s19444_s6 + $0xa8] sm:$0xff] %v11777_v40 }
0x132b   : > { %v11695_v19 = vpop.f32.mrf.mxu1 }
0x132c   : > { %v11744_v61 = vmul.f32 %v19433_v48, %v11695_v19 }
0x132e   : > { %v11778_v44 = vadd.f32 %v19435_v12, %v11744_v61 }
0x1330   : > { %11810 = vst [vmem:[%s19444_s6 + $0xb0] sm:$0xff] %v11778_v44 }
0x1333   : > { %v11697_v57 = vpop.f32.mrf.mxu1 }
0x1334   : > { %v11745_v29 = vmul.f32 %v19433_v48, %v11697_v57 }
0x1336   : > { %v11779_v49 = vadd.f32 %v19435_v12, %v11745_v29 }
0x1338   : > { %11811 = vst [vmem:[%s19444_s6 + $0xb8] sm:$0xff] %v11779_v49 }
0x133b   : > { %v11700_v20 = vpop.f32.mrf.mxu1 }
0x133c   : > { %v11746_v59 = vmul.f32 %v19433_v48, %v11700_v20 }
0x133e   : > { %v11780_v50 = vadd.f32 %v19435_v12, %v11746_v59 }
0x1340   : > { %11812 = vst [vmem:[%s19444_s6 + $0xc0] sm:$0xff] %v11780_v50 }
0x1343   : > { %v11702_v56 = vpop.f32.mrf.mxu1 }
0x1344   : > { %v11747_v63 = vmul.f32 %v19433_v48, %v11702_v56 }
0x1346   : > { %v11781_v5 = vadd.f32 %v19435_v12, %v11747_v63 }
0x1348   : > { %11813 = vst [vmem:[%s19444_s6 + $0xc8] sm:$0xff] %v11781_v5 }
0x134b   : > { %v11705_v54 = vpop.f32.mrf.mxu1 }
0x134c   : > { %v11748_v9 = vmul.f32 %v19433_v48, %v11705_v54 }
0x134e   : > { %v11782_v28 = vadd.f32 %v19435_v12, %v11748_v9 }
0x1350   : > { %11814 = vst [vmem:[%s19444_s6 + $0xd0] sm:$0xff] %v11782_v28 }
0x1353   : > { %v11707_v51 = vpop.f32.mrf.mxu1 }
0x1354   : > { %v11749_v17 = vmul.f32 %v19433_v48, %v11707_v51 }
0x1356   : > { %v11783_v1 = vadd.f32 %v19435_v12, %v11749_v17 }
0x1358   : > { %11815 = vst [vmem:[%s19444_s6 + $0xd8] sm:$0xff] %v11783_v1 }
0x135b   : > { %v11710_v32 = vpop.f32.mrf.mxu1 }
0x135c   : > { %v11750_v2 = vmul.f32 %v19433_v48, %v11710_v32 }
0x135e   : > { %v11784_v14 = vadd.f32 %v19435_v12, %v11750_v2 }
0x1360   : > { %11816 = vst [vmem:[%s19444_s6 + $0xe0] sm:$0xff] %v11784_v14 }
0x1363   : > { %v11712_v8 = vpop.f32.mrf.mxu1 }
0x1364   : > { %v11751_v34 = vmul.f32 %v19433_v48, %v11712_v8 }
0x1366   : > { %v11785_v25 = vadd.f32 %v19435_v12, %v11751_v34 }
0x1368   : > { %11817 = vst [vmem:[%s19444_s6 + $0xe8] sm:$0xff] %v11785_v25 }
0x136b   : > { %v11715_v3 = vpop.f32.mrf.mxu1 }
0x136c   : > { %v11752_v45 = vmul.f32 %v19433_v48, %v11715_v3 }
0x136e   : > { %v11786_v7 = vadd.f32 %v19435_v12, %v11752_v45 }
0x1370   : > { %11818 = vst [vmem:[%s19444_s6 + $0xf0] sm:$0xff] %v11786_v7 }
0x1373   : > { %v11717_v27 = vpop.f32.mrf.mxu1 }
0x1374   : > { %v11753_v16 = vmul.f32 %v19433_v48, %v11717_v27 }
0x1376   : > { %v11787_v52 = vadd.f32 %v19435_v12, %v11753_v16 }
0x1378   : > { %11819 = vst [vmem:[%s19444_s6 + $0xf8] sm:$0xff] %v11787_v52 }
0x1379 PF: > { %s19873_s13 = sld [smem:[#allocation26_spill]] }
0x137a   : > { %s19874_s20 = sld [smem:[#allocation24_spill]] }
0x137f   : > { %p16304_p5 = scmp.ge.s32.totalorder %s19873_s13, 2 }
0x1380   : > { %s11882_s30 = sand.u32 1, %s19874_s20  }
0x1381   : > { %p16285_p9 = pnand %p16304_p5, %p16808_p6  ;;  %s11883_s21 = scalar_lea.sflag [#allocation5], %s11882_s30 }
0x1383   : > { %p16286_p10 = pneg %p16285_p9 }
0x1385   : > { %16668 = dma.done.wait (%p16286_p10), %s11883_s21, 256  }
0x1386   : > { %16670 = vsyncadd (%p16286_p10), %s11883_s21, 4294967040  ;;  %s19876_s24 = sld [smem:[#allocation27_spill]]  ;;  %s19879_s21 = smov %s16677_s22 }
0x1387   : > { %s19877_s15 = sld [smem:[#allocation25_spill]] }
0x1388   : > { %s19878_s23 = sld [smem:[#allocation28_spill]] }
0x138c   : > { %p28_p11 = scmp.ge.s32.totalorder %s19876_s24, 4  }
0x138d   : > { %s19880_s22 = smov %s19877_s15 }
0x138e   :  { %30 = sbr.rel (!%p28_p11) target bundleno = 13 (0xd), region = 231 }
0x1393   :  { %11905 = vsyncpa [#allocation4], 1 }
0x1394   :  { %11907 = vsyncpa [#allocation4 + $0x1], 1 }
0x1395   :  { %11908 = vsyncpa [#allocation7], 1 }
0x1396   :  { %11909 = vsyncpa [#allocation10], 1 }
0x1397   :  { %11910 = vsyncpa [#allocation13], 1 }
0x1398   :  { %11911 = vsyncpa [#allocation16], 1 }
0x1399   :  { %11912 = vsyncpa [#allocation5], 1 }
0x139a   :  { %11914 = vsyncpa [#allocation5 + $0x1], 1 }

</bundles_post_ra>
